<compile_context>
chip_gen: v6e
topology: v6e:2x2x1
jax: 0.10.0
libtpu: 0.0.40
codegen_flags: <defaults>
</compile_context>

<pallas_src>
import math
import functools

import jax
import jax.numpy as jnp
import numpy as np
from jax.experimental import pallas as pl
from jax.experimental.pallas import tpu as pltpu

# ---- module hyper-parameters (small, consistent with the module) -------------
D_MODEL = 32
N_HEADS = 4
D_K = D_MODEL // N_HEADS          # 8
LOCAL_WINDOW = 32                 # local attention window size
GLOBAL_WINDOW = 16                # stride for global down-sampling
LN_EPS = 1e-5                     # PyTorch nn.LayerNorm default
SCALE = 1.0 / math.sqrt(D_K)


# ---------------------------- fused Pallas kernel ------------------------------
def _attn_ctx(q_h, k_h, v_h):
    """softmax(q k^T) v for one head block.  `q_h` is already scaled by 1/sqrt(dk)."""
    s = jax.lax.dot_general(q_h, k_h, (((1,), (1,)), ((), ())),
                            preferred_element_type=jnp.float32)       # (Lq, Lk)
    s = s - jnp.max(s, axis=-1, keepdims=True)
    p = jnp.exp(s)
    p = p / jnp.sum(p, axis=-1, keepdims=True)
    return jnp.dot(p, v_h, preferred_element_type=jnp.float32)        # (Lq, D_K)


def _fused_kernel(x_ref, wqkv_l_ref, bqkv_l_ref, wqkv_g_ref, bqkv_g_ref,
                  wo_ref, bo_ref, gamma_ref, beta_ref, o_ref, ctx_ref,
                  *, global_len):
    """Per-batch fused hierarchical attention.  x_ref: (1, S_pad, D)."""
    S_pad, D = x_ref.shape[1], x_ref.shape[2]
    W = LOCAL_WINDOW
    n_win = S_pad // W
    G = global_len

    x = x_ref[0]                                                       # (S_pad, D)

    # ---- packed QKV projections: one (S,32)@(32,96) matmul per branch ----
    qkv_l = (jnp.dot(x, wqkv_l_ref[...], preferred_element_type=jnp.float32)
             + bqkv_l_ref[0])
    qkv_g = (jnp.dot(x, wqkv_g_ref[...], preferred_element_type=jnp.float32)
             + bqkv_g_ref[0])

    q_l = qkv_l[:, :D] * SCALE                                         # scale folded once
    k_l = qkv_l[:, D:2 * D]
    v_l = qkv_l[:, 2 * D:]
    q_g = qkv_g[:, :D] * SCALE                                         # (S_pad, D)

    # Global K/V are rows 0, 16, 32, ... of the full global projection (the
    # projection is row-wise linear).  Extract them with a tiny one-hot
    # selection matmul (no strided ref read, no second projection matmul).
    row = jax.lax.broadcasted_iota(jnp.int32, (G, S_pad), 0)
    col = jax.lax.broadcasted_iota(jnp.int32, (G, S_pad), 1)
    sel = (col == row * GLOBAL_WINDOW).astype(jnp.float32)             # (G, S_pad)
    kv_g = jnp.dot(sel, qkv_g[:, D:], preferred_element_type=jnp.float32)  # (G, 2D)
    k_g, v_g = kv_g[:, :D], kv_g[:, D:]

    # ---- per-head attention, contexts written straight into the lane-packed
    #      (S_pad, 2D) scratch:  cols [0,D) = local ctx, cols [D,2D) = global ctx.
    for h in range(N_HEADS):                                           # static unroll
        hs = slice(h * D_K, (h + 1) * D_K)
        qh, kh, vh = q_l[:, hs], k_l[:, hs], v_l[:, hs]
        for w in range(n_win):                                         # static unroll
            rs = slice(w * W, (w + 1) * W)
            ctx_ref[pl.ds(w * W, W), pl.ds(h * D_K, D_K)] = _attn_ctx(
                qh[rs], kh[rs], vh[rs])
        ctx_ref[:, pl.ds(D + h * D_K, D_K)] = _attn_ctx(
            q_g[:, hs], k_g[:, hs], v_g[:, hs])

    # ---- single packed output projection (K = 2D) + residual + LayerNorm ----
    proj = (jnp.dot(ctx_ref[...], wo_ref[...], preferred_element_type=jnp.float32)
            + bo_ref[0])
    y = x + proj
    mean = jnp.mean(y, axis=-1, keepdims=True)
    var = jnp.mean((y - mean) ** 2, axis=-1, keepdims=True)
    normed = (y - mean) * jax.lax.rsqrt(var + LN_EPS)
    o_ref[0] = (normed * gamma_ref[0] + beta_ref[0]).astype(o_ref.dtype)


# ------------------------------ wrapper ---------------------------------------
def hierarchical_attention(x, params):
    B, S, D = x.shape
    W = LOCAL_WINDOW
    pad = (W - S % W) % W
    x_pad = jnp.pad(x, ((0, 0), (0, pad), (0, 0))) if pad > 0 else x
    S_pad = S + pad
    G = -(-S // GLOBAL_WINDOW)   # ceil(S / stride); same rows the reference takes

    def rep(shape):
        return pl.BlockSpec(shape, lambda b: (0, 0))

    out_pad = pl.pallas_call(
        functools.partial(_fused_kernel, global_len=G),
        out_shape=jax.ShapeDtypeStruct((B, S_pad, D), x.dtype),
        grid=(B,),
        in_specs=[
            pl.BlockSpec((1, S_pad, D), lambda b: (b, 0, 0)),
            rep((D, 3 * D)), rep((1, 3 * D)),
            rep((D, 3 * D)), rep((1, 3 * D)),
            rep((2 * D, D)), rep((1, D)),
            rep((1, D)), rep((1, D)),
        ],
        out_specs=pl.BlockSpec((1, S_pad, D), lambda b: (b, 0, 0)),
        scratch_shapes=[pltpu.VMEM((S_pad, 2 * D), jnp.float32)],
        compiler_params=pltpu.CompilerParams(
            dimension_semantics=("parallel",)),
    )(x_pad,
      params["wqkv_l"], params["bqkv_l"],
      params["wqkv_g"], params["bqkv_g"],
      params["wo_packed"], params["bo"],
      params["gamma"], params["beta"])
    return out_pad[:, :S] if pad > 0 else out_pad


# -------------------------- deterministic params -------------------------------
def init_params(key, d_model=D_MODEL):
    """nn.Linear-style uniform(-1/sqrt(fan_in), 1/sqrt(fan_in)) init.

    Weights are stored in (in_features, out_features) layout so kernels compute
    y = x @ W + b (equivalent to PyTorch's x @ W_pt.T + b).  Q/K/V weights are
    packed into (D, 3D); the output projection stays packed as (2D, D).
    """
    keys = jax.random.split(key, 16)
    p = {}

    def lin(kw, kb, fan_in, fan_out):
        b_ = 1.0 / math.sqrt(fan_in)
        w = jax.random.uniform(kw, (fan_in, fan_out), jnp.float32, -b_, b_)
        b = jax.random.uniform(kb, (1, fan_out), jnp.float32, -b_, b_)
        return w, b

    p["wq_l"], p["bq_l"] = lin(keys[0], keys[1], d_model, d_model)
    p["wk_l"], p["bk_l"] = lin(keys[2], keys[3], d_model, d_model)
    p["wv_l"], p["bv_l"] = lin(keys[4], keys[5], d_model, d_model)
    p["wq_g"], p["bq_g"] = lin(keys[6], keys[7], d_model, d_model)
    p["wk_g"], p["bk_g"] = lin(keys[8], keys[9], d_model, d_model)
    p["wv_g"], p["bv_g"] = lin(keys[10], keys[11], d_model, d_model)
    wo, bo = lin(keys[12], keys[13], 2 * d_model, d_model)   # (2D, D)
    p["wo_local"] = wo[:d_model]
    p["wo_global"] = wo[d_model:]
    p["wo_packed"] = wo                                      # (2D, D) used by kernel
    p["bo"] = bo
    p["gamma"] = jnp.ones((1, d_model), jnp.float32)
    p["beta"] = jnp.zeros((1, d_model), jnp.float32)

    # packed QKV weights / biases for the fused kernel
    p["wqkv_l"] = jnp.concatenate([p["wq_l"], p["wk_l"], p["wv_l"]], axis=1)
    p["bqkv_l"] = jnp.concatenate([p["bq_l"], p["bk_l"], p["bv_l"]], axis=1)
    p["wqkv_g"] = jnp.concatenate([p["wq_g"], p["wk_g"], p["wv_g"]], axis=1)
    p["bqkv_g"] = jnp.concatenate([p["bq_g"], p["bk_g"], p["bv_g"]], axis=1)
    return p


# ------------------------------ pure-JAX reference -----------------------------
def reference(x, p):
    B, S, D = x.shape

    def heads(t):
        b_, l_, _ = t.shape
        return t.reshape(b_, l_, N_HEADS, D_K).transpose(0, 2, 1, 3)

    # local
    W = LOCAL_WINDOW
    pad = (W - S % W) % W
    xp = jnp.pad(x, ((0, 0), (0, pad), (0, 0))) if pad else x
    outs = []
    for i in range((S + pad) // W):
        win = xp[:, i * W:(i + 1) * W]
        q = heads(win @ p["wq_l"] + p["bq_l"][0])
        k = heads(win @ p["wk_l"] + p["bk_l"][0])
        v = heads(win @ p["wv_l"] + p["bv_l"][0])
        s = jnp.einsum("bhqd,bhkd->bhqk", q, k) * SCALE
        a = jax.nn.softmax(s, axis=-1)
        o = jnp.einsum("bhqk,bhkd->bhqd", a, v)
        outs.append(o.transpose(0, 2, 1, 3).reshape(B, W, D))
    local = jnp.concatenate(outs, axis=1)[:, :S]

    # global
    g = x[:, ::GLOBAL_WINDOW]
    q = heads(x @ p["wq_g"] + p["bq_g"][0])
    k = heads(g @ p["wk_g"] + p["bk_g"][0])
    v = heads(g @ p["wv_g"] + p["bv_g"][0])
    s = jnp.einsum("bhqd,bhkd->bhqk", q, k) * SCALE
    a = jax.nn.softmax(s, axis=-1)
    glob = jnp.einsum("bhqk,bhkd->bhqd", a, v).transpose(0, 2, 1, 3).reshape(B, S, D)

    comb = local @ p["wo_local"] + glob @ p["wo_global"] + p["bo"][0]
    y = x + comb
    mean = y.mean(-1, keepdims=True)
    var = ((y - mean) ** 2).mean(-1, keepdims=True)
    return (y - mean) / jnp.sqrt(var + LN_EPS) * p["gamma"][0] + p["beta"][0]


# ----------------------------------- main ---------------------------------------
if __name__ == "__main__":
    key = jax.random.PRNGKey(0)
    k_x, k_p = jax.random.split(key)

    B, S = 2, 128
    x = jax.random.normal(k_x, (B, S, D_MODEL), dtype=jnp.float32)
    params = init_params(k_p)

    out = hierarchical_attention(x, params)
    out = jax.block_until_ready(out)

    ref = jax.block_until_ready(reference(x, params))
    np.testing.assert_allclose(np.asarray(out), np.asarray(ref),
                               rtol=2e-2, atol=2e-2)

    print("KERNEL_OK")
</pallas_src>

<mosaic_0001>
module attributes {stable_mosaic.version = 11 : i64} {
  func.func @_fused_kernel(%arg0: i32, %arg1: memref<1x128x32xf32, #tpu.memory_space<vmem>>, %arg2: memref<32x96xf32, #tpu.memory_space<vmem>>, %arg3: memref<1x96xf32, #tpu.memory_space<vmem>>, %arg4: memref<32x96xf32, #tpu.memory_space<vmem>>, %arg5: memref<1x96xf32, #tpu.memory_space<vmem>>, %arg6: memref<64x32xf32, #tpu.memory_space<vmem>>, %arg7: memref<1x32xf32, #tpu.memory_space<vmem>>, %arg8: memref<1x32xf32, #tpu.memory_space<vmem>>, %arg9: memref<1x32xf32, #tpu.memory_space<vmem>>, %arg10: memref<1x128x32xf32, #tpu.memory_space<vmem>>, %arg11: memref<128x64xf32, #tpu.memory_space<vmem>>) attributes {dimension_semantics = [#tpu.dimension_semantics<parallel>], iteration_bounds = array<i64: 2>, scalar_prefetch = 0 : i64, scratch_operands = 1 : i64, tpu.core_type = #tpu.core_type<tc>, window_params = [{transform_indices = @transform_0, window_bounds = array<i64: 1, 128, 32>}, {pipeline_mode = #tpu.pipeline_mode<synchronous>, transform_indices = @transform_1, window_bounds = array<i64: 32, 96>}, {pipeline_mode = #tpu.pipeline_mode<synchronous>, transform_indices = @transform_2, window_bounds = array<i64: 1, 96>}, {pipeline_mode = #tpu.pipeline_mode<synchronous>, transform_indices = @transform_3, window_bounds = array<i64: 32, 96>}, {pipeline_mode = #tpu.pipeline_mode<synchronous>, transform_indices = @transform_4, window_bounds = array<i64: 1, 96>}, {pipeline_mode = #tpu.pipeline_mode<synchronous>, transform_indices = @transform_5, window_bounds = array<i64: 64, 32>}, {pipeline_mode = #tpu.pipeline_mode<synchronous>, transform_indices = @transform_6, window_bounds = array<i64: 1, 32>}, {pipeline_mode = #tpu.pipeline_mode<synchronous>, transform_indices = @transform_7, window_bounds = array<i64: 1, 32>}, {pipeline_mode = #tpu.pipeline_mode<synchronous>, transform_indices = @transform_8, window_bounds = array<i64: 1, 32>}, {transform_indices = @transform_9, window_bounds = array<i64: 1, 128, 32>}]} {
    %c0 = arith.constant 0 : index
    %c0_0 = arith.constant 0 : index
    %c0_1 = arith.constant 0 : index
    %0 = vector.load %arg1[%c0, %c0_0, %c0_1] : memref<1x128x32xf32, #tpu.memory_space<vmem>>, vector<1x128x32xf32>
    %1 = vector.shape_cast %0 : vector<1x128x32xf32> to vector<128x32xf32>
    %c0_2 = arith.constant 0 : index
    %c0_3 = arith.constant 0 : index
    %2 = vector.load %arg2[%c0_2, %c0_3] : memref<32x96xf32, #tpu.memory_space<vmem>>, vector<32x96xf32>
    %cst = arith.constant dense<0.000000e+00> : vector<128x96xf32>
    %3 = tpu.matmul %1, %2, %cst {dimension_numbers = #tpu.dot_dimension_numbers<[1], [0], [0], [1], [0, 0, 1, 1], [], []>} : vector<128x32xf32>, vector<32x96xf32>, vector<128x96xf32> -> vector<128x96xf32>
    %c0_4 = arith.constant 0 : index
    %c0_5 = arith.constant 0 : index
    %4 = vector.load %arg3[%c0_4, %c0_5] : memref<1x96xf32, #tpu.memory_space<vmem>>, vector<1x96xf32>
    %5 = vector.shape_cast %4 : vector<1x96xf32> to vector<96xf32>
    %6 = vector.shape_cast %5 : vector<96xf32> to vector<1x96xf32>
    %7 = vector.broadcast %6 : vector<1x96xf32> to vector<128x96xf32>
    %8 = arith.addf %3, %7 : vector<128x96xf32>
    %c0_6 = arith.constant 0 : index
    %c0_7 = arith.constant 0 : index
    %9 = vector.load %arg4[%c0_6, %c0_7] : memref<32x96xf32, #tpu.memory_space<vmem>>, vector<32x96xf32>
    %cst_8 = arith.constant dense<0.000000e+00> : vector<128x96xf32>
    %10 = tpu.matmul %1, %9, %cst_8 {dimension_numbers = #tpu.dot_dimension_numbers<[1], [0], [0], [1], [0, 0, 1, 1], [], []>} : vector<128x32xf32>, vector<32x96xf32>, vector<128x96xf32> -> vector<128x96xf32>
    %c0_9 = arith.constant 0 : index
    %c0_10 = arith.constant 0 : index
    %11 = vector.load %arg5[%c0_9, %c0_10] : memref<1x96xf32, #tpu.memory_space<vmem>>, vector<1x96xf32>
    %12 = vector.shape_cast %11 : vector<1x96xf32> to vector<96xf32>
    %13 = vector.shape_cast %12 : vector<96xf32> to vector<1x96xf32>
    %14 = vector.broadcast %13 : vector<1x96xf32> to vector<128x96xf32>
    %15 = arith.addf %10, %14 : vector<128x96xf32>
    %16 = vector.extract_strided_slice %8 {offsets = [0, 0], sizes = [128, 32], strides = [1, 1]} : vector<128x96xf32> to vector<128x32xf32>
    %cst_11 = arith.constant 0.353553385 : f32
    %17 = vector.broadcast %cst_11 : f32 to vector<128x32xf32>
    %18 = arith.mulf %16, %17 : vector<128x32xf32>
    %19 = vector.extract_strided_slice %8 {offsets = [0, 32], sizes = [128, 32], strides = [1, 1]} : vector<128x96xf32> to vector<128x32xf32>
    %20 = vector.extract_strided_slice %8 {offsets = [0, 64], sizes = [128, 32], strides = [1, 1]} : vector<128x96xf32> to vector<128x32xf32>
    %21 = vector.extract_strided_slice %15 {offsets = [0, 0], sizes = [128, 32], strides = [1, 1]} : vector<128x96xf32> to vector<128x32xf32>
    %cst_12 = arith.constant 0.353553385 : f32
    %22 = vector.broadcast %cst_12 : f32 to vector<128x32xf32>
    %23 = arith.mulf %21, %22 : vector<128x32xf32>
    %24 = tpu.iota {dimensions = array<i32: 0>} : vector<8x128xi32>
    %25 = tpu.iota {dimensions = array<i32: 1>} : vector<8x128xi32>
    %c16_i32 = arith.constant 16 : i32
    %26 = vector.broadcast %c16_i32 : i32 to vector<8x128xi32>
    %27 = arith.muli %24, %26 : vector<8x128xi32>
    %28 = arith.cmpi eq, %25, %27 : vector<8x128xi32>
    %29 = arith.extui %28 : vector<8x128xi1> to vector<8x128xi32>
    %30 = arith.sitofp %29 : vector<8x128xi32> to vector<8x128xf32>
    %31 = vector.extract_strided_slice %15 {offsets = [0, 32], sizes = [128, 64], strides = [1, 1]} : vector<128x96xf32> to vector<128x64xf32>
    %cst_13 = arith.constant dense<0.000000e+00> : vector<8x64xf32>
    %32 = tpu.matmul %30, %31, %cst_13 {dimension_numbers = #tpu.dot_dimension_numbers<[1], [0], [0], [1], [0, 0, 1, 1], [], []>} : vector<8x128xf32>, vector<128x64xf32>, vector<8x64xf32> -> vector<8x64xf32>
    %33 = vector.extract_strided_slice %32 {offsets = [0, 0], sizes = [8, 32], strides = [1, 1]} : vector<8x64xf32> to vector<8x32xf32>
    %34 = vector.extract_strided_slice %32 {offsets = [0, 32], sizes = [8, 32], strides = [1, 1]} : vector<8x64xf32> to vector<8x32xf32>
    %35 = vector.extract_strided_slice %18 {offsets = [0, 0], sizes = [128, 8], strides = [1, 1]} : vector<128x32xf32> to vector<128x8xf32>
    %36 = vector.extract_strided_slice %19 {offsets = [0, 0], sizes = [128, 8], strides = [1, 1]} : vector<128x32xf32> to vector<128x8xf32>
    %37 = vector.extract_strided_slice %20 {offsets = [0, 0], sizes = [128, 8], strides = [1, 1]} : vector<128x32xf32> to vector<128x8xf32>
    %38 = vector.extract_strided_slice %35 {offsets = [0, 0], sizes = [32, 8], strides = [1, 1]} : vector<128x8xf32> to vector<32x8xf32>
    %39 = vector.extract_strided_slice %36 {offsets = [0, 0], sizes = [32, 8], strides = [1, 1]} : vector<128x8xf32> to vector<32x8xf32>
    %40 = vector.extract_strided_slice %37 {offsets = [0, 0], sizes = [32, 8], strides = [1, 1]} : vector<128x8xf32> to vector<32x8xf32>
    %cst_14 = arith.constant dense<0.000000e+00> : vector<32x32xf32>
    %41 = tpu.matmul %38, %39, %cst_14 {dimension_numbers = #tpu.dot_dimension_numbers<[1], [1], [0], [0], [0, 0, 1, 0], [], []>} : vector<32x8xf32>, vector<32x8xf32>, vector<32x32xf32> -> vector<32x32xf32>
    %cst_15 = arith.constant dense<0xFF800000> : vector<32xf32>
    %42 = vector.multi_reduction <maximumf>, %41, %cst_15 [1] : vector<32x32xf32> to vector<32xf32>
    %43 = vector.shape_cast %42 : vector<32xf32> to vector<32x1xf32>
    %44 = vector.broadcast %43 : vector<32x1xf32> to vector<32x32xf32>
    %45 = arith.subf %41, %44 : vector<32x32xf32>
    %46 = math.exp %45 : vector<32x32xf32>
    %cst_16 = arith.constant dense<0.000000e+00> : vector<32xf32>
    %47 = vector.multi_reduction <add>, %46, %cst_16 [1] : vector<32x32xf32> to vector<32xf32>
    %48 = vector.shape_cast %47 : vector<32xf32> to vector<32x1xf32>
    %49 = vector.broadcast %48 : vector<32x1xf32> to vector<32x32xf32>
    %50 = arith.divf %46, %49 : vector<32x32xf32>
    %cst_17 = arith.constant dense<0.000000e+00> : vector<32x8xf32>
    %51 = tpu.matmul %50, %40, %cst_17 {dimension_numbers = #tpu.dot_dimension_numbers<[1], [0], [0], [1], [0, 0, 1, 1], [], []>} : vector<32x32xf32>, vector<32x8xf32>, vector<32x8xf32> -> vector<32x8xf32>
    %c0_18 = arith.constant 0 : index
    %c0_19 = arith.constant 0 : index
    %52 = vector.load %arg11[%c0_18, %c0_19] : memref<128x64xf32, #tpu.memory_space<vmem>>, vector<32x8xf32>
    tpu.vector_store %arg11[%c0_18, %c0_19], %51 {strides = array<i32>} : memref<128x64xf32, #tpu.memory_space<vmem>>, vector<32x8xf32>,
    %53 = vector.extract_strided_slice %35 {offsets = [32, 0], sizes = [32, 8], strides = [1, 1]} : vector<128x8xf32> to vector<32x8xf32>
    %54 = vector.extract_strided_slice %36 {offsets = [32, 0], sizes = [32, 8], strides = [1, 1]} : vector<128x8xf32> to vector<32x8xf32>
    %55 = vector.extract_strided_slice %37 {offsets = [32, 0], sizes = [32, 8], strides = [1, 1]} : vector<128x8xf32> to vector<32x8xf32>
    %cst_20 = arith.constant dense<0.000000e+00> : vector<32x32xf32>
    %56 = tpu.matmul %53, %54, %cst_20 {dimension_numbers = #tpu.dot_dimension_numbers<[1], [1], [0], [0], [0, 0, 1, 0], [], []>} : vector<32x8xf32>, vector<32x8xf32>, vector<32x32xf32> -> vector<32x32xf32>
    %cst_21 = arith.constant dense<0xFF800000> : vector<32xf32>
    %57 = vector.multi_reduction <maximumf>, %56, %cst_21 [1] : vector<32x32xf32> to vector<32xf32>
    %58 = vector.shape_cast %57 : vector<32xf32> to vector<32x1xf32>
    %59 = vector.broadcast %58 : vector<32x1xf32> to vector<32x32xf32>
    %60 = arith.subf %56, %59 : vector<32x32xf32>
    %61 = math.exp %60 : vector<32x32xf32>
    %cst_22 = arith.constant dense<0.000000e+00> : vector<32xf32>
    %62 = vector.multi_reduction <add>, %61, %cst_22 [1] : vector<32x32xf32> to vector<32xf32>
    %63 = vector.shape_cast %62 : vector<32xf32> to vector<32x1xf32>
    %64 = vector.broadcast %63 : vector<32x1xf32> to vector<32x32xf32>
    %65 = arith.divf %61, %64 : vector<32x32xf32>
    %cst_23 = arith.constant dense<0.000000e+00> : vector<32x8xf32>
    %66 = tpu.matmul %65, %55, %cst_23 {dimension_numbers = #tpu.dot_dimension_numbers<[1], [0], [0], [1], [0, 0, 1, 1], [], []>} : vector<32x32xf32>, vector<32x8xf32>, vector<32x8xf32> -> vector<32x8xf32>
    %c32 = arith.constant 32 : index
    %c0_24 = arith.constant 0 : index
    %67 = vector.load %arg11[%c32, %c0_24] : memref<128x64xf32, #tpu.memory_space<vmem>>, vector<32x8xf32>
    tpu.vector_store %arg11[%c32, %c0_24], %66 {strides = array<i32>} : memref<128x64xf32, #tpu.memory_space<vmem>>, vector<32x8xf32>,
    %68 = vector.extract_strided_slice %35 {offsets = [64, 0], sizes = [32, 8], strides = [1, 1]} : vector<128x8xf32> to vector<32x8xf32>
    %69 = vector.extract_strided_slice %36 {offsets = [64, 0], sizes = [32, 8], strides = [1, 1]} : vector<128x8xf32> to vector<32x8xf32>
    %70 = vector.extract_strided_slice %37 {offsets = [64, 0], sizes = [32, 8], strides = [1, 1]} : vector<128x8xf32> to vector<32x8xf32>
    %cst_25 = arith.constant dense<0.000000e+00> : vector<32x32xf32>
    %71 = tpu.matmul %68, %69, %cst_25 {dimension_numbers = #tpu.dot_dimension_numbers<[1], [1], [0], [0], [0, 0, 1, 0], [], []>} : vector<32x8xf32>, vector<32x8xf32>, vector<32x32xf32> -> vector<32x32xf32>
    %cst_26 = arith.constant dense<0xFF800000> : vector<32xf32>
    %72 = vector.multi_reduction <maximumf>, %71, %cst_26 [1] : vector<32x32xf32> to vector<32xf32>
    %73 = vector.shape_cast %72 : vector<32xf32> to vector<32x1xf32>
    %74 = vector.broadcast %73 : vector<32x1xf32> to vector<32x32xf32>
    %75 = arith.subf %71, %74 : vector<32x32xf32>
    %76 = math.exp %75 : vector<32x32xf32>
    %cst_27 = arith.constant dense<0.000000e+00> : vector<32xf32>
    %77 = vector.multi_reduction <add>, %76, %cst_27 [1] : vector<32x32xf32> to vector<32xf32>
    %78 = vector.shape_cast %77 : vector<32xf32> to vector<32x1xf32>
    %79 = vector.broadcast %78 : vector<32x1xf32> to vector<32x32xf32>
    %80 = arith.divf %76, %79 : vector<32x32xf32>
    %cst_28 = arith.constant dense<0.000000e+00> : vector<32x8xf32>
    %81 = tpu.matmul %80, %70, %cst_28 {dimension_numbers = #tpu.dot_dimension_numbers<[1], [0], [0], [1], [0, 0, 1, 1], [], []>} : vector<32x32xf32>, vector<32x8xf32>, vector<32x8xf32> -> vector<32x8xf32>
    %c64 = arith.constant 64 : index
    %c0_29 = arith.constant 0 : index
    %82 = vector.load %arg11[%c64, %c0_29] : memref<128x64xf32, #tpu.memory_space<vmem>>, vector<32x8xf32>
    tpu.vector_store %arg11[%c64, %c0_29], %81 {strides = array<i32>} : memref<128x64xf32, #tpu.memory_space<vmem>>, vector<32x8xf32>,
    %83 = vector.extract_strided_slice %35 {offsets = [96, 0], sizes = [32, 8], strides = [1, 1]} : vector<128x8xf32> to vector<32x8xf32>
    %84 = vector.extract_strided_slice %36 {offsets = [96, 0], sizes = [32, 8], strides = [1, 1]} : vector<128x8xf32> to vector<32x8xf32>
    %85 = vector.extract_strided_slice %37 {offsets = [96, 0], sizes = [32, 8], strides = [1, 1]} : vector<128x8xf32> to vector<32x8xf32>
    %cst_30 = arith.constant dense<0.000000e+00> : vector<32x32xf32>
    %86 = tpu.matmul %83, %84, %cst_30 {dimension_numbers = #tpu.dot_dimension_numbers<[1], [1], [0], [0], [0, 0, 1, 0], [], []>} : vector<32x8xf32>, vector<32x8xf32>, vector<32x32xf32> -> vector<32x32xf32>
    %cst_31 = arith.constant dense<0xFF800000> : vector<32xf32>
    %87 = vector.multi_reduction <maximumf>, %86, %cst_31 [1] : vector<32x32xf32> to vector<32xf32>
    %88 = vector.shape_cast %87 : vector<32xf32> to vector<32x1xf32>
    %89 = vector.broadcast %88 : vector<32x1xf32> to vector<32x32xf32>
    %90 = arith.subf %86, %89 : vector<32x32xf32>
    %91 = math.exp %90 : vector<32x32xf32>
    %cst_32 = arith.constant dense<0.000000e+00> : vector<32xf32>
    %92 = vector.multi_reduction <add>, %91, %cst_32 [1] : vector<32x32xf32> to vector<32xf32>
    %93 = vector.shape_cast %92 : vector<32xf32> to vector<32x1xf32>
    %94 = vector.broadcast %93 : vector<32x1xf32> to vector<32x32xf32>
    %95 = arith.divf %91, %94 : vector<32x32xf32>
    %cst_33 = arith.constant dense<0.000000e+00> : vector<32x8xf32>
    %96 = tpu.matmul %95, %85, %cst_33 {dimension_numbers = #tpu.dot_dimension_numbers<[1], [0], [0], [1], [0, 0, 1, 1], [], []>} : vector<32x32xf32>, vector<32x8xf32>, vector<32x8xf32> -> vector<32x8xf32>
    %c96 = arith.constant 96 : index
    %c0_34 = arith.constant 0 : index
    %97 = vector.load %arg11[%c96, %c0_34] : memref<128x64xf32, #tpu.memory_space<vmem>>, vector<32x8xf32>
    tpu.vector_store %arg11[%c96, %c0_34], %96 {strides = array<i32>} : memref<128x64xf32, #tpu.memory_space<vmem>>, vector<32x8xf32>,
    %98 = vector.extract_strided_slice %23 {offsets = [0, 0], sizes = [128, 8], strides = [1, 1]} : vector<128x32xf32> to vector<128x8xf32>
    %99 = vector.extract_strided_slice %33 {offsets = [0, 0], sizes = [8, 8], strides = [1, 1]} : vector<8x32xf32> to vector<8x8xf32>
    %100 = vector.extract_strided_slice %34 {offsets = [0, 0], sizes = [8, 8], strides = [1, 1]} : vector<8x32xf32> to vector<8x8xf32>
    %cst_35 = arith.constant dense<0.000000e+00> : vector<128x8xf32>
    %101 = tpu.matmul %98, %99, %cst_35 {dimension_numbers = #tpu.dot_dimension_numbers<[1], [1], [0], [0], [0, 0, 1, 0], [], []>} : vector<128x8xf32>, vector<8x8xf32>, vector<128x8xf32> -> vector<128x8xf32>
    %cst_36 = arith.constant dense<0xFF800000> : vector<128xf32>
    %102 = vector.multi_reduction <maximumf>, %101, %cst_36 [1] : vector<128x8xf32> to vector<128xf32>
    %103 = vector.shape_cast %102 : vector<128xf32> to vector<128x1xf32>
    %104 = vector.broadcast %103 : vector<128x1xf32> to vector<128x8xf32>
    %105 = arith.subf %101, %104 : vector<128x8xf32>
    %106 = math.exp %105 : vector<128x8xf32>
    %cst_37 = arith.constant dense<0.000000e+00> : vector<128xf32>
    %107 = vector.multi_reduction <add>, %106, %cst_37 [1] : vector<128x8xf32> to vector<128xf32>
    %108 = vector.shape_cast %107 : vector<128xf32> to vector<128x1xf32>
    %109 = vector.broadcast %108 : vector<128x1xf32> to vector<128x8xf32>
    %110 = arith.divf %106, %109 : vector<128x8xf32>
    %cst_38 = arith.constant dense<0.000000e+00> : vector<128x8xf32>
    %111 = tpu.matmul %110, %100, %cst_38 {dimension_numbers = #tpu.dot_dimension_numbers<[1], [0], [0], [1], [0, 0, 1, 1], [], []>} : vector<128x8xf32>, vector<8x8xf32>, vector<128x8xf32> -> vector<128x8xf32>
    %c0_39 = arith.constant 0 : index
    %c32_40 = arith.constant 32 : index
    %112 = vector.load %arg11[%c0_39, %c32_40] : memref<128x64xf32, #tpu.memory_space<vmem>>, vector<128x8xf32>
    tpu.vector_store %arg11[%c0_39, %c32_40], %111 {strides = array<i32>} : memref<128x64xf32, #tpu.memory_space<vmem>>, vector<128x8xf32>,
    %113 = vector.extract_strided_slice %18 {offsets = [0, 8], sizes = [128, 8], strides = [1, 1]} : vector<128x32xf32> to vector<128x8xf32>
    %114 = vector.extract_strided_slice %19 {offsets = [0, 8], sizes = [128, 8], strides = [1, 1]} : vector<128x32xf32> to vector<128x8xf32>
    %115 = vector.extract_strided_slice %20 {offsets = [0, 8], sizes = [128, 8], strides = [1, 1]} : vector<128x32xf32> to vector<128x8xf32>
    %116 = vector.extract_strided_slice %113 {offsets = [0, 0], sizes = [32, 8], strides = [1, 1]} : vector<128x8xf32> to vector<32x8xf32>
    %117 = vector.extract_strided_slice %114 {offsets = [0, 0], sizes = [32, 8], strides = [1, 1]} : vector<128x8xf32> to vector<32x8xf32>
    %118 = vector.extract_strided_slice %115 {offsets = [0, 0], sizes = [32, 8], strides = [1, 1]} : vector<128x8xf32> to vector<32x8xf32>
    %cst_41 = arith.constant dense<0.000000e+00> : vector<32x32xf32>
    %119 = tpu.matmul %116, %117, %cst_41 {dimension_numbers = #tpu.dot_dimension_numbers<[1], [1], [0], [0], [0, 0, 1, 0], [], []>} : vector<32x8xf32>, vector<32x8xf32>, vector<32x32xf32> -> vector<32x32xf32>
    %cst_42 = arith.constant dense<0xFF800000> : vector<32xf32>
    %120 = vector.multi_reduction <maximumf>, %119, %cst_42 [1] : vector<32x32xf32> to vector<32xf32>
    %121 = vector.shape_cast %120 : vector<32xf32> to vector<32x1xf32>
    %122 = vector.broadcast %121 : vector<32x1xf32> to vector<32x32xf32>
    %123 = arith.subf %119, %122 : vector<32x32xf32>
    %124 = math.exp %123 : vector<32x32xf32>
    %cst_43 = arith.constant dense<0.000000e+00> : vector<32xf32>
    %125 = vector.multi_reduction <add>, %124, %cst_43 [1] : vector<32x32xf32> to vector<32xf32>
    %126 = vector.shape_cast %125 : vector<32xf32> to vector<32x1xf32>
    %127 = vector.broadcast %126 : vector<32x1xf32> to vector<32x32xf32>
    %128 = arith.divf %124, %127 : vector<32x32xf32>
    %cst_44 = arith.constant dense<0.000000e+00> : vector<32x8xf32>
    %129 = tpu.matmul %128, %118, %cst_44 {dimension_numbers = #tpu.dot_dimension_numbers<[1], [0], [0], [1], [0, 0, 1, 1], [], []>} : vector<32x32xf32>, vector<32x8xf32>, vector<32x8xf32> -> vector<32x8xf32>
    %c0_45 = arith.constant 0 : index
    %c8 = arith.constant 8 : index
    %130 = vector.load %arg11[%c0_45, %c8] : memref<128x64xf32, #tpu.memory_space<vmem>>, vector<32x8xf32>
    tpu.vector_store %arg11[%c0_45, %c8], %129 {strides = array<i32>} : memref<128x64xf32, #tpu.memory_space<vmem>>, vector<32x8xf32>,
    %131 = vector.extract_strided_slice %113 {offsets = [32, 0], sizes = [32, 8], strides = [1, 1]} : vector<128x8xf32> to vector<32x8xf32>
    %132 = vector.extract_strided_slice %114 {offsets = [32, 0], sizes = [32, 8], strides = [1, 1]} : vector<128x8xf32> to vector<32x8xf32>
    %133 = vector.extract_strided_slice %115 {offsets = [32, 0], sizes = [32, 8], strides = [1, 1]} : vector<128x8xf32> to vector<32x8xf32>
    %cst_46 = arith.constant dense<0.000000e+00> : vector<32x32xf32>
    %134 = tpu.matmul %131, %132, %cst_46 {dimension_numbers = #tpu.dot_dimension_numbers<[1], [1], [0], [0], [0, 0, 1, 0], [], []>} : vector<32x8xf32>, vector<32x8xf32>, vector<32x32xf32> -> vector<32x32xf32>
    %cst_47 = arith.constant dense<0xFF800000> : vector<32xf32>
    %135 = vector.multi_reduction <maximumf>, %134, %cst_47 [1] : vector<32x32xf32> to vector<32xf32>
    %136 = vector.shape_cast %135 : vector<32xf32> to vector<32x1xf32>
    %137 = vector.broadcast %136 : vector<32x1xf32> to vector<32x32xf32>
    %138 = arith.subf %134, %137 : vector<32x32xf32>
    %139 = math.exp %138 : vector<32x32xf32>
    %cst_48 = arith.constant dense<0.000000e+00> : vector<32xf32>
    %140 = vector.multi_reduction <add>, %139, %cst_48 [1] : vector<32x32xf32> to vector<32xf32>
    %141 = vector.shape_cast %140 : vector<32xf32> to vector<32x1xf32>
    %142 = vector.broadcast %141 : vector<32x1xf32> to vector<32x32xf32>
    %143 = arith.divf %139, %142 : vector<32x32xf32>
    %cst_49 = arith.constant dense<0.000000e+00> : vector<32x8xf32>
    %144 = tpu.matmul %143, %133, %cst_49 {dimension_numbers = #tpu.dot_dimension_numbers<[1], [0], [0], [1], [0, 0, 1, 1], [], []>} : vector<32x32xf32>, vector<32x8xf32>, vector<32x8xf32> -> vector<32x8xf32>
    %c32_50 = arith.constant 32 : index
    %c8_51 = arith.constant 8 : index
    %145 = vector.load %arg11[%c32_50, %c8_51] : memref<128x64xf32, #tpu.memory_space<vmem>>, vector<32x8xf32>
    tpu.vector_store %arg11[%c32_50, %c8_51], %144 {strides = array<i32>} : memref<128x64xf32, #tpu.memory_space<vmem>>, vector<32x8xf32>,
    %146 = vector.extract_strided_slice %113 {offsets = [64, 0], sizes = [32, 8], strides = [1, 1]} : vector<128x8xf32> to vector<32x8xf32>
    %147 = vector.extract_strided_slice %114 {offsets = [64, 0], sizes = [32, 8], strides = [1, 1]} : vector<128x8xf32> to vector<32x8xf32>
    %148 = vector.extract_strided_slice %115 {offsets = [64, 0], sizes = [32, 8], strides = [1, 1]} : vector<128x8xf32> to vector<32x8xf32>
    %cst_52 = arith.constant dense<0.000000e+00> : vector<32x32xf32>
    %149 = tpu.matmul %146, %147, %cst_52 {dimension_numbers = #tpu.dot_dimension_numbers<[1], [1], [0], [0], [0, 0, 1, 0], [], []>} : vector<32x8xf32>, vector<32x8xf32>, vector<32x32xf32> -> vector<32x32xf32>
    %cst_53 = arith.constant dense<0xFF800000> : vector<32xf32>
    %150 = vector.multi_reduction <maximumf>, %149, %cst_53 [1] : vector<32x32xf32> to vector<32xf32>
    %151 = vector.shape_cast %150 : vector<32xf32> to vector<32x1xf32>
    %152 = vector.broadcast %151 : vector<32x1xf32> to vector<32x32xf32>
    %153 = arith.subf %149, %152 : vector<32x32xf32>
    %154 = math.exp %153 : vector<32x32xf32>
    %cst_54 = arith.constant dense<0.000000e+00> : vector<32xf32>
    %155 = vector.multi_reduction <add>, %154, %cst_54 [1] : vector<32x32xf32> to vector<32xf32>
    %156 = vector.shape_cast %155 : vector<32xf32> to vector<32x1xf32>
    %157 = vector.broadcast %156 : vector<32x1xf32> to vector<32x32xf32>
    %158 = arith.divf %154, %157 : vector<32x32xf32>
    %cst_55 = arith.constant dense<0.000000e+00> : vector<32x8xf32>
    %159 = tpu.matmul %158, %148, %cst_55 {dimension_numbers = #tpu.dot_dimension_numbers<[1], [0], [0], [1], [0, 0, 1, 1], [], []>} : vector<32x32xf32>, vector<32x8xf32>, vector<32x8xf32> -> vector<32x8xf32>
    %c64_56 = arith.constant 64 : index
    %c8_57 = arith.constant 8 : index
    %160 = vector.load %arg11[%c64_56, %c8_57] : memref<128x64xf32, #tpu.memory_space<vmem>>, vector<32x8xf32>
    tpu.vector_store %arg11[%c64_56, %c8_57], %159 {strides = array<i32>} : memref<128x64xf32, #tpu.memory_space<vmem>>, vector<32x8xf32>,
    %161 = vector.extract_strided_slice %113 {offsets = [96, 0], sizes = [32, 8], strides = [1, 1]} : vector<128x8xf32> to vector<32x8xf32>
    %162 = vector.extract_strided_slice %114 {offsets = [96, 0], sizes = [32, 8], strides = [1, 1]} : vector<128x8xf32> to vector<32x8xf32>
    %163 = vector.extract_strided_slice %115 {offsets = [96, 0], sizes = [32, 8], strides = [1, 1]} : vector<128x8xf32> to vector<32x8xf32>
    %cst_58 = arith.constant dense<0.000000e+00> : vector<32x32xf32>
    %164 = tpu.matmul %161, %162, %cst_58 {dimension_numbers = #tpu.dot_dimension_numbers<[1], [1], [0], [0], [0, 0, 1, 0], [], []>} : vector<32x8xf32>, vector<32x8xf32>, vector<32x32xf32> -> vector<32x32xf32>
    %cst_59 = arith.constant dense<0xFF800000> : vector<32xf32>
    %165 = vector.multi_reduction <maximumf>, %164, %cst_59 [1] : vector<32x32xf32> to vector<32xf32>
    %166 = vector.shape_cast %165 : vector<32xf32> to vector<32x1xf32>
    %167 = vector.broadcast %166 : vector<32x1xf32> to vector<32x32xf32>
    %168 = arith.subf %164, %167 : vector<32x32xf32>
    %169 = math.exp %168 : vector<32x32xf32>
    %cst_60 = arith.constant dense<0.000000e+00> : vector<32xf32>
    %170 = vector.multi_reduction <add>, %169, %cst_60 [1] : vector<32x32xf32> to vector<32xf32>
    %171 = vector.shape_cast %170 : vector<32xf32> to vector<32x1xf32>
    %172 = vector.broadcast %171 : vector<32x1xf32> to vector<32x32xf32>
    %173 = arith.divf %169, %172 : vector<32x32xf32>
    %cst_61 = arith.constant dense<0.000000e+00> : vector<32x8xf32>
    %174 = tpu.matmul %173, %163, %cst_61 {dimension_numbers = #tpu.dot_dimension_numbers<[1], [0], [0], [1], [0, 0, 1, 1], [], []>} : vector<32x32xf32>, vector<32x8xf32>, vector<32x8xf32> -> vector<32x8xf32>
    %c96_62 = arith.constant 96 : index
    %c8_63 = arith.constant 8 : index
    %175 = vector.load %arg11[%c96_62, %c8_63] : memref<128x64xf32, #tpu.memory_space<vmem>>, vector<32x8xf32>
    tpu.vector_store %arg11[%c96_62, %c8_63], %174 {strides = array<i32>} : memref<128x64xf32, #tpu.memory_space<vmem>>, vector<32x8xf32>,
    %176 = vector.extract_strided_slice %23 {offsets = [0, 8], sizes = [128, 8], strides = [1, 1]} : vector<128x32xf32> to vector<128x8xf32>
    %177 = vector.extract_strided_slice %33 {offsets = [0, 8], sizes = [8, 8], strides = [1, 1]} : vector<8x32xf32> to vector<8x8xf32>
    %178 = vector.extract_strided_slice %34 {offsets = [0, 8], sizes = [8, 8], strides = [1, 1]} : vector<8x32xf32> to vector<8x8xf32>
    %cst_64 = arith.constant dense<0.000000e+00> : vector<128x8xf32>
    %179 = tpu.matmul %176, %177, %cst_64 {dimension_numbers = #tpu.dot_dimension_numbers<[1], [1], [0], [0], [0, 0, 1, 0], [], []>} : vector<128x8xf32>, vector<8x8xf32>, vector<128x8xf32> -> vector<128x8xf32>
    %cst_65 = arith.constant dense<0xFF800000> : vector<128xf32>
    %180 = vector.multi_reduction <maximumf>, %179, %cst_65 [1] : vector<128x8xf32> to vector<128xf32>
    %181 = vector.shape_cast %180 : vector<128xf32> to vector<128x1xf32>
    %182 = vector.broadcast %181 : vector<128x1xf32> to vector<128x8xf32>
    %183 = arith.subf %179, %182 : vector<128x8xf32>
    %184 = math.exp %183 : vector<128x8xf32>
    %cst_66 = arith.constant dense<0.000000e+00> : vector<128xf32>
    %185 = vector.multi_reduction <add>, %184, %cst_66 [1] : vector<128x8xf32> to vector<128xf32>
    %186 = vector.shape_cast %185 : vector<128xf32> to vector<128x1xf32>
    %187 = vector.broadcast %186 : vector<128x1xf32> to vector<128x8xf32>
    %188 = arith.divf %184, %187 : vector<128x8xf32>
    %cst_67 = arith.constant dense<0.000000e+00> : vector<128x8xf32>
    %189 = tpu.matmul %188, %178, %cst_67 {dimension_numbers = #tpu.dot_dimension_numbers<[1], [0], [0], [1], [0, 0, 1, 1], [], []>} : vector<128x8xf32>, vector<8x8xf32>, vector<128x8xf32> -> vector<128x8xf32>
    %c0_68 = arith.constant 0 : index
    %c40 = arith.constant 40 : index
    %190 = vector.load %arg11[%c0_68, %c40] : memref<128x64xf32, #tpu.memory_space<vmem>>, vector<128x8xf32>
    tpu.vector_store %arg11[%c0_68, %c40], %189 {strides = array<i32>} : memref<128x64xf32, #tpu.memory_space<vmem>>, vector<128x8xf32>,
    %191 = vector.extract_strided_slice %18 {offsets = [0, 16], sizes = [128, 8], strides = [1, 1]} : vector<128x32xf32> to vector<128x8xf32>
    %192 = vector.extract_strided_slice %19 {offsets = [0, 16], sizes = [128, 8], strides = [1, 1]} : vector<128x32xf32> to vector<128x8xf32>
    %193 = vector.extract_strided_slice %20 {offsets = [0, 16], sizes = [128, 8], strides = [1, 1]} : vector<128x32xf32> to vector<128x8xf32>
    %194 = vector.extract_strided_slice %191 {offsets = [0, 0], sizes = [32, 8], strides = [1, 1]} : vector<128x8xf32> to vector<32x8xf32>
    %195 = vector.extract_strided_slice %192 {offsets = [0, 0], sizes = [32, 8], strides = [1, 1]} : vector<128x8xf32> to vector<32x8xf32>
    %196 = vector.extract_strided_slice %193 {offsets = [0, 0], sizes = [32, 8], strides = [1, 1]} : vector<128x8xf32> to vector<32x8xf32>
    %cst_69 = arith.constant dense<0.000000e+00> : vector<32x32xf32>
    %197 = tpu.matmul %194, %195, %cst_69 {dimension_numbers = #tpu.dot_dimension_numbers<[1], [1], [0], [0], [0, 0, 1, 0], [], []>} : vector<32x8xf32>, vector<32x8xf32>, vector<32x32xf32> -> vector<32x32xf32>
    %cst_70 = arith.constant dense<0xFF800000> : vector<32xf32>
    %198 = vector.multi_reduction <maximumf>, %197, %cst_70 [1] : vector<32x32xf32> to vector<32xf32>
    %199 = vector.shape_cast %198 : vector<32xf32> to vector<32x1xf32>
    %200 = vector.broadcast %199 : vector<32x1xf32> to vector<32x32xf32>
    %201 = arith.subf %197, %200 : vector<32x32xf32>
    %202 = math.exp %201 : vector<32x32xf32>
    %cst_71 = arith.constant dense<0.000000e+00> : vector<32xf32>
    %203 = vector.multi_reduction <add>, %202, %cst_71 [1] : vector<32x32xf32> to vector<32xf32>
    %204 = vector.shape_cast %203 : vector<32xf32> to vector<32x1xf32>
    %205 = vector.broadcast %204 : vector<32x1xf32> to vector<32x32xf32>
    %206 = arith.divf %202, %205 : vector<32x32xf32>
    %cst_72 = arith.constant dense<0.000000e+00> : vector<32x8xf32>
    %207 = tpu.matmul %206, %196, %cst_72 {dimension_numbers = #tpu.dot_dimension_numbers<[1], [0], [0], [1], [0, 0, 1, 1], [], []>} : vector<32x32xf32>, vector<32x8xf32>, vector<32x8xf32> -> vector<32x8xf32>
    %c0_73 = arith.constant 0 : index
    %c16 = arith.constant 16 : index
    %208 = vector.load %arg11[%c0_73, %c16] : memref<128x64xf32, #tpu.memory_space<vmem>>, vector<32x8xf32>
    tpu.vector_store %arg11[%c0_73, %c16], %207 {strides = array<i32>} : memref<128x64xf32, #tpu.memory_space<vmem>>, vector<32x8xf32>,
    %209 = vector.extract_strided_slice %191 {offsets = [32, 0], sizes = [32, 8], strides = [1, 1]} : vector<128x8xf32> to vector<32x8xf32>
    %210 = vector.extract_strided_slice %192 {offsets = [32, 0], sizes = [32, 8], strides = [1, 1]} : vector<128x8xf32> to vector<32x8xf32>
    %211 = vector.extract_strided_slice %193 {offsets = [32, 0], sizes = [32, 8], strides = [1, 1]} : vector<128x8xf32> to vector<32x8xf32>
    %cst_74 = arith.constant dense<0.000000e+00> : vector<32x32xf32>
    %212 = tpu.matmul %209, %210, %cst_74 {dimension_numbers = #tpu.dot_dimension_numbers<[1], [1], [0], [0], [0, 0, 1, 0], [], []>} : vector<32x8xf32>, vector<32x8xf32>, vector<32x32xf32> -> vector<32x32xf32>
    %cst_75 = arith.constant dense<0xFF800000> : vector<32xf32>
    %213 = vector.multi_reduction <maximumf>, %212, %cst_75 [1] : vector<32x32xf32> to vector<32xf32>
    %214 = vector.shape_cast %213 : vector<32xf32> to vector<32x1xf32>
    %215 = vector.broadcast %214 : vector<32x1xf32> to vector<32x32xf32>
    %216 = arith.subf %212, %215 : vector<32x32xf32>
    %217 = math.exp %216 : vector<32x32xf32>
    %cst_76 = arith.constant dense<0.000000e+00> : vector<32xf32>
    %218 = vector.multi_reduction <add>, %217, %cst_76 [1] : vector<32x32xf32> to vector<32xf32>
    %219 = vector.shape_cast %218 : vector<32xf32> to vector<32x1xf32>
    %220 = vector.broadcast %219 : vector<32x1xf32> to vector<32x32xf32>
    %221 = arith.divf %217, %220 : vector<32x32xf32>
    %cst_77 = arith.constant dense<0.000000e+00> : vector<32x8xf32>
    %222 = tpu.matmul %221, %211, %cst_77 {dimension_numbers = #tpu.dot_dimension_numbers<[1], [0], [0], [1], [0, 0, 1, 1], [], []>} : vector<32x32xf32>, vector<32x8xf32>, vector<32x8xf32> -> vector<32x8xf32>
    %c32_78 = arith.constant 32 : index
    %c16_79 = arith.constant 16 : index
    %223 = vector.load %arg11[%c32_78, %c16_79] : memref<128x64xf32, #tpu.memory_space<vmem>>, vector<32x8xf32>
    tpu.vector_store %arg11[%c32_78, %c16_79], %222 {strides = array<i32>} : memref<128x64xf32, #tpu.memory_space<vmem>>, vector<32x8xf32>,
    %224 = vector.extract_strided_slice %191 {offsets = [64, 0], sizes = [32, 8], strides = [1, 1]} : vector<128x8xf32> to vector<32x8xf32>
    %225 = vector.extract_strided_slice %192 {offsets = [64, 0], sizes = [32, 8], strides = [1, 1]} : vector<128x8xf32> to vector<32x8xf32>
    %226 = vector.extract_strided_slice %193 {offsets = [64, 0], sizes = [32, 8], strides = [1, 1]} : vector<128x8xf32> to vector<32x8xf32>
    %cst_80 = arith.constant dense<0.000000e+00> : vector<32x32xf32>
    %227 = tpu.matmul %224, %225, %cst_80 {dimension_numbers = #tpu.dot_dimension_numbers<[1], [1], [0], [0], [0, 0, 1, 0], [], []>} : vector<32x8xf32>, vector<32x8xf32>, vector<32x32xf32> -> vector<32x32xf32>
    %cst_81 = arith.constant dense<0xFF800000> : vector<32xf32>
    %228 = vector.multi_reduction <maximumf>, %227, %cst_81 [1] : vector<32x32xf32> to vector<32xf32>
    %229 = vector.shape_cast %228 : vector<32xf32> to vector<32x1xf32>
    %230 = vector.broadcast %229 : vector<32x1xf32> to vector<32x32xf32>
    %231 = arith.subf %227, %230 : vector<32x32xf32>
    %232 = math.exp %231 : vector<32x32xf32>
    %cst_82 = arith.constant dense<0.000000e+00> : vector<32xf32>
    %233 = vector.multi_reduction <add>, %232, %cst_82 [1] : vector<32x32xf32> to vector<32xf32>
    %234 = vector.shape_cast %233 : vector<32xf32> to vector<32x1xf32>
    %235 = vector.broadcast %234 : vector<32x1xf32> to vector<32x32xf32>
    %236 = arith.divf %232, %235 : vector<32x32xf32>
    %cst_83 = arith.constant dense<0.000000e+00> : vector<32x8xf32>
    %237 = tpu.matmul %236, %226, %cst_83 {dimension_numbers = #tpu.dot_dimension_numbers<[1], [0], [0], [1], [0, 0, 1, 1], [], []>} : vector<32x32xf32>, vector<32x8xf32>, vector<32x8xf32> -> vector<32x8xf32>
    %c64_84 = arith.constant 64 : index
    %c16_85 = arith.constant 16 : index
    %238 = vector.load %arg11[%c64_84, %c16_85] : memref<128x64xf32, #tpu.memory_space<vmem>>, vector<32x8xf32>
    tpu.vector_store %arg11[%c64_84, %c16_85], %237 {strides = array<i32>} : memref<128x64xf32, #tpu.memory_space<vmem>>, vector<32x8xf32>,
    %239 = vector.extract_strided_slice %191 {offsets = [96, 0], sizes = [32, 8], strides = [1, 1]} : vector<128x8xf32> to vector<32x8xf32>
    %240 = vector.extract_strided_slice %192 {offsets = [96, 0], sizes = [32, 8], strides = [1, 1]} : vector<128x8xf32> to vector<32x8xf32>
    %241 = vector.extract_strided_slice %193 {offsets = [96, 0], sizes = [32, 8], strides = [1, 1]} : vector<128x8xf32> to vector<32x8xf32>
    %cst_86 = arith.constant dense<0.000000e+00> : vector<32x32xf32>
    %242 = tpu.matmul %239, %240, %cst_86 {dimension_numbers = #tpu.dot_dimension_numbers<[1], [1], [0], [0], [0, 0, 1, 0], [], []>} : vector<32x8xf32>, vector<32x8xf32>, vector<32x32xf32> -> vector<32x32xf32>
    %cst_87 = arith.constant dense<0xFF800000> : vector<32xf32>
    %243 = vector.multi_reduction <maximumf>, %242, %cst_87 [1] : vector<32x32xf32> to vector<32xf32>
    %244 = vector.shape_cast %243 : vector<32xf32> to vector<32x1xf32>
    %245 = vector.broadcast %244 : vector<32x1xf32> to vector<32x32xf32>
    %246 = arith.subf %242, %245 : vector<32x32xf32>
    %247 = math.exp %246 : vector<32x32xf32>
    %cst_88 = arith.constant dense<0.000000e+00> : vector<32xf32>
    %248 = vector.multi_reduction <add>, %247, %cst_88 [1] : vector<32x32xf32> to vector<32xf32>
    %249 = vector.shape_cast %248 : vector<32xf32> to vector<32x1xf32>
    %250 = vector.broadcast %249 : vector<32x1xf32> to vector<32x32xf32>
    %251 = arith.divf %247, %250 : vector<32x32xf32>
    %cst_89 = arith.constant dense<0.000000e+00> : vector<32x8xf32>
    %252 = tpu.matmul %251, %241, %cst_89 {dimension_numbers = #tpu.dot_dimension_numbers<[1], [0], [0], [1], [0, 0, 1, 1], [], []>} : vector<32x32xf32>, vector<32x8xf32>, vector<32x8xf32> -> vector<32x8xf32>
    %c96_90 = arith.constant 96 : index
    %c16_91 = arith.constant 16 : index
    %253 = vector.load %arg11[%c96_90, %c16_91] : memref<128x64xf32, #tpu.memory_space<vmem>>, vector<32x8xf32>
    tpu.vector_store %arg11[%c96_90, %c16_91], %252 {strides = array<i32>} : memref<128x64xf32, #tpu.memory_space<vmem>>, vector<32x8xf32>,
    %254 = vector.extract_strided_slice %23 {offsets = [0, 16], sizes = [128, 8], strides = [1, 1]} : vector<128x32xf32> to vector<128x8xf32>
    %255 = vector.extract_strided_slice %33 {offsets = [0, 16], sizes = [8, 8], strides = [1, 1]} : vector<8x32xf32> to vector<8x8xf32>
    %256 = vector.extract_strided_slice %34 {offsets = [0, 16], sizes = [8, 8], strides = [1, 1]} : vector<8x32xf32> to vector<8x8xf32>
    %cst_92 = arith.constant dense<0.000000e+00> : vector<128x8xf32>
    %257 = tpu.matmul %254, %255, %cst_92 {dimension_numbers = #tpu.dot_dimension_numbers<[1], [1], [0], [0], [0, 0, 1, 0], [], []>} : vector<128x8xf32>, vector<8x8xf32>, vector<128x8xf32> -> vector<128x8xf32>
    %cst_93 = arith.constant dense<0xFF800000> : vector<128xf32>
    %258 = vector.multi_reduction <maximumf>, %257, %cst_93 [1] : vector<128x8xf32> to vector<128xf32>
    %259 = vector.shape_cast %258 : vector<128xf32> to vector<128x1xf32>
    %260 = vector.broadcast %259 : vector<128x1xf32> to vector<128x8xf32>
    %261 = arith.subf %257, %260 : vector<128x8xf32>
    %262 = math.exp %261 : vector<128x8xf32>
    %cst_94 = arith.constant dense<0.000000e+00> : vector<128xf32>
    %263 = vector.multi_reduction <add>, %262, %cst_94 [1] : vector<128x8xf32> to vector<128xf32>
    %264 = vector.shape_cast %263 : vector<128xf32> to vector<128x1xf32>
    %265 = vector.broadcast %264 : vector<128x1xf32> to vector<128x8xf32>
    %266 = arith.divf %262, %265 : vector<128x8xf32>
    %cst_95 = arith.constant dense<0.000000e+00> : vector<128x8xf32>
    %267 = tpu.matmul %266, %256, %cst_95 {dimension_numbers = #tpu.dot_dimension_numbers<[1], [0], [0], [1], [0, 0, 1, 1], [], []>} : vector<128x8xf32>, vector<8x8xf32>, vector<128x8xf32> -> vector<128x8xf32>
    %c0_96 = arith.constant 0 : index
    %c48 = arith.constant 48 : index
    %268 = vector.load %arg11[%c0_96, %c48] : memref<128x64xf32, #tpu.memory_space<vmem>>, vector<128x8xf32>
    tpu.vector_store %arg11[%c0_96, %c48], %267 {strides = array<i32>} : memref<128x64xf32, #tpu.memory_space<vmem>>, vector<128x8xf32>,
    %269 = vector.extract_strided_slice %18 {offsets = [0, 24], sizes = [128, 8], strides = [1, 1]} : vector<128x32xf32> to vector<128x8xf32>
    %270 = vector.extract_strided_slice %19 {offsets = [0, 24], sizes = [128, 8], strides = [1, 1]} : vector<128x32xf32> to vector<128x8xf32>
    %271 = vector.extract_strided_slice %20 {offsets = [0, 24], sizes = [128, 8], strides = [1, 1]} : vector<128x32xf32> to vector<128x8xf32>
    %272 = vector.extract_strided_slice %269 {offsets = [0, 0], sizes = [32, 8], strides = [1, 1]} : vector<128x8xf32> to vector<32x8xf32>
    %273 = vector.extract_strided_slice %270 {offsets = [0, 0], sizes = [32, 8], strides = [1, 1]} : vector<128x8xf32> to vector<32x8xf32>
    %274 = vector.extract_strided_slice %271 {offsets = [0, 0], sizes = [32, 8], strides = [1, 1]} : vector<128x8xf32> to vector<32x8xf32>
    %cst_97 = arith.constant dense<0.000000e+00> : vector<32x32xf32>
    %275 = tpu.matmul %272, %273, %cst_97 {dimension_numbers = #tpu.dot_dimension_numbers<[1], [1], [0], [0], [0, 0, 1, 0], [], []>} : vector<32x8xf32>, vector<32x8xf32>, vector<32x32xf32> -> vector<32x32xf32>
    %cst_98 = arith.constant dense<0xFF800000> : vector<32xf32>
    %276 = vector.multi_reduction <maximumf>, %275, %cst_98 [1] : vector<32x32xf32> to vector<32xf32>
    %277 = vector.shape_cast %276 : vector<32xf32> to vector<32x1xf32>
    %278 = vector.broadcast %277 : vector<32x1xf32> to vector<32x32xf32>
    %279 = arith.subf %275, %278 : vector<32x32xf32>
    %280 = math.exp %279 : vector<32x32xf32>
    %cst_99 = arith.constant dense<0.000000e+00> : vector<32xf32>
    %281 = vector.multi_reduction <add>, %280, %cst_99 [1] : vector<32x32xf32> to vector<32xf32>
    %282 = vector.shape_cast %281 : vector<32xf32> to vector<32x1xf32>
    %283 = vector.broadcast %282 : vector<32x1xf32> to vector<32x32xf32>
    %284 = arith.divf %280, %283 : vector<32x32xf32>
    %cst_100 = arith.constant dense<0.000000e+00> : vector<32x8xf32>
    %285 = tpu.matmul %284, %274, %cst_100 {dimension_numbers = #tpu.dot_dimension_numbers<[1], [0], [0], [1], [0, 0, 1, 1], [], []>} : vector<32x32xf32>, vector<32x8xf32>, vector<32x8xf32> -> vector<32x8xf32>
    %c0_101 = arith.constant 0 : index
    %c24 = arith.constant 24 : index
    %286 = vector.load %arg11[%c0_101, %c24] : memref<128x64xf32, #tpu.memory_space<vmem>>, vector<32x8xf32>
    tpu.vector_store %arg11[%c0_101, %c24], %285 {strides = array<i32>} : memref<128x64xf32, #tpu.memory_space<vmem>>, vector<32x8xf32>,
    %287 = vector.extract_strided_slice %269 {offsets = [32, 0], sizes = [32, 8], strides = [1, 1]} : vector<128x8xf32> to vector<32x8xf32>
    %288 = vector.extract_strided_slice %270 {offsets = [32, 0], sizes = [32, 8], strides = [1, 1]} : vector<128x8xf32> to vector<32x8xf32>
    %289 = vector.extract_strided_slice %271 {offsets = [32, 0], sizes = [32, 8], strides = [1, 1]} : vector<128x8xf32> to vector<32x8xf32>
    %cst_102 = arith.constant dense<0.000000e+00> : vector<32x32xf32>
    %290 = tpu.matmul %287, %288, %cst_102 {dimension_numbers = #tpu.dot_dimension_numbers<[1], [1], [0], [0], [0, 0, 1, 0], [], []>} : vector<32x8xf32>, vector<32x8xf32>, vector<32x32xf32> -> vector<32x32xf32>
    %cst_103 = arith.constant dense<0xFF800000> : vector<32xf32>
    %291 = vector.multi_reduction <maximumf>, %290, %cst_103 [1] : vector<32x32xf32> to vector<32xf32>
    %292 = vector.shape_cast %291 : vector<32xf32> to vector<32x1xf32>
    %293 = vector.broadcast %292 : vector<32x1xf32> to vector<32x32xf32>
    %294 = arith.subf %290, %293 : vector<32x32xf32>
    %295 = math.exp %294 : vector<32x32xf32>
    %cst_104 = arith.constant dense<0.000000e+00> : vector<32xf32>
    %296 = vector.multi_reduction <add>, %295, %cst_104 [1] : vector<32x32xf32> to vector<32xf32>
    %297 = vector.shape_cast %296 : vector<32xf32> to vector<32x1xf32>
    %298 = vector.broadcast %297 : vector<32x1xf32> to vector<32x32xf32>
    %299 = arith.divf %295, %298 : vector<32x32xf32>
    %cst_105 = arith.constant dense<0.000000e+00> : vector<32x8xf32>
    %300 = tpu.matmul %299, %289, %cst_105 {dimension_numbers = #tpu.dot_dimension_numbers<[1], [0], [0], [1], [0, 0, 1, 1], [], []>} : vector<32x32xf32>, vector<32x8xf32>, vector<32x8xf32> -> vector<32x8xf32>
    %c32_106 = arith.constant 32 : index
    %c24_107 = arith.constant 24 : index
    %301 = vector.load %arg11[%c32_106, %c24_107] : memref<128x64xf32, #tpu.memory_space<vmem>>, vector<32x8xf32>
    tpu.vector_store %arg11[%c32_106, %c24_107], %300 {strides = array<i32>} : memref<128x64xf32, #tpu.memory_space<vmem>>, vector<32x8xf32>,
    %302 = vector.extract_strided_slice %269 {offsets = [64, 0], sizes = [32, 8], strides = [1, 1]} : vector<128x8xf32> to vector<32x8xf32>
    %303 = vector.extract_strided_slice %270 {offsets = [64, 0], sizes = [32, 8], strides = [1, 1]} : vector<128x8xf32> to vector<32x8xf32>
    %304 = vector.extract_strided_slice %271 {offsets = [64, 0], sizes = [32, 8], strides = [1, 1]} : vector<128x8xf32> to vector<32x8xf32>
    %cst_108 = arith.constant dense<0.000000e+00> : vector<32x32xf32>
    %305 = tpu.matmul %302, %303, %cst_108 {dimension_numbers = #tpu.dot_dimension_numbers<[1], [1], [0], [0], [0, 0, 1, 0], [], []>} : vector<32x8xf32>, vector<32x8xf32>, vector<32x32xf32> -> vector<32x32xf32>
    %cst_109 = arith.constant dense<0xFF800000> : vector<32xf32>
    %306 = vector.multi_reduction <maximumf>, %305, %cst_109 [1] : vector<32x32xf32> to vector<32xf32>
    %307 = vector.shape_cast %306 : vector<32xf32> to vector<32x1xf32>
    %308 = vector.broadcast %307 : vector<32x1xf32> to vector<32x32xf32>
    %309 = arith.subf %305, %308 : vector<32x32xf32>
    %310 = math.exp %309 : vector<32x32xf32>
    %cst_110 = arith.constant dense<0.000000e+00> : vector<32xf32>
    %311 = vector.multi_reduction <add>, %310, %cst_110 [1] : vector<32x32xf32> to vector<32xf32>
    %312 = vector.shape_cast %311 : vector<32xf32> to vector<32x1xf32>
    %313 = vector.broadcast %312 : vector<32x1xf32> to vector<32x32xf32>
    %314 = arith.divf %310, %313 : vector<32x32xf32>
    %cst_111 = arith.constant dense<0.000000e+00> : vector<32x8xf32>
    %315 = tpu.matmul %314, %304, %cst_111 {dimension_numbers = #tpu.dot_dimension_numbers<[1], [0], [0], [1], [0, 0, 1, 1], [], []>} : vector<32x32xf32>, vector<32x8xf32>, vector<32x8xf32> -> vector<32x8xf32>
    %c64_112 = arith.constant 64 : index
    %c24_113 = arith.constant 24 : index
    %316 = vector.load %arg11[%c64_112, %c24_113] : memref<128x64xf32, #tpu.memory_space<vmem>>, vector<32x8xf32>
    tpu.vector_store %arg11[%c64_112, %c24_113], %315 {strides = array<i32>} : memref<128x64xf32, #tpu.memory_space<vmem>>, vector<32x8xf32>,
    %317 = vector.extract_strided_slice %269 {offsets = [96, 0], sizes = [32, 8], strides = [1, 1]} : vector<128x8xf32> to vector<32x8xf32>
    %318 = vector.extract_strided_slice %270 {offsets = [96, 0], sizes = [32, 8], strides = [1, 1]} : vector<128x8xf32> to vector<32x8xf32>
    %319 = vector.extract_strided_slice %271 {offsets = [96, 0], sizes = [32, 8], strides = [1, 1]} : vector<128x8xf32> to vector<32x8xf32>
    %cst_114 = arith.constant dense<0.000000e+00> : vector<32x32xf32>
    %320 = tpu.matmul %317, %318, %cst_114 {dimension_numbers = #tpu.dot_dimension_numbers<[1], [1], [0], [0], [0, 0, 1, 0], [], []>} : vector<32x8xf32>, vector<32x8xf32>, vector<32x32xf32> -> vector<32x32xf32>
    %cst_115 = arith.constant dense<0xFF800000> : vector<32xf32>
    %321 = vector.multi_reduction <maximumf>, %320, %cst_115 [1] : vector<32x32xf32> to vector<32xf32>
    %322 = vector.shape_cast %321 : vector<32xf32> to vector<32x1xf32>
    %323 = vector.broadcast %322 : vector<32x1xf32> to vector<32x32xf32>
    %324 = arith.subf %320, %323 : vector<32x32xf32>
    %325 = math.exp %324 : vector<32x32xf32>
    %cst_116 = arith.constant dense<0.000000e+00> : vector<32xf32>
    %326 = vector.multi_reduction <add>, %325, %cst_116 [1] : vector<32x32xf32> to vector<32xf32>
    %327 = vector.shape_cast %326 : vector<32xf32> to vector<32x1xf32>
    %328 = vector.broadcast %327 : vector<32x1xf32> to vector<32x32xf32>
    %329 = arith.divf %325, %328 : vector<32x32xf32>
    %cst_117 = arith.constant dense<0.000000e+00> : vector<32x8xf32>
    %330 = tpu.matmul %329, %319, %cst_117 {dimension_numbers = #tpu.dot_dimension_numbers<[1], [0], [0], [1], [0, 0, 1, 1], [], []>} : vector<32x32xf32>, vector<32x8xf32>, vector<32x8xf32> -> vector<32x8xf32>
    %c96_118 = arith.constant 96 : index
    %c24_119 = arith.constant 24 : index
    %331 = vector.load %arg11[%c96_118, %c24_119] : memref<128x64xf32, #tpu.memory_space<vmem>>, vector<32x8xf32>
    tpu.vector_store %arg11[%c96_118, %c24_119], %330 {strides = array<i32>} : memref<128x64xf32, #tpu.memory_space<vmem>>, vector<32x8xf32>,
    %332 = vector.extract_strided_slice %23 {offsets = [0, 24], sizes = [128, 8], strides = [1, 1]} : vector<128x32xf32> to vector<128x8xf32>
    %333 = vector.extract_strided_slice %33 {offsets = [0, 24], sizes = [8, 8], strides = [1, 1]} : vector<8x32xf32> to vector<8x8xf32>
    %334 = vector.extract_strided_slice %34 {offsets = [0, 24], sizes = [8, 8], strides = [1, 1]} : vector<8x32xf32> to vector<8x8xf32>
    %cst_120 = arith.constant dense<0.000000e+00> : vector<128x8xf32>
    %335 = tpu.matmul %332, %333, %cst_120 {dimension_numbers = #tpu.dot_dimension_numbers<[1], [1], [0], [0], [0, 0, 1, 0], [], []>} : vector<128x8xf32>, vector<8x8xf32>, vector<128x8xf32> -> vector<128x8xf32>
    %cst_121 = arith.constant dense<0xFF800000> : vector<128xf32>
    %336 = vector.multi_reduction <maximumf>, %335, %cst_121 [1] : vector<128x8xf32> to vector<128xf32>
    %337 = vector.shape_cast %336 : vector<128xf32> to vector<128x1xf32>
    %338 = vector.broadcast %337 : vector<128x1xf32> to vector<128x8xf32>
    %339 = arith.subf %335, %338 : vector<128x8xf32>
    %340 = math.exp %339 : vector<128x8xf32>
    %cst_122 = arith.constant dense<0.000000e+00> : vector<128xf32>
    %341 = vector.multi_reduction <add>, %340, %cst_122 [1] : vector<128x8xf32> to vector<128xf32>
    %342 = vector.shape_cast %341 : vector<128xf32> to vector<128x1xf32>
    %343 = vector.broadcast %342 : vector<128x1xf32> to vector<128x8xf32>
    %344 = arith.divf %340, %343 : vector<128x8xf32>
    %cst_123 = arith.constant dense<0.000000e+00> : vector<128x8xf32>
    %345 = tpu.matmul %344, %334, %cst_123 {dimension_numbers = #tpu.dot_dimension_numbers<[1], [0], [0], [1], [0, 0, 1, 1], [], []>} : vector<128x8xf32>, vector<8x8xf32>, vector<128x8xf32> -> vector<128x8xf32>
    %c0_124 = arith.constant 0 : index
    %c56 = arith.constant 56 : index
    %346 = vector.load %arg11[%c0_124, %c56] : memref<128x64xf32, #tpu.memory_space<vmem>>, vector<128x8xf32>
    tpu.vector_store %arg11[%c0_124, %c56], %345 {strides = array<i32>} : memref<128x64xf32, #tpu.memory_space<vmem>>, vector<128x8xf32>,
    %c0_125 = arith.constant 0 : index
    %c0_126 = arith.constant 0 : index
    %347 = vector.load %arg11[%c0_125, %c0_126] : memref<128x64xf32, #tpu.memory_space<vmem>>, vector<128x64xf32>
    %c0_127 = arith.constant 0 : index
    %c0_128 = arith.constant 0 : index
    %348 = vector.load %arg6[%c0_127, %c0_128] : memref<64x32xf32, #tpu.memory_space<vmem>>, vector<64x32xf32>
    %cst_129 = arith.constant dense<0.000000e+00> : vector<128x32xf32>
    %349 = tpu.matmul %347, %348, %cst_129 {dimension_numbers = #tpu.dot_dimension_numbers<[1], [0], [0], [1], [0, 0, 1, 1], [], []>} : vector<128x64xf32>, vector<64x32xf32>, vector<128x32xf32> -> vector<128x32xf32>
    %c0_130 = arith.constant 0 : index
    %c0_131 = arith.constant 0 : index
    %350 = vector.load %arg7[%c0_130, %c0_131] : memref<1x32xf32, #tpu.memory_space<vmem>>, vector<1x32xf32>
    %351 = vector.shape_cast %350 : vector<1x32xf32> to vector<32xf32>
    %352 = vector.shape_cast %351 : vector<32xf32> to vector<1x32xf32>
    %353 = vector.broadcast %352 : vector<1x32xf32> to vector<128x32xf32>
    %354 = arith.addf %349, %353 : vector<128x32xf32>
    %355 = arith.addf %1, %354 : vector<128x32xf32>
    %cst_132 = arith.constant dense<0.000000e+00> : vector<128xf32>
    %356 = vector.multi_reduction <add>, %355, %cst_132 [1] : vector<128x32xf32> to vector<128xf32>
    %357 = vector.shape_cast %356 : vector<128xf32> to vector<128x1xf32>
    %cst_133 = arith.constant 3.200000e+01 : f32
    %358 = vector.broadcast %cst_133 : f32 to vector<128x1xf32>
    %359 = arith.divf %357, %358 : vector<128x1xf32>
    %360 = vector.broadcast %359 : vector<128x1xf32> to vector<128x32xf32>
    %361 = arith.subf %355, %360 : vector<128x32xf32>
    %362 = arith.mulf %361, %361 : vector<128x32xf32>
    %cst_134 = arith.constant dense<0.000000e+00> : vector<128xf32>
    %363 = vector.multi_reduction <add>, %362, %cst_134 [1] : vector<128x32xf32> to vector<128xf32>
    %364 = vector.shape_cast %363 : vector<128xf32> to vector<128x1xf32>
    %cst_135 = arith.constant 3.200000e+01 : f32
    %365 = vector.broadcast %cst_135 : f32 to vector<128x1xf32>
    %366 = arith.divf %364, %365 : vector<128x1xf32>
    %367 = vector.broadcast %359 : vector<128x1xf32> to vector<128x32xf32>
    %368 = arith.subf %355, %367 : vector<128x32xf32>
    %cst_136 = arith.constant 9.99999974E-6 : f32
    %369 = vector.broadcast %cst_136 : f32 to vector<128x1xf32>
    %370 = arith.addf %366, %369 : vector<128x1xf32>
    %371 = math.rsqrt %370 : vector<128x1xf32>
    %372 = vector.broadcast %371 : vector<128x1xf32> to vector<128x32xf32>
    %373 = arith.mulf %368, %372 : vector<128x32xf32>
    %c0_137 = arith.constant 0 : index
    %c0_138 = arith.constant 0 : index
    %374 = vector.load %arg8[%c0_137, %c0_138] : memref<1x32xf32, #tpu.memory_space<vmem>>, vector<1x32xf32>
    %375 = vector.shape_cast %374 : vector<1x32xf32> to vector<32xf32>
    %376 = vector.shape_cast %375 : vector<32xf32> to vector<1x32xf32>
    %377 = vector.broadcast %376 : vector<1x32xf32> to vector<128x32xf32>
    %378 = arith.mulf %373, %377 : vector<128x32xf32>
    %c0_139 = arith.constant 0 : index
    %c0_140 = arith.constant 0 : index
    %379 = vector.load %arg9[%c0_139, %c0_140] : memref<1x32xf32, #tpu.memory_space<vmem>>, vector<1x32xf32>
    %380 = vector.shape_cast %379 : vector<1x32xf32> to vector<32xf32>
    %381 = vector.shape_cast %380 : vector<32xf32> to vector<1x32xf32>
    %382 = vector.broadcast %381 : vector<1x32xf32> to vector<128x32xf32>
    %383 = arith.addf %378, %382 : vector<128x32xf32>
    %c0_141 = arith.constant 0 : index
    %c0_142 = arith.constant 0 : index
    %c0_143 = arith.constant 0 : index
    %384 = vector.load %arg10[%c0_141, %c0_142, %c0_143] : memref<1x128x32xf32, #tpu.memory_space<vmem>>, vector<1x128x32xf32>
    %385 = vector.shape_cast %384 : vector<1x128x32xf32> to vector<128x32xf32>
    %386 = vector.shape_cast %383 : vector<128x32xf32> to vector<1x128x32xf32>
    tpu.vector_store %arg10[%c0_141, %c0_142, %c0_143], %386 {strides = array<i32>} : memref<1x128x32xf32, #tpu.memory_space<vmem>>, vector<1x128x32xf32>,
    return
  }
  func.func @transform_0(%arg0: i32) -> (i32, i32, i32) {
    %c0_i32 = arith.constant 0 : i32
    %c0_i32_0 = arith.constant 0 : i32
    %c0_i32_1 = arith.constant 0 : i32
    return %arg0, %c0_i32, %c0_i32_0 : i32, i32, i32
  }
  func.func @transform_1(%arg0: i32) -> (i32, i32) {
    %c0_i32 = arith.constant 0 : i32
    %c0_i32_0 = arith.constant 0 : i32
    %c0_i32_1 = arith.constant 0 : i32
    return %c0_i32, %c0_i32_0 : i32, i32
  }
  func.func @transform_2(%arg0: i32) -> (i32, i32) {
    %c0_i32 = arith.constant 0 : i32
    %c0_i32_0 = arith.constant 0 : i32
    %c0_i32_1 = arith.constant 0 : i32
    return %c0_i32, %c0_i32_0 : i32, i32
  }
  func.func @transform_3(%arg0: i32) -> (i32, i32) {
    %c0_i32 = arith.constant 0 : i32
    %c0_i32_0 = arith.constant 0 : i32
    %c0_i32_1 = arith.constant 0 : i32
    return %c0_i32, %c0_i32_0 : i32, i32
  }
  func.func @transform_4(%arg0: i32) -> (i32, i32) {
    %c0_i32 = arith.constant 0 : i32
    %c0_i32_0 = arith.constant 0 : i32
    %c0_i32_1 = arith.constant 0 : i32
    return %c0_i32, %c0_i32_0 : i32, i32
  }
  func.func @transform_5(%arg0: i32) -> (i32, i32) {
    %c0_i32 = arith.constant 0 : i32
    %c0_i32_0 = arith.constant 0 : i32
    %c0_i32_1 = arith.constant 0 : i32
    return %c0_i32, %c0_i32_0 : i32, i32
  }
  func.func @transform_6(%arg0: i32) -> (i32, i32) {
    %c0_i32 = arith.constant 0 : i32
    %c0_i32_0 = arith.constant 0 : i32
    %c0_i32_1 = arith.constant 0 : i32
    return %c0_i32, %c0_i32_0 : i32, i32
  }
  func.func @transform_7(%arg0: i32) -> (i32, i32) {
    %c0_i32 = arith.constant 0 : i32
    %c0_i32_0 = arith.constant 0 : i32
    %c0_i32_1 = arith.constant 0 : i32
    return %c0_i32, %c0_i32_0 : i32, i32
  }
  func.func @transform_8(%arg0: i32) -> (i32, i32) {
    %c0_i32 = arith.constant 0 : i32
    %c0_i32_0 = arith.constant 0 : i32
    %c0_i32_1 = arith.constant 0 : i32
    return %c0_i32, %c0_i32_0 : i32, i32
  }
  func.func @transform_9(%arg0: i32) -> (i32, i32, i32) {
    %c0_i32 = arith.constant 0 : i32
    %c0_i32_0 = arith.constant 0 : i32
    %c0_i32_1 = arith.constant 0 : i32
    return %arg0, %c0_i32, %c0_i32_0 : i32, i32, i32
  }
}

</mosaic_0001>

<bundles_post_ra>
// kernel: tpu_custom_call.1
= control target key start
LH: loop header
LB: loop body
LE: loop exit
PB: predicated region body
PF: predicated region fallthrough
CT: control target
= control target key end

     0   :  { %s11000_s30 = smov 0   ;;  %s14112_s0 = inlined_call_operand.vmem [shape: f32[2,128,32], index: 0, kind: input, shape index: {}]   ;;  %s14113_s1 = inlined_call_operand.vmem [shape: f32[32,96], index: 1, kind: input, shape index: {}]   ;;  %s14114_s2 = inlined_call_operand.vmem [shape: f32[1,96], index: 2, kind: input, shape index: {}]   ;;  %s14115_s3 = inlined_call_operand.vmem [shape: f32[32,96], index: 3, kind: input, shape index: {}]   ;;  %s14116_s4 = inlined_call_operand.vmem [shape: f32[1,96], index: 4, kind: input, shape index: {}]   ;;  %s14117_s5 = inlined_call_operand.vmem [shape: f32[64,32], index: 5, kind: input, shape index: {}]   ;;  %s14118_s6 = inlined_call_operand.vmem [shape: f32[1,32], index: 6, kind: input, shape index: {}]   ;;  %s14119_s7 = inlined_call_operand.vmem [shape: f32[1,32], index: 7, kind: input, shape index: {}]   ;;  %s14120_s8 = inlined_call_operand.vmem [shape: f32[1,32], index: 8, kind: input, shape index: {}]   ;;  %s14121_s9 = inlined_call_operand.vmem [shape: f32[2,128,32], index: 9, kind: output, shape index: {}]  }
   0x1 LB: > { %s8678_s10 = sadd.s32 4294967295, %s10930_s30   ;;  %p8682_p0 = scmp.ge.s32.totalorder %s10930_s30, 1  ;;  %s10930_s30 = sphi %s11000_s30, %s19_s30  }
   0x2   : > { %p287_p1 = scmp.lt.s32.totalorder %s10930_s30, 3 }
   0x4   : > { %p288_p2 = pnand %p8682_p0, %p287_p1 }
   0x6   : > { %291 = sbr.rel (%p288_p2) target bundleno = 9205 (0x23f5), region = 56 }
   0xb   : > { %v352_v0 = vld [vmem:[%s14113_s1 + $0x18] sm:$0xff]  ;;  %v351_v1 = vld [vmem:[%s14113_s1 + $0x10] sm:$0xff]  ;;  %p323_p3 = scmp.lt.s32.totalorder %s8678_s10, 1  ;;  %v350_v4 = vld [vmem:[%s14113_s1 + $0x8] sm:$0xff]  ;;  %vm360_vm0 = vcmask 261120   ;;  %s10932_s14 = smov 96  }
   0xc   : > { %9543 = vmatprep.subr.mxu0 %v352_v0  ;;  %v557_v2 = vld [vmem:[%s14115_s3 + $0x18] sm:$0xff]  ;;  %v556_v3 = vld [vmem:[%s14115_s3 + $0x10] sm:$0xff]  ;;  %v555_v5 = vld [vmem:[%s14115_s3 + $0x8] sm:$0xff]  ;;  %vm896_vm1 = vcmask 64512   ;;  %s10933_s17 = smov 64   ;;  %vm10935_vm2 = vmmov 0  }
   0xd   : > { %9544 = vmatpush3.msra.mxu0 %v352_v0  ;;  %s14412_s10 = smov (!%p323_p3, %s8678_s10), 1  ;;  %9575 = vmatprep.subr.mxu1 %v557_v2  ;;  %v349_v6 = vld [vmem:[%s14113_s1] sm:$0xff]  ;;  %s10937_s18 = smov 88   ;;  %vm2613_vm4 = vcmask 326912   ;;  %vm2916_vm5 = vcmask 130112   ;;  %vm4440_vm6 = vcmask 392512  }
   0xe   : > { %9545 = vmatprep.subr.mxu0 %v351_v1  ;;  %9576 = vmatpush3.msra.mxu1 %v557_v2  ;;  %s9068_s25 = sshll.u32 %s14412_s10, 7  ;;  %v554_v9 = vld [vmem:[%s14115_s3] sm:$0xff]  ;;  %s10938_s19 = smov 120   ;;  %vm4743_vm7 = vcmask 195712   ;;  %vm6267_vm8 = vcmask 458112   ;;  %vm6570_vm9 = vcmask 261312  }
   0xf   : > { %9546 = vmatpush3.msra.mxu0 %v351_v1  ;;  %9577 = vmatprep.subr.mxu1 %v556_v3  ;;  %s11037_s28 = scalar_lea.vmem %s14112_s0, %s9068_s25  ;;  %v11093_v24 = vld [vmem:[%s14114_s2] ss:$0 sm:$0xff]  ;;  %v10934_v1 = vmov 0.0   ;;  %s10939_s20 = smov 56   ;;  %vm8094_vm10 = vcmask 523712   ;;  %vm8142_vm11 = vcmask 523264  }
  0x10   : > { %9547 = vmatprep.subr.mxu0 %v350_v4  ;;  %9578 = vmatpush3.msra.mxu1 %v556_v3  ;;  %v333_v7 = vld [vmem:[%s11037_s28] sm:$0xff]  ;;  %v334_v8 = vld [vmem:[%s11037_s28 + $0x8] sm:$0xff]  ;;  %v335_v10 = vld [vmem:[%s11037_s28 + $0x10] sm:$0xff]  ;;  %s10940_s21 = smov 80   ;;  %s10941_s22 = smov 112  }
  0x11   : > { %9548 = vmatpush3.msra.mxu0 %v350_v4  ;;  %9579 = vmatprep.subr.mxu1 %v555_v5  ;;  %v336_v11 = vld [vmem:[%s11037_s28 + $0x18] sm:$0xff]  ;;  %v337_v12 = vld [vmem:[%s11037_s28 + $0x20] sm:$0xff]  ;;  %v338_v13 = vld [vmem:[%s11037_s28 + $0x28] sm:$0xff]  ;;  %s10942_s23 = smov 48   ;;  %s10943_s24 = smov 72  }
  0x12   : > { %9549 = vmatprep.subr.mxu0 %v349_v6  ;;  %9551 = vmatprep.mubr.msk.f32.mxu0 %vm360_vm0, %v333_v7  ;;  %v339_v14 = vld [vmem:[%s11037_s28 + $0x30] sm:$0xff]  ;;  %v340_v15 = vld [vmem:[%s11037_s28 + $0x38] sm:$0xff]  ;;  %v341_v16 = vld [vmem:[%s11037_s28 + $0x40] sm:$0xff]  ;;  %s10944_s26 = smov 104   ;;  %s10945_s27 = smov 40  }
  0x13   : > { %9550 = vmatpush3.msra.mxu0 %v349_v6  ;;  %9580 = vmatpush3.msra.mxu1 %v555_v5  ;;  %v342_v17 = vld [vmem:[%s11037_s28 + $0x48] sm:$0xff]  ;;  %v343_v18 = vld [vmem:[%s11037_s28 + $0x50] sm:$0xff]  ;;  %v344_v19 = vld [vmem:[%s11037_s28 + $0x58] sm:$0xff]  ;;  %s10946_s29 = smov 32   ;;  %s10947_s11 = smov 8  }
  0x14   : > { %9552 = vmatmul.mubr.msk.f32.vlgmr.msra.gmra.mxu0 %vm360_vm0, %v334_v8  ;;  %9581 = vmatprep.subr.mxu1 %v554_v9  ;;  %v345_v20 = vld [vmem:[%s11037_s28 + $0x60] sm:$0xff]  ;;  %v346_v21 = vld [vmem:[%s11037_s28 + $0x68] sm:$0xff]  ;;  %v347_v22 = vld [vmem:[%s11037_s28 + $0x70] sm:$0xff]  ;;  %s10948_s12 = smov 16   ;;  %s10949_s13 = smov 24  }
  0x15   : > { %9554 = vmatprep.mubr.msk.f32.mxu0 %vm360_vm0, %v335_v10  ;;  %9582 = vmatpush3.msra.mxu1 %v554_v9  ;;  %v348_v23 = vld [vmem:[%s11037_s28 + $0x78] sm:$0xff]  ;;  %v8704_v47 = vld [vmem:[%s14116_s4] ss:$0 sm:$0xff] }
  0x16   : > { %9583 = vmatprep.mubr.msk.f32.mxu1 %vm360_vm0, %v333_v7  ;;  %9607 = vmatprep.subr.mxu0 %v10934_v1 }
  0x17   : > { %9584 = vmatmul.mubr.msk.f32.vlgmr.msra.gmra.mxu1 %vm360_vm0, %v334_v8 }
  0x18   : > { %9555 = vmatmul.mubr.msk.f32.gmra.mxu0 %vm360_vm0, %v336_v11  ;;  %9586 = vmatprep.mubr.msk.f32.mxu1 %vm360_vm0, %v335_v10 }
  0x19   : > { %9557 = vmatprep.mubr.msk.f32.mxu0 %vm360_vm0, %v337_v12 }
  0x1b   : > { %9587 = vmatmul.mubr.msk.f32.gmra.mxu1 %vm360_vm0, %v336_v11 }
  0x1c   : > { %9558 = vmatmul.mubr.msk.f32.gmra.mxu0 %vm360_vm0, %v338_v13  ;;  %9589 = vmatprep.mubr.msk.f32.mxu1 %vm360_vm0, %v337_v12 }
  0x1d   : > { %9560 = vmatprep.mubr.msk.f32.mxu0 %vm360_vm0, %v339_v14 }
  0x1f   : > { %9590 = vmatmul.mubr.msk.f32.gmra.mxu1 %vm360_vm0, %v338_v13 }
  0x20   : > { %9561 = vmatmul.mubr.msk.f32.gmra.mxu0 %vm360_vm0, %v340_v15  ;;  %9592 = vmatprep.mubr.msk.f32.mxu1 %vm360_vm0, %v339_v14 }
  0x21   : > { %9563 = vmatprep.mubr.msk.f32.mxu0 %vm360_vm0, %v341_v16 }
  0x23   : > { %9593 = vmatmul.mubr.msk.f32.gmra.mxu1 %vm360_vm0, %v340_v15 }
  0x24   : > { %9595 = vmatprep.mubr.msk.f32.mxu1 %vm360_vm0, %v341_v16  ;;  %9564 = vmatmul.mubr.msk.f32.gmra.mxu0 %vm360_vm0, %v342_v17 }
  0x25   : > { %9566 = vmatprep.mubr.msk.f32.mxu0 %vm360_vm0, %v343_v18 }
  0x27   : > { %9596 = vmatmul.mubr.msk.f32.gmra.mxu1 %vm360_vm0, %v342_v17 }
  0x28   : > { %9598 = vmatprep.mubr.msk.f32.mxu1 %vm360_vm0, %v343_v18  ;;  %9567 = vmatmul.mubr.msk.f32.gmra.mxu0 %vm360_vm0, %v344_v19 }
  0x29   : > { %9569 = vmatprep.mubr.msk.f32.mxu0 %vm360_vm0, %v345_v20 }
  0x2b   : > { %9599 = vmatmul.mubr.msk.f32.gmra.mxu1 %vm360_vm0, %v344_v19 }
  0x2c   : > { %9601 = vmatprep.mubr.msk.f32.mxu1 %vm360_vm0, %v345_v20  ;;  %9570 = vmatmul.mubr.msk.f32.gmra.mxu0 %vm360_vm0, %v346_v21 }
  0x2d   : > { %9572 = vmatprep.mubr.msk.f32.mxu0 %vm360_vm0, %v347_v22 }
  0x2f   : > { %9602 = vmatmul.mubr.msk.f32.gmra.mxu1 %vm360_vm0, %v346_v21 }
  0x30   : > { %9604 = vmatprep.mubr.msk.f32.mxu1 %vm360_vm0, %v347_v22  ;;  %9573 = vmatmul.mubr.msk.f32.gmra.mxu0 %vm360_vm0, %v348_v23 }
  0x31   : > { %9639 = vmatprep.mubr.msk.f32.mxu0 %vm10935_vm2, %v10934_v1 }
  0x33   : > { %9605 = vmatmul.mubr.msk.f32.gmra.mxu1 %vm360_vm0, %v348_v23 }
  0xd4   : > { %v9553_v25 = vpop.f32.mrf.mxu0 }
  0xd5   : > { %v11096_v26 = vadd.f32 %v9553_v25, %v11093_v24 }
  0xd6   : > { %v475_v27 = vpop.f32.mrf.mxu0 }
  0xd7   : > { %14189 = vst [vmem:[#allocation3_spill] sm:$0xff] %v11096_v26  ;;  %v11099_v28 = vadd.f32 %v11093_v24, %v475_v27  ;;  %890 = vrot.lane.b32.xlu1 %v11096_v26, %s10932_s14  ;;  %v9585_v29 = vpop.f32.mrf.mxu1  ;;  %v11230_v20 = vmul.f32 0.35355338, %v11096_v26 }
  0xd8   : > { %v9556_v30 = vpop.f32.mrf.mxu0  ;;  %v11161_v55 = vadd.f32 %v9585_v29, %v8704_v47 }
  0xd9   : > { %14190 = vst [vmem:[#allocation4_spill] sm:$0xff] %v11099_v28  ;;  %v11104_v31 = vadd.f32 %v9556_v30, %v11093_v24  ;;  %v11107_v32 = vmul.f32 0.35355338, %v11099_v28  ;;  %v631_v33 = vpop.f32.mrf.mxu1  ;;  %14198 = vst [vmem:[#allocation12_spill] sm:$0xff] %v11230_v20 }
  0xda   : > { %v485_v34 = vpop.f32.mrf.mxu0  ;;  %v11167_v58 = vadd.f32 %v8704_v47, %v631_v33 }
  0xdb   : > { %14191 = vst [vmem:[#allocation5_spill] sm:$0xff] %v11104_v31  ;;  %14192 = vst [vmem:[#allocation6_spill] sm:$0xff] %v11107_v32  ;;  %894 = vrot.lane.b32.xlu0 %v11104_v31, %s10932_s14  ;;  %888 = vrot.lane.b32.xlu1 %v11099_v28, %s10932_s14  ;;  %v9588_v35 = vpop.f32.mrf.mxu1  ;;  %v11116_v37 = vadd.f32 %v11093_v24, %v485_v34  ;;  %v11242_v25 = vmul.f32 0.35355338, %v11104_v31 }
  0xdc   : > { %9650 = vmatprep.mubr.msk.f32.mxu1 %vm896_vm1, %v11107_v32  ;;  %v9559_v36 = vpop.f32.mrf.mxu0  ;;  %v11147_v52 = vadd.f32 %v9588_v35, %v8704_v47 }
  0xdd   : > { %14193 = vst [vmem:[#allocation7_spill] sm:$0xff] %v11116_v37  ;;  %v641_v38 = vpop.f32.mrf.mxu1  ;;  %v11124_v45 = vadd.f32 %v9559_v36, %v11093_v24  ;;  %v11234_v22 = vmul.f32 0.35355338, %v11116_v37  ;;  %14200 = vst [vmem:[#allocation14_spill] sm:$0xff] %v11242_v25 }
  0xde   : > { %v495_v39 = vpop.f32.mrf.mxu0  ;;  %v11155_v54 = vadd.f32 %v8704_v47, %v641_v38 }
  0xdf   : > { %892 = vrot.lane.b32.xlu0 %v11116_v37, %s10932_s14  ;;  %v9591_v40 = vpop.f32.mrf.mxu1  ;;  %14195 = vst [vmem:[#allocation9_spill] sm:$0xff] %v11124_v45  ;;  %v11135_v48 = vadd.f32 %v11093_v24, %v495_v39  ;;  %14199 = vst [vmem:[#allocation13_spill] sm:$0xff] %v11234_v22  ;;  %v11262_v38 = vmul.f32 0.35355338, %v11124_v45 }
  0xe0   : > { %v9562_v41 = vpop.f32.mrf.mxu0  ;;  %v11139_v50 = vadd.f32 %v9591_v40, %v8704_v47 }
  0xe1   : > { %v11121_v42 = vadd.f32 %v9562_v41, %v11093_v24  ;;  %v651_v44 = vpop.f32.mrf.mxu1  ;;  %14197 = vst [vmem:[#allocation11_spill] sm:$0xff] %v11135_v48  ;;  %v11246_v29 = vmul.f32 0.35355338, %v11135_v48  ;;  %14202 = vst [vmem:[#allocation16_spill] sm:$0xff] %v11262_v38 }
  0xe2   : > { %v505_v43 = vpop.f32.mrf.mxu0  ;;  %v11151_v53 = vadd.f32 %v8704_v47, %v651_v44 }
  0xe3   : > { %14194 = vst [vmem:[#allocation8_spill] sm:$0xff] %v11121_v42  ;;  %v11127_v46 = vadd.f32 %v11093_v24, %v505_v43  ;;  %1169 = vrot.lane.b32.xlu0 %v11121_v42, %s10932_s14  ;;  %v9594_v49 = vpop.f32.mrf.mxu1  ;;  %14201 = vst [vmem:[#allocation15_spill] sm:$0xff] %v11246_v29  ;;  %v11272_v43 = vmul.f32 0.35355338, %v11121_v42 }
  0xe4   : > { %v11145_v51 = vadd.f32 %v9594_v49, %v8704_v47 }
  0xe5   : > { %14196 = vst [vmem:[#allocation10_spill] sm:$0xff] %v11127_v46  ;;  %1167 = vrot.lane.b32.xlu1 %v11127_v46, %s10932_s14  ;;  %v661_v56 = vpop.f32.mrf.mxu1  ;;  %v11265_v40 = vmul.f32 0.35355338, %v11127_v46  ;;  %14204 = vst [vmem:[#allocation18_spill] sm:$0xff] %v11272_v43 }
  0xe6   : > { %v11173_v59 = vadd.f32 %v8704_v47, %v661_v56 }
  0xe7   : > { %1165 = vrot.lane.b32.xlu0 %v11124_v45, %s10932_s14  ;;  %v9597_v57 = vpop.f32.mrf.mxu1  ;;  %14203 = vst [vmem:[#allocation17_spill] sm:$0xff] %v11265_v40 }
  0xe8   : > { %v11181_v62 = vadd.f32 %v9597_v57, %v8704_v47 }
  0xe9   : > { %1163 = vrot.lane.b32.xlu1 %v11135_v48, %s10932_s14  ;;  %v671_v60 = vpop.f32.mrf.mxu1 }
  0xea   : > { %v11192_v4 = vadd.f32 %v8704_v47, %v671_v60 }
  0xeb   : > { %776 = vrot.lane.b32.xlu0 %v11139_v50, %s10932_s14  ;;  %v9600_v61 = vpop.f32.mrf.mxu1 }
  0xec   : > { %v11200_v7 = vadd.f32 %v9600_v61, %v8704_v47 }
  0xed   : > { %780 = vrot.lane.b32.xlu1 %v11145_v51, %s10932_s14  ;;  %v681_v63 = vpop.f32.mrf.mxu1 }
  0xee   : > { %v11190_v2 = vadd.f32 %v8704_v47, %v681_v63 }
  0xef   : > { %772 = vrot.lane.b32.xlu0 %v11147_v52, %s10932_s14  ;;  %v9603_v0 = vpop.f32.mrf.mxu1 }
  0xf0   : > { %v11198_v6 = vadd.f32 %v9603_v0, %v8704_v47 }
  0xf1   : > { %774 = vrot.lane.b32.xlu1 %v11151_v53, %s10932_s14  ;;  %v691_v3 = vpop.f32.mrf.mxu1 }
  0xf2   : > { %v11206_v9 = vadd.f32 %v8704_v47, %v691_v3 }
  0xf3   : > { %770 = vrot.lane.b32.xlu0 %v11155_v54, %s10932_s14  ;;  %v9606_v5 = vpop.f32.mrf.mxu1 }
  0xf4   : > { %v11214_v11 = vadd.f32 %v9606_v5, %v8704_v47 }
  0xf5   : > { %1052 = vrot.lane.b32.xlu1 %v11104_v31, %s10933_s17  ;;  %v701_v8 = vpop.f32.mrf.mxu1 }
  0xf6   : > { %v11210_v10 = vadd.f32 %v8704_v47, %v701_v8 }
  0xf7   : > { %768 = vrot.lane.b32.xlu0 %v11161_v55, %s10932_s14 }
  0xf9   : > { %1048 = vrot.lane.b32.xlu1 %v11096_v26, %s10933_s17 }
  0xfb   : > { %766 = vrot.lane.b32.xlu0 %v11167_v58, %s10932_s14 }
  0xfd   : > { %778 = vrot.lane.b32.xlu1 %v11173_v59, %s10932_s14 }
  0xff   : > { %1050 = vrot.lane.b32.xlu0 %v11116_v37, %s10933_s17 }
 0x101   : > { %1324 = vrot.lane.b32.xlu1 %v11127_v46, %s10933_s17 }
 0x103   : > { %1046 = vrot.lane.b32.xlu0 %v11099_v28, %s10933_s17 }
 0x105   : > { %784 = vrot.lane.b32.xlu1 %v11181_v62, %s10932_s14 }
 0x107   : > { %1326 = vrot.lane.b32.xlu0 %v11121_v42, %s10933_s17 }
 0x109   : > { %786 = vrot.lane.b32.xlu1 %v11190_v2, %s10932_s14 }
 0x10b   : > { %782 = vrot.lane.b32.xlu0 %v11192_v4, %s10932_s14 }
 0x10d   : > { %792 = vrot.lane.b32.xlu1 %v11198_v6, %s10932_s14 }
 0x10f   : > { %788 = vrot.lane.b32.xlu0 %v11200_v7, %s10932_s14 }
 0x111   : > { %790 = vrot.lane.b32.xlu1 %v11206_v9, %s10932_s14 }
 0x113   : > { %794 = vrot.lane.b32.xlu0 %v11210_v10, %s10932_s14 }
 0x115   : > { %796 = vrot.lane.b32.xlu1 %v11214_v11, %s10932_s14 }
 0x149   : > { %v891_v12 = vpop.permute.xlu1 %890 }
 0x14d   : > { %v895_v13 = vpop.permute.xlu0 %894  ;;  %v889_v15 = vpop.permute.xlu1 %888 }
 0x14e   : > { %9642 = vmatprep.subr.msk.mxu1 %vm896_vm1, %v895_v13 }
 0x14f   : > { %9643 = vmatpush3.xpose.msk.msra.mxu1 %vm896_vm1, %v895_v13 }
 0x151   : > { %v893_v14 = vpop.permute.xlu0 %892 }
 0x152   : > { %9644 = vmatprep.subr.msk.mxu1 %vm896_vm1, %v893_v14 }
 0x153   : > { %9645 = vmatpush3.xpose.msk.msra.mxu1 %vm896_vm1, %v893_v14 }
 0x154   : > { %9646 = vmatprep.subr.msk.mxu1 %vm896_vm1, %v891_v12 }
 0x155   : > { %v1170_v16 = vpop.permute.xlu0 %1169 }
 0x157   : > { %9647 = vmatpush3.xpose.msk.msra.mxu1 %vm896_vm1, %v891_v12  ;;  %v1168_v17 = vpop.permute.xlu1 %1167  ;;  %v742_v12 = vlaneseq }
 0x158   : > { %9648 = vmatprep.subr.msk.mxu1 %vm896_vm1, %v889_v15 }
 0x159   : > { %v1166_v18 = vpop.permute.xlu0 %1165  ;;  %v743_v13 = vshrl.u32 %v742_v12, 7  ;;  %v745_v14 = vand.u32 127, %v742_v12 }
 0x15b   : > { %9649 = vmatpush3.xpose.msk.msra.mxu1 %vm896_vm1, %v889_v15  ;;  %v1164_v19 = vpop.permute.xlu1 %1163  ;;  %v746_v15 = vmul.u32 16, %v743_v13 }
 0x15c   : > { %9670 = vmatprep.subr.msk.mxu1 %vm896_vm1, %v1170_v16 }
 0x15d   : > { %v777_v21 = vpop.permute.xlu0 %776  ;;  %vm747_vm3 = vcmp.eq.s32.totalorder %v745_v14, %v746_v15 }
 0x15e   : > { %9651 = vmatmul.mubr.msk.f32.vlgmr.msra.gmra.mxu1 %vm896_vm1, %v11230_v20 }
 0x15f   : > { %v781_v23 = vpop.permute.xlu1 %780  ;;  %9653 = vmatprep.mubr.msk.f32.mxu1 %vm896_vm1, %v11234_v22  ;;  %9671 = vmatpush3.xpose.msk.msra.mxu1 %vm896_vm1, %v1170_v16  ;;  %v10936_v16 = vmov 1.0  }
 0x160   : > { %9672 = vmatprep.subr.msk.mxu1 %vm896_vm1, %v1168_v17 }
 0x161   : > { %v773_v27 = vpop.permute.xlu0 %772 }
 0x162   : > { %9654 = vmatmul.mubr.msk.f32.gmra.mxu1 %vm896_vm1, %v11242_v25 }
 0x163   : > { %v775_v30 = vpop.permute.xlu1 %774  ;;  %9673 = vmatpush3.xpose.msk.msra.mxu1 %vm896_vm1, %v1168_v17  ;;  %9678 = vmatprep.mubr.msk.f32.mxu1 %vm896_vm1, %v11246_v29 }
 0x164   : > { %9674 = vmatprep.subr.msk.mxu1 %vm896_vm1, %v1166_v18 }
 0x165   : > { %v771_v33 = vpop.permute.xlu0 %770 }
 0x167   : > { %v11254_v34 = vpop.permute.xlu1 %1052  ;;  %9675 = vmatpush3.xpose.msk.msra.mxu1 %vm896_vm1, %v1166_v18 }
 0x168   : > { %9676 = vmatprep.subr.msk.mxu1 %vm896_vm1, %v1164_v19 }
 0x169   : > { %v769_v35 = vpop.permute.xlu0 %768 }
 0x16b   : > { %v11258_v36 = vpop.permute.xlu1 %1048  ;;  %9677 = vmatpush3.xpose.msk.msra.mxu1 %vm896_vm1, %v1164_v19 }
 0x16d   : > { %v767_v39 = vpop.permute.xlu0 %766 }
 0x16e   : > { %9679 = vmatmul.mubr.msk.f32.vlgmr.msra.gmra.mxu1 %vm896_vm1, %v11262_v38 }
 0x16f   : > { %v779_v41 = vpop.permute.xlu1 %778  ;;  %9681 = vmatprep.mubr.msk.f32.mxu1 %vm896_vm1, %v11265_v40 }
 0x171   : > { %v1051_v44 = vpop.permute.xlu0 %1050 }
 0x172   : > { %9682 = vmatmul.mubr.msk.f32.gmra.mxu1 %vm896_vm1, %v11272_v43 }
 0x173   : > { %v11276_v47 = vpop.permute.xlu1 %1324 }
 0x175   : > { %v1047_v49 = vpop.permute.xlu0 %1046 }
 0x177   : > { %v785_v56 = vpop.permute.xlu1 %784 }
 0x179   : > { %v11278_v57 = vpop.permute.xlu0 %1326 }
 0x17b   : > { %v787_v60 = vpop.permute.xlu1 %786 }
 0x17d   : > { %v783_v61 = vpop.permute.xlu0 %782 }
 0x17f   : > { %v793_v63 = vpop.permute.xlu1 %792 }
 0x181   : > { %v789_v0 = vpop.permute.xlu0 %788 }
 0x183   : > { %v791_v3 = vpop.permute.xlu1 %790 }
 0x185   : > { %v795_v8 = vpop.permute.xlu0 %794 }
 0x187   : > { %v797_v5 = vpop.permute.xlu1 %796 }
 0x188   : > { %9608 = vmatpush3.msra.mxu0 %v797_v5 }
 0x189   : > { %9609 = vmatprep.subr.mxu0 %v10934_v1 }
 0x18a   : > { %9610 = vmatpush3.msra.mxu0 %v795_v8 }
 0x18b   : > { %9611 = vmatprep.subr.mxu0 %v10934_v1 }
 0x18c   : > { %9612 = vmatpush3.msra.mxu0 %v793_v63 }
 0x18d   : > { %9613 = vmatprep.subr.mxu0 %v10934_v1 }
 0x18e   : > { %9614 = vmatpush3.msra.mxu0 %v791_v3 }
 0x18f   : > { %9615 = vmatprep.subr.mxu0 %v10934_v1 }
 0x190   : > { %9616 = vmatpush3.msra.mxu0 %v789_v0 }
 0x191   : > { %9617 = vmatprep.subr.mxu0 %v10934_v1 }
 0x192   : > { %9618 = vmatpush3.msra.mxu0 %v787_v60 }
 0x193   : > { %9619 = vmatprep.subr.mxu0 %v10934_v1 }
 0x194   : > { %9620 = vmatpush3.msra.mxu0 %v785_v56 }
 0x195   : > { %9621 = vmatprep.subr.mxu0 %v10934_v1 }
 0x196   : > { %9622 = vmatpush3.msra.mxu0 %v783_v61 }
 0x197   : > { %9623 = vmatprep.subr.mxu0 %v10934_v1 }
 0x198   : > { %9624 = vmatpush3.msra.mxu0 %v781_v23 }
 0x199   : > { %9625 = vmatprep.subr.mxu0 %v10934_v1 }
 0x19a   : > { %9626 = vmatpush3.msra.mxu0 %v779_v41 }
 0x19b   : > { %9627 = vmatprep.subr.mxu0 %v10934_v1 }
 0x19c   : > { %9628 = vmatpush3.msra.mxu0 %v777_v21 }
 0x19d   : > { %9629 = vmatprep.subr.mxu0 %v10934_v1 }
 0x19e   : > { %9630 = vmatpush3.msra.mxu0 %v775_v30 }
 0x19f   : > { %9631 = vmatprep.subr.mxu0 %v10934_v1 }
 0x1a0   : > { %9632 = vmatpush3.msra.mxu0 %v773_v27 }
 0x1a1   : > { %9633 = vmatprep.subr.mxu0 %v10934_v1 }
 0x1a2   : > { %9634 = vmatpush3.msra.mxu0 %v771_v33 }
 0x1a3   : > { %9635 = vmatprep.subr.mxu0 %v10934_v1 }
 0x1a4   : > { %9636 = vmatpush3.msra.mxu0 %v769_v35 }
 0x1a5   : > { %9637 = vmatprep.subr.mxu0 %v10934_v1 }
 0x1a6   : > { %9638 = vmatpush3.msra.mxu0 %v767_v39 }
 0x1a7   : > { %9656 = vmatprep.subr.mxu0 %v11254_v34  ;;  %9640 = vmatmul.mubr.msk.f32.vlgmr.msra.gmra.mxu0 %vm747_vm3, %v10936_v16  ;;  %v9565_v16 = vpop.f32.mrf.mxu0 }
 0x1a8   : > { %9657 = vmatpush3.msra.mxu0 %v11254_v34 }
 0x1a9   : > { %9658 = vmatprep.subr.mxu0 %v1051_v44 }
 0x1aa   : > { %9659 = vmatpush3.msra.mxu0 %v1051_v44 }
 0x1ab   : > { %9660 = vmatprep.subr.mxu0 %v11258_v36 }
 0x1ac   : > { %9661 = vmatpush3.msra.mxu0 %v11258_v36 }
 0x1ad   : > { %9662 = vmatprep.subr.mxu0 %v1047_v49 }
 0x1ae   : > { %9663 = vmatpush3.msra.mxu0 %v1047_v49 }
 0x1af   : > { %9684 = vmatprep.subr.mxu0 %v11278_v57 }
 0x21e   : > { %v9652_v17 = vpop.f32.mrf.mxu1 }
 0x21f   : > { %v1005_v1 = vsel %vm360_vm0, %v9652_v17, -inf }
 0x220   : > { %1006 = vmax.xlane.f32.xlu1 %v1005_v1  ;;  %v983_v18 = vpop.f32.mrf.mxu1 }
 0x221   : > { %v1002_v19 = vsel %vm360_vm0, %v983_v18, -inf }
 0x222   : > { %1003 = vmax.xlane.f32.xlu0 %v1002_v19  ;;  %v9655_v21 = vpop.f32.mrf.mxu1 }
 0x223   : > { %v1011_v23 = vsel %vm360_vm0, %v9655_v21, -inf }
 0x224   : > { %v993_v27 = vpop.f32.mrf.mxu1 }
 0x225   : > { %v1008_v30 = vsel %vm360_vm0, %v993_v27, -inf }
 0x226   : > { %1012 = vmax.xlane.f32.xlu0 %v1011_v23 }
 0x22a   : > { %1009 = vmax.xlane.f32.xlu0 %v1008_v30 }
 0x22e   : > { %v9680_v33 = vpop.f32.mrf.mxu1 }
 0x22f   : > { %v1279_v34 = vsel %vm360_vm0, %v9680_v33, -inf }
 0x230   : > { %v1257_v35 = vpop.f32.mrf.mxu1  ;;  %1280 = vmax.xlane.f32.xlu0 %v1279_v34 }
 0x231   : > { %v1276_v36 = vsel %vm360_vm0, %v1257_v35, -inf }
 0x232   : > { %1277 = vmax.xlane.f32.xlu1 %v1276_v36  ;;  %v9683_v39 = vpop.f32.mrf.mxu1 }
 0x233   : > { %v1285_v41 = vsel %vm360_vm0, %v9683_v39, -inf }
 0x234   : > { %v1267_v44 = vpop.f32.mrf.mxu1  ;;  %1286 = vmax.xlane.f32.xlu0 %v1285_v41 }
 0x235   : > { %v1282_v49 = vsel %vm360_vm0, %v1267_v44, -inf }
 0x236   : > { %1283 = vmax.xlane.f32.xlu1 %v1282_v49 }
 0x247   : > { %1320 = vrot.lane.b32.xlu1 %v11135_v48, %s10933_s17 }
 0x24a   : > { %1322 = vrot.lane.b32.xlu0 %v11124_v45, %s10933_s17 }
 0x2a9   : > { %v1007_v56 = vpop.xlane.xlu1 %1006 }
 0x2aa   : > { %v1015_v60 = vsub.f32 %v9652_v17, %v1007_v56 }
 0x2ab   : > { %v1004_v61 = vpop.xlane.xlu0 %1003 }
 0x2ac   : > { %v1020_v63 = vmul.f32 1.442695, %v1015_v60  ;;  %v1014_v0 = vsub.f32 %v983_v18, %v1004_v61  ;;  %v515_v18 = vpop.f32.mrf.mxu0 }
 0x2ae   : > { %10364 = vpow2.f32 %v1020_v63  ;;  %v1018_v3 = vmul.f32 1.442695, %v1014_v0 }
 0x2af   : > { %v1013_v5 = vpop.xlane.xlu0 %1012 }
 0x2b0   : > { %10366 = vpow2.f32 %v1018_v3  ;;  %v1017_v8 = vsub.f32 %v9655_v21, %v1013_v5  ;;  %v9568_v21 = vpop.f32.mrf.mxu0 }
 0x2b1   : > { %v11330_v41 = vadd.f32 %v9568_v21, %v11093_v24 }
 0x2b2   : > { %v1024_v12 = vmul.f32 1.442695, %v1017_v8  ;;  %v525_v23 = vpop.f32.mrf.mxu0 }
 0x2b3   : > { %v11325_v30 = vadd.f32 %v11093_v24, %v525_v23  ;;  %v1010_v34 = vpop.xlane.xlu0 %1009 }
 0x2b4   : > { %10368 = vpow2.f32 %v1024_v12  ;;  %v1016_v49 = vsub.f32 %v993_v27, %v1010_v34 }
 0x2b6   : > { %v1022_v61 = vmul.f32 1.442695, %v1016_v49 }
 0x2b8   : > { %10370 = vpow2.f32 %v1022_v61  ;;  %v11358_v61 = vpop.f32.mrf.mxu0 }
 0x2b9   : > { %v1281_v56 = vpop.xlane.xlu0 %1280 }
 0x2ba   : > { %v1289_v63 = vsub.f32 %v9680_v33, %v1281_v56  ;;  %v11349_v56 = vadd.f32 %v9565_v16, %v11093_v24 }
 0x2bb   : > { %v11312_v13 = vpop.eup %10364  ;;  %v1278_v36 = vpop.xlane.xlu1 %1277 }
 0x2bc   : > { %v1029_v14 = vsel %vm360_vm0, %v11312_v13, 0.0  ;;  %v1294_v3 = vmul.f32 1.442695, %v1289_v63  ;;  %v1288_v5 = vsub.f32 %v1257_v35, %v1278_v36  ;;  %v11360_v63 = vpop.f32.mrf.mxu0 }
 0x2bd   : > { %v11316_v15 = vpop.eup %10366  ;;  %1030 = vadd.xlane.f32.xlu1 %v1029_v14  ;;  %v1287_v8 = vpop.xlane.xlu0 %1286 }
 0x2be   : > { %v1026_v17 = vsel %vm360_vm0, %v11316_v15, 0.0  ;;  %10372 = vpow2.f32 %v1294_v3  ;;  %v1292_v14 = vmul.f32 1.442695, %v1288_v5 }
 0x2bf   : > { %1027 = vadd.xlane.f32.xlu0 %v1026_v17  ;;  %v1284_v60 = vpop.xlane.xlu1 %1283  ;;  %v1291_v17 = vsub.f32 %v9683_v39, %v1287_v8 }
 0x2c0   : > { %v1290_v0 = vsub.f32 %v1267_v44, %v1284_v60  ;;  %v11352_v60 = vadd.f32 %v11093_v24, %v515_v18 }
 0x2c1   : > { %v11320_v1 = vpop.eup %10368  ;;  %v1323_v18 = vpop.permute.xlu0 %1322 }
 0x2c2   : > { %v1035_v19 = vsel %vm360_vm0, %v11320_v1, 0.0  ;;  %v1296_v12 = vmul.f32 1.442695, %v1290_v0  ;;  %v11362_v0 = vpop.f32.mrf.mxu0 }
 0x2c3   : > { %1036 = vadd.xlane.f32.xlu0 %v1035_v19  ;;  %v1298_v19 = vmul.f32 1.442695, %v1291_v17  ;;  %v1321_v8 = vpop.permute.xlu1 %1320 }
 0x2c4   : > { %10374 = vpow2.f32 %v1296_v12  ;;  %v11364_v3 = vpop.f32.mrf.mxu0 }
 0x2c5   : > { %10376 = vpow2.f32 %v1292_v14  ;;  %v10371_v27 = vpop.eup %10370 }
 0x2c6   : > { %10378 = vpow2.f32 %v1298_v19  ;;  %v1032_v21 = vsel %vm360_vm0, %v10371_v27, 0.0  ;;  %v11366_v5 = vpop.f32.mrf.mxu0 }
 0x2c8   : > { %v9641_v16 = vpop.f32.mrf.mxu0 }
 0x2cb   : > { %v11335_v23 = vpop.eup %10372 }
 0x2cc   : > { %v1303_v35 = vsel %vm360_vm0, %v11335_v23, 0.0 }
 0x2ce   : > { %1441 = vrot.lane.b32.xlu1 %v11325_v30, %s10932_s14 }
 0x2d1   : > { %v11337_v33 = vpop.eup %10374 }
 0x2d2   : > { %v10377_v44 = vpop.eup %10376  ;;  %v1306_v39 = vsel %vm360_vm0, %v11337_v33, 0.0 }
 0x2d3   : > { %v1300_v34 = vsel %vm360_vm0, %v10377_v44, 0.0  ;;  %v11344_v36 = vpop.eup %10378 }
 0x2d4   : > { %v1309_v49 = vsel %vm360_vm0, %v11344_v36, 0.0 }
 0x2d9   : > { %1443 = vrot.lane.b32.xlu0 %v11330_v41, %s10932_s14 }
 0x2f2   : > { %1033 = vadd.xlane.f32.xlu1 %v1032_v21 }
 0x2f6   : > { %1304 = vadd.xlane.f32.xlu1 %v1303_v35 }
 0x2f8   : > { %1307 = vadd.xlane.f32.xlu0 %v1306_v39 }
 0x2fa   : > { %1301 = vadd.xlane.f32.xlu1 %v1300_v34 }
 0x2fe   : > { %1310 = vadd.xlane.f32.xlu1 %v1309_v49 }
 0x30e   : > { %1439 = vrot.lane.b32.xlu0 %v11349_v56, %s10932_s14 }
 0x30f   : > { %1437 = vrot.lane.b32.xlu1 %v11352_v60, %s10932_s14 }
 0x346   : > { %v1031_v12 = vpop.xlane.xlu1 %1030 }
 0x347   : > { %10380 = vrcp.f32 %v1031_v12 }
 0x348   : > { %v1028_v14 = vpop.xlane.xlu0 %1027 }
 0x349   : > { %10382 = vrcp.f32 %v1028_v14 }
 0x34c   : > { %v1037_v39 = vpop.xlane.xlu0 %1036 }
 0x34d   : > { %10384 = vrcp.f32 %v1037_v39 }
 0x350   : > { %v1444_v34 = vpop.permute.xlu0 %1443 }
 0x354   : > { %v10381_v17 = vpop.eup %10380 }
 0x355   : > { %v1041_v35 = vmul.f32 %v10381_v17, %v11312_v13 }
 0x356   : > { %v10383_v19 = vpop.eup %10382 }
 0x357   : > { %v1039_v21 = vmul.f32 %v10383_v19, %v11316_v15  ;;  %v1442_v15 = vpop.permute.xlu1 %1441 }
 0x359   : > { %9664 = vmatprep.mubr.msk.f32.mxu0 %vm360_vm0, %v1039_v21 }
 0x35a   : > { %9665 = vmatmul.mubr.msk.f32.vlgmr.msra.gmra.mxu0 %vm360_vm0, %v1041_v35  ;;  %v10385_v14 = vpop.eup %10384 }
 0x35b   : > { %9685 = vmatpush3.msra.mxu0 %v11278_v57  ;;  %v1045_v17 = vmul.f32 %v10385_v14, %v11320_v1 }
 0x35c   : > { %9686 = vmatprep.subr.mxu0 %v11276_v47 }
 0x35d   : > { %9687 = vmatpush3.msra.mxu0 %v11276_v47 }
 0x35e   : > { %9688 = vmatprep.subr.mxu0 %v1323_v18 }
 0x35f   : > { %9689 = vmatpush3.msra.mxu0 %v1323_v18 }
 0x360   : > { %9690 = vmatprep.subr.mxu0 %v1321_v8 }
 0x361   : > { %9691 = vmatpush3.msra.mxu0 %v1321_v8 }
 0x362   : > { %9698 = vmatprep.subr.msk.mxu0 %vm896_vm1, %v1444_v34 }
 0x37b   : > { %v1034_v13 = vpop.xlane.xlu1 %1033 }
 0x37c   : > { %10386 = vrcp.f32 %v1034_v13 }
 0x37f   : > { %v1305_v49 = vpop.xlane.xlu1 %1304 }
 0x380   : > { %10388 = vrcp.f32 %v1305_v49 }
 0x381   : > { %v1308_v16 = vpop.xlane.xlu0 %1307 }
 0x382   : > { %10390 = vrcp.f32 %v1308_v16 }
 0x383   : > { %v1302_v57 = vpop.xlane.xlu1 %1301 }
 0x384   : > { %10392 = vrcp.f32 %v1302_v57 }
 0x387   : > { %v1311_v12 = vpop.xlane.xlu1 %1310 }
 0x388   : > { %10394 = vrcp.f32 %v1311_v12 }
 0x389   : > { %v10387_v47 = vpop.eup %10386 }
 0x38a   : > { %v1043_v18 = vmul.f32 %v10387_v47, %v10371_v27  ;;  %v11388_v27 = vmul.f32 0.35355338, %v11352_v60 }
 0x38c   : > { %9667 = vmatprep.mubr.msk.f32.mxu0 %vm360_vm0, %v1043_v18 }
 0x38d   : > { %9668 = vmatmul.mubr.msk.f32.gmra.mxu0 %vm360_vm0, %v1045_v17  ;;  %v10389_v8 = vpop.eup %10388 }
 0x38e   : > { %v1315_v39 = vmul.f32 %v10389_v8, %v11335_v23  ;;  %v1440_v23 = vpop.permute.xlu0 %1439 }
 0x38f   : > { %v10391_v19 = vpop.eup %10390 }
 0x390   : > { %v1317_v13 = vmul.f32 %v10391_v19, %v11337_v33  ;;  %v1438_v33 = vpop.permute.xlu1 %1437 }
 0x391   : > { %v10393_v21 = vpop.eup %10392 }
 0x392   : > { %v1313_v35 = vmul.f32 %v10393_v21, %v10377_v44  ;;  %v11399_v44 = vmul.f32 0.35355338, %v11349_v56 }
 0x394   : > { %9692 = vmatprep.mubr.msk.f32.mxu0 %vm360_vm0, %v1313_v35 }
 0x395   : > { %v10395_v49 = vpop.eup %10394  ;;  %9693 = vmatmul.mubr.msk.f32.vlgmr.msra.gmra.mxu0 %vm360_vm0, %v1315_v39 }
 0x396   : > { %9699 = vmatpush3.xpose.msk.msra.mxu0 %vm896_vm1, %v1444_v34  ;;  %9695 = vmatprep.mubr.msk.f32.mxu0 %vm360_vm0, %v1317_v13  ;;  %v1319_v1 = vmul.f32 %v10395_v49, %v11344_v36  ;;  %v11402_v36 = vmul.f32 0.35355338, %v11325_v30  ;;  %v11409_v34 = vmul.f32 0.35355338, %v11330_v41 }
 0x397   : > { %9700 = vmatprep.subr.msk.mxu0 %vm896_vm1, %v1442_v15 }
 0x398   : > { %14205 = vst [vmem:[#allocation19_spill] sm:$0xff] %v11402_v36 }
 0x399   : > { %9696 = vmatmul.mubr.msk.f32.gmra.mxu0 %vm360_vm0, %v1319_v1 }
 0x39a   : > { %9701 = vmatpush3.xpose.msk.msra.mxu0 %vm896_vm1, %v1442_v15  ;;  %9706 = vmatprep.mubr.msk.f32.mxu0 %vm896_vm1, %v11388_v27 }
 0x39b   : > { %9702 = vmatprep.subr.msk.mxu0 %vm896_vm1, %v1440_v23 }
 0x39e   : > { %9703 = vmatpush3.xpose.msk.msra.mxu0 %vm896_vm1, %v1440_v23  ;;  %v11433_v23 = vadd.f32 %v11093_v24, %v11364_v3 }
 0x39f   : > { %9704 = vmatprep.subr.msk.mxu0 %vm896_vm1, %v1438_v33 }
 0x3a2   : > { %9705 = vmatpush3.xpose.msk.msra.mxu0 %vm896_vm1, %v1438_v33  ;;  %v11441_v33 = vadd.f32 %v11362_v0, %v11093_v24 }
 0x3a5   : > { %9707 = vmatmul.mubr.msk.f32.vlgmr.msra.gmra.mxu0 %vm896_vm1, %v11399_v44 }
 0x3a6   : > { %9709 = vmatprep.mubr.msk.f32.mxu0 %vm896_vm1, %v11402_v36 }
 0x3a9   : > { %9710 = vmatmul.mubr.msk.f32.gmra.mxu0 %vm896_vm1, %v11409_v34 }
 0x41a   : > { %v9666_v15 = vpop.f32.mrf.mxu0 }
 0x41b   : > { %1156 = vst.msk [vmem:[#allocation2 + $0x8] sm:$0xff] %vm896_vm1, %v9666_v15 }
 0x41c   : > { %v1136_v16 = vpop.f32.mrf.mxu0 }
 0x41d   : > { %1155 = vst.msk [vmem:[#allocation2] sm:$0xff] %vm896_vm1, %v1136_v16 }
 0x44d   : > { %v9669_v57 = vpop.f32.mrf.mxu0 }
 0x44e   : > { %1158 = vst.msk [vmem:[#allocation2 + $0x18] sm:$0xff] %vm896_vm1, %v9669_v57 }
 0x44f   : > { %v1146_v12 = vpop.f32.mrf.mxu0 }
 0x450   : > { %1157 = vst.msk [vmem:[#allocation2 + $0x10] sm:$0xff] %vm896_vm1, %v1146_v12 }
 0x455   : > { %v9694_v14 = vpop.f32.mrf.mxu0 }
 0x456   : > { %1430 = vst.msk [vmem:[#allocation2 + $0x28] sm:$0xff] %vm896_vm1, %v9694_v14 }
 0x457   : > { %v1410_v47 = vpop.f32.mrf.mxu0 }
 0x458   : > { %1429 = vst.msk [vmem:[#allocation2 + $0x20] sm:$0xff] %vm896_vm1, %v1410_v47 }
 0x459   : > { %v9697_v18 = vpop.f32.mrf.mxu0 }
 0x45a   : > { %1432 = vst.msk [vmem:[#allocation2 + $0x38] sm:$0xff] %vm896_vm1, %v9697_v18 }
 0x45b   : > { %v1420_v17 = vpop.f32.mrf.mxu0 }
 0x45c   : > { %1431 = vst.msk [vmem:[#allocation2 + $0x30] sm:$0xff] %vm896_vm1, %v1420_v17 }
 0x465   : > { %v9708_v8 = vpop.f32.mrf.mxu0 }
 0x466   : > { %v1553_v19 = vsel %vm360_vm0, %v9708_v8, -inf }
 0x467   : > { %1554 = vmax.xlane.f32.xlu1 %v1553_v19  ;;  %v1531_v21 = vpop.f32.mrf.mxu0 }
 0x468   : > { %v1550_v35 = vsel %vm360_vm0, %v1531_v21, -inf }
 0x469   : > { %1551 = vmax.xlane.f32.xlu0 %v1550_v35  ;;  %v9711_v39 = vpop.f32.mrf.mxu0 }
 0x46a   : > { %v1559_v1 = vsel %vm360_vm0, %v9711_v39, -inf }
 0x46b   : > { %v1541_v13 = vpop.f32.mrf.mxu0 }
 0x46c   : > { %v1556_v49 = vsel %vm360_vm0, %v1541_v13, -inf }
 0x46d   : > { %1557 = vmax.xlane.f32.xlu0 %v1556_v49 }
 0x471   : > { %1560 = vmax.xlane.f32.xlu0 %v1559_v1 }
 0x478   : > { %1600 = vrot.lane.b32.xlu1 %v11330_v41, %s10933_s17 }
 0x47c   : > { %1596 = vrot.lane.b32.xlu1 %v11349_v56, %s10933_s17 }
 0x480   : > { %1594 = vrot.lane.b32.xlu1 %v11352_v60, %s10933_s17 }
 0x484   : > { %1715 = vrot.lane.b32.xlu1 %v11433_v23, %s10932_s14 }
 0x487   : > { %1598 = vrot.lane.b32.xlu0 %v11325_v30, %s10933_s17 }
 0x48b   : > { %1717 = vrot.lane.b32.xlu0 %v11441_v33, %s10932_s14 }
 0x4f0   : > { %v1555_v15 = vpop.xlane.xlu1 %1554 }
 0x4f1   : > { %v1563_v16 = vsub.f32 %v9708_v8, %v1555_v15 }
 0x4f2   : > { %v1552_v57 = vpop.xlane.xlu0 %1551 }
 0x4f3   : > { %v1568_v12 = vmul.f32 1.442695, %v1563_v16  ;;  %v1562_v14 = vsub.f32 %v1531_v21, %v1552_v57 }
 0x4f4   : > { %v1601_v3 = vpop.permute.xlu1 %1600 }
 0x4f5   : > { %10396 = vpow2.f32 %v1568_v12  ;;  %v1566_v47 = vmul.f32 1.442695, %v1562_v14  ;;  %9712 = vmatprep.subr.mxu1 %v1601_v3 }
 0x4f6   : > { %9713 = vmatpush3.msra.mxu1 %v1601_v3  ;;  %v1558_v18 = vpop.xlane.xlu0 %1557  ;;  %v11452_v3 = vadd.f32 %v11093_v24, %v11360_v63 }
 0x4f7   : > { %10398 = vpow2.f32 %v1566_v47  ;;  %v1564_v17 = vsub.f32 %v1541_v13, %v1558_v18  ;;  %v11458_v47 = vadd.f32 %v11358_v61, %v11093_v24 }
 0x4f8   : > { %v1597_v49 = vpop.permute.xlu1 %1596 }
 0x4f9   : > { %v1570_v19 = vmul.f32 1.442695, %v1564_v17 }
 0x4fa   : > { %v1561_v35 = vpop.xlane.xlu0 %1560 }
 0x4fb   : > { %10400 = vpow2.f32 %v1570_v19  ;;  %v1565_v0 = vsub.f32 %v9711_v39, %v1561_v35 }
 0x4fc   : > { %v1595_v21 = vpop.permute.xlu1 %1594 }
 0x4fd   : > { %v1572_v1 = vmul.f32 1.442695, %v1565_v0 }
 0x4fe   : > { %v1599_v36 = vpop.permute.xlu0 %1598 }
 0x4ff   : > { %10402 = vpow2.f32 %v1572_v1  ;;  %9714 = vmatprep.subr.mxu1 %v1599_v36 }
 0x500   : > { %9715 = vmatpush3.msra.mxu1 %v1599_v36  ;;  %v1716_v18 = vpop.permute.xlu1 %1715 }
 0x501   : > { %9716 = vmatprep.subr.mxu1 %v1597_v49 }
 0x502   : > { %v10397_v8 = vpop.eup %10396  ;;  %9717 = vmatpush3.msra.mxu1 %v1597_v49  ;;  %v1718_v57 = vpop.permute.xlu0 %1717 }
 0x503   : > { %9718 = vmatprep.subr.mxu1 %v1595_v21  ;;  %v1577_v15 = vsel %vm360_vm0, %v10397_v8, 0.0 }
 0x504   : > { %v10399_v16 = vpop.eup %10398  ;;  %1578 = vadd.xlane.f32.xlu0 %v1577_v15  ;;  %9719 = vmatpush3.msra.mxu1 %v1595_v21 }
 0x505   : > { %9726 = vmatprep.subr.msk.mxu1 %vm896_vm1, %v1718_v57  ;;  %v1574_v39 = vsel %vm360_vm0, %v10399_v16, 0.0 }
 0x506   : > { %1575 = vadd.xlane.f32.xlu1 %v1574_v39 }
 0x508   : > { %v10401_v13 = vpop.eup %10400 }
 0x509   : > { %v1580_v12 = vsel %vm360_vm0, %v10401_v13, 0.0 }
 0x50a   : > { %1581 = vadd.xlane.f32.xlu1 %v1580_v12 }
 0x50c   : > { %v10403_v36 = vpop.eup %10402 }
 0x50d   : > { %v1583_v14 = vsel %vm360_vm0, %v10403_v36, 0.0 }
 0x50e   : > { %1584 = vadd.xlane.f32.xlu0 %v1583_v14 }
 0x51b   : > { %1711 = vrot.lane.b32.xlu1 %v11452_v3, %s10932_s14 }
 0x524   : > { %1713 = vrot.lane.b32.xlu0 %v11458_v47, %s10932_s14 }
 0x58d   : > { %v1579_v17 = vpop.xlane.xlu0 %1578 }
 0x58e   : > { %10404 = vrcp.f32 %v1579_v17 }
 0x58f   : > { %v1576_v19 = vpop.xlane.xlu1 %1575 }
 0x590   : > { %10406 = vrcp.f32 %v1576_v19 }
 0x593   : > { %v1582_v35 = vpop.xlane.xlu1 %1581 }
 0x594   : > { %10408 = vrcp.f32 %v1582_v35 }
 0x597   : > { %v1585_v0 = vpop.xlane.xlu0 %1584 }
 0x598   : > { %10410 = vrcp.f32 %v1585_v0 }
 0x59b   : > { %v10405_v63 = vpop.eup %10404  ;;  %v1714_v39 = vpop.permute.xlu0 %1713 }
 0x59c   : > { %v1589_v21 = vmul.f32 %v10405_v63, %v10397_v8  ;;  %v11470_v8 = vmul.f32 0.35355338, %v11452_v3 }
 0x59d   : > { %v10407_v49 = vpop.eup %10406 }
 0x59e   : > { %v1587_v1 = vmul.f32 %v10407_v49, %v10399_v16  ;;  %v1712_v16 = vpop.permute.xlu1 %1711 }
 0x5a0   : > { %9720 = vmatprep.mubr.msk.f32.mxu1 %vm360_vm0, %v1587_v1 }
 0x5a1   : > { %v10409_v24 = vpop.eup %10408  ;;  %9721 = vmatmul.mubr.msk.f32.vlgmr.msra.gmra.mxu1 %vm360_vm0, %v1589_v21 }
 0x5a2   : > { %9727 = vmatpush3.xpose.msk.msra.mxu1 %vm896_vm1, %v1718_v57  ;;  %v1591_v61 = vmul.f32 %v10409_v24, %v10401_v13  ;;  %v11479_v57 = vmul.f32 0.35355338, %v11458_v47  ;;  %v11482_v13 = vmul.f32 0.35355338, %v11433_v23 }
 0x5a3   : > { %9728 = vmatprep.subr.msk.mxu1 %vm896_vm1, %v1716_v18 }
 0x5a4   : > { %9723 = vmatprep.mubr.msk.f32.mxu1 %vm360_vm0, %v1591_v61  ;;  %14206 = vst [vmem:[#allocation20_spill] sm:$0xff] %v11482_v13 }
 0x5a5   : > { %v10411_v15 = vpop.eup %10410 }
 0x5a6   : > { %9729 = vmatpush3.xpose.msk.msra.mxu1 %vm896_vm1, %v1716_v18  ;;  %v1593_v12 = vmul.f32 %v10411_v15, %v10403_v36  ;;  %v11489_v36 = vmul.f32 0.35355338, %v11441_v33 }
 0x5a7   : > { %9730 = vmatprep.subr.msk.mxu1 %vm896_vm1, %v1714_v39 }
 0x5a8   : > { %9724 = vmatmul.mubr.msk.f32.gmra.mxu1 %vm360_vm0, %v1593_v12 }
 0x5a9   : > { %9734 = vmatprep.mubr.msk.f32.mxu1 %vm896_vm1, %v11470_v8 }
 0x5aa   : > { %9731 = vmatpush3.xpose.msk.msra.mxu1 %vm896_vm1, %v1714_v39 }
 0x5ab   : > { %9732 = vmatprep.subr.msk.mxu1 %vm896_vm1, %v1712_v16 }
 0x5ae   : > { %9733 = vmatpush3.xpose.msk.msra.mxu1 %vm896_vm1, %v1712_v16 }
 0x5b1   : > { %9735 = vmatmul.mubr.msk.f32.vlgmr.msra.gmra.mxu1 %vm896_vm1, %v11479_v57 }
 0x5b2   : > { %9737 = vmatprep.mubr.msk.f32.mxu1 %vm896_vm1, %v11482_v13 }
 0x5b5   : > { %9738 = vmatmul.mubr.msk.f32.gmra.mxu1 %vm896_vm1, %v11489_v36 }
 0x661   : > { %v9722_v14 = vpop.f32.mrf.mxu1 }
 0x662   : > { %1704 = vst.msk [vmem:[#allocation2 + $0x48] sm:$0xff] %vm896_vm1, %v9722_v14 }
 0x663   : > { %v1684_v18 = vpop.f32.mrf.mxu1 }
 0x664   : > { %1703 = vst.msk [vmem:[#allocation2 + $0x40] sm:$0xff] %vm896_vm1, %v1684_v18 }
 0x668   : > { %v9725_v17 = vpop.f32.mrf.mxu1 }
 0x669   : > { %1706 = vst.msk [vmem:[#allocation2 + $0x58] sm:$0xff] %vm896_vm1, %v9725_v17 }
 0x66a   : > { %v1694_v19 = vpop.f32.mrf.mxu1 }
 0x66b   : > { %1705 = vst.msk [vmem:[#allocation2 + $0x50] sm:$0xff] %vm896_vm1, %v1694_v19 }
 0x671   : > { %v9736_v35 = vpop.f32.mrf.mxu1 }
 0x672   : > { %v1827_v0 = vsel %vm360_vm0, %v9736_v35, -inf }
 0x673   : > { %1828 = vmax.xlane.f32.xlu1 %v1827_v0  ;;  %v1805_v63 = vpop.f32.mrf.mxu1 }
 0x674   : > { %v1824_v49 = vsel %vm360_vm0, %v1805_v63, -inf }
 0x675   : > { %1825 = vmax.xlane.f32.xlu0 %v1824_v49  ;;  %v9739_v1 = vpop.f32.mrf.mxu1 }
 0x676   : > { %v1833_v61 = vsel %vm360_vm0, %v9739_v1, -inf }
 0x677   : > { %v1815_v21 = vpop.f32.mrf.mxu1 }
 0x678   : > { %v1830_v24 = vsel %vm360_vm0, %v1815_v21, -inf }
 0x679   : > { %1831 = vmax.xlane.f32.xlu0 %v1830_v24 }
 0x67d   : > { %1834 = vmax.xlane.f32.xlu0 %v1833_v61 }
 0x684   : > { %1874 = vrot.lane.b32.xlu1 %v11441_v33, %s10933_s17 }
 0x6fc   : > { %v1829_v15 = vpop.xlane.xlu1 %1828 }
 0x6fd   : > { %v1837_v39 = vsub.f32 %v9736_v35, %v1829_v15 }
 0x6fe   : > { %v1826_v12 = vpop.xlane.xlu0 %1825 }
 0x6ff   : > { %v1842_v16 = vmul.f32 1.442695, %v1837_v39  ;;  %v1836_v14 = vsub.f32 %v1805_v63, %v1826_v12 }
 0x700   : > { %v1875_v18 = vpop.permute.xlu1 %1874 }
 0x701   : > { %10412 = vpow2.f32 %v1842_v16  ;;  %v1840_v17 = vmul.f32 1.442695, %v1836_v14  ;;  %9740 = vmatprep.subr.mxu0 %v1875_v18 }
 0x702   : > { %9741 = vmatpush3.msra.mxu0 %v1875_v18  ;;  %v1832_v19 = vpop.xlane.xlu0 %1831 }
 0x703   : > { %10414 = vpow2.f32 %v1840_v17 }
 0x706   : > { %v1835_v0 = vpop.xlane.xlu0 %1834 }
 0x707   : > { %v1839_v49 = vsub.f32 %v9739_v1, %v1835_v0  ;;  %v1838_v1 = vsub.f32 %v1815_v21, %v1832_v19 }
 0x709   : > { %v1846_v24 = vmul.f32 1.442695, %v1839_v49  ;;  %v1844_v12 = vmul.f32 1.442695, %v1838_v1 }
 0x70b   : > { %10416 = vpow2.f32 %v1846_v24 }
 0x70c   : > { %10418 = vpow2.f32 %v1844_v12 }
 0x70e   : > { %v11503_v61 = vpop.eup %10412 }
 0x70f   : > { %v1851_v13 = vsel %vm360_vm0, %v11503_v61, 0.0 }
 0x710   : > { %v10415_v35 = vpop.eup %10414  ;;  %1852 = vadd.xlane.f32.xlu0 %v1851_v13 }
 0x711   : > { %v1848_v63 = vsel %vm360_vm0, %v10415_v35, 0.0 }
 0x712   : > { %1849 = vadd.xlane.f32.xlu1 %v1848_v63 }
 0x718   : > { %v11508_v15 = vpop.eup %10416 }
 0x719   : > { %v1857_v39 = vsel %vm360_vm0, %v11508_v15, 0.0  ;;  %v10419_v13 = vpop.eup %10418 }
 0x71a   : > { %1858 = vadd.xlane.f32.xlu0 %v1857_v39  ;;  %v1854_v21 = vsel %vm360_vm0, %v10419_v13, 0.0 }
 0x723   : > { %1870 = vrot.lane.b32.xlu1 %v11458_v47, %s10933_s17 }
 0x730   : > { %1872 = vrot.lane.b32.xlu0 %v11433_v23, %s10933_s17 }
 0x734   : > { %2644 = vrot.lane.b32.xlu0 %v11104_v31, %s10937_s18 }
 0x738   : > { %2640 = vrot.lane.b32.xlu0 %v11096_v26, %s10937_s18 }
 0x73c   : > { %2630 = vrot.lane.b32.xlu0 %v11107_v32, %s10938_s19 }
 0x740   : > { %2632 = vrot.lane.b32.xlu0 %v11230_v20, %s10938_s19 }
 0x744   : > { %2931 = vrot.lane.b32.xlu0 %v11124_v45, %s10937_s18 }
 0x747   : > { %1855 = vadd.xlane.f32.xlu1 %v1854_v21 }
 0x748   : > { %2636 = vrot.lane.b32.xlu0 %v11242_v25, %s10938_s19 }
 0x74c   : > { %2921 = vrot.lane.b32.xlu0 %v11246_v29, %s10938_s19 }
 0x750   : > { %2925 = vrot.lane.b32.xlu0 %v11265_v40, %s10938_s19 }
 0x754   : > { %2797 = vrot.lane.b32.xlu0 %v11104_v31, %s10939_s20 }
 0x758   : > { %1868 = vrot.lane.b32.xlu1 %v11452_v3, %s10933_s17  ;;  %2795 = vrot.lane.b32.xlu0 %v11116_v37, %s10939_s20 }
 0x75c   : > { %2642 = vrot.lane.b32.xlu1 %v11116_v37, %s10937_s18  ;;  %2791 = vrot.lane.b32.xlu0 %v11099_v28, %s10939_s20 }
 0x760   : > { %2638 = vrot.lane.b32.xlu1 %v11099_v28, %s10937_s18  ;;  %3088 = vrot.lane.b32.xlu0 %v11121_v42, %s10939_s20 }
 0x764   : > { %2935 = vrot.lane.b32.xlu1 %v11121_v42, %s10937_s18  ;;  %3086 = vrot.lane.b32.xlu0 %v11127_v46, %s10939_s20 }
 0x768   : > { %2933 = vrot.lane.b32.xlu1 %v11127_v46, %s10937_s18  ;;  %3084 = vrot.lane.b32.xlu0 %v11124_v45, %s10939_s20 }
 0x76c   : > { %2634 = vrot.lane.b32.xlu1 %v11234_v22, %s10938_s19 }
 0x770   : > { %2929 = vrot.lane.b32.xlu1 %v11135_v48, %s10937_s18 }
 0x774   : > { %2923 = vrot.lane.b32.xlu1 %v11262_v38, %s10938_s19 }
 0x778   : > { %2927 = vrot.lane.b32.xlu1 %v11272_v43, %s10938_s19 }
 0x77c   : > { %2353 = vrot.lane.b32.xlu1 %v11366_v5, %s10932_s14 }
 0x780   : > { %2793 = vrot.lane.b32.xlu1 %v11096_v26, %s10939_s20 }
 0x799   : > { %v1853_v14 = vpop.xlane.xlu0 %1852 }
 0x79b   : > { %v1850_v16 = vpop.xlane.xlu1 %1849 }
 0x79c   : > { %10420 = vrcp.f32 %v1850_v16 }
 0x79d   : > { %10422 = vrcp.f32 %v1853_v14 }
 0x79f   : > { %v1871_v0 = vpop.permute.xlu1 %1870 }
 0x7a3   : > { %v1859_v18 = vpop.xlane.xlu0 %1858 }
 0x7a4   : > { %10424 = vrcp.f32 %v1859_v18 }
 0x7a7   : > { %v1873_v17 = vpop.permute.xlu0 %1872 }
 0x7a8   : > { %9742 = vmatprep.subr.mxu0 %v1873_v17 }
 0x7a9   : > { %v10421_v19 = vpop.eup %10420  ;;  %9743 = vmatpush3.msra.mxu0 %v1873_v17 }
 0x7aa   : > { %9744 = vmatprep.subr.mxu0 %v1871_v0  ;;  %v1861_v49 = vmul.f32 %v10421_v19, %v10415_v35  ;;  %v10423_v1 = vpop.eup %10422 }
 0x7ab   : > { %9745 = vmatpush3.msra.mxu0 %v1871_v0  ;;  %v2645_v24 = vpop.permute.xlu0 %2644  ;;  %v1863_v21 = vmul.f32 %v10423_v1, %v11503_v61 }
 0x7ac   : > { %9748 = vmatprep.mubr.msk.f32.mxu0 %vm360_vm0, %v1861_v49 }
 0x7af   : > { %v2641_v63 = vpop.permute.xlu0 %2640 }
 0x7b1   : > { %v10425_v17 = vpop.eup %10424 }
 0x7b2   : > { %v1867_v49 = vmul.f32 %v10425_v17, %v11508_v15  ;;  %v11605_v17 = vmul.f32 0.35355338, %v11151_v53  ;;  %v11625_v53 = vmul.f32 0.35355338, %v11145_v51 }
 0x7b3   : > { %v11569_v16 = vpop.permute.xlu0 %2630 }
 0x7b4   : > { %14208 = vst [vmem:[#allocation22_spill] sm:$0xff] %v11605_v17  ;;  %14211 = vst [vmem:[#allocation25_spill] sm:$0xff] %v11625_v53 }
 0x7b7   : > { %v11577_v14 = vpop.permute.xlu0 %2632 }
 0x7bb   : > { %v11584_v1 = vpop.permute.xlu0 %2931 }
 0x7bf   : > { %v2637_v15 = vpop.permute.xlu0 %2636 }
 0x7d0   : > { %v1856_v39 = vpop.xlane.xlu1 %1855 }
 0x7d1   : > { %10426 = vrcp.f32 %v1856_v39  ;;  %v11581_v39 = vmul.f32 0.35355338, %v11167_v58  ;;  %v11601_v58 = vmul.f32 0.35355338, %v11147_v52 }
 0x7d4   : > { %v1869_v12 = vpop.permute.xlu1 %1868 }
 0x7d5   : > { %9746 = vmatprep.subr.mxu0 %v1869_v12 }
 0x7d6   : > { %9747 = vmatpush3.msra.mxu0 %v1869_v12  ;;  %v11590_v12 = vmul.f32 0.35355338, %v11161_v55 }
 0x7d7   : > { %9749 = vmatmul.mubr.msk.f32.vlgmr.msra.gmra.mxu0 %vm360_vm0, %v1863_v21  ;;  %9754 = vmatprep.subr.msk.mxu0 %vm896_vm1, %v11366_v5 }
 0x7d8   : > { %v2643_v35 = vpop.permute.xlu1 %2642  ;;  %9755 = vmatpush3.xpose.msk.msra.mxu0 %vm896_vm1, %v11366_v5 }
 0x7d9   : > { %9806 = vmatprep.subr.msk.mxu0 %vm896_vm1, %v2645_v24 }
 0x7dc   : > { %v2639_v18 = vpop.permute.xlu1 %2638 }
 0x7de   : > { %v10427_v61 = vpop.eup %10426 }
 0x7df   : > { %v1865_v19 = vmul.f32 %v10427_v61, %v10419_v13  ;;  %v11593_v13 = vmul.f32 0.35355338, %v11155_v54  ;;  %v11613_v54 = vmul.f32 0.35355338, %v11139_v50  ;;  %v2922_v61 = vpop.permute.xlu0 %2921 }
 0x7e0   : > { %v2936_v0 = vpop.permute.xlu1 %2935 }
 0x7e1   : > { %9751 = vmatprep.mubr.msk.f32.mxu0 %vm360_vm0, %v1865_v19  ;;  %14207 = vst [vmem:[#allocation21_spill] sm:$0xff] %v11593_v13  ;;  %14209 = vst [vmem:[#allocation23_spill] sm:$0xff] %v11613_v54  ;;  %v11641_v19 = vmul.f32 0.35355338, %v11190_v2  ;;  %v11661_v2 = vmul.f32 0.35355338, %v11198_v6 }
 0x7e2   : > { %9752 = vmatmul.mubr.msk.f32.gmra.mxu0 %vm360_vm0, %v1867_v49 }
 0x7e3   : > { %9756 = vmatprep.mubr.msk.f32.mxu0 %vm896_vm1, %v11581_v39  ;;  %14214 = vst [vmem:[#allocation28_spill] sm:$0xff] %v11641_v19  ;;  %14217 = vst [vmem:[#allocation31_spill] sm:$0xff] %v11661_v2 }
 0x7e4   : > { %v2934_v21 = vpop.permute.xlu1 %2933 }
 0x7e6   : > { %9757 = vmatmul.mubr.msk.f32.vlgmr.msra.gmra.mxu0 %vm896_vm1, %v11590_v12 }
 0x7e7   : > { %9807 = vmatpush3.xpose.msk.msra.mxu0 %vm896_vm1, %v2645_v24  ;;  %9759 = vmatprep.mubr.msk.f32.mxu0 %vm896_vm1, %v11593_v13  ;;  %v11617_v24 = vmul.f32 0.35355338, %v11173_v59  ;;  %v11637_v59 = vmul.f32 0.35355338, %v11181_v62  ;;  %v11651_v62 = vmul.f32 0.35355338, %v11206_v9 }
 0x7e8   : > { %9808 = vmatprep.subr.msk.mxu0 %vm896_vm1, %v2643_v35  ;;  %v2635_v55 = vpop.permute.xlu1 %2634  ;;  %v11671_v9 = vmul.f32 0.35355338, %v11214_v11 }
 0x7e9   : > { %14210 = vst [vmem:[#allocation24_spill] sm:$0xff] %v11617_v24  ;;  %14213 = vst [vmem:[#allocation27_spill] sm:$0xff] %v11637_v59 }
 0x7ea   : > { %9760 = vmatmul.mubr.msk.f32.gmra.mxu0 %vm896_vm1, %v11601_v58  ;;  %14216 = vst [vmem:[#allocation30_spill] sm:$0xff] %v11651_v62  ;;  %14219 = vst [vmem:[#allocation33_spill] sm:$0xff] %v11671_v9 }
 0x7eb   : > { %9809 = vmatpush3.xpose.msk.msra.mxu0 %vm896_vm1, %v2643_v35  ;;  %9762 = vmatprep.mubr.msk.f32.mxu0 %vm896_vm1, %v11605_v17  ;;  %v11629_v35 = vmul.f32 0.35355338, %v11192_v4  ;;  %v11648_v4 = vmul.f32 0.35355338, %v11200_v7  ;;  %v11664_v7 = vmul.f32 0.35355338, %v11210_v10 }
 0x7ec   : > { %9810 = vmatprep.subr.msk.mxu0 %vm896_vm1, %v2641_v63  ;;  %v2930_v52 = vpop.permute.xlu1 %2929 }
 0x7ed   : > { %14212 = vst [vmem:[#allocation26_spill] sm:$0xff] %v11629_v35  ;;  %14215 = vst [vmem:[#allocation29_spill] sm:$0xff] %v11648_v4 }
 0x7ee   : > { %9763 = vmatmul.mubr.msk.f32.gmra.mxu0 %vm896_vm1, %v11613_v54  ;;  %14218 = vst [vmem:[#allocation32_spill] sm:$0xff] %v11664_v7 }
 0x7ef   : > { %9811 = vmatpush3.xpose.msk.msra.mxu0 %vm896_vm1, %v2641_v63  ;;  %9765 = vmatprep.mubr.msk.f32.mxu0 %vm896_vm1, %v11617_v24  ;;  %v2926_v63 = vpop.permute.xlu0 %2925 }
 0x7f0   : > { %9812 = vmatprep.subr.msk.mxu0 %vm896_vm1, %v2639_v18  ;;  %v2924_v50 = vpop.permute.xlu1 %2923 }
 0x7f2   : > { %9766 = vmatmul.mubr.msk.f32.gmra.mxu0 %vm896_vm1, %v11625_v53 }
 0x7f3   : > { %9813 = vmatpush3.xpose.msk.msra.mxu0 %vm896_vm1, %v2639_v18  ;;  %9768 = vmatprep.mubr.msk.f32.mxu0 %vm896_vm1, %v11629_v35  ;;  %v11653_v49 = vpop.permute.xlu0 %2797 }
 0x7f4   : > { %9834 = vmatprep.subr.msk.mxu0 %vm896_vm1, %v2936_v0  ;;  %v2928_v51 = vpop.permute.xlu1 %2927 }
 0x7f6   : > { %9769 = vmatmul.mubr.msk.f32.gmra.mxu0 %vm896_vm1, %v11637_v59 }
 0x7f7   : > { %9771 = vmatprep.mubr.msk.f32.mxu0 %vm896_vm1, %v11641_v19 }
 0x7f8   : > { %v2354_v18 = vpop.permute.xlu1 %2353 }
 0x7f9   : > { %9780 = vmatprep.subr.mxu1 %v2354_v18 }
 0x7fa   : > { %9772 = vmatmul.mubr.msk.f32.gmra.mxu0 %vm896_vm1, %v11648_v4  ;;  %9781 = vmatpush3.msra.mxu1 %v2354_v18 }
 0x7fb   : > { %9774 = vmatprep.mubr.msk.f32.mxu0 %vm896_vm1, %v11651_v62  ;;  %9820 = vmatprep.subr.mxu1 %v11653_v49 }
 0x7fc   : > { %v11804_v31 = vpop.permute.xlu1 %2793 }
 0x7fe   : > { %9775 = vmatmul.mubr.msk.f32.gmra.mxu0 %vm896_vm1, %v11661_v2 }
 0x7ff   : > { %9777 = vmatprep.mubr.msk.f32.mxu0 %vm896_vm1, %v11664_v7 }
 0x802   : > { %9778 = vmatmul.mubr.msk.f32.gmra.mxu0 %vm896_vm1, %v11671_v9 }
 0x803   : > { %9814 = vmatprep.mubr.msk.f32.mxu0 %vm896_vm1, %v11569_v16 }
 0x806   : > { %9815 = vmatmul.mubr.msk.f32.vlgmr.msra.gmra.mxu0 %vm896_vm1, %v11577_v14 }
 0x807   : > { %9835 = vmatpush3.xpose.msk.msra.mxu0 %vm896_vm1, %v2936_v0  ;;  %9817 = vmatprep.mubr.msk.f32.mxu0 %vm896_vm1, %v2635_v55 }
 0x808   : > { %9836 = vmatprep.subr.msk.mxu0 %vm896_vm1, %v2934_v21 }
 0x80a   : > { %9818 = vmatmul.mubr.msk.f32.gmra.mxu0 %vm896_vm1, %v2637_v15 }
 0x80b   : > { %9837 = vmatpush3.xpose.msk.msra.mxu0 %vm896_vm1, %v2934_v21  ;;  %9842 = vmatprep.mubr.msk.f32.mxu0 %vm896_vm1, %v2922_v61 }
 0x80c   : > { %9838 = vmatprep.subr.msk.mxu0 %vm896_vm1, %v11584_v1 }
 0x80f   : > { %9839 = vmatpush3.xpose.msk.msra.mxu0 %vm896_vm1, %v11584_v1 }
 0x810   : > { %9840 = vmatprep.subr.msk.mxu0 %vm896_vm1, %v2930_v52 }
 0x813   : > { %9841 = vmatpush3.xpose.msk.msra.mxu0 %vm896_vm1, %v2930_v52 }
 0x816   : > { %9843 = vmatmul.mubr.msk.f32.vlgmr.msra.gmra.mxu0 %vm896_vm1, %v2924_v50 }
 0x817   : > { %9845 = vmatprep.mubr.msk.f32.mxu0 %vm896_vm1, %v2926_v63 }
 0x81a   : > { %9846 = vmatmul.mubr.msk.f32.gmra.mxu0 %vm896_vm1, %v2928_v51 }
 0x897   : > { %v9750_v6 = vpop.f32.mrf.mxu0 }
 0x898   : > { %1978 = vst.msk [vmem:[#allocation2 + $0x68] sm:$0xff] %vm896_vm1, %v9750_v6 }
 0x899   : > { %v1958_v10 = vpop.f32.mrf.mxu0 }
 0x89a   : > { %1977 = vst.msk [vmem:[#allocation2 + $0x60] sm:$0xff] %vm896_vm1, %v1958_v10 }
 0x8a2   : > { %v9753_v11 = vpop.f32.mrf.mxu0 }
 0x8a3   : > { %1980 = vst.msk [vmem:[#allocation2 + $0x78] sm:$0xff] %vm896_vm1, %v9753_v11 }
 0x8a4   : > { %v1968_v16 = vpop.f32.mrf.mxu0 }
 0x8a5   : > { %1979 = vst.msk [vmem:[#allocation2 + $0x70] sm:$0xff] %vm896_vm1, %v1968_v16 }
 0x8a6   : > { %v11698_v14 = vpop.f32.mrf.mxu0 }
 0x8a7   : > { %v2180_v0 = vsel %vm896_vm1, %v11698_v14, -inf }
 0x8a8   : > { %2181 = vmax.xlane.f32.xlu1 %v2180_v0  ;;  %v11702_v1 = vpop.f32.mrf.mxu0 }
 0x8a9   : > { %v2177_v21 = vsel %vm896_vm1, %v11702_v1, -inf }
 0x8aa   : > { %2178 = vmax.xlane.f32.xlu0 %v2177_v21  ;;  %v11706_v15 = vpop.f32.mrf.mxu0 }
 0x8ab   : > { %v2186_v52 = vsel %vm896_vm1, %v11706_v15, -inf }
 0x8ac   : > { %v11708_v55 = vpop.f32.mrf.mxu0 }
 0x8ad   : > { %v2183_v63 = vsel %vm896_vm1, %v11708_v55, -inf }
 0x8ae   : > { %2187 = vmax.xlane.f32.xlu0 %v2186_v52  ;;  %v11712_v61 = vpop.f32.mrf.mxu0 }
 0x8af   : > { %v2192_v10 = vsel %vm896_vm1, %v11712_v61, -inf }
 0x8b0   : > { %v11714_v50 = vpop.f32.mrf.mxu0 }
 0x8b1   : > { %v2189_v51 = vsel %vm896_vm1, %v11714_v50, -inf }
 0x8b2   : > { %2184 = vmax.xlane.f32.xlu0 %v2183_v63  ;;  %2190 = vmax.xlane.f32.xlu1 %v2189_v51  ;;  %v11720_v18 = vpop.f32.mrf.mxu0 }
 0x8b3   : > { %v2198_v21 = vsel %vm896_vm1, %v11720_v18, -inf }
 0x8b4   : > { %v11722_v6 = vpop.f32.mrf.mxu0 }
 0x8b5   : > { %v2195_v11 = vsel %vm896_vm1, %v11722_v6, -inf }
 0x8b6   : > { %2193 = vmax.xlane.f32.xlu0 %v2192_v10  ;;  %2196 = vmax.xlane.f32.xlu1 %v2195_v11  ;;  %v11728_v16 = vpop.f32.mrf.mxu0 }
 0x8b7   : > { %v2204_v10 = vsel %vm896_vm1, %v11728_v16, -inf }
 0x8b8   : > { %v11730_v0 = vpop.f32.mrf.mxu0 }
 0x8b9   : > { %v2201_v52 = vsel %vm896_vm1, %v11730_v0, -inf }
 0x8ba   : > { %2199 = vmax.xlane.f32.xlu0 %v2198_v21  ;;  %2202 = vmax.xlane.f32.xlu1 %v2201_v52  ;;  %v11736_v63 = vpop.f32.mrf.mxu0 }
 0x8bb   : > { %v2210_v21 = vsel %vm896_vm1, %v11736_v63, -inf }
 0x8bc   : > { %v11738_v51 = vpop.f32.mrf.mxu0 }
 0x8bd   : > { %v2207_v11 = vsel %vm896_vm1, %v11738_v51, -inf }
 0x8be   : > { %2205 = vmax.xlane.f32.xlu0 %v2204_v10  ;;  %2208 = vmax.xlane.f32.xlu1 %v2207_v11  ;;  %v11744_v43 = vpop.f32.mrf.mxu0 }
 0x8bf   : > { %v2216_v10 = vsel %vm896_vm1, %v11744_v43, -inf }
 0x8c0   : > { %v11746_v38 = vpop.f32.mrf.mxu0 }
 0x8c1   : > { %v2213_v52 = vsel %vm896_vm1, %v11746_v38, -inf }
 0x8c2   : > { %2211 = vmax.xlane.f32.xlu0 %v2210_v21  ;;  %2214 = vmax.xlane.f32.xlu1 %v2213_v52  ;;  %v11752_v22 = vpop.f32.mrf.mxu0 }
 0x8c3   : > { %v2222_v21 = vsel %vm896_vm1, %v11752_v22, -inf }
 0x8c4   : > { %v11754_v40 = vpop.f32.mrf.mxu0 }
 0x8c5   : > { %v2219_v11 = vsel %vm896_vm1, %v11754_v40, -inf }
 0x8c6   : > { %2217 = vmax.xlane.f32.xlu0 %v2216_v10  ;;  %2220 = vmax.xlane.f32.xlu1 %v2219_v11  ;;  %v11760_v29 = vpop.f32.mrf.mxu0 }
 0x8c7   : > { %v2750_v10 = vsel %vm360_vm0, %v11760_v29, -inf }
 0x8c8   : > { %v11762_v25 = vpop.f32.mrf.mxu0 }
 0x8c9   : > { %v2747_v52 = vsel %vm360_vm0, %v11762_v25, -inf }
 0x8ca   : > { %2223 = vmax.xlane.f32.xlu0 %v2222_v21  ;;  %2748 = vmax.xlane.f32.xlu1 %v2747_v52  ;;  %v11768_v45 = vpop.f32.mrf.mxu0 }
 0x8cb   : > { %v2756_v28 = vsel %vm360_vm0, %v11768_v45, -inf }
 0x8cc   : > { %v11770_v32 = vpop.f32.mrf.mxu0 }
 0x8cd   : > { %v2753_v11 = vsel %vm360_vm0, %v11770_v32, -inf }
 0x8ce   : > { %2751 = vmax.xlane.f32.xlu0 %v2750_v10  ;;  %2754 = vmax.xlane.f32.xlu1 %v2753_v11 }
 0x8d2   : > { %2757 = vmax.xlane.f32.xlu0 %v2756_v28 }
 0x8d6   : > { %v11778_v20 = vpop.f32.mrf.mxu0 }
 0x8d7   : > { %v3041_v21 = vsel %vm360_vm0, %v11778_v20, -inf }
 0x8d8   : > { %3042 = vmax.xlane.f32.xlu0 %v3041_v21  ;;  %v11782_v52 = vpop.f32.mrf.mxu0  ;;  %v11796_v21 = vpop.permute.xlu0 %2795 }
 0x8d9   : > { %v3038_v46 = vsel %vm360_vm0, %v11782_v52, -inf }
 0x8da   : > { %3039 = vmax.xlane.f32.xlu1 %v3038_v46  ;;  %v11786_v26 = vpop.f32.mrf.mxu0 }
 0x8db   : > { %v3047_v10 = vsel %vm360_vm0, %v11786_v26, -inf }
 0x8dc   : > { %3048 = vmax.xlane.f32.xlu0 %v3047_v10  ;;  %v11792_v28 = vpop.f32.mrf.mxu0  ;;  %v11798_v37 = vpop.permute.xlu0 %2791 }
 0x8dd   : > { %v3044_v11 = vsel %vm360_vm0, %v11792_v28, -inf }
 0x8e0   : > { %v11800_v46 = vpop.permute.xlu0 %3088 }
 0x8e4   : > { %v11802_v42 = vpop.permute.xlu0 %3086 }
 0x8e8   : > { %v11806_v10 = vpop.permute.xlu0 %3084 }
 0x8eb   : > { %3082 = vrot.lane.b32.xlu1 %v11135_v48, %s10939_s20 }
 0x90f   : > { %3045 = vmax.xlane.f32.xlu1 %v3044_v11 }
 0x931   : > { %v2182_v7 = vpop.xlane.xlu1 %2181 }
 0x932   : > { %v2226_v48 = vsub.f32 %v11698_v14, %v2182_v7 }
 0x933   : > { %v2179_v62 = vpop.xlane.xlu0 %2178 }
 0x934   : > { %v2243_v19 = vmul.f32 1.442695, %v2226_v48  ;;  %v2225_v35 = vsub.f32 %v11702_v1, %v2179_v62 }
 0x936   : > { %10428 = vpow2.f32 %v2243_v19  ;;  %v2241_v11 = vmul.f32 1.442695, %v2225_v35 }
 0x937   : > { %v2188_v24 = vpop.xlane.xlu0 %2187 }
 0x938   : > { %10430 = vpow2.f32 %v2241_v11  ;;  %v2228_v17 = vsub.f32 %v11706_v15, %v2188_v24 }
 0x93a   : > { %v2247_v13 = vmul.f32 1.442695, %v2228_v17 }
 0x93b   : > { %v2191_v9 = vpop.xlane.xlu1 %2190  ;;  %v2185_v2 = vpop.xlane.xlu0 %2184 }
 0x93c   : > { %10432 = vpow2.f32 %v2247_v13  ;;  %v2229_v4 = vsub.f32 %v11714_v50, %v2191_v9  ;;  %v2227_v59 = vsub.f32 %v11708_v55, %v2185_v2 }
 0x93e   : > { %v2245_v53 = vmul.f32 1.442695, %v2227_v59  ;;  %v2249_v7 = vmul.f32 1.442695, %v2229_v4 }
 0x93f   : > { %v2197_v14 = vpop.xlane.xlu1 %2196  ;;  %v2194_v48 = vpop.xlane.xlu0 %2193 }
 0x940   : > { %v2231_v62 = vsub.f32 %v11722_v6, %v2197_v14  ;;  %v2230_v35 = vsub.f32 %v11712_v61, %v2194_v48  ;;  %10434 = vpow2.f32 %v2245_v53 }
 0x941   : > { %10436 = vpow2.f32 %v2249_v7 }
 0x942   : > { %v2251_v19 = vmul.f32 1.442695, %v2230_v35  ;;  %v2253_v17 = vmul.f32 1.442695, %v2231_v62 }
 0x943   : > { %v11815_v1 = vpop.eup %10428  ;;  %v2203_v24 = vpop.xlane.xlu1 %2202 }
 0x944   : > { %v2200_v13 = vpop.xlane.xlu0 %2199  ;;  %v2233_v9 = vsub.f32 %v11730_v0, %v2203_v24  ;;  %v2276_v59 = vsel %vm896_vm1, %v11815_v1, 0.0  ;;  %10438 = vpow2.f32 %v2251_v19 }
 0x945   : > { %v2232_v2 = vsub.f32 %v11720_v18, %v2200_v13  ;;  %v11821_v4 = vpop.eup %10430  ;;  %2277 = vadd.xlane.f32.xlu0 %v2276_v59  ;;  %10440 = vpow2.f32 %v2253_v17 }
 0x946   : > { %v2273_v53 = vsel %vm896_vm1, %v11821_v4, 0.0  ;;  %v2257_v55 = vmul.f32 1.442695, %v2233_v9 }
 0x947   : > { %v2255_v15 = vmul.f32 1.442695, %v2232_v2  ;;  %v2209_v61 = vpop.xlane.xlu1 %2208  ;;  %2274 = vadd.xlane.f32.xlu1 %v2273_v53 }
 0x948   : > { %v2206_v50 = vpop.xlane.xlu0 %2205  ;;  %v2235_v6 = vsub.f32 %v11738_v51, %v2209_v61 }
 0x949   : > { %v2234_v18 = vsub.f32 %v11728_v16, %v2206_v50  ;;  %v11827_v0 = vpop.eup %10432  ;;  %10442 = vpow2.f32 %v2255_v15 }
 0x94a   : > { %v2282_v7 = vsel %vm896_vm1, %v11827_v0, 0.0  ;;  %10444 = vpow2.f32 %v2257_v55  ;;  %v2261_v14 = vmul.f32 1.442695, %v2235_v6 }
 0x94b   : > { %v2259_v11 = vmul.f32 1.442695, %v2234_v18  ;;  %v2215_v48 = vpop.xlane.xlu1 %2214  ;;  %2283 = vadd.xlane.f32.xlu0 %v2282_v7 }
 0x94c   : > { %v2212_v62 = vpop.xlane.xlu0 %2211  ;;  %v2237_v35 = vsub.f32 %v11746_v38, %v2215_v48 }
 0x94d   : > { %v2236_v19 = vsub.f32 %v11736_v63, %v2212_v62  ;;  %10446 = vpow2.f32 %v2259_v11  ;;  %v11833_v51 = vpop.eup %10434 }
 0x94e   : > { %10448 = vpow2.f32 %v2261_v14  ;;  %v2265_v17 = vmul.f32 1.442695, %v2237_v35  ;;  %v2279_v13 = vsel %vm896_vm1, %v11833_v51, 0.0  ;;  %v11837_v2 = vpop.eup %10436 }
 0x94f   : > { %v2263_v16 = vmul.f32 1.442695, %v2236_v19  ;;  %v2221_v24 = vpop.xlane.xlu1 %2220  ;;  %2280 = vadd.xlane.f32.xlu1 %v2279_v13  ;;  %v2285_v55 = vsel %vm896_vm1, %v11837_v2, 0.0 }
 0x950   : > { %v2218_v9 = vpop.xlane.xlu0 %2217  ;;  %v2239_v15 = vsub.f32 %v11754_v40, %v2221_v24 }
 0x951   : > { %v2238_v59 = vsub.f32 %v11744_v43, %v2218_v9  ;;  %10450 = vpow2.f32 %v2263_v16  ;;  %v11840_v38 = vpop.eup %10438 }
 0x952   : > { %10452 = vpow2.f32 %v2265_v17  ;;  %v2288_v61 = vsel %vm896_vm1, %v11840_v38, 0.0  ;;  %v11847_v6 = vpop.eup %10440  ;;  %v2269_v7 = vmul.f32 1.442695, %v2239_v15 }
 0x953   : > { %v2267_v63 = vmul.f32 1.442695, %v2238_v59  ;;  %v2749_v53 = vpop.xlane.xlu1 %2748  ;;  %2286 = vadd.xlane.f32.xlu1 %v2285_v55  ;;  %2289 = vadd.xlane.f32.xlu0 %v2288_v61  ;;  %v2291_v14 = vsel %vm896_vm1, %v11847_v6, 0.0 }
 0x954   : > { %v2224_v50 = vpop.xlane.xlu0 %2223  ;;  %v2759_v17 = vsub.f32 %v11762_v25, %v2749_v53 }
 0x955   : > { %v2240_v43 = vsub.f32 %v11752_v22, %v2224_v50  ;;  %10454 = vpow2.f32 %v2267_v63 }
 0x956   : > { %v11850_v18 = vpop.eup %10442  ;;  %v2763_v15 = vmul.f32 1.442695, %v2759_v17 }
 0x957   : > { %v2271_v11 = vmul.f32 1.442695, %v2240_v43  ;;  %v2755_v40 = vpop.xlane.xlu1 %2754  ;;  %v2294_v48 = vsel %vm896_vm1, %v11850_v18, 0.0  ;;  %v11856_v35 = vpop.eup %10444  ;;  %2292 = vadd.xlane.f32.xlu1 %v2291_v14 }
 0x958   : > { %v2752_v62 = vpop.xlane.xlu0 %2751  ;;  %v2761_v19 = vsub.f32 %v11770_v32, %v2755_v40  ;;  %2295 = vadd.xlane.f32.xlu0 %v2294_v48  ;;  %v2297_v9 = vsel %vm896_vm1, %v11856_v35, 0.0 }
 0x959   : > { %v2760_v22 = vsub.f32 %v11760_v29, %v2752_v62  ;;  %10456 = vpow2.f32 %v2271_v11 }
 0x95a   : > { %v11860_v16 = vpop.eup %10446  ;;  %v2767_v24 = vmul.f32 1.442695, %v2761_v19  ;;  %10458 = vpow2.f32 %v2269_v7 }
 0x95b   : > { %v2765_v13 = vmul.f32 1.442695, %v2760_v22  ;;  %v2300_v59 = vsel %vm896_vm1, %v11860_v16, 0.0  ;;  %v11867_v32 = vpop.eup %10448  ;;  %2298 = vadd.xlane.f32.xlu1 %v2297_v9 }
 0x95c   : > { %v2758_v63 = vpop.xlane.xlu0 %2757  ;;  %10460 = vpow2.f32 %v2767_v24  ;;  %2301 = vadd.xlane.f32.xlu0 %v2300_v59  ;;  %v2303_v53 = vsel %vm896_vm1, %v11867_v32, 0.0 }
 0x95d   : > { %10462 = vpow2.f32 %v2765_v13  ;;  %v2762_v25 = vsub.f32 %v11768_v45, %v2758_v63 }
 0x95e   : > { %v11869_v29 = vpop.eup %10450  ;;  %10464 = vpow2.f32 %v2763_v15 }
 0x95f   : > { %v2306_v55 = vsel %vm896_vm1, %v11869_v29, 0.0  ;;  %v11876_v61 = vpop.eup %10452  ;;  %2304 = vadd.xlane.f32.xlu1 %v2303_v53  ;;  %v2769_v11 = vmul.f32 1.442695, %v2762_v25 }
 0x960   : > { %2307 = vadd.xlane.f32.xlu0 %v2306_v55  ;;  %v2309_v45 = vsel %vm896_vm1, %v11876_v61, 0.0 }
 0x961   : > { %v3043_v50 = vpop.xlane.xlu0 %3042  ;;  %10466 = vpow2.f32 %v2769_v11 }
 0x962   : > { %v11878_v43 = vpop.eup %10454  ;;  %v3051_v7 = vsub.f32 %v11778_v20, %v3043_v50 }
 0x963   : > { %v2312_v40 = vsel %vm896_vm1, %v11878_v43, 0.0  ;;  %v3040_v14 = vpop.xlane.xlu1 %3039  ;;  %2310 = vadd.xlane.f32.xlu1 %v2309_v45 }
 0x964   : > { %2313 = vadd.xlane.f32.xlu0 %v2312_v40  ;;  %v3056_v62 = vmul.f32 1.442695, %v3051_v7  ;;  %v3050_v19 = vsub.f32 %v11782_v52, %v3040_v14 }
 0x965   : > { %v3049_v45 = vpop.xlane.xlu0 %3048 }
 0x966   : > { %v11885_v48 = vpop.eup %10456  ;;  %10468 = vpow2.f32 %v3056_v62  ;;  %v3054_v13 = vmul.f32 1.442695, %v3050_v19  ;;  %v3053_v40 = vsub.f32 %v11786_v26, %v3049_v45 }
 0x967   : > { %v2318_v22 = vsel %vm896_vm1, %v11885_v48, 0.0  ;;  %v11890_v17 = vpop.eup %10458  ;;  %v11921_v62 = vpop.permute.xlu1 %3082 }
 0x968   : > { %2319 = vadd.xlane.f32.xlu0 %v2318_v22  ;;  %v2315_v9 = vsel %vm896_vm1, %v11890_v17, 0.0  ;;  %10470 = vpow2.f32 %v3054_v13  ;;  %v3060_v14 = vmul.f32 1.442695, %v3053_v40 }
 0x969   : > { %v11892_v20 = vpop.eup %10460 }
 0x96a   : > { %v2777_v24 = vsel %vm360_vm0, %v11892_v20, 0.0  ;;  %v11898_v59 = vpop.eup %10462  ;;  %10472 = vpow2.f32 %v3060_v14 }
 0x96b   : > { %2778 = vadd.xlane.f32.xlu1 %v2777_v24  ;;  %v11900_v52 = vpop.eup %10464  ;;  %v2774_v63 = vsel %vm360_vm0, %v11898_v59, 0.0 }
 0x96c   : > { %2316 = vadd.xlane.f32.xlu0 %v2315_v9  ;;  %v2771_v15 = vsel %vm360_vm0, %v11900_v52, 0.0 }
 0x96e   : > { %v11906_v25 = vpop.eup %10466 }
 0x96f   : > { %v2780_v53 = vsel %vm360_vm0, %v11906_v25, 0.0 }
 0x970   : > { %2775 = vadd.xlane.f32.xlu0 %v2774_v63 }
 0x973   : > { %v11910_v55 = vpop.eup %10468 }
 0x974   : > { %2772 = vadd.xlane.f32.xlu0 %v2771_v15  ;;  %v3065_v50 = vsel %vm360_vm0, %v11910_v55, 0.0 }
 0x975   : > { %v11914_v11 = vpop.eup %10470 }
 0x976   : > { %v3062_v7 = vsel %vm360_vm0, %v11914_v11, 0.0 }
 0x977   : > { %v11925_v22 = vpop.eup %10472 }
 0x978   : > { %2781 = vadd.xlane.f32.xlu0 %v2780_v53  ;;  %v3071_v13 = vsel %vm360_vm0, %v11925_v22, 0.0  ;;  %v14220_v53 = vld [vmem:[#allocation19_spill] sm:$0xff] }
 0x97c   : > { %3066 = vadd.xlane.f32.xlu0 %v3065_v50  ;;  %3223 = vrot.lane.b32.xlu1 %v11325_v30, %s10937_s18 }
 0x980   : > { %3063 = vadd.xlane.f32.xlu0 %v3062_v7 }
 0x996   : > { %3225 = vrot.lane.b32.xlu0 %v11330_v41, %s10937_s18 }
 0x998   : > { %v3046_v19 = vpop.xlane.xlu1 %3045 }
 0x999   : > { %v3052_v24 = vsub.f32 %v11792_v28, %v3046_v19 }
 0x99b   : > { %v3058_v9 = vmul.f32 1.442695, %v3052_v24 }
 0x99d   : > { %10474 = vpow2.f32 %v3058_v9 }
 0x9a0   : > { %3072 = vadd.xlane.f32.xlu1 %v3071_v13 }
 0x9aa   : > { %v11930_v63 = vpop.eup %10474 }
 0x9ab   : > { %v3068_v26 = vsel %vm360_vm0, %v11930_v63, 0.0 }
 0x9b1   : > { %3219 = vrot.lane.b32.xlu1 %v11352_v60, %s10937_s18 }
 0x9b5   : > { %3069 = vadd.xlane.f32.xlu0 %v3068_v26  ;;  %3213 = vrot.lane.b32.xlu1 %v11399_v44, %s10938_s19 }
 0x9b9   : > { %3217 = vrot.lane.b32.xlu1 %v11409_v34, %s10938_s19 }
 0x9bd   : > { %3378 = vrot.lane.b32.xlu1 %v11330_v41, %s10939_s20 }
 0x9c1   : > { %3374 = vrot.lane.b32.xlu1 %v11349_v56, %s10939_s20 }
 0x9c5   : > { %3372 = vrot.lane.b32.xlu1 %v11352_v60, %s10939_s20 }
 0x9cb   : > { %3221 = vrot.lane.b32.xlu0 %v11349_v56, %s10937_s18 }
 0x9ce   : > { %v2278_v28 = vpop.xlane.xlu0 %2277 }
 0x9cf   : > { %3211 = vrot.lane.b32.xlu0 %v11388_v27, %s10938_s19  ;;  %10476 = vrcp.f32 %v2278_v28 }
 0x9d0   : > { %v2275_v15 = vpop.xlane.xlu1 %2274 }
 0x9d1   : > { %10478 = vrcp.f32 %v2275_v15 }
 0x9d3   : > { %3215 = vrot.lane.b32.xlu0 %v14220_v53, %s10938_s19 }
 0x9d4   : > { %v2284_v50 = vpop.xlane.xlu0 %2283 }
 0x9d5   : > { %10480 = vrcp.f32 %v2284_v50 }
 0x9d7   : > { %3376 = vrot.lane.b32.xlu0 %v11325_v30, %s10939_s20 }
 0x9d8   : > { %v2281_v7 = vpop.xlane.xlu1 %2280 }
 0x9d9   : > { %10482 = vrcp.f32 %v2281_v7 }
 0x9dc   : > { %v10477_v45 = vpop.eup %10476  ;;  %v2287_v40 = vpop.xlane.xlu1 %2286 }
 0x9dd   : > { %v2290_v14 = vpop.xlane.xlu0 %2289  ;;  %10484 = vrcp.f32 %v2287_v40  ;;  %v2324_v13 = vmul.f32 %v10477_v45, %v11815_v1 }
 0x9de   : > { %v10479_v19 = vpop.eup %10478  ;;  %10486 = vrcp.f32 %v2290_v14 }
 0x9df   : > { %v2322_v24 = vmul.f32 %v10479_v19, %v11821_v4 }
 0x9e0   : > { %v2293_v9 = vpop.xlane.xlu1 %2292 }
 0x9e1   : > { %v2296_v26 = vpop.xlane.xlu0 %2295  ;;  %9782 = vmatprep.mubr.msk.f32.mxu1 %vm896_vm1, %v2322_v24  ;;  %10488 = vrcp.f32 %v2293_v9 }
 0x9e2   : > { %9783 = vmatmul.mubr.msk.f32.vlgmr.msra.gmra.mxu1 %vm896_vm1, %v2324_v13  ;;  %10490 = vrcp.f32 %v2296_v26  ;;  %v10481_v50 = vpop.eup %10480 }
 0x9e3   : > { %9821 = vmatpush3.msra.mxu1 %v11653_v49  ;;  %v2328_v45 = vmul.f32 %v10481_v50, %v11827_v0 }
 0x9e4   : > { %9822 = vmatprep.subr.mxu1 %v11796_v21  ;;  %v2299_v28 = vpop.xlane.xlu1 %2298 }
 0x9e5   : > { %9823 = vmatpush3.msra.mxu1 %v11796_v21  ;;  %v2302_v15 = vpop.xlane.xlu0 %2301  ;;  %10492 = vrcp.f32 %v2299_v28 }
 0x9e6   : > { %9824 = vmatprep.subr.mxu1 %v11804_v31  ;;  %v10483_v1 = vpop.eup %10482  ;;  %10494 = vrcp.f32 %v2302_v15 }
 0x9e7   : > { %9825 = vmatpush3.msra.mxu1 %v11804_v31  ;;  %v2326_v4 = vmul.f32 %v10483_v1, %v11833_v51 }
 0x9e8   : > { %9826 = vmatprep.subr.mxu1 %v11798_v37  ;;  %v2305_v7 = vpop.xlane.xlu1 %2304 }
 0x9e9   : > { %9827 = vmatpush3.msra.mxu1 %v11798_v37  ;;  %v2308_v49 = vpop.xlane.xlu0 %2307  ;;  %10496 = vrcp.f32 %v2305_v7  ;;  %9785 = vmatprep.mubr.msk.f32.mxu1 %vm896_vm1, %v2326_v4 }
 0x9ea   : > { %9848 = vmatprep.subr.mxu1 %v11800_v46  ;;  %v10485_v21 = vpop.eup %10484  ;;  %10498 = vrcp.f32 %v2308_v49  ;;  %9786 = vmatmul.mubr.msk.f32.gmra.mxu1 %vm896_vm1, %v2328_v45 }
 0x9eb   : > { %v10487_v31 = vpop.eup %10486  ;;  %v2330_v40 = vmul.f32 %v10485_v21, %v11837_v2 }
 0x9ec   : > { %v2311_v14 = vpop.xlane.xlu1 %2310  ;;  %v2332_v19 = vmul.f32 %v10487_v31, %v11840_v38 }
 0x9ed   : > { %v2314_v51 = vpop.xlane.xlu0 %2313  ;;  %10500 = vrcp.f32 %v2311_v14  ;;  %9788 = vmatprep.mubr.msk.f32.mxu1 %vm896_vm1, %v2330_v40 }
 0x9ee   : > { %v10489_v37 = vpop.eup %10488  ;;  %10502 = vrcp.f32 %v2314_v51  ;;  %9789 = vmatmul.mubr.msk.f32.gmra.mxu1 %vm896_vm1, %v2332_v19 }
 0x9ef   : > { %v10491_v0 = vpop.eup %10490  ;;  %v2334_v24 = vmul.f32 %v10489_v37, %v11847_v6 }
 0x9f0   : > { %v2336_v9 = vmul.f32 %v10491_v0, %v11850_v18 }
 0x9f1   : > { %v2320_v13 = vpop.xlane.xlu0 %2319  ;;  %9791 = vmatprep.mubr.msk.f32.mxu1 %vm896_vm1, %v2334_v24 }
 0x9f2   : > { %v10493_v2 = vpop.eup %10492  ;;  %9792 = vmatmul.mubr.msk.f32.gmra.mxu1 %vm896_vm1, %v2336_v9  ;;  %10504 = vrcp.f32 %v2320_v13 }
 0x9f3   : > { %v10495_v26 = vpop.eup %10494  ;;  %v2338_v38 = vmul.f32 %v10493_v2, %v11856_v35 }
 0x9f4   : > { %v2340_v15 = vmul.f32 %v10495_v26, %v11860_v16  ;;  %v2779_v1 = vpop.xlane.xlu1 %2778 }
 0x9f5   : > { %v2317_v28 = vpop.xlane.xlu0 %2316  ;;  %9794 = vmatprep.mubr.msk.f32.mxu1 %vm896_vm1, %v2338_v38 }
 0x9f6   : > { %10506 = vrcp.f32 %v2317_v28  ;;  %v10497_v50 = vpop.eup %10496  ;;  %9795 = vmatmul.mubr.msk.f32.gmra.mxu1 %vm896_vm1, %v2340_v15 }
 0x9f7   : > { %v10499_v6 = vpop.eup %10498  ;;  %v2342_v18 = vmul.f32 %v10497_v50, %v11867_v32  ;;  %10508 = vrcp.f32 %v2779_v1 }
 0x9f8   : > { %v2344_v7 = vmul.f32 %v10499_v6, %v11869_v29 }
 0x9f9   : > { %v2776_v4 = vpop.xlane.xlu0 %2775  ;;  %9797 = vmatprep.mubr.msk.f32.mxu1 %vm896_vm1, %v2342_v18 }
 0x9fa   : > { %v10501_v35 = vpop.eup %10500  ;;  %9798 = vmatmul.mubr.msk.f32.gmra.mxu1 %vm896_vm1, %v2344_v7  ;;  %10510 = vrcp.f32 %v2776_v4 }
 0x9fb   : > { %v10503_v49 = vpop.eup %10502  ;;  %v2346_v16 = vmul.f32 %v10501_v35, %v11876_v61 }
 0x9fc   : > { %v2348_v21 = vmul.f32 %v10503_v49, %v11878_v43 }
 0x9fd   : > { %v2773_v45 = vpop.xlane.xlu0 %2772  ;;  %9800 = vmatprep.mubr.msk.f32.mxu1 %vm896_vm1, %v2346_v16 }
 0x9fe   : > { %10512 = vrcp.f32 %v2773_v45  ;;  %9801 = vmatmul.mubr.msk.f32.gmra.mxu1 %vm896_vm1, %v2348_v21 }
 0x9ff   : > { %v10505_v29 = vpop.eup %10504 }
 0xa00   : > { %v2352_v51 = vmul.f32 %v10505_v29, %v11885_v48 }
 0xa01   : > { %v2782_v32 = vpop.xlane.xlu0 %2781 }
 0xa02   : > { %10514 = vrcp.f32 %v2782_v32 }
 0xa03   : > { %v10507_v31 = vpop.eup %10506 }
 0xa04   : > { %v2350_v40 = vmul.f32 %v10507_v31, %v11890_v17  ;;  %v10509_v61 = vpop.eup %10508 }
 0xa05   : > { %v3067_v14 = vpop.xlane.xlu0 %3066  ;;  %v2788_v17 = vmul.f32 %v10509_v61, %v11892_v20 }
 0xa06   : > { %9803 = vmatprep.mubr.msk.f32.mxu1 %vm896_vm1, %v2350_v40  ;;  %10516 = vrcp.f32 %v3067_v14 }
 0xa07   : > { %9804 = vmatmul.mubr.msk.f32.gmra.mxu1 %vm896_vm1, %v2352_v51  ;;  %v10511_v19 = vpop.eup %10510 }
 0xa08   : > { %v2786_v24 = vmul.f32 %v10511_v19, %v11898_v59 }
 0xa09   : > { %v3064_v43 = vpop.xlane.xlu0 %3063 }
 0xa0a   : > { %10518 = vrcp.f32 %v3064_v43 }
 0xa0b   : > { %v10513_v37 = vpop.eup %10512 }
 0xa0c   : > { %v2784_v0 = vmul.f32 %v10513_v37, %v11900_v52 }
 0xa0d   : > { %v3226_v59 = vpop.permute.xlu0 %3225 }
 0xa0e   : > { %9828 = vmatprep.mubr.msk.f32.mxu1 %vm360_vm0, %v2784_v0 }
 0xa0f   : > { %v10515_v13 = vpop.eup %10514  ;;  %9829 = vmatmul.mubr.msk.f32.vlgmr.msra.gmra.mxu1 %vm360_vm0, %v2786_v24 }
 0xa10   : > { %9849 = vmatpush3.msra.mxu1 %v11800_v46  ;;  %9831 = vmatprep.mubr.msk.f32.mxu1 %vm360_vm0, %v2788_v17  ;;  %v2790_v48 = vmul.f32 %v10515_v13, %v11906_v25 }
 0xa11   : > { %9850 = vmatprep.subr.mxu1 %v11802_v42 }
 0xa12   : > { %9851 = vmatpush3.msra.mxu1 %v11802_v42  ;;  %v3224_v42 = vpop.permute.xlu1 %3223 }
 0xa13   : > { %9852 = vmatprep.subr.mxu1 %v11806_v10  ;;  %9832 = vmatmul.mubr.msk.f32.gmra.mxu1 %vm360_vm0, %v2790_v48  ;;  %v10517_v20 = vpop.eup %10516 }
 0xa14   : > { %9853 = vmatpush3.msra.mxu1 %v11806_v10  ;;  %v3077_v25 = vmul.f32 %v10517_v20, %v11910_v55 }
 0xa15   : > { %9854 = vmatprep.subr.mxu1 %v11921_v62 }
 0xa16   : > { %9855 = vmatpush3.msra.mxu1 %v11921_v62 }
 0xa17   : > { %v10519_v46 = vpop.eup %10518  ;;  %9862 = vmatprep.subr.msk.mxu1 %vm896_vm1, %v3226_v59 }
 0xa18   : > { %v3075_v52 = vmul.f32 %v10519_v46, %v11914_v11 }
 0xa1a   : > { %9856 = vmatprep.mubr.msk.f32.mxu1 %vm360_vm0, %v3075_v52 }
 0xa1b   : > { %9857 = vmatmul.mubr.msk.f32.vlgmr.msra.gmra.mxu1 %vm360_vm0, %v3077_v25 }
 0xa1c   : > { %9863 = vmatpush3.xpose.msk.msra.mxu1 %vm896_vm1, %v3226_v59 }
 0xa1d   : > { %9864 = vmatprep.subr.msk.mxu1 %vm896_vm1, %v3224_v42 }
 0xa20   : > { %9865 = vmatpush3.xpose.msk.msra.mxu1 %vm896_vm1, %v3224_v42 }
 0xa29   : > { %v3073_v10 = vpop.xlane.xlu1 %3072 }
 0xa2a   : > { %10520 = vrcp.f32 %v3073_v10 }
 0xa2d   : > { %v3220_v62 = vpop.permute.xlu1 %3219 }
 0xa31   : > { %v3214_v9 = vpop.permute.xlu1 %3213 }
 0xa35   : > { %v3218_v2 = vpop.permute.xlu1 %3217 }
 0xa37   : > { %v10521_v15 = vpop.eup %10520 }
 0xa38   : > { %v3081_v4 = vmul.f32 %v10521_v15, %v11925_v22 }
 0xa39   : > { %v3379_v26 = vpop.permute.xlu1 %3378 }
 0xa3a   : > { %9876 = vmatprep.subr.mxu0 %v3379_v26 }
 0xa3b   : > { %9877 = vmatpush3.msra.mxu0 %v3379_v26 }
 0xa3d   : > { %v3375_v6 = vpop.permute.xlu1 %3374 }
 0xa3e   : > { %v3070_v55 = vpop.xlane.xlu0 %3069 }
 0xa3f   : > { %10522 = vrcp.f32 %v3070_v55 }
 0xa41   : > { %v3373_v7 = vpop.permute.xlu1 %3372 }
 0xa42   : > { %v3222_v11 = vpop.permute.xlu0 %3221 }
 0xa43   : > { %9866 = vmatprep.subr.msk.mxu1 %vm896_vm1, %v3222_v11 }
 0xa44   : > { %9867 = vmatpush3.xpose.msk.msra.mxu1 %vm896_vm1, %v3222_v11 }
 0xa45   : > { %9868 = vmatprep.subr.msk.mxu1 %vm896_vm1, %v3220_v62 }
 0xa46   : > { %v3212_v38 = vpop.permute.xlu0 %3211 }
 0xa48   : > { %9869 = vmatpush3.xpose.msk.msra.mxu1 %vm896_vm1, %v3220_v62 }
 0xa4a   : > { %v3216_v28 = vpop.permute.xlu0 %3215 }
 0xa4c   : > { %v10523_v50 = vpop.eup %10522 }
 0xa4d   : > { %v3079_v18 = vmul.f32 %v10523_v50, %v11930_v63 }
 0xa4e   : > { %v3377_v1 = vpop.permute.xlu0 %3376 }
 0xa4f   : > { %9859 = vmatprep.mubr.msk.f32.mxu1 %vm360_vm0, %v3079_v18  ;;  %9878 = vmatprep.subr.mxu0 %v3377_v1 }
 0xa50   : > { %9860 = vmatmul.mubr.msk.f32.gmra.mxu1 %vm360_vm0, %v3081_v4  ;;  %9879 = vmatpush3.msra.mxu0 %v3377_v1 }
 0xa51   : > { %9870 = vmatprep.mubr.msk.f32.mxu1 %vm896_vm1, %v3212_v38  ;;  %9880 = vmatprep.subr.mxu0 %v3375_v6 }
 0xa52   : > { %9881 = vmatpush3.msra.mxu0 %v3375_v6 }
 0xa53   : > { %9882 = vmatprep.subr.mxu0 %v3373_v7 }
 0xa54   : > { %9871 = vmatmul.mubr.msk.f32.vlgmr.msra.gmra.mxu1 %vm896_vm1, %v3214_v9  ;;  %9883 = vmatpush3.msra.mxu0 %v3373_v7 }
 0xa55   : > { %9873 = vmatprep.mubr.msk.f32.mxu1 %vm896_vm1, %v3216_v28 }
 0xa58   : > { %9874 = vmatmul.mubr.msk.f32.gmra.mxu1 %vm896_vm1, %v3218_v2 }
 0xaa2   : > { %v12029_v22 = vpop.f32.mrf.mxu1 }
 0xaa3   : > { %14221 = vst [vmem:[#allocation19_spill] sm:$0xff] %v12029_v22 }
 0xaa4   : > { %v12031_v63 = vpop.f32.mrf.mxu1 }
 0xaa5   : > { %14222 = vst [vmem:[#allocation34_spill] sm:$0xff] %v12031_v63 }
 0xaaa   : > { %v12033_v35 = vpop.f32.mrf.mxu1 }
 0xaab   : > { %14223 = vst [vmem:[#allocation35_spill] sm:$0xff] %v12033_v35 }
 0xaac   : > { %v12035_v49 = vpop.f32.mrf.mxu1 }
 0xaad   : > { %14224 = vst [vmem:[#allocation36_spill] sm:$0xff] %v12035_v49 }
 0xaae   : > { %v12037_v16 = vpop.f32.mrf.mxu1 }
 0xaaf   : > { %14225 = vst [vmem:[#allocation37_spill] sm:$0xff] %v12037_v16  ;;  %v14266_v16 = vld [vmem:[#allocation5_spill] sm:$0xff] }
 0xab0   : > { %v12039_v45 = vpop.f32.mrf.mxu1 }
 0xab1   : > { %14226 = vst [vmem:[#allocation38_spill] sm:$0xff] %v12039_v45 }
 0xab2   : > { %v12041_v21 = vpop.f32.mrf.mxu1 }
 0xab3   : > { %14227 = vst [vmem:[#allocation39_spill] sm:$0xff] %v12041_v21 }
 0xab4   : > { %v12043_v32 = vpop.f32.mrf.mxu1 }
 0xab5   : > { %14228 = vst [vmem:[#allocation40_spill] sm:$0xff] %v12043_v32 }
 0xab6   : > { %v12045_v29 = vpop.f32.mrf.mxu1 }
 0xab7   : > { %14229 = vst [vmem:[#allocation41_spill] sm:$0xff] %v12045_v29 }
 0xab8   : > { %v12047_v31 = vpop.f32.mrf.mxu1 }
 0xab9   : > { %14230 = vst [vmem:[#allocation42_spill] sm:$0xff] %v12047_v31 }
 0xaba   : > { %v12049_v40 = vpop.f32.mrf.mxu1 }
 0xabb   : > { %14231 = vst [vmem:[#allocation43_spill] sm:$0xff] %v12049_v40 }
 0xabc   : > { %v12051_v14 = vpop.f32.mrf.mxu1 }
 0xabd   : > { %14232 = vst [vmem:[#allocation44_spill] sm:$0xff] %v12051_v14 }
 0xabe   : > { %v12053_v51 = vpop.f32.mrf.mxu1 }
 0xabf   : > { %14233 = vst [vmem:[#allocation45_spill] sm:$0xff] %v12053_v51 }
 0xac0   : > { %v12055_v61 = vpop.f32.mrf.mxu1 }
 0xac1   : > { %14234 = vst [vmem:[#allocation46_spill] sm:$0xff] %v12055_v61 }
 0xac7   : > { %v12057_v43 = vpop.f32.mrf.mxu1 }
 0xac8   : > { %14235 = vst [vmem:[#allocation47_spill] sm:$0xff] %v12057_v43 }
 0xac9   : > { %v12059_v19 = vpop.f32.mrf.mxu1 }
 0xaca   : > { %14236 = vst [vmem:[#allocation48_spill] sm:$0xff] %v12059_v19 }
 0xacf   : > { %v12061_v37 = vpop.f32.mrf.mxu1 }
 0xad0   : > { %14237 = vst [vmem:[#allocation49_spill] sm:$0xff] %v12061_v37 }
 0xad1   : > { %v12063_v0 = vpop.f32.mrf.mxu1 }
 0xad2   : > { %14238 = vst [vmem:[#allocation50_spill] sm:$0xff] %v12063_v0 }
 0xad3   : > { %v12065_v24 = vpop.f32.mrf.mxu1 }
 0xad4   : > { %14239 = vst [vmem:[#allocation51_spill] sm:$0xff] %v12065_v24 }
 0xad5   : > { %v12067_v17 = vpop.f32.mrf.mxu1 }
 0xad6   : > { %14240 = vst [vmem:[#allocation52_spill] sm:$0xff] %v12067_v17 }
 0xadb   : > { %v12069_v13 = vpop.f32.mrf.mxu1 }
 0xadc   : > { %14241 = vst [vmem:[#allocation53_spill] sm:$0xff] %v12069_v13 }
 0xadd   : > { %v12071_v48 = vpop.f32.mrf.mxu1 }
 0xade   : > { %14242 = vst [vmem:[#allocation54_spill] sm:$0xff] %v12071_v48  ;;  %v14267_v48 = vld [vmem:[#allocation8_spill] sm:$0xff] }
 0xb10   : > { %v12073_v20 = vpop.f32.mrf.mxu1 }
 0xb11   : > { %14243 = vst [vmem:[#allocation55_spill] sm:$0xff] %v12073_v20 }
 0xb12   : > { %v12075_v59 = vpop.f32.mrf.mxu1 }
 0xb13   : > { %14244 = vst [vmem:[#allocation56_spill] sm:$0xff] %v12075_v59 }
 0xb14   : > { %v9872_v46 = vpop.f32.mrf.mxu1 }
 0xb15   : > { %v3331_v52 = vsel %vm360_vm0, %v9872_v46, -inf }
 0xb16   : > { %3332 = vmax.xlane.f32.xlu1 %v3331_v52  ;;  %v3309_v25 = vpop.f32.mrf.mxu1 }
 0xb17   : > { %v3328_v42 = vsel %vm360_vm0, %v3309_v25, -inf }
 0xb18   : > { %3329 = vmax.xlane.f32.xlu0 %v3328_v42  ;;  %v9875_v10 = vpop.f32.mrf.mxu1 }
 0xb19   : > { %v3337_v62 = vsel %vm360_vm0, %v9875_v10, -inf }
 0xb1a   : > { %v3319_v9 = vpop.f32.mrf.mxu1 }
 0xb1b   : > { %v3334_v2 = vsel %vm360_vm0, %v3319_v9, -inf }
 0xb1c   : > { %3338 = vmax.xlane.f32.xlu0 %v3337_v62 }
 0xb20   : > { %3335 = vmax.xlane.f32.xlu0 %v3334_v2 }
 0xb27   : > { %3513 = vrot.lane.b32.xlu1 %v11433_v23, %s10937_s18 }
 0xb36   : > { %3515 = vrot.lane.b32.xlu0 %v11441_v33, %s10937_s18 }
 0xb9f   : > { %v3333_v26 = vpop.xlane.xlu1 %3332 }
 0xba0   : > { %v3341_v55 = vsub.f32 %v9872_v46, %v3333_v26 }
 0xba1   : > { %v3330_v11 = vpop.xlane.xlu0 %3329 }
 0xba2   : > { %v3346_v38 = vmul.f32 1.442695, %v3341_v55  ;;  %v3340_v28 = vsub.f32 %v3309_v25, %v3330_v11 }
 0xba4   : > { %10524 = vpow2.f32 %v3346_v38  ;;  %v3344_v15 = vmul.f32 1.442695, %v3340_v28 }
 0xba5   : > { %v3339_v50 = vpop.xlane.xlu0 %3338 }
 0xba6   : > { %10526 = vpow2.f32 %v3344_v15  ;;  %v3343_v46 = vsub.f32 %v9875_v10, %v3339_v50  ;;  %v14245_v10 = vld [vmem:[#allocation20_spill] sm:$0xff] }
 0xba8   : > { %v3350_v42 = vmul.f32 1.442695, %v3343_v46 }
 0xba9   : > { %v3336_v6 = vpop.xlane.xlu0 %3335 }
 0xbaa   : > { %v3342_v25 = vsub.f32 %v3319_v9, %v3336_v6  ;;  %10528 = vpow2.f32 %v3350_v42  ;;  %v3514_v9 = vpop.permute.xlu1 %3513 }
 0xbac   : > { %v3348_v62 = vmul.f32 1.442695, %v3342_v25 }
 0xbad   : > { %v3516_v18 = vpop.permute.xlu0 %3515 }
 0xbae   : > { %9890 = vmatprep.subr.msk.mxu0 %vm896_vm1, %v3516_v18  ;;  %10530 = vpow2.f32 %v3348_v62 }
 0xbb1   : > { %v10525_v1 = vpop.eup %10524 }
 0xbb2   : > { %v3355_v4 = vsel %vm360_vm0, %v10525_v1, 0.0 }
 0xbb3   : > { %v10527_v7 = vpop.eup %10526  ;;  %3356 = vadd.xlane.f32.xlu0 %v3355_v4 }
 0xbb4   : > { %v3352_v52 = vsel %vm360_vm0, %v10527_v7, 0.0 }
 0xbb5   : > { %3353 = vadd.xlane.f32.xlu1 %v3352_v52 }
 0xbb7   : > { %v10529_v2 = vpop.eup %10528 }
 0xbb8   : > { %v3361_v55 = vsel %vm360_vm0, %v10529_v2, 0.0 }
 0xbbb   : > { %v10531_v26 = vpop.eup %10530 }
 0xbbc   : > { %v3358_v11 = vsel %vm360_vm0, %v10531_v26, 0.0 }
 0xbc6   : > { %3509 = vrot.lane.b32.xlu1 %v11452_v3, %s10937_s18 }
 0xbc9   : > { %3511 = vrot.lane.b32.xlu0 %v11458_v47, %s10937_s18 }
 0xbe8   : > { %3362 = vadd.xlane.f32.xlu0 %v3361_v55 }
 0xbea   : > { %3359 = vadd.xlane.f32.xlu1 %v3358_v11 }
 0xbfb   : > { %3503 = vrot.lane.b32.xlu1 %v11479_v57, %s10938_s19 }
 0xbfe   : > { %3501 = vrot.lane.b32.xlu0 %v11470_v8, %s10938_s19 }
 0xbff   : > { %3507 = vrot.lane.b32.xlu1 %v11489_v36, %s10938_s19 }
 0xc02   : > { %3505 = vrot.lane.b32.xlu0 %v14245_v10, %s10938_s19 }
 0xc3c   : > { %v3357_v38 = vpop.xlane.xlu0 %3356 }
 0xc3d   : > { %10532 = vrcp.f32 %v3357_v38 }
 0xc3e   : > { %v3354_v28 = vpop.xlane.xlu1 %3353 }
 0xc3f   : > { %10534 = vrcp.f32 %v3354_v28 }
 0xc40   : > { %v3512_v52 = vpop.permute.xlu0 %3511 }
 0xc42   : > { %v3510_v46 = vpop.permute.xlu1 %3509 }
 0xc4a   : > { %v10533_v15 = vpop.eup %10532 }
 0xc4b   : > { %v3367_v4 = vmul.f32 %v10533_v15, %v10525_v1 }
 0xc4c   : > { %v10535_v50 = vpop.eup %10534 }
 0xc4d   : > { %v3365_v6 = vmul.f32 %v10535_v50, %v10527_v7 }
 0xc4f   : > { %9884 = vmatprep.mubr.msk.f32.mxu0 %vm360_vm0, %v3365_v6 }
 0xc50   : > { %9885 = vmatmul.mubr.msk.f32.vlgmr.msra.gmra.mxu0 %vm360_vm0, %v3367_v4 }
 0xc51   : > { %9891 = vmatpush3.xpose.msk.msra.mxu0 %vm896_vm1, %v3516_v18 }
 0xc52   : > { %9892 = vmatprep.subr.msk.mxu0 %vm896_vm1, %v3514_v9 }
 0xc55   : > { %9893 = vmatpush3.xpose.msk.msra.mxu0 %vm896_vm1, %v3514_v9 }
 0xc56   : > { %9894 = vmatprep.subr.msk.mxu0 %vm896_vm1, %v3512_v52 }
 0xc59   : > { %9895 = vmatpush3.xpose.msk.msra.mxu0 %vm896_vm1, %v3512_v52 }
 0xc5a   : > { %9896 = vmatprep.subr.msk.mxu0 %vm896_vm1, %v3510_v46 }
 0xc5d   : > { %9897 = vmatpush3.xpose.msk.msra.mxu0 %vm896_vm1, %v3510_v46 }
 0xc71   : > { %v3363_v1 = vpop.xlane.xlu0 %3362 }
 0xc72   : > { %10536 = vrcp.f32 %v3363_v1 }
 0xc73   : > { %v3360_v7 = vpop.xlane.xlu1 %3359 }
 0xc74   : > { %10538 = vrcp.f32 %v3360_v7 }
 0xc75   : > { %v3502_v62 = vpop.permute.xlu0 %3501 }
 0xc77   : > { %v3504_v11 = vpop.permute.xlu1 %3503 }
 0xc79   : > { %v3506_v9 = vpop.permute.xlu0 %3505 }
 0xc7b   : > { %v3508_v38 = vpop.permute.xlu1 %3507 }
 0xc7f   : > { %v10537_v25 = vpop.eup %10536 }
 0xc80   : > { %v3371_v55 = vmul.f32 %v10537_v25, %v10529_v2 }
 0xc81   : > { %v10539_v18 = vpop.eup %10538 }
 0xc82   : > { %v3369_v42 = vmul.f32 %v10539_v18, %v10531_v26 }
 0xc84   : > { %9887 = vmatprep.mubr.msk.f32.mxu0 %vm360_vm0, %v3369_v42 }
 0xc85   : > { %9888 = vmatmul.mubr.msk.f32.gmra.mxu0 %vm360_vm0, %v3371_v55 }
 0xc86   : > { %9898 = vmatprep.mubr.msk.f32.mxu0 %vm896_vm1, %v3502_v62 }
 0xc89   : > { %9899 = vmatmul.mubr.msk.f32.vlgmr.msra.gmra.mxu0 %vm896_vm1, %v3504_v11 }
 0xc8a   : > { %9901 = vmatprep.mubr.msk.f32.mxu0 %vm896_vm1, %v3506_v9 }
 0xc8d   : > { %9902 = vmatmul.mubr.msk.f32.gmra.mxu0 %vm896_vm1, %v3508_v38 }
 0xd10   : > { %v12117_v28 = vpop.f32.mrf.mxu0 }
 0xd11   : > { %14246 = vst [vmem:[#allocation20_spill] sm:$0xff] %v12117_v28 }
 0xd12   : > { %v12119_v26 = vpop.f32.mrf.mxu0 }
 0xd13   : > { %14247 = vst [vmem:[#allocation57_spill] sm:$0xff] %v12119_v26 }
 0xd45   : > { %v12121_v2 = vpop.f32.mrf.mxu0 }
 0xd46   : > { %14248 = vst [vmem:[#allocation58_spill] sm:$0xff] %v12121_v2 }
 0xd47   : > { %v12123_v15 = vpop.f32.mrf.mxu0 }
 0xd48   : > { %14249 = vst [vmem:[#allocation59_spill] sm:$0xff] %v12123_v15 }
 0xd49   : > { %v9900_v50 = vpop.f32.mrf.mxu0 }
 0xd4a   : > { %v3621_v6 = vsel %vm360_vm0, %v9900_v50, -inf }
 0xd4b   : > { %3622 = vmax.xlane.f32.xlu1 %v3621_v6  ;;  %v3599_v4 = vpop.f32.mrf.mxu0 }
 0xd4c   : > { %v3618_v52 = vsel %vm360_vm0, %v3599_v4, -inf }
 0xd4d   : > { %3619 = vmax.xlane.f32.xlu0 %v3618_v52  ;;  %v9903_v46 = vpop.f32.mrf.mxu0 }
 0xd4e   : > { %v3627_v25 = vsel %vm360_vm0, %v9903_v46, -inf }
 0xd4f   : > { %v3609_v1 = vpop.f32.mrf.mxu0 }
 0xd50   : > { %v3624_v7 = vsel %vm360_vm0, %v3609_v1, -inf }
 0xd51   : > { %3625 = vmax.xlane.f32.xlu0 %v3624_v7 }
 0xd55   : > { %3628 = vmax.xlane.f32.xlu0 %v3627_v25 }
 0xd5c   : > { %3668 = vrot.lane.b32.xlu1 %v11441_v33, %s10939_s20 }
 0xd60   : > { %3664 = vrot.lane.b32.xlu1 %v11458_v47, %s10939_s20 }
 0xd64   : > { %3662 = vrot.lane.b32.xlu1 %v11452_v3, %s10939_s20 }
 0xd6b   : > { %3666 = vrot.lane.b32.xlu0 %v11433_v23, %s10939_s20 }
 0xdd4   : > { %v3623_v18 = vpop.xlane.xlu1 %3622 }
 0xdd5   : > { %v3631_v42 = vsub.f32 %v9900_v50, %v3623_v18 }
 0xdd6   : > { %v3620_v62 = vpop.xlane.xlu0 %3619 }
 0xdd7   : > { %v3636_v55 = vmul.f32 1.442695, %v3631_v42  ;;  %v3630_v11 = vsub.f32 %v3599_v4, %v3620_v62 }
 0xdd8   : > { %v3669_v9 = vpop.permute.xlu1 %3668 }
 0xdd9   : > { %10540 = vpow2.f32 %v3636_v55  ;;  %v3634_v38 = vmul.f32 1.442695, %v3630_v11  ;;  %9904 = vmatprep.subr.mxu1 %v3669_v9  ;;  %v14250_v11 = vld [vmem:[#allocation25_spill] sm:$0xff] }
 0xdda   : > { %9905 = vmatpush3.msra.mxu1 %v3669_v9  ;;  %v3626_v6 = vpop.xlane.xlu0 %3625 }
 0xddb   : > { %10542 = vpow2.f32 %v3634_v38 }
 0xddc   : > { %v3665_v25 = vpop.permute.xlu1 %3664 }
 0xdde   : > { %v3629_v52 = vpop.xlane.xlu0 %3628 }
 0xddf   : > { %v3633_v7 = vsub.f32 %v9903_v46, %v3629_v52  ;;  %v14253_v52 = vld [vmem:[#allocation31_spill] sm:$0xff] }
 0xde0   : > { %v3663_v18 = vpop.permute.xlu1 %3662 }
 0xde1   : > { %v3640_v43 = vmul.f32 1.442695, %v3633_v7  ;;  %v14254_v7 = vld [vmem:[#allocation33_spill] sm:$0xff] }
 0xde2   : > { %v3667_v19 = vpop.permute.xlu0 %3666 }
 0xde3   : > { %10544 = vpow2.f32 %v3640_v43  ;;  %9906 = vmatprep.subr.mxu1 %v3667_v19  ;;  %v3632_v43 = vsub.f32 %v3609_v1, %v3626_v6  ;;  %v14251_v1 = vld [vmem:[#allocation27_spill] sm:$0xff]  ;;  %v14252_v6 = vld [vmem:[#allocation29_spill] sm:$0xff] }
 0xde4   : > { %9907 = vmatpush3.msra.mxu1 %v3667_v19 }
 0xde5   : > { %9908 = vmatprep.subr.mxu1 %v3665_v25  ;;  %v3638_v19 = vmul.f32 1.442695, %v3632_v43  ;;  %v14260_v43 = vld [vmem:[#allocation30_spill] sm:$0xff] }
 0xde6   : > { %v10541_v50 = vpop.eup %10540  ;;  %9909 = vmatpush3.msra.mxu1 %v3665_v25  ;;  %v14255_v25 = vld [vmem:[#allocation21_spill] sm:$0xff] }
 0xde7   : > { %9910 = vmatprep.subr.mxu1 %v3663_v18  ;;  %v3645_v4 = vsel %vm360_vm0, %v10541_v50, 0.0  ;;  %10546 = vpow2.f32 %v3638_v19  ;;  %v14261_v19 = vld [vmem:[#allocation32_spill] sm:$0xff] }
 0xde8   : > { %v10543_v42 = vpop.eup %10542  ;;  %3646 = vadd.xlane.f32.xlu0 %v3645_v4  ;;  %9911 = vmatpush3.msra.mxu1 %v3663_v18  ;;  %v14256_v18 = vld [vmem:[#allocation22_spill] sm:$0xff]  ;;  %v14257_v4 = vld [vmem:[#allocation24_spill] sm:$0xff] }
 0xde9   : > { %v3642_v62 = vsel %vm360_vm0, %v10543_v42, 0.0 }
 0xdea   : > { %3643 = vadd.xlane.f32.xlu1 %v3642_v62  ;;  %v14258_v62 = vld [vmem:[#allocation26_spill] sm:$0xff] }
 0xdf0   : > { %v10545_v46 = vpop.eup %10544 }
 0xdf1   : > { %v3651_v55 = vsel %vm360_vm0, %v10545_v46, 0.0 }
 0xdf2   : > { %3652 = vadd.xlane.f32.xlu0 %v3651_v55  ;;  %v14259_v55 = vld [vmem:[#allocation28_spill] sm:$0xff] }
 0xdf4   : > { %v10547_v9 = vpop.eup %10546 }
 0xdf5   : > { %v3648_v38 = vsel %vm360_vm0, %v10547_v9, 0.0 }
 0xdfb   : > { %3791 = vrot.lane.b32.xlu1 %v11581_v39, %s10938_s19 }
 0xe08   : > { %3823 = vrot.lane.b32.xlu0 %v11366_v5, %s10938_s19 }
 0xe0c   : > { %3793 = vrot.lane.b32.xlu0 %v11590_v12, %s10938_s19 }
 0xe10   : > { %3797 = vrot.lane.b32.xlu0 %v11601_v58, %s10938_s19 }
 0xe14   : > { %3801 = vrot.lane.b32.xlu0 %v11613_v54, %s10938_s19 }
 0xe18   : > { %3805 = vrot.lane.b32.xlu0 %v14250_v11, %s10938_s19 }
 0xe1c   : > { %3809 = vrot.lane.b32.xlu0 %v14251_v1, %s10938_s19 }
 0xe1f   : > { %3649 = vadd.xlane.f32.xlu1 %v3648_v38 }
 0xe20   : > { %3813 = vrot.lane.b32.xlu0 %v14252_v6, %s10938_s19 }
 0xe24   : > { %3817 = vrot.lane.b32.xlu0 %v14253_v52, %s10938_s19 }
 0xe28   : > { %3821 = vrot.lane.b32.xlu0 %v14254_v7, %s10938_s19 }
 0xe30   : > { %3795 = vrot.lane.b32.xlu1 %v14255_v25, %s10938_s19 }
 0xe34   : > { %3799 = vrot.lane.b32.xlu1 %v14256_v18, %s10938_s19 }
 0xe38   : > { %3803 = vrot.lane.b32.xlu1 %v14257_v4, %s10938_s19 }
 0xe3c   : > { %3807 = vrot.lane.b32.xlu1 %v14258_v62, %s10938_s19 }
 0xe40   : > { %3811 = vrot.lane.b32.xlu1 %v14259_v55, %s10938_s19 }
 0xe44   : > { %3815 = vrot.lane.b32.xlu1 %v14260_v43, %s10938_s19 }
 0xe48   : > { %3819 = vrot.lane.b32.xlu1 %v14261_v19, %s10938_s19 }
 0xe71   : > { %v3647_v38 = vpop.xlane.xlu0 %3646 }
 0xe72   : > { %10548 = vrcp.f32 %v3647_v38 }
 0xe73   : > { %v3644_v51 = vpop.xlane.xlu1 %3643 }
 0xe74   : > { %10550 = vrcp.f32 %v3644_v51 }
 0xe77   : > { %v3792_v29 = vpop.permute.xlu1 %3791 }
 0xe7b   : > { %v3653_v61 = vpop.xlane.xlu0 %3652 }
 0xe7c   : > { %10552 = vrcp.f32 %v3653_v61 }
 0xe7f   : > { %v3824_v2 = vpop.permute.xlu0 %3823  ;;  %v10549_v40 = vpop.eup %10548 }
 0xe80   : > { %9918 = vmatprep.subr.msk.mxu1 %vm896_vm1, %v3824_v2  ;;  %v3657_v28 = vmul.f32 %v10549_v40, %v10541_v50 }
 0xe81   : > { %v10551_v15 = vpop.eup %10550 }
 0xe82   : > { %v3655_v14 = vmul.f32 %v10551_v15, %v10543_v42 }
 0xe83   : > { %v3794_v38 = vpop.permute.xlu0 %3793 }
 0xe84   : > { %9912 = vmatprep.mubr.msk.f32.mxu1 %vm360_vm0, %v3655_v14 }
 0xe85   : > { %9913 = vmatmul.mubr.msk.f32.vlgmr.msra.gmra.mxu1 %vm360_vm0, %v3657_v28 }
 0xe86   : > { %9919 = vmatpush3.xpose.msk.msra.mxu1 %vm896_vm1, %v3824_v2 }
 0xe87   : > { %v3798_v20 = vpop.permute.xlu0 %3797 }
 0xe89   : > { %v10553_v31 = vpop.eup %10552 }
 0xe8a   : > { %v3661_v13 = vmul.f32 %v10553_v31, %v10545_v46 }
 0xe8b   : > { %v3802_v40 = vpop.permute.xlu0 %3801 }
 0xe8f   : > { %v3806_v61 = vpop.permute.xlu0 %3805 }
 0xe93   : > { %v3810_v31 = vpop.permute.xlu0 %3809 }
 0xea8   : > { %v3650_v26 = vpop.xlane.xlu1 %3649 }
 0xea9   : > { %10554 = vrcp.f32 %v3650_v26 }
 0xeac   : > { %v3796_v51 = vpop.permute.xlu1 %3795 }
 0xeb0   : > { %v3800_v32 = vpop.permute.xlu1 %3799 }
 0xeb4   : > { %v3804_v14 = vpop.permute.xlu1 %3803 }
 0xeb6   : > { %v10555_v21 = vpop.eup %10554 }
 0xeb7   : > { %v3659_v59 = vmul.f32 %v10555_v21, %v10547_v9 }
 0xeb8   : > { %v3808_v21 = vpop.permute.xlu1 %3807 }
 0xeb9   : > { %9915 = vmatprep.mubr.msk.f32.mxu1 %vm360_vm0, %v3659_v59 }
 0xeba   : > { %9916 = vmatmul.mubr.msk.f32.gmra.mxu1 %vm360_vm0, %v3661_v13 }
 0xebb   : > { %9920 = vmatprep.mubr.msk.f32.mxu1 %vm896_vm1, %v3792_v29  ;;  %v3814_v29 = vpop.permute.xlu0 %3813 }
 0xebc   : > { %v3812_v13 = vpop.permute.xlu1 %3811 }
 0xebe   : > { %9921 = vmatmul.mubr.msk.f32.vlgmr.msra.gmra.mxu1 %vm896_vm1, %v3794_v38 }
 0xebf   : > { %9923 = vmatprep.mubr.msk.f32.mxu1 %vm896_vm1, %v3796_v51 }
 0xec0   : > { %v3816_v59 = vpop.permute.xlu1 %3815 }
 0xec2   : > { %9924 = vmatmul.mubr.msk.f32.gmra.mxu1 %vm896_vm1, %v3798_v20 }
 0xec3   : > { %9926 = vmatprep.mubr.msk.f32.mxu1 %vm896_vm1, %v3800_v32  ;;  %v3818_v32 = vpop.permute.xlu0 %3817 }
 0xec4   : > { %v3820_v20 = vpop.permute.xlu1 %3819 }
 0xec6   : > { %9927 = vmatmul.mubr.msk.f32.gmra.mxu1 %vm896_vm1, %v3802_v40 }
 0xec7   : > { %9929 = vmatprep.mubr.msk.f32.mxu1 %vm896_vm1, %v3804_v14  ;;  %v3822_v28 = vpop.permute.xlu0 %3821 }
 0xeca   : > { %9930 = vmatmul.mubr.msk.f32.gmra.mxu1 %vm896_vm1, %v3806_v61 }
 0xecb   : > { %9932 = vmatprep.mubr.msk.f32.mxu1 %vm896_vm1, %v3808_v21 }
 0xece   : > { %9933 = vmatmul.mubr.msk.f32.gmra.mxu1 %vm896_vm1, %v3810_v31 }
 0xecf   : > { %9935 = vmatprep.mubr.msk.f32.mxu1 %vm896_vm1, %v3812_v13 }
 0xed2   : > { %9936 = vmatmul.mubr.msk.f32.gmra.mxu1 %vm896_vm1, %v3814_v29 }
 0xed3   : > { %9938 = vmatprep.mubr.msk.f32.mxu1 %vm896_vm1, %v3816_v59 }
 0xed6   : > { %9939 = vmatmul.mubr.msk.f32.gmra.mxu1 %vm896_vm1, %v3818_v32 }
 0xed7   : > { %9941 = vmatprep.mubr.msk.f32.mxu1 %vm896_vm1, %v3820_v20 }
 0xeda   : > { %9942 = vmatmul.mubr.msk.f32.gmra.mxu1 %vm896_vm1, %v3822_v28 }
 0xf45   : > { %v12197_v26 = vpop.f32.mrf.mxu1 }
 0xf46   : > { %14262 = vst [vmem:[#allocation60_spill] sm:$0xff] %v12197_v26 }
 0xf47   : > { %v12199_v2 = vpop.f32.mrf.mxu1 }
 0xf48   : > { %14263 = vst [vmem:[#allocation61_spill] sm:$0xff] %v12199_v2 }
 0xf7a   : > { %v12201_v15 = vpop.f32.mrf.mxu1 }
 0xf7b   : > { %14264 = vst [vmem:[#allocation62_spill] sm:$0xff] %v12201_v15 }
 0xf7c   : > { %v12203_v50 = vpop.f32.mrf.mxu1 }
 0xf7d   : > { %14265 = vst [vmem:[#allocation63_spill] sm:$0xff] %v12203_v50 }
 0xf7e   : > { %v9922_v42 = vpop.f32.mrf.mxu1 }
 0xf7f   : > { %v4007_v46 = vsel %vm896_vm1, %v9922_v42, -inf }
 0xf80   : > { %4008 = vmax.xlane.f32.xlu0 %v4007_v46  ;;  %v3925_v9 = vpop.f32.mrf.mxu1 }
 0xf81   : > { %v4004_v38 = vsel %vm896_vm1, %v3925_v9, -inf }
 0xf82   : > { %4005 = vmax.xlane.f32.xlu1 %v4004_v38  ;;  %v9925_v51 = vpop.f32.mrf.mxu1 }
 0xf83   : > { %v4013_v14 = vsel %vm896_vm1, %v9925_v51, -inf }
 0xf84   : > { %v3935_v40 = vpop.f32.mrf.mxu1 }
 0xf85   : > { %v4010_v61 = vsel %vm896_vm1, %v3935_v40, -inf }
 0xf86   : > { %4014 = vmax.xlane.f32.xlu1 %v4013_v14  ;;  %4011 = vmax.xlane.f32.xlu0 %v4010_v61  ;;  %v9928_v21 = vpop.f32.mrf.mxu1 }
 0xf87   : > { %v4019_v13 = vsel %vm896_vm1, %v9928_v21, -inf }
 0xf88   : > { %v3945_v31 = vpop.f32.mrf.mxu1 }
 0xf89   : > { %v4016_v29 = vsel %vm896_vm1, %v3945_v31, -inf }
 0xf8a   : > { %4020 = vmax.xlane.f32.xlu1 %v4019_v13  ;;  %4017 = vmax.xlane.f32.xlu0 %v4016_v29  ;;  %v12211_v59 = vpop.f32.mrf.mxu1 }
 0xf8b   : > { %v4025_v20 = vsel %vm896_vm1, %v12211_v59, -inf }
 0xf8c   : > { %v12213_v32 = vpop.f32.mrf.mxu1 }
 0xf8d   : > { %v4022_v28 = vsel %vm896_vm1, %v12213_v32, -inf }
 0xf8e   : > { %4026 = vmax.xlane.f32.xlu1 %v4025_v20  ;;  %4023 = vmax.xlane.f32.xlu0 %v4022_v28  ;;  %v12219_v46 = vpop.f32.mrf.mxu1 }
 0xf8f   : > { %v4031_v14 = vsel %vm896_vm1, %v12219_v46, -inf }
 0xf90   : > { %v12221_v38 = vpop.f32.mrf.mxu1 }
 0xf91   : > { %v4028_v61 = vsel %vm896_vm1, %v12221_v38, -inf }
 0xf92   : > { %4032 = vmax.xlane.f32.xlu1 %v4031_v14  ;;  %4029 = vmax.xlane.f32.xlu0 %v4028_v61  ;;  %v12227_v13 = vpop.f32.mrf.mxu1 }
 0xf93   : > { %v4037_v20 = vsel %vm896_vm1, %v12227_v13, -inf }
 0xf94   : > { %v12229_v29 = vpop.f32.mrf.mxu1 }
 0xf95   : > { %v4034_v28 = vsel %vm896_vm1, %v12229_v29, -inf }
 0xf96   : > { %4038 = vmax.xlane.f32.xlu1 %v4037_v20  ;;  %4035 = vmax.xlane.f32.xlu0 %v4034_v28  ;;  %v12235_v15 = vpop.f32.mrf.mxu1 }
 0xf97   : > { %v4043_v14 = vsel %vm896_vm1, %v12235_v15, -inf }
 0xf98   : > { %v12237_v50 = vpop.f32.mrf.mxu1 }
 0xf99   : > { %v4040_v61 = vsel %vm896_vm1, %v12237_v50, -inf }
 0xf9a   : > { %4044 = vmax.xlane.f32.xlu1 %v4043_v14  ;;  %4041 = vmax.xlane.f32.xlu0 %v4040_v61  ;;  %v12243_v26 = vpop.f32.mrf.mxu1  ;;  %v14268_v14 = vld [vmem:[#allocation7_spill] sm:$0xff] }
 0xf9b   : > { %v4049_v20 = vsel %vm896_vm1, %v12243_v26, -inf  ;;  %v14269_v61 = vld [vmem:[#allocation3_spill] sm:$0xff] }
 0xf9c   : > { %v12245_v2 = vpop.f32.mrf.mxu1 }
 0xf9d   : > { %v4046_v28 = vsel %vm896_vm1, %v12245_v2, -inf }
 0xf9e   : > { %4050 = vmax.xlane.f32.xlu1 %v4049_v20  ;;  %4047 = vmax.xlane.f32.xlu0 %v4046_v28 }
 0xfaf   : > { %4471 = vrot.lane.b32.xlu1 %v14266_v16, %s10940_s21 }
 0xfb3   : > { %4762 = vrot.lane.b32.xlu1 %v14267_v48, %s10940_s21 }
 0xfb4   : > { %4180 = vrot.lane.b32.xlu0 %v11366_v5, %s10937_s18 }
 0xfb8   : > { %4469 = vrot.lane.b32.xlu0 %v14268_v14, %s10940_s21 }
 0xfbc   : > { %4467 = vrot.lane.b32.xlu0 %v14269_v61, %s10940_s21 }
0x1009   : > { %v4009_v45 = vpop.xlane.xlu0 %4008 }
0x100a   : > { %v4053_v24 = vsub.f32 %v9922_v42, %v4009_v45 }
0x100b   : > { %v4006_v20 = vpop.xlane.xlu1 %4005 }
0x100c   : > { %v4070_v28 = vmul.f32 1.442695, %v4053_v24  ;;  %v4052_v35 = vsub.f32 %v3925_v9, %v4006_v20 }
0x100e   : > { %10556 = vpow2.f32 %v4070_v28  ;;  %v4068_v17 = vmul.f32 1.442695, %v4052_v35 }
0x100f   : > { %v4015_v49 = vpop.xlane.xlu1 %4014  ;;  %v4012_v0 = vpop.xlane.xlu0 %4011 }
0x1010   : > { %10558 = vpow2.f32 %v4068_v17  ;;  %v4055_v37 = vsub.f32 %v9925_v51, %v4015_v49  ;;  %v4054_v22 = vsub.f32 %v3935_v40, %v4012_v0 }
0x1012   : > { %v4074_v63 = vmul.f32 1.442695, %v4055_v37  ;;  %v4072_v7 = vmul.f32 1.442695, %v4054_v22 }
0x1013   : > { %v4021_v19 = vpop.xlane.xlu1 %4020  ;;  %v4018_v6 = vpop.xlane.xlu0 %4017 }
0x1014   : > { %10560 = vpow2.f32 %v4074_v63  ;;  %v4057_v55 = vsub.f32 %v9928_v21, %v4021_v19  ;;  %v4056_v52 = vsub.f32 %v3945_v31, %v4018_v6 }
0x1015   : > { %10562 = vpow2.f32 %v4072_v7 }
0x1016   : > { %v4078_v43 = vmul.f32 1.442695, %v4057_v55  ;;  %v4076_v45 = vmul.f32 1.442695, %v4056_v52 }
0x1017   : > { %v4027_v42 = vpop.xlane.xlu1 %4026  ;;  %v4024_v24 = vpop.xlane.xlu0 %4023 }
0x1018   : > { %10564 = vpow2.f32 %v4078_v43  ;;  %v4059_v35 = vsub.f32 %v12211_v59, %v4027_v42  ;;  %v4058_v9 = vsub.f32 %v12213_v32, %v4024_v24 }
0x1019   : > { %10566 = vpow2.f32 %v4076_v45 }
0x101a   : > { %v4082_v49 = vmul.f32 1.442695, %v4059_v35  ;;  %v4080_v0 = vmul.f32 1.442695, %v4058_v9 }
0x101b   : > { %v12263_v37 = vpop.eup %10556  ;;  %v4033_v22 = vpop.xlane.xlu1 %4032 }
0x101c   : > { %v4030_v17 = vpop.xlane.xlu0 %4029  ;;  %10568 = vpow2.f32 %v4082_v49  ;;  %v4061_v63 = vsub.f32 %v12219_v46, %v4033_v22  ;;  %v4103_v52 = vsel %vm896_vm1, %v12263_v37, 0.0 }
0x101d   : > { %v4060_v6 = vsub.f32 %v12221_v38, %v4030_v17  ;;  %v12269_v7 = vpop.eup %10558  ;;  %10570 = vpow2.f32 %v4080_v0  ;;  %4104 = vadd.xlane.f32.xlu1 %v4103_v52 }
0x101e   : > { %v4086_v55 = vmul.f32 1.442695, %v4061_v63  ;;  %v4100_v19 = vsel %vm896_vm1, %v12269_v7, 0.0 }
0x101f   : > { %v4084_v43 = vmul.f32 1.442695, %v4060_v6  ;;  %v4039_v51 = vpop.xlane.xlu1 %4038  ;;  %4101 = vadd.xlane.f32.xlu0 %v4100_v19 }
0x1020   : > { %v4036_v40 = vpop.xlane.xlu0 %4035  ;;  %10572 = vpow2.f32 %v4086_v55  ;;  %v4063_v21 = vsub.f32 %v12227_v13, %v4039_v51 }
0x1021   : > { %v4062_v31 = vsub.f32 %v12229_v29, %v4036_v40  ;;  %v12275_v59 = vpop.eup %10560  ;;  %10574 = vpow2.f32 %v4084_v43 }
0x1022   : > { %v12277_v32 = vpop.eup %10562  ;;  %v4090_v46 = vmul.f32 1.442695, %v4063_v21  ;;  %v4109_v20 = vsel %vm896_vm1, %v12275_v59, 0.0 }
0x1023   : > { %v4088_v38 = vmul.f32 1.442695, %v4062_v31  ;;  %v4045_v28 = vpop.xlane.xlu1 %4044  ;;  %4110 = vadd.xlane.f32.xlu1 %v4109_v20  ;;  %v4106_v45 = vsel %vm896_vm1, %v12277_v32, 0.0 }
0x1024   : > { %v4042_v42 = vpop.xlane.xlu0 %4041  ;;  %10576 = vpow2.f32 %v4090_v46  ;;  %v4065_v13 = vsub.f32 %v12235_v15, %v4045_v28  ;;  %4107 = vadd.xlane.f32.xlu0 %v4106_v45 }
0x1025   : > { %v4064_v29 = vsub.f32 %v12237_v50, %v4042_v42  ;;  %v12285_v24 = vpop.eup %10564  ;;  %10578 = vpow2.f32 %v4088_v38 }
0x1026   : > { %v12287_v35 = vpop.eup %10566  ;;  %v4094_v9 = vmul.f32 1.442695, %v4065_v13  ;;  %v4115_v0 = vsel %vm896_vm1, %v12285_v24, 0.0 }
0x1027   : > { %v4092_v49 = vmul.f32 1.442695, %v4064_v29  ;;  %v4051_v22 = vpop.xlane.xlu1 %4050  ;;  %4116 = vadd.xlane.f32.xlu1 %v4115_v0  ;;  %v4112_v17 = vsel %vm896_vm1, %v12287_v35, 0.0  ;;  %v14272_v0 = vld [vmem:[#allocation4_spill] sm:$0xff] }
0x1028   : > { %v4048_v63 = vpop.xlane.xlu0 %4047  ;;  %10580 = vpow2.f32 %v4094_v9  ;;  %4113 = vadd.xlane.f32.xlu0 %v4112_v17  ;;  %v14270_v9 = vld [vmem:[#allocation10_spill] sm:$0xff] }
0x1029   : > { %v12293_v15 = vpop.eup %10568  ;;  %10582 = vpow2.f32 %v4092_v49  ;;  %v14271_v49 = vld [vmem:[#allocation12_spill] sm:$0xff]  ;;  %v14273_v17 = vld [vmem:[#allocation6_spill] sm:$0xff] }
0x102a   : > { %v12295_v50 = vpop.eup %10570  ;;  %v4121_v6 = vsel %vm896_vm1, %v12293_v15, 0.0 }
0x102b   : > { %v12299_v52 = vpop.permute.xlu1 %4471  ;;  %4122 = vadd.xlane.f32.xlu1 %v4121_v6  ;;  %v4118_v55 = vsel %vm896_vm1, %v12295_v50, 0.0  ;;  %v14274_v6 = vld [vmem:[#allocation9_spill] sm:$0xff] }
0x102c   : > { %v4181_v43 = vpop.permute.xlu0 %4180  ;;  %4119 = vadd.xlane.f32.xlu0 %v4118_v55  ;;  %v4067_v55 = vsub.f32 %v12243_v26, %v4051_v22 }
0x102d   : > { %9944 = vmatprep.subr.mxu0 %v4181_v43  ;;  %v12303_v19 = vpop.eup %10572 }
0x102e   : > { %9945 = vmatpush3.msra.mxu0 %v4181_v43  ;;  %v12305_v51 = vpop.eup %10574  ;;  %v4127_v40 = vsel %vm896_vm1, %v12303_v19, 0.0  ;;  %v14275_v43 = vld [vmem:[#allocation14_spill] sm:$0xff] }
0x102f   : > { %9970 = vmatprep.subr.msk.mxu0 %vm896_vm1, %v12299_v52  ;;  %v4763_v21 = vpop.permute.xlu1 %4762  ;;  %4128 = vadd.xlane.f32.xlu1 %v4127_v40  ;;  %v4124_v31 = vsel %vm896_vm1, %v12305_v51, 0.0  ;;  %v4098_v40 = vmul.f32 1.442695, %v4067_v55  ;;  %v14280_v55 = vld [vmem:[#allocation16_spill] sm:$0xff] }
0x1030   : > { %4125 = vadd.xlane.f32.xlu0 %v4124_v31  ;;  %9998 = vmatprep.subr.msk.mxu1 %vm896_vm1, %v4763_v21  ;;  %v14276_v31 = vld [vmem:[#allocation15_spill] sm:$0xff] }
0x1031   : > { %v12314_v46 = vpop.eup %10576  ;;  %9999 = vmatpush3.xpose.msk.msra.mxu1 %vm896_vm1, %v4763_v21  ;;  %v4066_v21 = vsub.f32 %v12245_v2, %v4048_v63  ;;  %10584 = vpow2.f32 %v4098_v40  ;;  %v14278_v63 = vld [vmem:[#allocation13_spill] sm:$0xff]  ;;  %v14281_v40 = vld [vmem:[#allocation18_spill] sm:$0xff] }
0x1032   : > { %v12317_v38 = vpop.eup %10578  ;;  %v4133_v20 = vsel %vm896_vm1, %v12314_v46, 0.0 }
0x1033   : > { %4134 = vadd.xlane.f32.xlu1 %v4133_v20  ;;  %v4130_v28 = vsel %vm896_vm1, %v12317_v38, 0.0  ;;  %v4096_v20 = vmul.f32 1.442695, %v4066_v21  ;;  %v4470_v21 = vpop.permute.xlu0 %4469 }
0x1034   : > { %4131 = vadd.xlane.f32.xlu0 %v4130_v28  ;;  %v14277_v28 = vld [vmem:[#allocation17_spill] sm:$0xff] }
0x1035   : > { %v12323_v45 = vpop.eup %10580  ;;  %10586 = vpow2.f32 %v4096_v20 }
0x1036   : > { %v12325_v42 = vpop.eup %10582  ;;  %v4139_v13 = vsel %vm896_vm1, %v12323_v45, 0.0 }
0x1037   : > { %4140 = vadd.xlane.f32.xlu1 %v4139_v13  ;;  %v4136_v29 = vsel %vm896_vm1, %v12325_v42, 0.0  ;;  %v4468_v20 = vpop.permute.xlu0 %4467 }
0x1038   : > { %4137 = vadd.xlane.f32.xlu0 %v4136_v29  ;;  %v14279_v29 = vld [vmem:[#allocation11_spill] sm:$0xff] }
0x103e   : > { %v12349_v13 = vpop.eup %10584 }
0x103f   : > { %v4145_v26 = vsel %vm896_vm1, %v12349_v13, 0.0 }
0x1042   : > { %v12353_v22 = vpop.eup %10586 }
0x1043   : > { %v4142_v2 = vsel %vm896_vm1, %v12353_v22, 0.0 }
0x1048   : > { %4760 = vrot.lane.b32.xlu1 %v14270_v9, %s10940_s21 }
0x104c   : > { %4459 = vrot.lane.b32.xlu1 %v14271_v49, %s10941_s22 }
0x104e   : > { %4465 = vrot.lane.b32.xlu0 %v14272_v0, %s10940_s21 }
0x1052   : > { %4457 = vrot.lane.b32.xlu0 %v14273_v17, %s10941_s22 }
0x1056   : > { %4758 = vrot.lane.b32.xlu0 %v14274_v6, %s10940_s21 }
0x105a   : > { %4463 = vrot.lane.b32.xlu0 %v14275_v43, %s10941_s22 }
0x105e   : > { %4748 = vrot.lane.b32.xlu0 %v14276_v31, %s10941_s22 }
0x1062   : > { %4752 = vrot.lane.b32.xlu0 %v14277_v28, %s10941_s22 }
0x1070   : > { %4146 = vadd.xlane.f32.xlu1 %v4145_v26 }
0x1074   : > { %4143 = vadd.xlane.f32.xlu1 %v4142_v2 }
0x1085   : > { %4461 = vrot.lane.b32.xlu1 %v14278_v63, %s10941_s22 }
0x1089   : > { %4756 = vrot.lane.b32.xlu1 %v14279_v29, %s10940_s21 }
0x108d   : > { %4750 = vrot.lane.b32.xlu1 %v14280_v55, %s10941_s22 }
0x1091   : > { %4754 = vrot.lane.b32.xlu1 %v14281_v40, %s10941_s22 }
0x10a6   : > { %v4105_v28 = vpop.xlane.xlu1 %4104 }
0x10a7   : > { %10588 = vrcp.f32 %v4105_v28 }
0x10a8   : > { %v4102_v26 = vpop.xlane.xlu0 %4101 }
0x10a9   : > { %10590 = vrcp.f32 %v4102_v26 }
0x10ac   : > { %v4111_v31 = vpop.xlane.xlu1 %4110 }
0x10ad   : > { %10592 = vrcp.f32 %v4111_v31  ;;  %v4108_v2 = vpop.xlane.xlu0 %4107 }
0x10ae   : > { %10594 = vrcp.f32 %v4108_v2 }
0x10b0   : > { %v4117_v63 = vpop.xlane.xlu1 %4116 }
0x10b1   : > { %10596 = vrcp.f32 %v4117_v63  ;;  %v4114_v43 = vpop.xlane.xlu0 %4113 }
0x10b2   : > { %10598 = vrcp.f32 %v4114_v43 }
0x10b4   : > { %v4123_v49 = vpop.xlane.xlu1 %4122  ;;  %v10589_v17 = vpop.eup %10588 }
0x10b5   : > { %10600 = vrcp.f32 %v4123_v49  ;;  %v4120_v55 = vpop.xlane.xlu0 %4119  ;;  %v4151_v28 = vmul.f32 %v10589_v17, %v12263_v37 }
0x10b6   : > { %v10591_v11 = vpop.eup %10590  ;;  %10602 = vrcp.f32 %v4120_v55 }
0x10b7   : > { %v4149_v40 = vmul.f32 %v10591_v11, %v12269_v7 }
0x10b8   : > { %v4129_v54 = vpop.xlane.xlu1 %4128 }
0x10b9   : > { %10604 = vrcp.f32 %v4129_v54  ;;  %v4126_v26 = vpop.xlane.xlu0 %4125  ;;  %9946 = vmatprep.mubr.msk.f32.mxu0 %vm896_vm1, %v4149_v40 }
0x10ba   : > { %v10593_v31 = vpop.eup %10592  ;;  %10606 = vrcp.f32 %v4126_v26  ;;  %9947 = vmatmul.mubr.msk.f32.vlgmr.msra.gmra.mxu0 %vm896_vm1, %v4151_v28 }
0x10bb   : > { %v10595_v43 = vpop.eup %10594  ;;  %9971 = vmatpush3.xpose.msk.msra.mxu0 %vm896_vm1, %v12299_v52  ;;  %v4155_v49 = vmul.f32 %v10593_v31, %v12275_v59 }
0x10bc   : > { %9972 = vmatprep.subr.msk.mxu0 %vm896_vm1, %v4470_v21  ;;  %v4135_v11 = vpop.xlane.xlu1 %4134  ;;  %v4153_v37 = vmul.f32 %v10595_v43, %v12277_v32 }
0x10bd   : > { %10608 = vrcp.f32 %v4135_v11  ;;  %v4132_v54 = vpop.xlane.xlu0 %4131 }
0x10be   : > { %v10597_v7 = vpop.eup %10596  ;;  %10610 = vrcp.f32 %v4132_v54  ;;  %9949 = vmatprep.mubr.msk.f32.mxu0 %vm896_vm1, %v4153_v37 }
0x10bf   : > { %v10599_v17 = vpop.eup %10598  ;;  %9950 = vmatmul.mubr.msk.f32.gmra.mxu0 %vm896_vm1, %v4155_v49  ;;  %v4159_v63 = vmul.f32 %v10597_v7, %v12285_v24 }
0x10c0   : > { %9973 = vmatpush3.xpose.msk.msra.mxu0 %vm896_vm1, %v4470_v21  ;;  %v4141_v52 = vpop.xlane.xlu1 %4140  ;;  %v4157_v59 = vmul.f32 %v10599_v17, %v12287_v35 }
0x10c1   : > { %9974 = vmatprep.subr.msk.mxu0 %vm896_vm1, %v4468_v20  ;;  %10612 = vrcp.f32 %v4141_v52  ;;  %v4138_v32 = vpop.xlane.xlu0 %4137 }
0x10c2   : > { %v10601_v55 = vpop.eup %10600  ;;  %10614 = vrcp.f32 %v4138_v32  ;;  %9952 = vmatprep.mubr.msk.f32.mxu0 %vm896_vm1, %v4157_v59 }
0x10c3   : > { %v10603_v40 = vpop.eup %10602  ;;  %9953 = vmatmul.mubr.msk.f32.gmra.mxu0 %vm896_vm1, %v4159_v63  ;;  %v4163_v2 = vmul.f32 %v10601_v55, %v12293_v15 }
0x10c4   : > { %9975 = vmatpush3.xpose.msk.msra.mxu0 %vm896_vm1, %v4468_v20  ;;  %v4761_v24 = vpop.permute.xlu1 %4760  ;;  %v4161_v21 = vmul.f32 %v10603_v40, %v12295_v50 }
0x10c5   : > { %v4466_v28 = vpop.permute.xlu0 %4465  ;;  %10000 = vmatprep.subr.msk.mxu1 %vm896_vm1, %v4761_v24 }
0x10c6   : > { %v10605_v35 = vpop.eup %10604  ;;  %9955 = vmatprep.mubr.msk.f32.mxu0 %vm896_vm1, %v4161_v21  ;;  %9976 = vmatprep.subr.msk.mxu0 %vm896_vm1, %v4466_v28 }
0x10c7   : > { %v10607_v26 = vpop.eup %10606  ;;  %9956 = vmatmul.mubr.msk.f32.gmra.mxu0 %vm896_vm1, %v4163_v2  ;;  %10001 = vmatpush3.xpose.msk.msra.mxu1 %vm896_vm1, %v4761_v24  ;;  %v4167_v15 = vmul.f32 %v10605_v35, %v12303_v19 }
0x10c8   : > { %9977 = vmatpush3.xpose.msk.msra.mxu0 %vm896_vm1, %v4466_v28  ;;  %v4165_v20 = vmul.f32 %v10607_v26, %v12305_v51 }
0x10c9   : > { %v4458_v50 = vpop.permute.xlu0 %4457 }
0x10ca   : > { %v10609_v31 = vpop.eup %10608  ;;  %9958 = vmatprep.mubr.msk.f32.mxu0 %vm896_vm1, %v4165_v20 }
0x10cb   : > { %v10611_v43 = vpop.eup %10610  ;;  %9959 = vmatmul.mubr.msk.f32.gmra.mxu0 %vm896_vm1, %v4167_v15  ;;  %v4171_v49 = vmul.f32 %v10609_v31, %v12314_v46 }
0x10cc   : > { %v4169_v11 = vmul.f32 %v10611_v43, %v12317_v38  ;;  %v4460_v38 = vpop.permute.xlu1 %4459 }
0x10cd   : > { %v4759_v37 = vpop.permute.xlu0 %4758 }
0x10ce   : > { %v10613_v54 = vpop.eup %10612  ;;  %9961 = vmatprep.mubr.msk.f32.mxu0 %vm896_vm1, %v4169_v11  ;;  %10002 = vmatprep.subr.msk.mxu1 %vm896_vm1, %v4759_v37 }
0x10cf   : > { %v10615_v19 = vpop.eup %10614  ;;  %9962 = vmatmul.mubr.msk.f32.gmra.mxu0 %vm896_vm1, %v4171_v49  ;;  %10003 = vmatpush3.xpose.msk.msra.mxu1 %vm896_vm1, %v4759_v37  ;;  %v4175_v51 = vmul.f32 %v10613_v54, %v12323_v45 }
0x10d0   : > { %v4173_v7 = vmul.f32 %v10615_v19, %v12325_v42 }
0x10d1   : > { %v4464_v17 = vpop.permute.xlu0 %4463 }
0x10d2   : > { %9964 = vmatprep.mubr.msk.f32.mxu0 %vm896_vm1, %v4173_v7 }
0x10d3   : > { %9965 = vmatmul.mubr.msk.f32.gmra.mxu0 %vm896_vm1, %v4175_v51 }
0x10d5   : > { %v4749_v46 = vpop.permute.xlu0 %4748 }
0x10d6   : > { %10006 = vmatprep.mubr.msk.f32.mxu1 %vm896_vm1, %v4749_v46 }
0x10d9   : > { %v4753_v55 = vpop.permute.xlu0 %4752 }
0x10f9   : > { %v4147_v63 = vpop.xlane.xlu1 %4146 }
0x10fa   : > { %10616 = vrcp.f32 %v4147_v63 }
0x10fd   : > { %v4144_v52 = vpop.xlane.xlu1 %4143 }
0x10fe   : > { %10618 = vrcp.f32 %v4144_v52 }
0x1101   : > { %v4462_v59 = vpop.permute.xlu1 %4461 }
0x1105   : > { %v4757_v32 = vpop.permute.xlu1 %4756 }
0x1106   : > { %10004 = vmatprep.subr.msk.mxu1 %vm896_vm1, %v4757_v32 }
0x1107   : > { %10005 = vmatpush3.xpose.msk.msra.mxu1 %vm896_vm1, %v4757_v32  ;;  %v10617_v42 = vpop.eup %10616 }
0x1108   : > { %v4179_v21 = vmul.f32 %v10617_v42, %v12349_v13 }
0x1109   : > { %v4751_v45 = vpop.permute.xlu1 %4750 }
0x110a   : > { %10007 = vmatmul.mubr.msk.f32.vlgmr.msra.gmra.mxu1 %vm896_vm1, %v4751_v45 }
0x110b   : > { %v10619_v40 = vpop.eup %10618  ;;  %10009 = vmatprep.mubr.msk.f32.mxu1 %vm896_vm1, %v4753_v55 }
0x110c   : > { %v4177_v2 = vmul.f32 %v10619_v40, %v12353_v22 }
0x110d   : > { %v4755_v24 = vpop.permute.xlu1 %4754 }
0x110e   : > { %9967 = vmatprep.mubr.msk.f32.mxu0 %vm896_vm1, %v4177_v2  ;;  %10010 = vmatmul.mubr.msk.f32.gmra.mxu1 %vm896_vm1, %v4755_v24 }
0x110f   : > { %9968 = vmatmul.mubr.msk.f32.gmra.mxu0 %vm896_vm1, %v4179_v21 }
0x1110   : > { %9978 = vmatprep.mubr.msk.f32.mxu0 %vm896_vm1, %v4458_v50 }
0x1113   : > { %9979 = vmatmul.mubr.msk.f32.vlgmr.msra.gmra.mxu0 %vm896_vm1, %v4460_v38 }
0x1114   : > { %9981 = vmatprep.mubr.msk.f32.mxu0 %vm896_vm1, %v4462_v59 }
0x1117   : > { %9982 = vmatmul.mubr.msk.f32.gmra.mxu0 %vm896_vm1, %v4464_v17 }
0x117a   : > { %v12419_v28 = vpop.f32.mrf.mxu0 }
0x117b   : > { %14282 = vst [vmem:[#allocation5_spill] sm:$0xff] %v12419_v28 }
0x117c   : > { %v12421_v22 = vpop.f32.mrf.mxu0 }
0x117d   : > { %14283 = vst [vmem:[#allocation8_spill] sm:$0xff] %v12421_v22 }
0x117f   : > { %v12423_v35 = vpop.f32.mrf.mxu0 }
0x1180   : > { %14284 = vst [vmem:[#allocation7_spill] sm:$0xff] %v12423_v35 }
0x1181   : > { %v12425_v13 = vpop.f32.mrf.mxu0 }
0x1182   : > { %14285 = vst [vmem:[#allocation3_spill] sm:$0xff] %v12425_v13 }
0x1183   : > { %v12427_v26 = vpop.f32.mrf.mxu0 }
0x1184   : > { %14286 = vst [vmem:[#allocation10_spill] sm:$0xff] %v12427_v26 }
0x1185   : > { %v12429_v15 = vpop.f32.mrf.mxu0 }
0x1186   : > { %14287 = vst [vmem:[#allocation4_spill] sm:$0xff] %v12429_v15 }
0x1187   : > { %v12431_v20 = vpop.f32.mrf.mxu0 }
0x1188   : > { %14288 = vst [vmem:[#allocation9_spill] sm:$0xff] %v12431_v20 }
0x1189   : > { %v12433_v50 = vpop.f32.mrf.mxu0 }
0x118a   : > { %14289 = vst [vmem:[#allocation11_spill] sm:$0xff] %v12433_v50 }
0x118b   : > { %v12435_v31 = vpop.f32.mrf.mxu0 }
0x118c   : > { %14290 = vst [vmem:[#allocation64_spill] sm:$0xff] %v12435_v31 }
0x118d   : > { %v12437_v43 = vpop.f32.mrf.mxu0 }
0x118e   : > { %14291 = vst [vmem:[#allocation65_spill] sm:$0xff] %v12437_v43 }
0x118f   : > { %v12439_v49 = vpop.f32.mrf.mxu0 }
0x1190   : > { %14292 = vst [vmem:[#allocation66_spill] sm:$0xff] %v12439_v49 }
0x1191   : > { %v12441_v11 = vpop.f32.mrf.mxu0 }
0x1192   : > { %14293 = vst [vmem:[#allocation67_spill] sm:$0xff] %v12441_v11 }
0x1193   : > { %v12443_v37 = vpop.f32.mrf.mxu0 }
0x1194   : > { %14294 = vst [vmem:[#allocation68_spill] sm:$0xff] %v12443_v37 }
0x1195   : > { %v12445_v54 = vpop.f32.mrf.mxu0 }
0x1196   : > { %14295 = vst [vmem:[#allocation69_spill] sm:$0xff] %v12445_v54 }
0x11ca   : > { %v10008_v19 = vpop.f32.mrf.mxu1 }
0x11cb   : > { %v4868_v21 = vsel %vm360_vm0, %v10008_v19, -inf }
0x11cc   : > { %v4846_v7 = vpop.f32.mrf.mxu1 }
0x11cd   : > { %v4865_v45 = vsel %vm360_vm0, %v4846_v7, -inf }
0x11ce   : > { %v10011_v63 = vpop.f32.mrf.mxu1 }
0x11cf   : > { %v12447_v51 = vpop.f32.mrf.mxu0 }
0x11d0   : > { %14296 = vst [vmem:[#allocation70_spill] sm:$0xff] %v12447_v51  ;;  %v4856_v42 = vpop.f32.mrf.mxu1 }
0x11d1   : > { %v12449_v17 = vpop.f32.mrf.mxu0  ;;  %v4871_v2 = vsel %vm360_vm0, %v4856_v42, -inf }
0x11d2   : > { %14297 = vst [vmem:[#allocation71_spill] sm:$0xff] %v12449_v17 }
0x11d3   : > { %v12451_v46 = vpop.f32.mrf.mxu0 }
0x11d4   : > { %v4577_v38 = vsel %vm360_vm0, %v12451_v46, -inf }
0x11d5   : > { %4578 = vmax.xlane.f32.xlu1 %v4577_v38  ;;  %v12455_v52 = vpop.f32.mrf.mxu0  ;;  %v4874_v38 = vsel %vm360_vm0, %v10011_v63, -inf }
0x11d6   : > { %v4574_v59 = vsel %vm360_vm0, %v12455_v52, -inf }
0x11d7   : > { %4575 = vmax.xlane.f32.xlu0 %v4574_v59  ;;  %v12459_v32 = vpop.f32.mrf.mxu0 }
0x11d8   : > { %v4583_v24 = vsel %vm360_vm0, %v12459_v32, -inf }
0x11d9   : > { %v4565_v55 = vpop.f32.mrf.mxu0  ;;  %4866 = vmax.xlane.f32.xlu1 %v4865_v45 }
0x11da   : > { %v4580_v40 = vsel %vm360_vm0, %v4565_v55, -inf }
0x11db   : > { %4581 = vmax.xlane.f32.xlu0 %v4580_v40 }
0x11dd   : > { %4872 = vmax.xlane.f32.xlu1 %v4871_v2 }
0x11df   : > { %4584 = vmax.xlane.f32.xlu0 %v4583_v24 }
0x11e3   : > { %4869 = vmax.xlane.f32.xlu0 %v4868_v21 }
0x11e7   : > { %4875 = vmax.xlane.f32.xlu0 %v4874_v38 }
0x125e   : > { %v4579_v59 = vpop.xlane.xlu1 %4578 }
0x1260   : > { %v4576_v51 = vpop.xlane.xlu0 %4575 }
0x1262   : > { %v4867_v17 = vpop.xlane.xlu1 %4866 }
0x1263   : > { %v4877_v45 = vsub.f32 %v4846_v7, %v4867_v17 }
0x1264   : > { %v4582_v37 = vpop.xlane.xlu0 %4581 }
0x1265   : > { %v4881_v54 = vmul.f32 1.442695, %v4877_v45  ;;  %v4588_v45 = vsub.f32 %v4565_v55, %v4582_v37 }
0x1266   : > { %v4873_v40 = vpop.xlane.xlu1 %4872 }
0x1267   : > { %10620 = vpow2.f32 %v4881_v54  ;;  %v4879_v49 = vsub.f32 %v4856_v42, %v4873_v40  ;;  %v4586_v54 = vsub.f32 %v12455_v52, %v4576_v51 }
0x1268   : > { %v4585_v2 = vpop.xlane.xlu0 %4584 }
0x1269   : > { %v4885_v11 = vmul.f32 1.442695, %v4879_v49  ;;  %v4590_v42 = vmul.f32 1.442695, %v4586_v54 }
0x126b   : > { %10622 = vpow2.f32 %v4885_v11 }
0x126c   : > { %v4870_v31 = vpop.xlane.xlu0 %4869 }
0x126d   : > { %v4878_v24 = vsub.f32 %v10008_v19, %v4870_v31 }
0x126f   : > { %v4883_v43 = vmul.f32 1.442695, %v4878_v24  ;;  %v4594_v24 = vmul.f32 1.442695, %v4588_v45 }
0x1270   : > { %v4876_v20 = vpop.xlane.xlu0 %4875 }
0x1271   : > { %10624 = vpow2.f32 %v4883_v43  ;;  %v4880_v21 = vsub.f32 %v10011_v63, %v4876_v20  ;;  %v4587_v43 = vsub.f32 %v12451_v46, %v4579_v59  ;;  %v4589_v63 = vsub.f32 %v12459_v32, %v4585_v2 }
0x1273   : > { %v4887_v50 = vmul.f32 1.442695, %v4880_v21  ;;  %v4592_v19 = vmul.f32 1.442695, %v4587_v43  ;;  %v4596_v40 = vmul.f32 1.442695, %v4589_v63 }
0x1274   : > { %v12468_v38 = vpop.eup %10620 }
0x1275   : > { %10626 = vpow2.f32 %v4887_v50  ;;  %v4889_v7 = vsel %vm360_vm0, %v12468_v38, 0.0 }
0x1276   : > { %4890 = vadd.xlane.f32.xlu1 %v4889_v7  ;;  %10628 = vpow2.f32 %v4592_v19 }
0x1277   : > { %10630 = vpow2.f32 %v4590_v42 }
0x1278   : > { %v12472_v17 = vpop.eup %10622  ;;  %10632 = vpow2.f32 %v4596_v40 }
0x1279   : > { %v4895_v49 = vsel %vm360_vm0, %v12472_v17, 0.0  ;;  %10634 = vpow2.f32 %v4594_v24 }
0x127a   : > { %4896 = vadd.xlane.f32.xlu1 %v4895_v49 }
0x127e   : > { %v12476_v11 = vpop.eup %10624 }
0x127f   : > { %v4892_v31 = vsel %vm360_vm0, %v12476_v11, 0.0 }
0x1280   : > { %4893 = vadd.xlane.f32.xlu0 %v4892_v31 }
0x1282   : > { %v12480_v20 = vpop.eup %10626 }
0x1283   : > { %v4898_v50 = vsel %vm360_vm0, %v12480_v20, 0.0  ;;  %v12503_v21 = vpop.eup %10628 }
0x1284   : > { %4899 = vadd.xlane.f32.xlu1 %v4898_v50  ;;  %v10631_v7 = vpop.eup %10630  ;;  %v4601_v49 = vsel %vm360_vm0, %v12503_v21, 0.0 }
0x1285   : > { %v12507_v46 = vpop.eup %10632  ;;  %v4598_v52 = vsel %vm360_vm0, %v10631_v7, 0.0 }
0x1286   : > { %v4607_v51 = vsel %vm360_vm0, %v12507_v46, 0.0  ;;  %v12512_v37 = vpop.eup %10634 }
0x1287   : > { %v4604_v32 = vsel %vm360_vm0, %v12512_v37, 0.0 }
0x1295   : > { %4622 = vrot.lane.b32.xlu1 %v14268_v14, %s10942_s23 }
0x1296   : > { %4624 = vrot.lane.b32.xlu0 %v14266_v16, %s10942_s23 }
0x1299   : > { %4618 = vrot.lane.b32.xlu1 %v14272_v0, %s10942_s23 }
0x129a   : > { %4620 = vrot.lane.b32.xlu0 %v14269_v61, %s10942_s23 }
0x129d   : > { %4913 = vrot.lane.b32.xlu1 %v14270_v9, %s10942_s23 }
0x129e   : > { %4915 = vrot.lane.b32.xlu0 %v14267_v48, %s10942_s23 }
0x12a1   : > { %4909 = vrot.lane.b32.xlu1 %v14279_v29, %s10942_s23 }
0x12a2   : > { %4911 = vrot.lane.b32.xlu0 %v14274_v6, %s10942_s23 }
0x12c1   : > { %4602 = vadd.xlane.f32.xlu0 %v4601_v49 }
0x12c5   : > { %4608 = vadd.xlane.f32.xlu0 %v4607_v51  ;;  %4599 = vadd.xlane.f32.xlu1 %v4598_v52 }
0x12c9   : > { %4605 = vadd.xlane.f32.xlu1 %v4604_v32 }
0x12da   : > { %5050 = vrot.lane.b32.xlu1 %v11325_v30, %s10940_s21 }
0x12db   : > { %5052 = vrot.lane.b32.xlu0 %v11330_v41, %s10940_s21 }
0x12de   : > { %5046 = vrot.lane.b32.xlu1 %v11352_v60, %s10940_s21 }
0x12df   : > { %5048 = vrot.lane.b32.xlu0 %v11349_v56, %s10940_s21 }
0x12e2   : > { %5040 = vrot.lane.b32.xlu1 %v11399_v44, %s10941_s22 }
0x12e3   : > { %5038 = vrot.lane.b32.xlu0 %v11388_v27, %s10941_s22 }
0x12e6   : > { %5044 = vrot.lane.b32.xlu1 %v11409_v34, %s10941_s22 }
0x12e7   : > { %5042 = vrot.lane.b32.xlu0 %v14220_v53, %s10941_s22 }
0x12ea   : > { %5205 = vrot.lane.b32.xlu1 %v11330_v41, %s10942_s23 }
0x12eb   : > { %5203 = vrot.lane.b32.xlu0 %v11325_v30, %s10942_s23 }
0x12ee   : > { %5201 = vrot.lane.b32.xlu1 %v11349_v56, %s10942_s23 }
0x12f2   : > { %5199 = vrot.lane.b32.xlu1 %v11352_v60, %s10942_s23 }
0x12ff   : > { %v4891_v55 = vpop.xlane.xlu1 %4890 }
0x1303   : > { %v4897_v59 = vpop.xlane.xlu1 %4896 }
0x1309   : > { %v4894_v2 = vpop.xlane.xlu0 %4893 }
0x130d   : > { %v4900_v31 = vpop.xlane.xlu1 %4899  ;;  %v4625_v50 = vpop.permute.xlu0 %4624 }
0x130e   : > { %9984 = vmatprep.subr.mxu0 %v4625_v50 }
0x130f   : > { %9985 = vmatpush3.msra.mxu0 %v4625_v50 }
0x1311   : > { %v4623_v43 = vpop.permute.xlu1 %4622  ;;  %v4621_v54 = vpop.permute.xlu0 %4620 }
0x1312   : > { %9986 = vmatprep.subr.mxu0 %v4623_v43 }
0x1313   : > { %9987 = vmatpush3.msra.mxu0 %v4623_v43 }
0x1314   : > { %9988 = vmatprep.subr.mxu0 %v4621_v54 }
0x1315   : > { %v4619_v19 = vpop.permute.xlu1 %4618  ;;  %9989 = vmatpush3.msra.mxu0 %v4621_v54  ;;  %v4916_v63 = vpop.permute.xlu0 %4915 }
0x1316   : > { %9990 = vmatprep.subr.mxu0 %v4619_v19 }
0x1317   : > { %9991 = vmatpush3.msra.mxu0 %v4619_v19 }
0x1318   : > { %10012 = vmatprep.subr.mxu0 %v4916_v63 }
0x1319   : > { %v4914_v42 = vpop.permute.xlu1 %4913  ;;  %v4912_v45 = vpop.permute.xlu0 %4911 }
0x131d   : > { %v4910_v40 = vpop.permute.xlu1 %4909 }
0x134a   : > { %v4603_v24 = vpop.xlane.xlu0 %4602 }
0x134b   : > { %10636 = vrcp.f32 %v4603_v24 }
0x134e   : > { %v4600_v49 = vpop.xlane.xlu1 %4599  ;;  %v4609_v51 = vpop.xlane.xlu0 %4608 }
0x134f   : > { %10638 = vrcp.f32 %v4600_v49 }
0x1350   : > { %10640 = vrcp.f32 %v4891_v55 }
0x1351   : > { %10642 = vrcp.f32 %v4609_v51 }
0x1352   : > { %v4606_v52 = vpop.xlane.xlu1 %4605  ;;  %v5053_v32 = vpop.permute.xlu0 %5052 }
0x1353   : > { %10644 = vrcp.f32 %v4606_v52 }
0x1354   : > { %10646 = vrcp.f32 %v4894_v2 }
0x1355   : > { %10648 = vrcp.f32 %v4897_v59 }
0x1356   : > { %v5051_v50 = vpop.permute.xlu1 %5050  ;;  %v5049_v43 = vpop.permute.xlu0 %5048  ;;  %10650 = vrcp.f32 %v4900_v31 }
0x1358   : > { %v10637_v19 = vpop.eup %10636 }
0x1359   : > { %v4613_v24 = vmul.f32 %v10637_v19, %v12503_v21 }
0x135a   : > { %v5047_v54 = vpop.permute.xlu1 %5046  ;;  %v5039_v13 = vpop.permute.xlu0 %5038 }
0x135c   : > { %v10639_v26 = vpop.eup %10638 }
0x135d   : > { %v4611_v15 = vmul.f32 %v10639_v26, %v10631_v7  ;;  %v10641_v35 = vpop.eup %10640 }
0x135e   : > { %v5041_v22 = vpop.permute.xlu1 %5040  ;;  %v10643_v49 = vpop.eup %10642  ;;  %v4902_v26 = vmul.f32 %v10641_v35, %v12468_v38 }
0x135f   : > { %9992 = vmatprep.mubr.msk.f32.mxu0 %vm360_vm0, %v4611_v15  ;;  %v4617_v31 = vmul.f32 %v10643_v49, %v12507_v46  ;;  %v5043_v21 = vpop.permute.xlu0 %5042 }
0x1360   : > { %v10645_v55 = vpop.eup %10644  ;;  %9993 = vmatmul.mubr.msk.f32.vlgmr.msra.gmra.mxu0 %vm360_vm0, %v4613_v24 }
0x1361   : > { %10013 = vmatpush3.msra.mxu0 %v4916_v63  ;;  %v4615_v59 = vmul.f32 %v10645_v55, %v12512_v37  ;;  %v10647_v51 = vpop.eup %10646 }
0x1362   : > { %10014 = vmatprep.subr.mxu0 %v4914_v42  ;;  %v5045_v2 = vpop.permute.xlu1 %5044  ;;  %v10649_v15 = vpop.eup %10648  ;;  %v4904_v7 = vmul.f32 %v10647_v51, %v12476_v11 }
0x1363   : > { %10015 = vmatpush3.msra.mxu0 %v4914_v42  ;;  %9995 = vmatprep.mubr.msk.f32.mxu0 %vm360_vm0, %v4615_v59  ;;  %v10651_v63 = vpop.eup %10650  ;;  %v4906_v35 = vmul.f32 %v10649_v15, %v12472_v17  ;;  %v5204_v38 = vpop.permute.xlu0 %5203 }
0x1364   : > { %10016 = vmatprep.subr.mxu0 %v4912_v45  ;;  %9996 = vmatmul.mubr.msk.f32.gmra.mxu0 %vm360_vm0, %v4617_v31  ;;  %v4908_v46 = vmul.f32 %v10651_v63, %v12480_v20 }
0x1365   : > { %10017 = vmatpush3.msra.mxu0 %v4912_v45  ;;  %10020 = vmatprep.mubr.msk.f32.mxu0 %vm360_vm0, %v4902_v26 }
0x1366   : > { %10018 = vmatprep.subr.mxu0 %v4910_v40  ;;  %v5206_v37 = vpop.permute.xlu1 %5205 }
0x1367   : > { %10019 = vmatpush3.msra.mxu0 %v4910_v40  ;;  %10040 = vmatprep.subr.mxu1 %v5206_v37 }
0x1368   : > { %10026 = vmatprep.subr.msk.mxu0 %vm896_vm1, %v5053_v32  ;;  %10021 = vmatmul.mubr.msk.f32.vlgmr.msra.gmra.mxu0 %vm360_vm0, %v4904_v7 }
0x1369   : > { %10027 = vmatpush3.xpose.msk.msra.mxu0 %vm896_vm1, %v5053_v32  ;;  %10041 = vmatpush3.msra.mxu1 %v5206_v37 }
0x136a   : > { %10023 = vmatprep.mubr.msk.f32.mxu0 %vm360_vm0, %v4906_v35  ;;  %10028 = vmatprep.subr.msk.mxu0 %vm896_vm1, %v5051_v50  ;;  %v5202_v11 = vpop.permute.xlu1 %5201 }
0x136b   : > { %10042 = vmatprep.subr.mxu1 %v5204_v38 }
0x136c   : > { %10043 = vmatpush3.msra.mxu1 %v5204_v38  ;;  %10024 = vmatmul.mubr.msk.f32.gmra.mxu0 %vm360_vm0, %v4908_v46 }
0x136d   : > { %10044 = vmatprep.subr.mxu1 %v5202_v11  ;;  %10029 = vmatpush3.xpose.msk.msra.mxu0 %vm896_vm1, %v5051_v50 }
0x136e   : > { %10045 = vmatpush3.msra.mxu1 %v5202_v11  ;;  %10030 = vmatprep.subr.msk.mxu0 %vm896_vm1, %v5049_v43  ;;  %v5200_v17 = vpop.permute.xlu1 %5199 }
0x136f   : > { %10034 = vmatprep.mubr.msk.f32.mxu0 %vm896_vm1, %v5039_v13  ;;  %10046 = vmatprep.subr.mxu1 %v5200_v17 }
0x1370   : > { %10047 = vmatpush3.msra.mxu1 %v5200_v17 }
0x1371   : > { %10031 = vmatpush3.xpose.msk.msra.mxu0 %vm896_vm1, %v5049_v43 }
0x1372   : > { %10032 = vmatprep.subr.msk.mxu0 %vm896_vm1, %v5047_v54 }
0x1375   : > { %10033 = vmatpush3.xpose.msk.msra.mxu0 %vm896_vm1, %v5047_v54 }
0x1378   : > { %10035 = vmatmul.mubr.msk.f32.vlgmr.msra.gmra.mxu0 %vm896_vm1, %v5041_v22 }
0x1379   : > { %10037 = vmatprep.mubr.msk.f32.mxu0 %vm896_vm1, %v5043_v21 }
0x137c   : > { %10038 = vmatmul.mubr.msk.f32.gmra.mxu0 %vm896_vm1, %v5045_v2 }
0x1420   : > { %v12567_v20 = vpop.f32.mrf.mxu0 }
0x1421   : > { %14298 = vst [vmem:[#allocation72_spill] sm:$0xff] %v12567_v20 }
0x1422   : > { %v12569_v42 = vpop.f32.mrf.mxu0 }
0x1423   : > { %14299 = vst [vmem:[#allocation73_spill] sm:$0xff] %v12569_v42 }
0x1424   : > { %v12571_v45 = vpop.f32.mrf.mxu0 }
0x1425   : > { %14300 = vst [vmem:[#allocation74_spill] sm:$0xff] %v12571_v45 }
0x1426   : > { %v12573_v13 = vpop.f32.mrf.mxu0 }
0x1427   : > { %14301 = vst [vmem:[#allocation75_spill] sm:$0xff] %v12573_v13 }
0x1428   : > { %v12575_v40 = vpop.f32.mrf.mxu0 }
0x1429   : > { %14302 = vst [vmem:[#allocation76_spill] sm:$0xff] %v12575_v40 }
0x142a   : > { %v12577_v52 = vpop.f32.mrf.mxu0 }
0x142b   : > { %14303 = vst [vmem:[#allocation77_spill] sm:$0xff] %v12577_v52 }
0x142c   : > { %v12579_v32 = vpop.f32.mrf.mxu0 }
0x142d   : > { %14304 = vst [vmem:[#allocation78_spill] sm:$0xff] %v12579_v32 }
0x142e   : > { %v12581_v50 = vpop.f32.mrf.mxu0 }
0x142f   : > { %14305 = vst [vmem:[#allocation79_spill] sm:$0xff] %v12581_v50 }
0x1438   : > { %v10036_v22 = vpop.f32.mrf.mxu0 }
0x1439   : > { %v5158_v43 = vsel %vm360_vm0, %v10036_v22, -inf }
0x143a   : > { %5159 = vmax.xlane.f32.xlu1 %v5158_v43  ;;  %v5136_v54 = vpop.f32.mrf.mxu0 }
0x143b   : > { %v5155_v19 = vsel %vm360_vm0, %v5136_v54, -inf }
0x143c   : > { %5156 = vmax.xlane.f32.xlu0 %v5155_v19  ;;  %v10039_v24 = vpop.f32.mrf.mxu0 }
0x143d   : > { %v5164_v49 = vsel %vm360_vm0, %v10039_v24, -inf }
0x143e   : > { %v5146_v55 = vpop.f32.mrf.mxu0 }
0x143f   : > { %v5161_v59 = vsel %vm360_vm0, %v5146_v55, -inf }
0x1440   : > { %5165 = vmax.xlane.f32.xlu0 %v5164_v49 }
0x1444   : > { %5162 = vmax.xlane.f32.xlu0 %v5161_v59 }
0x144b   : > { %5340 = vrot.lane.b32.xlu1 %v11433_v23, %s10940_s21 }
0x145a   : > { %5342 = vrot.lane.b32.xlu0 %v11441_v33, %s10940_s21 }
0x14c3   : > { %v5160_v2 = vpop.xlane.xlu1 %5159 }
0x14c4   : > { %v5168_v31 = vsub.f32 %v10036_v22, %v5160_v2 }
0x14c5   : > { %v5157_v51 = vpop.xlane.xlu0 %5156 }
0x14c6   : > { %v5173_v26 = vmul.f32 1.442695, %v5168_v31  ;;  %v5167_v21 = vsub.f32 %v5136_v54, %v5157_v51 }
0x14c8   : > { %10652 = vpow2.f32 %v5173_v26  ;;  %v5171_v15 = vmul.f32 1.442695, %v5167_v21 }
0x14c9   : > { %v5166_v7 = vpop.xlane.xlu0 %5165 }
0x14ca   : > { %10654 = vpow2.f32 %v5171_v15  ;;  %v5170_v17 = vsub.f32 %v10039_v24, %v5166_v7  ;;  %v5341_v24 = vpop.permute.xlu1 %5340 }
0x14cc   : > { %v5177_v43 = vmul.f32 1.442695, %v5170_v17 }
0x14cd   : > { %v5163_v37 = vpop.xlane.xlu0 %5162 }
0x14ce   : > { %v5169_v22 = vsub.f32 %v5146_v55, %v5163_v37  ;;  %10656 = vpow2.f32 %v5177_v43 }
0x14d0   : > { %v5175_v54 = vmul.f32 1.442695, %v5169_v22 }
0x14d1   : > { %v5343_v63 = vpop.permute.xlu0 %5342 }
0x14d2   : > { %10054 = vmatprep.subr.msk.mxu1 %vm896_vm1, %v5343_v63  ;;  %10658 = vpow2.f32 %v5175_v54 }
0x14d5   : > { %v10653_v35 = vpop.eup %10652 }
0x14d6   : > { %v5182_v38 = vsel %vm360_vm0, %v10653_v35, 0.0 }
0x14d7   : > { %v10655_v11 = vpop.eup %10654  ;;  %5183 = vadd.xlane.f32.xlu0 %v5182_v38 }
0x14d8   : > { %v5179_v46 = vsel %vm360_vm0, %v10655_v11, 0.0 }
0x14d9   : > { %5180 = vadd.xlane.f32.xlu1 %v5179_v46 }
0x14db   : > { %v10657_v19 = vpop.eup %10656 }
0x14dc   : > { %v5188_v59 = vsel %vm360_vm0, %v10657_v19, 0.0 }
0x14df   : > { %v10659_v49 = vpop.eup %10658 }
0x14e0   : > { %v5185_v2 = vsel %vm360_vm0, %v10659_v49, 0.0 }
0x14ea   : > { %5336 = vrot.lane.b32.xlu1 %v11452_v3, %s10940_s21 }
0x14ed   : > { %5338 = vrot.lane.b32.xlu0 %v11458_v47, %s10940_s21 }
0x150c   : > { %5189 = vadd.xlane.f32.xlu0 %v5188_v59 }
0x150e   : > { %5186 = vadd.xlane.f32.xlu1 %v5185_v2 }
0x151f   : > { %5330 = vrot.lane.b32.xlu1 %v11479_v57, %s10941_s22 }
0x1522   : > { %5328 = vrot.lane.b32.xlu0 %v11470_v8, %s10941_s22 }
0x1523   : > { %5334 = vrot.lane.b32.xlu1 %v11489_v36, %s10941_s22 }
0x1526   : > { %5332 = vrot.lane.b32.xlu0 %v14245_v10, %s10941_s22 }
0x1560   : > { %v5184_v55 = vpop.xlane.xlu0 %5183 }
0x1561   : > { %10660 = vrcp.f32 %v5184_v55 }
0x1562   : > { %v5181_v31 = vpop.xlane.xlu1 %5180 }
0x1563   : > { %10662 = vrcp.f32 %v5181_v31 }
0x1564   : > { %v5339_v7 = vpop.permute.xlu0 %5338 }
0x1566   : > { %v5337_v37 = vpop.permute.xlu1 %5336 }
0x156e   : > { %v10661_v51 = vpop.eup %10660 }
0x156f   : > { %v5194_v15 = vmul.f32 %v10661_v51, %v10653_v35 }
0x1570   : > { %v10663_v26 = vpop.eup %10662 }
0x1571   : > { %v5192_v21 = vmul.f32 %v10663_v26, %v10655_v11 }
0x1573   : > { %10048 = vmatprep.mubr.msk.f32.mxu1 %vm360_vm0, %v5192_v21 }
0x1574   : > { %10049 = vmatmul.mubr.msk.f32.vlgmr.msra.gmra.mxu1 %vm360_vm0, %v5194_v15 }
0x1575   : > { %10055 = vmatpush3.xpose.msk.msra.mxu1 %vm896_vm1, %v5343_v63 }
0x1576   : > { %10056 = vmatprep.subr.msk.mxu1 %vm896_vm1, %v5341_v24 }
0x1579   : > { %10057 = vmatpush3.xpose.msk.msra.mxu1 %vm896_vm1, %v5341_v24 }
0x157a   : > { %10058 = vmatprep.subr.msk.mxu1 %vm896_vm1, %v5339_v7 }
0x157d   : > { %10059 = vmatpush3.xpose.msk.msra.mxu1 %vm896_vm1, %v5339_v7 }
0x157e   : > { %10060 = vmatprep.subr.msk.mxu1 %vm896_vm1, %v5337_v37 }
0x1581   : > { %10061 = vmatpush3.xpose.msk.msra.mxu1 %vm896_vm1, %v5337_v37 }
0x1595   : > { %v5190_v35 = vpop.xlane.xlu0 %5189 }
0x1596   : > { %10664 = vrcp.f32 %v5190_v35 }
0x1597   : > { %v5187_v38 = vpop.xlane.xlu1 %5186 }
0x1598   : > { %10666 = vrcp.f32 %v5187_v38 }
0x1599   : > { %v5329_v17 = vpop.permute.xlu0 %5328 }
0x159b   : > { %v5331_v43 = vpop.permute.xlu1 %5330 }
0x159d   : > { %v5333_v54 = vpop.permute.xlu0 %5332 }
0x159f   : > { %v5335_v59 = vpop.permute.xlu1 %5334 }
0x15a3   : > { %v10665_v11 = vpop.eup %10664 }
0x15a4   : > { %v5198_v22 = vmul.f32 %v10665_v11, %v10657_v19 }
0x15a5   : > { %v10667_v63 = vpop.eup %10666 }
0x15a6   : > { %v5196_v46 = vmul.f32 %v10667_v63, %v10659_v49 }
0x15a8   : > { %10051 = vmatprep.mubr.msk.f32.mxu1 %vm360_vm0, %v5196_v46 }
0x15a9   : > { %10052 = vmatmul.mubr.msk.f32.gmra.mxu1 %vm360_vm0, %v5198_v22 }
0x15aa   : > { %10062 = vmatprep.mubr.msk.f32.mxu1 %vm896_vm1, %v5329_v17 }
0x15ad   : > { %10063 = vmatmul.mubr.msk.f32.vlgmr.msra.gmra.mxu1 %vm896_vm1, %v5331_v43 }
0x15ae   : > { %10065 = vmatprep.mubr.msk.f32.mxu1 %vm896_vm1, %v5333_v54 }
0x15b1   : > { %10066 = vmatmul.mubr.msk.f32.gmra.mxu1 %vm896_vm1, %v5335_v59 }
0x1634   : > { %v12623_v2 = vpop.f32.mrf.mxu1 }
0x1635   : > { %14306 = vst [vmem:[#allocation80_spill] sm:$0xff] %v12623_v2 }
0x1636   : > { %v12625_v49 = vpop.f32.mrf.mxu1 }
0x1637   : > { %14307 = vst [vmem:[#allocation81_spill] sm:$0xff] %v12625_v49 }
0x1669   : > { %v12627_v19 = vpop.f32.mrf.mxu1 }
0x166a   : > { %14308 = vst [vmem:[#allocation82_spill] sm:$0xff] %v12627_v19 }
0x166b   : > { %v12629_v24 = vpop.f32.mrf.mxu1 }
0x166c   : > { %14309 = vst [vmem:[#allocation83_spill] sm:$0xff] %v12629_v24 }
0x166d   : > { %v10064_v55 = vpop.f32.mrf.mxu1 }
0x166e   : > { %v5448_v31 = vsel %vm360_vm0, %v10064_v55, -inf }
0x166f   : > { %5449 = vmax.xlane.f32.xlu1 %v5448_v31  ;;  %v5426_v51 = vpop.f32.mrf.mxu1 }
0x1670   : > { %v5445_v26 = vsel %vm360_vm0, %v5426_v51, -inf }
0x1671   : > { %5446 = vmax.xlane.f32.xlu0 %v5445_v26  ;;  %v10067_v21 = vpop.f32.mrf.mxu1 }
0x1672   : > { %v5454_v37 = vsel %vm360_vm0, %v10067_v21, -inf }
0x1673   : > { %v5436_v15 = vpop.f32.mrf.mxu1 }
0x1674   : > { %v5451_v7 = vsel %vm360_vm0, %v5436_v15, -inf }
0x1675   : > { %5452 = vmax.xlane.f32.xlu0 %v5451_v7 }
0x1679   : > { %5455 = vmax.xlane.f32.xlu0 %v5454_v37 }
0x1680   : > { %5495 = vrot.lane.b32.xlu1 %v11441_v33, %s10942_s23 }
0x1684   : > { %5491 = vrot.lane.b32.xlu1 %v11458_v47, %s10942_s23 }
0x1688   : > { %5489 = vrot.lane.b32.xlu1 %v11452_v3, %s10942_s23 }
0x168c   : > { %5618 = vrot.lane.b32.xlu1 %v11581_v39, %s10941_s22 }
0x168f   : > { %5493 = vrot.lane.b32.xlu0 %v11433_v23, %s10942_s23 }
0x1690   : > { %5622 = vrot.lane.b32.xlu1 %v14255_v25, %s10941_s22 }
0x1693   : > { %5650 = vrot.lane.b32.xlu0 %v11366_v5, %s10941_s22 }
0x1694   : > { %5626 = vrot.lane.b32.xlu1 %v14256_v18, %s10941_s22 }
0x1697   : > { %5620 = vrot.lane.b32.xlu0 %v11590_v12, %s10941_s22 }
0x169b   : > { %5624 = vrot.lane.b32.xlu0 %v11601_v58, %s10941_s22 }
0x16f8   : > { %v5450_v35 = vpop.xlane.xlu1 %5449 }
0x16f9   : > { %v5458_v38 = vsub.f32 %v10064_v55, %v5450_v35 }
0x16fa   : > { %v5447_v11 = vpop.xlane.xlu0 %5446 }
0x16fb   : > { %v5463_v63 = vmul.f32 1.442695, %v5458_v38  ;;  %v5457_v46 = vsub.f32 %v5426_v51, %v5447_v11 }
0x16fc   : > { %v5496_v17 = vpop.permute.xlu1 %5495 }
0x16fd   : > { %10668 = vpow2.f32 %v5463_v63  ;;  %v5461_v22 = vmul.f32 1.442695, %v5457_v46  ;;  %10068 = vmatprep.subr.mxu0 %v5496_v17 }
0x16fe   : > { %10069 = vmatpush3.msra.mxu0 %v5496_v17  ;;  %v5453_v43 = vpop.xlane.xlu0 %5452  ;;  %v14310_v17 = vld [vmem:[#allocation23_spill] sm:$0xff] }
0x16ff   : > { %10670 = vpow2.f32 %v5461_v22  ;;  %v5459_v54 = vsub.f32 %v5436_v15, %v5453_v43  ;;  %v14311_v22 = vld [vmem:[#allocation25_spill] sm:$0xff]  ;;  %v14312_v43 = vld [vmem:[#allocation30_spill] sm:$0xff] }
0x1700   : > { %v5492_v7 = vpop.permute.xlu1 %5491 }
0x1701   : > { %v5465_v59 = vmul.f32 1.442695, %v5459_v54  ;;  %v14313_v54 = vld [vmem:[#allocation31_spill] sm:$0xff] }
0x1702   : > { %v5456_v31 = vpop.xlane.xlu0 %5455 }
0x1703   : > { %10672 = vpow2.f32 %v5465_v59  ;;  %v5460_v26 = vsub.f32 %v10067_v21, %v5456_v31  ;;  %v14314_v59 = vld [vmem:[#allocation28_spill] sm:$0xff]  ;;  %v14315_v31 = vld [vmem:[#allocation29_spill] sm:$0xff] }
0x1704   : > { %v5490_v51 = vpop.permute.xlu1 %5489 }
0x1705   : > { %v5467_v37 = vmul.f32 1.442695, %v5460_v26  ;;  %v14316_v26 = vld [vmem:[#allocation6_spill] sm:$0xff] }
0x1706   : > { %v5494_v19 = vpop.permute.xlu0 %5493 }
0x1707   : > { %10674 = vpow2.f32 %v5467_v37  ;;  %10070 = vmatprep.subr.mxu0 %v5494_v19  ;;  %v14318_v37 = vld [vmem:[#allocation32_spill] sm:$0xff] }
0x1708   : > { %10071 = vmatpush3.msra.mxu0 %v5494_v19 }
0x1709   : > { %10072 = vmatprep.subr.mxu0 %v5492_v7 }
0x170a   : > { %v12655_v55 = vpop.eup %10668  ;;  %10073 = vmatpush3.msra.mxu0 %v5492_v7  ;;  %v12661_v38 = vpop.permute.xlu0 %5650  ;;  %v14317_v7 = vld [vmem:[#allocation12_spill] sm:$0xff] }
0x170b   : > { %10074 = vmatprep.subr.mxu0 %v5490_v51  ;;  %v5472_v35 = vsel %vm360_vm0, %v12655_v55, 0.0 }
0x170c   : > { %v12659_v15 = vpop.eup %10670  ;;  %5473 = vadd.xlane.f32.xlu0 %v5472_v35  ;;  %10075 = vmatpush3.msra.mxu0 %v5490_v51  ;;  %v14319_v51 = vld [vmem:[#allocation33_spill] sm:$0xff]  ;;  %v14320_v35 = vld [vmem:[#allocation14_spill] sm:$0xff] }
0x170d   : > { %10082 = vmatprep.subr.msk.mxu0 %vm896_vm1, %v12661_v38  ;;  %v5469_v19 = vsel %vm360_vm0, %v12659_v15, 0.0 }
0x170e   : > { %5470 = vadd.xlane.f32.xlu1 %v5469_v19  ;;  %v14321_v19 = vld [vmem:[#allocation15_spill] sm:$0xff] }
0x1710   : > { %v12667_v21 = vpop.eup %10672 }
0x1711   : > { %v5475_v11 = vsel %vm360_vm0, %v12667_v21, 0.0 }
0x1712   : > { %5476 = vadd.xlane.f32.xlu1 %v5475_v11  ;;  %v14322_v11 = vld [vmem:[#allocation17_spill] sm:$0xff] }
0x1714   : > { %v12671_v63 = vpop.eup %10674 }
0x1715   : > { %v5478_v46 = vsel %vm360_vm0, %v12671_v63, 0.0 }
0x1716   : > { %5479 = vadd.xlane.f32.xlu0 %v5478_v46  ;;  %v14323_v46 = vld [vmem:[#allocation13_spill] sm:$0xff] }
0x1723   : > { %5630 = vrot.lane.b32.xlu1 %v14257_v4, %s10941_s22 }
0x1727   : > { %5634 = vrot.lane.b32.xlu1 %v14258_v62, %s10941_s22 }
0x172b   : > { %5636 = vrot.lane.b32.xlu1 %v14251_v1, %s10941_s22 }
0x172c   : > { %5628 = vrot.lane.b32.xlu0 %v14310_v17, %s10941_s22 }
0x172f   : > { %6296 = vrot.lane.b32.xlu1 %v14268_v14, %s10943_s24 }
0x1730   : > { %5632 = vrot.lane.b32.xlu0 %v14311_v22, %s10941_s22 }
0x1733   : > { %5642 = vrot.lane.b32.xlu1 %v14312_v43, %s10941_s22 }
0x1734   : > { %6298 = vrot.lane.b32.xlu0 %v14266_v16, %s10943_s24 }
0x1737   : > { %5644 = vrot.lane.b32.xlu1 %v14313_v54, %s10941_s22 }
0x1738   : > { %5638 = vrot.lane.b32.xlu0 %v14314_v59, %s10941_s22 }
0x173b   : > { %6292 = vrot.lane.b32.xlu1 %v14272_v0, %s10943_s24 }
0x173c   : > { %5640 = vrot.lane.b32.xlu0 %v14315_v31, %s10941_s22 }
0x173f   : > { %6284 = vrot.lane.b32.xlu1 %v14316_v26, %s10944_s26  ;;  %v14324_v26 = vld [vmem:[#allocation16_spill] sm:$0xff] }
0x1740   : > { %6294 = vrot.lane.b32.xlu0 %v14269_v61, %s10943_s24 }
0x1743   : > { %6286 = vrot.lane.b32.xlu1 %v14317_v7, %s10944_s26  ;;  %v14325_v7 = vld [vmem:[#allocation18_spill] sm:$0xff] }
0x1744   : > { %5646 = vrot.lane.b32.xlu0 %v14318_v37, %s10941_s22 }
0x1747   : > { %6585 = vrot.lane.b32.xlu1 %v14274_v6, %s10943_s24 }
0x1748   : > { %5648 = vrot.lane.b32.xlu0 %v14319_v51, %s10941_s22 }
0x174b   : > { %6290 = vrot.lane.b32.xlu1 %v14320_v35, %s10944_s26  ;;  %v5621_v35 = vpop.permute.xlu0 %5620 }
0x174c   : > { %6589 = vrot.lane.b32.xlu0 %v14267_v48, %s10943_s24 }
0x174f   : > { %6575 = vrot.lane.b32.xlu1 %v14321_v19, %s10944_s26 }
0x1750   : > { %6587 = vrot.lane.b32.xlu0 %v14270_v9, %s10943_s24 }
0x1753   : > { %6579 = vrot.lane.b32.xlu1 %v14322_v11, %s10944_s26  ;;  %v5625_v11 = vpop.permute.xlu0 %5624 }
0x1754   : > { %6288 = vrot.lane.b32.xlu0 %v14323_v46, %s10944_s26 }
0x1757   : > { %6451 = vrot.lane.b32.xlu1 %v14266_v16, %s10945_s27  ;;  %v5619_v16 = vpop.permute.xlu1 %5618 }
0x1758   : > { %6583 = vrot.lane.b32.xlu0 %v14279_v29, %s10943_s24 }
0x175b   : > { %v5623_v19 = vpop.permute.xlu1 %5622 }
0x175c   : > { %6577 = vrot.lane.b32.xlu0 %v14324_v26, %s10944_s26 }
0x175f   : > { %v5627_v46 = vpop.permute.xlu1 %5626 }
0x1760   : > { %6581 = vrot.lane.b32.xlu0 %v14325_v7, %s10944_s26 }
0x1764   : > { %6007 = vrot.lane.b32.xlu0 %v11366_v5, %s10940_s21  ;;  %s14030_s21 = scalar_lea.vmem %s14121_s9, %s9068_s25 }
0x1768   : > { %6449 = vrot.lane.b32.xlu0 %v14268_v14, %s10945_s27 }
0x176c   : > { %6447 = vrot.lane.b32.xlu0 %v14269_v61, %s10945_s27 }
0x1770   : > { %6445 = vrot.lane.b32.xlu0 %v14272_v0, %s10945_s27 }
0x1774   : > { %6742 = vrot.lane.b32.xlu0 %v14267_v48, %s10945_s27 }
0x1795   : > { %v5474_v26 = vpop.xlane.xlu0 %5473 }
0x1796   : > { %10676 = vrcp.f32 %v5474_v26 }
0x1797   : > { %v5471_v7 = vpop.xlane.xlu1 %5470 }
0x1798   : > { %10678 = vrcp.f32 %v5471_v7 }
0x179b   : > { %v5477_v24 = vpop.xlane.xlu1 %5476 }
0x179c   : > { %10680 = vrcp.f32 %v5477_v24 }
0x179f   : > { %v5631_v14 = vpop.permute.xlu1 %5630  ;;  %v5480_v2 = vpop.xlane.xlu0 %5479 }
0x17a0   : > { %10682 = vrcp.f32 %v5480_v2 }
0x17a3   : > { %v5635_v61 = vpop.permute.xlu1 %5634  ;;  %v5629_v49 = vpop.permute.xlu0 %5628 }
0x17a4   : > { %v10677_v0 = vpop.eup %10676 }
0x17a5   : > { %v10679_v32 = vpop.eup %10678  ;;  %v5484_v50 = vmul.f32 %v10677_v0, %v12655_v55 }
0x17a6   : > { %v5482_v48 = vmul.f32 %v10679_v32, %v12659_v15 }
0x17a7   : > { %v5637_v40 = vpop.permute.xlu1 %5636  ;;  %v5633_v52 = vpop.permute.xlu0 %5632 }
0x17a8   : > { %10076 = vmatprep.mubr.msk.f32.mxu0 %vm360_vm0, %v5482_v48 }
0x17a9   : > { %v10681_v26 = vpop.eup %10680  ;;  %10077 = vmatmul.mubr.msk.f32.vlgmr.msra.gmra.mxu0 %vm360_vm0, %v5484_v50 }
0x17aa   : > { %10083 = vmatpush3.xpose.msk.msra.mxu0 %vm896_vm1, %v12661_v38  ;;  %v5486_v2 = vmul.f32 %v10681_v26, %v12667_v21 }
0x17ab   : > { %v6297_v24 = vpop.permute.xlu1 %6296  ;;  %v6299_v7 = vpop.permute.xlu0 %6298 }
0x17ac   : > { %10079 = vmatprep.mubr.msk.f32.mxu0 %vm360_vm0, %v5486_v2  ;;  %10134 = vmatprep.subr.msk.mxu0 %vm896_vm1, %v6299_v7 }
0x17ad   : > { %v10683_v32 = vpop.eup %10682 }
0x17ae   : > { %v5488_v55 = vmul.f32 %v10683_v32, %v12671_v63 }
0x17af   : > { %v5643_v15 = vpop.permute.xlu1 %5642  ;;  %v5639_v0 = vpop.permute.xlu0 %5638 }
0x17b0   : > { %10080 = vmatmul.mubr.msk.f32.gmra.mxu0 %vm360_vm0, %v5488_v55 }
0x17b1   : > { %10084 = vmatprep.mubr.msk.f32.mxu0 %vm896_vm1, %v5619_v16 }
0x17b3   : > { %v5645_v50 = vpop.permute.xlu1 %5644  ;;  %v5641_v48 = vpop.permute.xlu0 %5640 }
0x17b4   : > { %10085 = vmatmul.mubr.msk.f32.vlgmr.msra.gmra.mxu0 %vm896_vm1, %v5621_v35 }
0x17b5   : > { %10135 = vmatpush3.xpose.msk.msra.mxu0 %vm896_vm1, %v6299_v7  ;;  %10087 = vmatprep.mubr.msk.f32.mxu0 %vm896_vm1, %v5623_v19 }
0x17b6   : > { %10136 = vmatprep.subr.msk.mxu0 %vm896_vm1, %v6297_v24 }
0x17b7   : > { %v6293_v38 = vpop.permute.xlu1 %6292  ;;  %v6295_v21 = vpop.permute.xlu0 %6294 }
0x17b8   : > { %10088 = vmatmul.mubr.msk.f32.gmra.mxu0 %vm896_vm1, %v5625_v11 }
0x17b9   : > { %10137 = vmatpush3.xpose.msk.msra.mxu0 %vm896_vm1, %v6297_v24  ;;  %10090 = vmatprep.mubr.msk.f32.mxu0 %vm896_vm1, %v5627_v46 }
0x17ba   : > { %10138 = vmatprep.subr.msk.mxu0 %vm896_vm1, %v6295_v21 }
0x17bb   : > { %v6285_v63 = vpop.permute.xlu1 %6284  ;;  %v5647_v16 = vpop.permute.xlu0 %5646 }
0x17bc   : > { %10091 = vmatmul.mubr.msk.f32.gmra.mxu0 %vm896_vm1, %v5629_v49 }
0x17bd   : > { %10139 = vmatpush3.xpose.msk.msra.mxu0 %vm896_vm1, %v6295_v21  ;;  %10093 = vmatprep.mubr.msk.f32.mxu0 %vm896_vm1, %v5631_v14 }
0x17be   : > { %10140 = vmatprep.subr.msk.mxu0 %vm896_vm1, %v6293_v38 }
0x17bf   : > { %v6287_v35 = vpop.permute.xlu1 %6286  ;;  %v5649_v19 = vpop.permute.xlu0 %5648 }
0x17c0   : > { %10094 = vmatmul.mubr.msk.f32.gmra.mxu0 %vm896_vm1, %v5633_v52 }
0x17c1   : > { %10141 = vmatpush3.xpose.msk.msra.mxu0 %vm896_vm1, %v6293_v38  ;;  %10096 = vmatprep.mubr.msk.f32.mxu0 %vm896_vm1, %v5635_v61 }
0x17c3   : > { %v6590_v11 = vpop.permute.xlu0 %6589  ;;  %v6586_v49 = vpop.permute.xlu1 %6585 }
0x17c4   : > { %10097 = vmatmul.mubr.msk.f32.gmra.mxu0 %vm896_vm1, %v5637_v40  ;;  %10162 = vmatprep.subr.msk.mxu0 %vm896_vm1, %v6590_v11 }
0x17c5   : > { %10099 = vmatprep.mubr.msk.f32.mxu0 %vm896_vm1, %v5639_v0 }
0x17c7   : > { %v6588_v46 = vpop.permute.xlu0 %6587  ;;  %v6291_v14 = vpop.permute.xlu1 %6290 }
0x17c8   : > { %10100 = vmatmul.mubr.msk.f32.gmra.mxu0 %vm896_vm1, %v5641_v48 }
0x17c9   : > { %10102 = vmatprep.mubr.msk.f32.mxu0 %vm896_vm1, %v5643_v15 }
0x17cb   : > { %v6289_v26 = vpop.permute.xlu0 %6288  ;;  %v6576_v40 = vpop.permute.xlu1 %6575 }
0x17cc   : > { %10103 = vmatmul.mubr.msk.f32.gmra.mxu0 %vm896_vm1, %v5645_v50 }
0x17cd   : > { %10105 = vmatprep.mubr.msk.f32.mxu0 %vm896_vm1, %v5647_v16 }
0x17cf   : > { %v6584_v52 = vpop.permute.xlu0 %6583  ;;  %v6580_v2 = vpop.permute.xlu1 %6579 }
0x17d0   : > { %10106 = vmatmul.mubr.msk.f32.gmra.mxu0 %vm896_vm1, %v5649_v19 }
0x17d1   : > { %10142 = vmatprep.mubr.msk.f32.mxu0 %vm896_vm1, %v6285_v63 }
0x17d3   : > { %v6578_v61 = vpop.permute.xlu0 %6577  ;;  %v12785_v32 = vpop.permute.xlu1 %6451 }
0x17d4   : > { %10143 = vmatmul.mubr.msk.f32.vlgmr.msra.gmra.mxu0 %vm896_vm1, %v6287_v35 }
0x17d5   : > { %10163 = vmatpush3.xpose.msk.msra.mxu0 %vm896_vm1, %v6590_v11  ;;  %10145 = vmatprep.mubr.msk.f32.mxu0 %vm896_vm1, %v6289_v26 }
0x17d6   : > { %10164 = vmatprep.subr.msk.mxu0 %vm896_vm1, %v6588_v46 }
0x17d7   : > { %v6582_v24 = vpop.permute.xlu0 %6581 }
0x17d8   : > { %10146 = vmatmul.mubr.msk.f32.gmra.mxu0 %vm896_vm1, %v6291_v14 }
0x17d9   : > { %10165 = vmatpush3.xpose.msk.msra.mxu0 %vm896_vm1, %v6588_v46  ;;  %10170 = vmatprep.mubr.msk.f32.mxu0 %vm896_vm1, %v6576_v40 }
0x17da   : > { %10166 = vmatprep.subr.msk.mxu0 %vm896_vm1, %v6586_v49 }
0x17db   : > { %v6008_v7 = vpop.permute.xlu0 %6007 }
0x17dc   : > { %10108 = vmatprep.subr.mxu1 %v6008_v7 }
0x17dd   : > { %10167 = vmatpush3.xpose.msk.msra.mxu0 %vm896_vm1, %v6586_v49  ;;  %10109 = vmatpush3.msra.mxu1 %v6008_v7 }
0x17de   : > { %10168 = vmatprep.subr.msk.mxu0 %vm896_vm1, %v6584_v52  ;;  %10148 = vmatprep.subr.mxu1 %v12785_v32 }
0x17df   : > { %v12902_v37 = vpop.permute.xlu0 %6449 }
0x17e1   : > { %10169 = vmatpush3.xpose.msk.msra.mxu0 %vm896_vm1, %v6584_v52 }
0x17e4   : > { %10171 = vmatmul.mubr.msk.f32.vlgmr.msra.gmra.mxu0 %vm896_vm1, %v6578_v61 }
0x17e5   : > { %10173 = vmatprep.mubr.msk.f32.mxu0 %vm896_vm1, %v6580_v2 }
0x17e8   : > { %10174 = vmatmul.mubr.msk.f32.gmra.mxu0 %vm896_vm1, %v6582_v24 }
0x1869   : > { %v12794_v55 = vpop.f32.mrf.mxu0 }
0x186a   : > { %14326 = vst [vmem:[#allocation6_spill] sm:$0xff] %v12794_v55 }
0x186b   : > { %v12796_v15 = vpop.f32.mrf.mxu0 }
0x186c   : > { %14327 = vst [vmem:[#allocation12_spill] sm:$0xff] %v12796_v15 }
0x1870   : > { %v12798_v0 = vpop.f32.mrf.mxu0 }
0x1871   : > { %14328 = vst [vmem:[#allocation14_spill] sm:$0xff] %v12798_v0 }
0x1872   : > { %v12800_v50 = vpop.f32.mrf.mxu0 }
0x1873   : > { %14329 = vst [vmem:[#allocation15_spill] sm:$0xff] %v12800_v50 }
0x1874   : > { %v12802_v48 = vpop.f32.mrf.mxu0 }
0x1875   : > { %v5834_v38 = vsel %vm896_vm1, %v12802_v48, -inf }
0x1876   : > { %5835 = vmax.xlane.f32.xlu0 %v5834_v38  ;;  %v12806_v21 = vpop.f32.mrf.mxu0 }
0x1877   : > { %v5831_v63 = vsel %vm896_vm1, %v12806_v21, -inf }
0x1878   : > { %5832 = vmax.xlane.f32.xlu1 %v5831_v63  ;;  %v12810_v16 = vpop.f32.mrf.mxu0 }
0x1879   : > { %v5840_v19 = vsel %vm896_vm1, %v12810_v16, -inf }
0x187a   : > { %v12812_v35 = vpop.f32.mrf.mxu0 }
0x187b   : > { %v5837_v11 = vsel %vm896_vm1, %v12812_v35, -inf }
0x187c   : > { %5841 = vmax.xlane.f32.xlu1 %v5840_v19  ;;  %5838 = vmax.xlane.f32.xlu0 %v5837_v11  ;;  %v12818_v49 = vpop.f32.mrf.mxu0 }
0x187d   : > { %v5846_v14 = vsel %vm896_vm1, %v12818_v49, -inf }
0x187e   : > { %v12820_v46 = vpop.f32.mrf.mxu0 }
0x187f   : > { %v5843_v26 = vsel %vm896_vm1, %v12820_v46, -inf }
0x1880   : > { %5847 = vmax.xlane.f32.xlu1 %v5846_v14  ;;  %5844 = vmax.xlane.f32.xlu0 %v5843_v26  ;;  %v12826_v52 = vpop.f32.mrf.mxu0 }
0x1881   : > { %v5852_v61 = vsel %vm896_vm1, %v12826_v52, -inf }
0x1882   : > { %v12828_v40 = vpop.f32.mrf.mxu0 }
0x1883   : > { %v5849_v2 = vsel %vm896_vm1, %v12828_v40, -inf }
0x1884   : > { %5853 = vmax.xlane.f32.xlu1 %v5852_v61  ;;  %5850 = vmax.xlane.f32.xlu0 %v5849_v2  ;;  %v12834_v24 = vpop.f32.mrf.mxu0 }
0x1885   : > { %v5858_v38 = vsel %vm896_vm1, %v12834_v24, -inf }
0x1886   : > { %v12836_v7 = vpop.f32.mrf.mxu0 }
0x1887   : > { %v5855_v63 = vsel %vm896_vm1, %v12836_v7, -inf }
0x1888   : > { %5859 = vmax.xlane.f32.xlu1 %v5858_v38  ;;  %5856 = vmax.xlane.f32.xlu0 %v5855_v63  ;;  %v12842_v19 = vpop.f32.mrf.mxu0 }
0x1889   : > { %v5864_v14 = vsel %vm896_vm1, %v12842_v19, -inf }
0x188a   : > { %v12844_v11 = vpop.f32.mrf.mxu0 }
0x188b   : > { %v5861_v26 = vsel %vm896_vm1, %v12844_v11, -inf }
0x188c   : > { %5865 = vmax.xlane.f32.xlu1 %v5864_v14  ;;  %5862 = vmax.xlane.f32.xlu0 %v5861_v26  ;;  %v12850_v61 = vpop.f32.mrf.mxu0 }
0x188d   : > { %v5870_v38 = vsel %vm896_vm1, %v12850_v61, -inf }
0x188e   : > { %v12852_v2 = vpop.f32.mrf.mxu0 }
0x188f   : > { %v5867_v63 = vsel %vm896_vm1, %v12852_v2, -inf }
0x1890   : > { %5871 = vmax.xlane.f32.xlu1 %v5870_v38  ;;  %5868 = vmax.xlane.f32.xlu0 %v5867_v63  ;;  %v12858_v0 = vpop.f32.mrf.mxu0 }
0x1891   : > { %v5876_v14 = vsel %vm896_vm1, %v12858_v0, -inf }
0x1892   : > { %v12860_v50 = vpop.f32.mrf.mxu0 }
0x1893   : > { %v5873_v26 = vsel %vm896_vm1, %v12860_v50, -inf }
0x1894   : > { %5877 = vmax.xlane.f32.xlu1 %v5876_v14  ;;  %v12866_v55 = vpop.f32.mrf.mxu0  ;;  %5874 = vmax.xlane.f32.xlu0 %v5873_v26 }
0x1895   : > { %v6404_v38 = vsel %vm360_vm0, %v12866_v55, -inf }
0x1896   : > { %v12868_v15 = vpop.f32.mrf.mxu0 }
0x1897   : > { %v6401_v63 = vsel %vm360_vm0, %v12868_v15, -inf }
0x1898   : > { %6405 = vmax.xlane.f32.xlu1 %v6404_v38  ;;  %6402 = vmax.xlane.f32.xlu0 %v6401_v63  ;;  %v12874_v45 = vpop.f32.mrf.mxu0 }
0x1899   : > { %v6410_v14 = vsel %vm360_vm0, %v12874_v45, -inf }
0x189a   : > { %v12876_v13 = vpop.f32.mrf.mxu0 }
0x189b   : > { %v6407_v26 = vsel %vm360_vm0, %v12876_v13, -inf }
0x189c   : > { %6411 = vmax.xlane.f32.xlu1 %v6410_v14  ;;  %6408 = vmax.xlane.f32.xlu0 %v6407_v26 }
0x18a4   : > { %v12882_v20 = vpop.f32.mrf.mxu0 }
0x18a5   : > { %v6695_v42 = vsel %vm360_vm0, %v12882_v20, -inf }
0x18a6   : > { %6696 = vmax.xlane.f32.xlu1 %v6695_v42  ;;  %v12886_v38 = vpop.f32.mrf.mxu0 }
0x18a7   : > { %v6692_v63 = vsel %vm360_vm0, %v12886_v38, -inf }
0x18a8   : > { %6693 = vmax.xlane.f32.xlu0 %v6692_v63  ;;  %v12894_v14 = vpop.f32.mrf.mxu0  ;;  %v12904_v63 = vpop.permute.xlu0 %6447 }
0x18a9   : > { %v6701_v28 = vsel %vm360_vm0, %v12894_v14, -inf }
0x18aa   : > { %v12896_v26 = vpop.f32.mrf.mxu0 }
0x18ab   : > { %v6698_v42 = vsel %vm360_vm0, %v12896_v26, -inf }
0x18b7   : > { %6738 = vrot.lane.b32.xlu1 %v14274_v6, %s10945_s27  ;;  %v12906_v6 = vpop.permute.xlu0 %6445 }
0x18bb   : > { %v12908_v43 = vpop.permute.xlu0 %6742 }
0x18be   : > { %6740 = vrot.lane.b32.xlu0 %v14270_v9, %s10945_s27 }
0x18db   : > { %6702 = vmax.xlane.f32.xlu1 %v6701_v28 }
0x18dd   : > { %6699 = vmax.xlane.f32.xlu0 %v6698_v42 }
0x18ff   : > { %v5836_v9 = vpop.xlane.xlu0 %5835 }
0x1900   : > { %v5880_v59 = vsub.f32 %v12802_v48, %v5836_v9 }
0x1901   : > { %v5833_v62 = vpop.xlane.xlu1 %5832 }
0x1902   : > { %v5897_v4 = vmul.f32 1.442695, %v5880_v59  ;;  %v5879_v18 = vsub.f32 %v12806_v21, %v5833_v62 }
0x1904   : > { %10684 = vpow2.f32 %v5897_v4  ;;  %v5895_v28 = vmul.f32 1.442695, %v5879_v18 }
0x1905   : > { %v5842_v25 = vpop.xlane.xlu1 %5841  ;;  %v5839_v51 = vpop.xlane.xlu0 %5838 }
0x1906   : > { %10686 = vpow2.f32 %v5895_v28  ;;  %v5882_v42 = vsub.f32 %v12810_v16, %v5842_v25  ;;  %v5881_v54 = vsub.f32 %v12812_v35, %v5839_v51 }
0x1908   : > { %v5901_v31 = vmul.f32 1.442695, %v5882_v42  ;;  %v5899_v1 = vmul.f32 1.442695, %v5881_v54 }
0x1909   : > { %v5848_v22 = vpop.xlane.xlu1 %5847  ;;  %v5845_v17 = vpop.xlane.xlu0 %5844 }
0x190a   : > { %10688 = vpow2.f32 %v5901_v31  ;;  %v5884_v48 = vsub.f32 %v12818_v49, %v5848_v22  ;;  %v5883_v59 = vsub.f32 %v12820_v46, %v5845_v17 }
0x190b   : > { %10690 = vpow2.f32 %v5899_v1 }
0x190c   : > { %v5905_v62 = vmul.f32 1.442695, %v5884_v48  ;;  %v5903_v4 = vmul.f32 1.442695, %v5883_v59 }
0x190d   : > { %v5854_v18 = vpop.xlane.xlu1 %5853  ;;  %v5851_v21 = vpop.xlane.xlu0 %5850 }
0x190e   : > { %10692 = vpow2.f32 %v5905_v62  ;;  %v5886_v9 = vsub.f32 %v12826_v52, %v5854_v18  ;;  %v5885_v25 = vsub.f32 %v12828_v40, %v5851_v21 }
0x190f   : > { %10694 = vpow2.f32 %v5903_v4 }
0x1910   : > { %v5909_v51 = vmul.f32 1.442695, %v5886_v9  ;;  %v5907_v54 = vmul.f32 1.442695, %v5885_v25 }
0x1911   : > { %v12918_v16 = vpop.eup %10684  ;;  %v5860_v31 = vpop.xlane.xlu1 %5859 }
0x1912   : > { %v5857_v35 = vpop.xlane.xlu0 %5856  ;;  %10696 = vpow2.f32 %v5909_v51  ;;  %v5888_v17 = vsub.f32 %v12834_v24, %v5860_v31  ;;  %v5930_v22 = vsel %vm896_vm1, %v12918_v16, 0.0 }
0x1913   : > { %v5887_v1 = vsub.f32 %v12836_v7, %v5857_v35  ;;  %v12924_v49 = vpop.eup %10686  ;;  %10698 = vpow2.f32 %v5907_v54  ;;  %5931 = vadd.xlane.f32.xlu1 %v5930_v22 }
0x1914   : > { %v5913_v46 = vmul.f32 1.442695, %v5888_v17  ;;  %v5927_v40 = vsel %vm896_vm1, %v12924_v49, 0.0 }
0x1915   : > { %v5911_v52 = vmul.f32 1.442695, %v5887_v1  ;;  %v5866_v28 = vpop.xlane.xlu1 %5865  ;;  %5928 = vadd.xlane.f32.xlu0 %v5927_v40 }
0x1916   : > { %v5863_v42 = vpop.xlane.xlu0 %5862  ;;  %10700 = vpow2.f32 %v5913_v46  ;;  %v5890_v24 = vsub.f32 %v12842_v19, %v5866_v28 }
0x1917   : > { %v5889_v7 = vsub.f32 %v12844_v11, %v5863_v42  ;;  %v12930_v48 = vpop.eup %10688  ;;  %10702 = vpow2.f32 %v5911_v52 }
0x1918   : > { %v12932_v59 = vpop.eup %10690  ;;  %v5917_v62 = vmul.f32 1.442695, %v5890_v24  ;;  %v5936_v18 = vsel %vm896_vm1, %v12930_v48, 0.0 }
0x1919   : > { %v5915_v4 = vmul.f32 1.442695, %v5889_v7  ;;  %v5872_v21 = vpop.xlane.xlu1 %5871  ;;  %5937 = vadd.xlane.f32.xlu1 %v5936_v18  ;;  %v5933_v9 = vsel %vm896_vm1, %v12932_v59, 0.0 }
0x191a   : > { %v5869_v25 = vpop.xlane.xlu0 %5868  ;;  %10704 = vpow2.f32 %v5917_v62  ;;  %v5892_v19 = vsub.f32 %v12850_v61, %v5872_v21  ;;  %5934 = vadd.xlane.f32.xlu0 %v5933_v9 }
0x191b   : > { %v5891_v11 = vsub.f32 %v12852_v2, %v5869_v25  ;;  %v12940_v51 = vpop.eup %10692  ;;  %10706 = vpow2.f32 %v5915_v4 }
0x191c   : > { %v12942_v54 = vpop.eup %10694  ;;  %v5921_v31 = vmul.f32 1.442695, %v5892_v19  ;;  %v5942_v17 = vsel %vm896_vm1, %v12940_v51, 0.0 }
0x191d   : > { %v5919_v35 = vmul.f32 1.442695, %v5891_v11  ;;  %v5878_v1 = vpop.xlane.xlu1 %5877  ;;  %5943 = vadd.xlane.f32.xlu1 %v5942_v17  ;;  %v5939_v22 = vsel %vm896_vm1, %v12942_v54, 0.0 }
0x191e   : > { %v5875_v46 = vpop.xlane.xlu0 %5874  ;;  %10708 = vpow2.f32 %v5921_v31  ;;  %v5894_v61 = vsub.f32 %v12858_v0, %v5878_v1  ;;  %5940 = vadd.xlane.f32.xlu0 %v5939_v22 }
0x191f   : > { %v5893_v2 = vsub.f32 %v12860_v50, %v5875_v46  ;;  %v12950_v52 = vpop.eup %10696  ;;  %10710 = vpow2.f32 %v5919_v35 }
0x1920   : > { %v12952_v40 = vpop.eup %10698  ;;  %v5925_v28 = vmul.f32 1.442695, %v5894_v61  ;;  %v5948_v24 = vsel %vm896_vm1, %v12950_v52, 0.0 }
0x1921   : > { %v5923_v42 = vmul.f32 1.442695, %v5893_v2  ;;  %v6406_v7 = vpop.xlane.xlu1 %6405  ;;  %5949 = vadd.xlane.f32.xlu1 %v5948_v24  ;;  %v5945_v62 = vsel %vm896_vm1, %v12952_v40, 0.0 }
0x1922   : > { %v6403_v4 = vpop.xlane.xlu0 %6402  ;;  %10712 = vpow2.f32 %v5925_v28  ;;  %v6414_v0 = vsub.f32 %v12866_v55, %v6406_v7  ;;  %5946 = vadd.xlane.f32.xlu0 %v5945_v62 }
0x1923   : > { %v12959_v50 = vpop.eup %10700  ;;  %10714 = vpow2.f32 %v5923_v42  ;;  %v6413_v9 = vsub.f32 %v12868_v15, %v6403_v4 }
0x1924   : > { %v12961_v18 = vpop.eup %10702  ;;  %v6419_v21 = vmul.f32 1.442695, %v6414_v0  ;;  %v5954_v25 = vsel %vm896_vm1, %v12959_v50, 0.0 }
0x1925   : > { %5955 = vadd.xlane.f32.xlu1 %v5954_v25  ;;  %v5951_v19 = vsel %vm896_vm1, %v12961_v18, 0.0  ;;  %v6417_v31 = vmul.f32 1.442695, %v6413_v9  ;;  %v6412_v0 = vpop.xlane.xlu1 %6411 }
0x1926   : > { %5952 = vadd.xlane.f32.xlu0 %v5951_v19  ;;  %10716 = vpow2.f32 %v6419_v21  ;;  %v6416_v21 = vsub.f32 %v12874_v45, %v6412_v0  ;;  %v6409_v25 = vpop.xlane.xlu0 %6408 }
0x1927   : > { %v12968_v11 = vpop.eup %10704  ;;  %10718 = vpow2.f32 %v6417_v31  ;;  %v6415_v19 = vsub.f32 %v12876_v13, %v6409_v25 }
0x1928   : > { %v12970_v55 = vpop.eup %10706  ;;  %v5960_v35 = vsel %vm896_vm1, %v12968_v11, 0.0  ;;  %v6423_v9 = vmul.f32 1.442695, %v6416_v21 }
0x1929   : > { %5961 = vadd.xlane.f32.xlu1 %v5960_v35  ;;  %v5957_v15 = vsel %vm896_vm1, %v12970_v55, 0.0 }
0x192a   : > { %5958 = vadd.xlane.f32.xlu0 %v5957_v15  ;;  %10720 = vpow2.f32 %v6423_v9  ;;  %v6421_v15 = vmul.f32 1.442695, %v6415_v19 }
0x192b   : > { %v12976_v17 = vpop.eup %10708 }
0x192c   : > { %v12978_v1 = vpop.eup %10710  ;;  %v5966_v22 = vsel %vm896_vm1, %v12976_v17, 0.0  ;;  %10722 = vpow2.f32 %v6421_v15 }
0x192d   : > { %5967 = vadd.xlane.f32.xlu1 %v5966_v22  ;;  %v5963_v46 = vsel %vm896_vm1, %v12978_v1, 0.0 }
0x192e   : > { %5964 = vadd.xlane.f32.xlu0 %v5963_v46 }
0x192f   : > { %v12984_v61 = vpop.eup %10712  ;;  %v6697_v31 = vpop.xlane.xlu1 %6696 }
0x1930   : > { %v5972_v2 = vsel %vm896_vm1, %v12984_v61, 0.0  ;;  %v12988_v28 = vpop.eup %10714  ;;  %v6705_v22 = vsub.f32 %v12882_v20, %v6697_v31 }
0x1931   : > { %5973 = vadd.xlane.f32.xlu1 %v5972_v2  ;;  %v5969_v42 = vsel %vm896_vm1, %v12988_v28, 0.0  ;;  %v6694_v35 = vpop.xlane.xlu0 %6693 }
0x1932   : > { %v6704_v45 = vsub.f32 %v12886_v38, %v6694_v35 }
0x1933   : > { %v12992_v24 = vpop.eup %10716  ;;  %v13009_v2 = vpop.permute.xlu1 %6738 }
0x1934   : > { %v6428_v7 = vsel %vm360_vm0, %v12992_v24, 0.0  ;;  %v12996_v62 = vpop.eup %10718 }
0x1935   : > { %5970 = vadd.xlane.f32.xlu1 %v5969_v42  ;;  %v6425_v4 = vsel %vm360_vm0, %v12996_v62, 0.0  ;;  %v13012_v42 = vpop.permute.xlu0 %6740 }
0x1937   : > { %v13007_v46 = vpop.eup %10720 }
0x1939   : > { %6429 = vadd.xlane.f32.xlu1 %v6428_v7  ;;  %v6434_v7 = vsel %vm360_vm0, %v13007_v46, 0.0  ;;  %v13018_v19 = vpop.eup %10722 }
0x193a   : > { %v6431_v38 = vsel %vm360_vm0, %v13018_v19, 0.0 }
0x193d   : > { %6426 = vadd.xlane.f32.xlu1 %v6425_v4  ;;  %v6708_v4 = vmul.f32 1.442695, %v6704_v45 }
0x1944   : > { %6736 = vrot.lane.b32.xlu0 %v14279_v29, %s10945_s27  ;;  %v6710_v29 = vmul.f32 1.442695, %v6705_v22 }
0x1946   : > { %10724 = vpow2.f32 %v6710_v29 }
0x1947   : > { %10726 = vpow2.f32 %v6708_v4 }
0x194e   : > { %6873 = vrot.lane.b32.xlu1 %v11352_v60, %s10943_s24 }
0x1953   : > { %v13022_v31 = vpop.eup %10724 }
0x1954   : > { %v6719_v35 = vsel %vm360_vm0, %v13022_v31, 0.0 }
0x1963   : > { %6435 = vadd.xlane.f32.xlu0 %v6434_v7 }
0x1964   : > { %v6703_v13 = vpop.xlane.xlu1 %6702 }
0x1965   : > { %v6707_v0 = vsub.f32 %v12894_v14, %v6703_v13  ;;  %v13026_v14 = vpop.eup %10726 }
0x1966   : > { %v6700_v20 = vpop.xlane.xlu0 %6699 }
0x1967   : > { %v6714_v21 = vmul.f32 1.442695, %v6707_v0  ;;  %v6706_v9 = vsub.f32 %v12896_v26, %v6700_v20  ;;  %v6716_v26 = vsel %vm360_vm0, %v13026_v14, 0.0 }
0x1969   : > { %10728 = vpow2.f32 %v6714_v21  ;;  %v6712_v25 = vmul.f32 1.442695, %v6706_v9 }
0x196b   : > { %10730 = vpow2.f32 %v6712_v25 }
0x1972   : > { %6432 = vadd.xlane.f32.xlu1 %v6431_v38 }
0x1976   : > { %6720 = vadd.xlane.f32.xlu1 %v6719_v35  ;;  %v13032_v15 = vpop.eup %10728 }
0x1977   : > { %v6725_v22 = vsel %vm360_vm0, %v13032_v15, 0.0 }
0x1978   : > { %v13038_v29 = vpop.eup %10730 }
0x1979   : > { %6879 = vrot.lane.b32.xlu0 %v11330_v41, %s10943_s24  ;;  %v6722_v45 = vsel %vm360_vm0, %v13038_v29, 0.0 }
0x197a   : > { %6717 = vadd.xlane.f32.xlu1 %v6716_v26 }
0x197d   : > { %6877 = vrot.lane.b32.xlu0 %v11325_v30, %s10943_s24 }
0x197e   : > { %6726 = vadd.xlane.f32.xlu1 %v6725_v22 }
0x1981   : > { %6875 = vrot.lane.b32.xlu0 %v11349_v56, %s10943_s24 }
0x1982   : > { %6723 = vadd.xlane.f32.xlu1 %v6722_v45 }
0x1985   : > { %6865 = vrot.lane.b32.xlu0 %v11388_v27, %s10944_s26 }
0x1989   : > { %6869 = vrot.lane.b32.xlu0 %v14220_v53, %s10944_s26 }
0x198d   : > { %7030 = vrot.lane.b32.xlu0 %v11325_v30, %s10945_s27 }
0x1993   : > { %6867 = vrot.lane.b32.xlu1 %v11399_v44, %s10944_s26 }
0x1997   : > { %6871 = vrot.lane.b32.xlu1 %v11409_v34, %s10944_s26 }
0x199b   : > { %7032 = vrot.lane.b32.xlu1 %v11330_v41, %s10945_s27 }
0x199c   : > { %v5932_v7 = vpop.xlane.xlu1 %5931 }
0x199d   : > { %10732 = vrcp.f32 %v5932_v7 }
0x199e   : > { %v5929_v13 = vpop.xlane.xlu0 %5928 }
0x199f   : > { %10734 = vrcp.f32 %v5929_v13  ;;  %7028 = vrot.lane.b32.xlu1 %v11349_v56, %s10945_s27 }
0x19a2   : > { %v5938_v27 = vpop.xlane.xlu1 %5937 }
0x19a3   : > { %10736 = vrcp.f32 %v5938_v27  ;;  %v5935_v53 = vpop.xlane.xlu0 %5934  ;;  %7026 = vrot.lane.b32.xlu1 %v11352_v60, %s10945_s27 }
0x19a4   : > { %10738 = vrcp.f32 %v5935_v53 }
0x19a6   : > { %v5944_v30 = vpop.xlane.xlu1 %5943 }
0x19a7   : > { %10740 = vrcp.f32 %v5944_v30  ;;  %v5941_v44 = vpop.xlane.xlu0 %5940 }
0x19a8   : > { %10742 = vrcp.f32 %v5941_v44 }
0x19aa   : > { %v5950_v34 = vpop.xlane.xlu1 %5949  ;;  %v10733_v41 = vpop.eup %10732 }
0x19ab   : > { %10744 = vrcp.f32 %v5950_v34  ;;  %v5947_v4 = vpop.xlane.xlu0 %5946  ;;  %v5978_v56 = vmul.f32 %v10733_v41, %v12918_v16 }
0x19ac   : > { %v10735_v0 = vpop.eup %10734  ;;  %10746 = vrcp.f32 %v5947_v4 }
0x19ad   : > { %v5976_v20 = vmul.f32 %v10735_v0, %v12924_v49 }
0x19ae   : > { %v5956_v21 = vpop.xlane.xlu1 %5955 }
0x19af   : > { %10748 = vrcp.f32 %v5956_v21  ;;  %v5953_v9 = vpop.xlane.xlu0 %5952  ;;  %10110 = vmatprep.mubr.msk.f32.mxu1 %vm896_vm1, %v5976_v20 }
0x19b0   : > { %v10737_v60 = vpop.eup %10736  ;;  %10750 = vrcp.f32 %v5953_v9  ;;  %10111 = vmatmul.mubr.msk.f32.vlgmr.msra.gmra.mxu1 %vm896_vm1, %v5978_v56 }
0x19b1   : > { %v10739_v25 = vpop.eup %10738  ;;  %10149 = vmatpush3.msra.mxu1 %v12785_v32  ;;  %v5982_v38 = vmul.f32 %v10737_v60, %v12930_v48 }
0x19b2   : > { %10150 = vmatprep.subr.mxu1 %v12902_v37  ;;  %v5962_v35 = vpop.xlane.xlu1 %5961  ;;  %v5980_v49 = vmul.f32 %v10739_v25, %v12932_v59 }
0x19b3   : > { %10752 = vrcp.f32 %v5962_v35  ;;  %10151 = vmatpush3.msra.mxu1 %v12902_v37  ;;  %v5959_v16 = vpop.xlane.xlu0 %5958 }
0x19b4   : > { %v10741_v26 = vpop.eup %10740  ;;  %10754 = vrcp.f32 %v5959_v16  ;;  %10113 = vmatprep.mubr.msk.f32.mxu1 %vm896_vm1, %v5980_v49  ;;  %10152 = vmatprep.subr.mxu1 %v12904_v63 }
0x19b5   : > { %v10743_v22 = vpop.eup %10742  ;;  %10114 = vmatmul.mubr.msk.f32.gmra.mxu1 %vm896_vm1, %v5982_v38  ;;  %v5986_v32 = vmul.f32 %v10741_v26, %v12940_v51 }
0x19b6   : > { %10153 = vmatpush3.msra.mxu1 %v12904_v63  ;;  %v5968_v48 = vpop.xlane.xlu1 %5967  ;;  %v5984_v59 = vmul.f32 %v10743_v22, %v12942_v54 }
0x19b7   : > { %10154 = vmatprep.subr.mxu1 %v12906_v6  ;;  %10756 = vrcp.f32 %v5968_v48  ;;  %v5965_v37 = vpop.xlane.xlu0 %5964 }
0x19b8   : > { %v10745_v45 = vpop.eup %10744  ;;  %10155 = vmatpush3.msra.mxu1 %v12906_v6  ;;  %10758 = vrcp.f32 %v5965_v37  ;;  %10116 = vmatprep.mubr.msk.f32.mxu1 %vm896_vm1, %v5984_v59 }
0x19b9   : > { %v10747_v7 = vpop.eup %10746  ;;  %10176 = vmatprep.subr.mxu1 %v12908_v43  ;;  %10117 = vmatmul.mubr.msk.f32.gmra.mxu1 %vm896_vm1, %v5986_v32  ;;  %v5990_v63 = vmul.f32 %v10745_v45, %v12950_v52 }
0x19ba   : > { %v5974_v51 = vpop.xlane.xlu1 %5973  ;;  %v5988_v54 = vmul.f32 %v10747_v7, %v12952_v40 }
0x19bb   : > { %10760 = vrcp.f32 %v5974_v51 }
0x19bc   : > { %v10749_v13 = vpop.eup %10748  ;;  %10119 = vmatprep.mubr.msk.f32.mxu1 %vm896_vm1, %v5988_v54 }
0x19bd   : > { %v10751_v27 = vpop.eup %10750  ;;  %10120 = vmatmul.mubr.msk.f32.gmra.mxu1 %vm896_vm1, %v5990_v63  ;;  %v5994_v6 = vmul.f32 %v10749_v13, %v12959_v50 }
0x19be   : > { %v5971_v53 = vpop.xlane.xlu1 %5970  ;;  %v5992_v30 = vmul.f32 %v10751_v27, %v12961_v18 }
0x19bf   : > { %10762 = vrcp.f32 %v5971_v53 }
0x19c0   : > { %v10753_v44 = vpop.eup %10752  ;;  %10122 = vmatprep.mubr.msk.f32.mxu1 %vm896_vm1, %v5992_v30 }
0x19c1   : > { %v10755_v52 = vpop.eup %10754  ;;  %10123 = vmatmul.mubr.msk.f32.gmra.mxu1 %vm896_vm1, %v5994_v6  ;;  %v5998_v40 = vmul.f32 %v10753_v44, %v12968_v11 }
0x19c2   : > { %v6430_v34 = vpop.xlane.xlu1 %6429  ;;  %v5996_v41 = vmul.f32 %v10755_v52, %v12970_v55 }
0x19c3   : > { %10764 = vrcp.f32 %v6430_v34 }
0x19c4   : > { %v10757_v4 = vpop.eup %10756  ;;  %10125 = vmatprep.mubr.msk.f32.mxu1 %vm896_vm1, %v5996_v41 }
0x19c5   : > { %v10759_v50 = vpop.eup %10758  ;;  %10126 = vmatmul.mubr.msk.f32.gmra.mxu1 %vm896_vm1, %v5998_v40  ;;  %v6002_v18 = vmul.f32 %v10757_v4, %v12976_v17 }
0x19c6   : > { %v6427_v0 = vpop.xlane.xlu1 %6426  ;;  %v6000_v20 = vmul.f32 %v10759_v50, %v12978_v1 }
0x19c7   : > { %10766 = vrcp.f32 %v6427_v0 }
0x19c8   : > { %10128 = vmatprep.mubr.msk.f32.mxu1 %vm896_vm1, %v6000_v20  ;;  %v10761_v11 = vpop.eup %10760 }
0x19c9   : > { %10129 = vmatmul.mubr.msk.f32.gmra.mxu1 %vm896_vm1, %v6002_v18  ;;  %v6006_v21 = vmul.f32 %v10761_v11, %v12984_v61  ;;  %v6737_v61 = vpop.permute.xlu0 %6736 }
0x19cc   : > { %v10763_v56 = vpop.eup %10762 }
0x19cd   : > { %v6004_v55 = vmul.f32 %v10763_v56, %v12988_v28 }
0x19cf   : > { %10131 = vmatprep.mubr.msk.f32.mxu1 %vm896_vm1, %v6004_v55 }
0x19d0   : > { %10132 = vmatmul.mubr.msk.f32.gmra.mxu1 %vm896_vm1, %v6006_v21  ;;  %v10765_v17 = vpop.eup %10764 }
0x19d1   : > { %v6440_v1 = vmul.f32 %v10765_v17, %v12992_v24  ;;  %v6874_v24 = vpop.permute.xlu1 %6873 }
0x19d4   : > { %v10767_v9 = vpop.eup %10766 }
0x19d5   : > { %v6438_v60 = vmul.f32 %v10767_v9, %v12996_v62 }
0x19d7   : > { %10156 = vmatprep.mubr.msk.f32.mxu1 %vm360_vm0, %v6438_v60 }
0x19d8   : > { %10157 = vmatmul.mubr.msk.f32.vlgmr.msra.gmra.mxu1 %vm360_vm0, %v6440_v1 }
0x19d9   : > { %10177 = vmatpush3.msra.mxu1 %v12908_v43 }
0x19da   : > { %10178 = vmatprep.subr.mxu1 %v13012_v42 }
0x19db   : > { %10179 = vmatpush3.msra.mxu1 %v13012_v42 }
0x19dc   : > { %10180 = vmatprep.subr.mxu1 %v13009_v2 }
0x19dd   : > { %10181 = vmatpush3.msra.mxu1 %v13009_v2 }
0x19de   : > { %10182 = vmatprep.subr.mxu1 %v6737_v61 }
0x19df   : > { %10183 = vmatpush3.msra.mxu1 %v6737_v61 }
0x19ec   : > { %v6436_v28 = vpop.xlane.xlu0 %6435 }
0x19ed   : > { %10768 = vrcp.f32 %v6436_v28 }
0x19f0   : > { %v6880_v62 = vpop.permute.xlu0 %6879 }
0x19f1   : > { %10190 = vmatprep.subr.msk.mxu1 %vm896_vm1, %v6880_v62 }
0x19f4   : > { %v6878_v38 = vpop.permute.xlu0 %6877 }
0x19f8   : > { %v6876_v42 = vpop.permute.xlu0 %6875 }
0x19fa   : > { %v10769_v16 = vpop.eup %10768 }
0x19fb   : > { %v6433_v25 = vpop.xlane.xlu1 %6432  ;;  %v6444_v32 = vmul.f32 %v10769_v16, %v13007_v46 }
0x19fc   : > { %10770 = vrcp.f32 %v6433_v25  ;;  %v6866_v48 = vpop.permute.xlu0 %6865 }
0x19ff   : > { %v6721_v43 = vpop.xlane.xlu1 %6720 }
0x1a00   : > { %10772 = vrcp.f32 %v6721_v43  ;;  %v6870_v51 = vpop.permute.xlu0 %6869 }
0x1a03   : > { %v6718_v35 = vpop.xlane.xlu1 %6717 }
0x1a04   : > { %10774 = vrcp.f32 %v6718_v35  ;;  %v7031_v27 = vpop.permute.xlu0 %7030 }
0x1a07   : > { %v6727_v49 = vpop.xlane.xlu1 %6726 }
0x1a08   : > { %10776 = vrcp.f32 %v6727_v49 }
0x1a09   : > { %v10771_v26 = vpop.eup %10770 }
0x1a0a   : > { %v6442_v2 = vmul.f32 %v10771_v26, %v13018_v19 }
0x1a0b   : > { %v6724_v22 = vpop.xlane.xlu1 %6723 }
0x1a0c   : > { %10778 = vrcp.f32 %v6724_v22  ;;  %10159 = vmatprep.mubr.msk.f32.mxu1 %vm360_vm0, %v6442_v2 }
0x1a0d   : > { %10160 = vmatmul.mubr.msk.f32.gmra.mxu1 %vm360_vm0, %v6444_v32  ;;  %v10773_v37 = vpop.eup %10772 }
0x1a0e   : > { %v6731_v63 = vmul.f32 %v10773_v37, %v13022_v31 }
0x1a0f   : > { %v6868_v59 = vpop.permute.xlu1 %6867 }
0x1a11   : > { %v10775_v45 = vpop.eup %10774 }
0x1a12   : > { %v6729_v7 = vmul.f32 %v10775_v45, %v13026_v14 }
0x1a13   : > { %v6872_v54 = vpop.permute.xlu1 %6871 }
0x1a14   : > { %10184 = vmatprep.mubr.msk.f32.mxu1 %vm360_vm0, %v6729_v7 }
0x1a15   : > { %10185 = vmatmul.mubr.msk.f32.vlgmr.msra.gmra.mxu1 %vm360_vm0, %v6731_v63  ;;  %v10777_v19 = vpop.eup %10776 }
0x1a16   : > { %10191 = vmatpush3.xpose.msk.msra.mxu1 %vm896_vm1, %v6880_v62  ;;  %v6735_v6 = vmul.f32 %v10777_v19, %v13032_v15 }
0x1a17   : > { %10192 = vmatprep.subr.msk.mxu1 %vm896_vm1, %v6878_v38  ;;  %v7033_v46 = vpop.permute.xlu1 %7032 }
0x1a18   : > { %10204 = vmatprep.subr.mxu0 %v7033_v46 }
0x1a19   : > { %v10779_v13 = vpop.eup %10778  ;;  %10205 = vmatpush3.msra.mxu0 %v7033_v46 }
0x1a1a   : > { %10193 = vmatpush3.xpose.msk.msra.mxu1 %vm896_vm1, %v6878_v38  ;;  %10206 = vmatprep.subr.mxu0 %v7031_v27  ;;  %v6733_v31 = vmul.f32 %v10779_v13, %v13038_v29 }
0x1a1b   : > { %10194 = vmatprep.subr.msk.mxu1 %vm896_vm1, %v6876_v42  ;;  %v7029_v14 = vpop.permute.xlu1 %7028  ;;  %10207 = vmatpush3.msra.mxu0 %v7031_v27 }
0x1a1c   : > { %10187 = vmatprep.mubr.msk.f32.mxu1 %vm360_vm0, %v6733_v31  ;;  %10208 = vmatprep.subr.mxu0 %v7029_v14 }
0x1a1d   : > { %10188 = vmatmul.mubr.msk.f32.gmra.mxu1 %vm360_vm0, %v6735_v6  ;;  %10209 = vmatpush3.msra.mxu0 %v7029_v14 }
0x1a1e   : > { %10195 = vmatpush3.xpose.msk.msra.mxu1 %vm896_vm1, %v6876_v42  ;;  %10198 = vmatprep.mubr.msk.f32.mxu1 %vm896_vm1, %v6866_v48 }
0x1a1f   : > { %10196 = vmatprep.subr.msk.mxu1 %vm896_vm1, %v6874_v24  ;;  %v7027_v53 = vpop.permute.xlu1 %7026 }
0x1a20   : > { %10210 = vmatprep.subr.mxu0 %v7027_v53 }
0x1a21   : > { %10211 = vmatpush3.msra.mxu0 %v7027_v53 }
0x1a22   : > { %10197 = vmatpush3.xpose.msk.msra.mxu1 %vm896_vm1, %v6874_v24 }
0x1a25   : > { %10199 = vmatmul.mubr.msk.f32.vlgmr.msra.gmra.mxu1 %vm896_vm1, %v6868_v59 }
0x1a26   : > { %10201 = vmatprep.mubr.msk.f32.mxu1 %vm896_vm1, %v6870_v51 }
0x1a29   : > { %10202 = vmatmul.mubr.msk.f32.gmra.mxu1 %vm896_vm1, %v6872_v54 }
0x1a70   : > { %v13133_v15 = vpop.f32.mrf.mxu1 }
0x1a72   : > { %v13135_v29 = vpop.f32.mrf.mxu1 }
0x1a75   : > { %v13137_v30 = vpop.f32.mrf.mxu1 }
0x1a77   : > { %v13139_v44 = vpop.f32.mrf.mxu1 }
0x1a79   : > { %v13141_v52 = vpop.f32.mrf.mxu1 }
0x1a7b   : > { %v13143_v40 = vpop.f32.mrf.mxu1 }
0x1a7d   : > { %v13145_v34 = vpop.f32.mrf.mxu1 }
0x1a7f   : > { %v13147_v41 = vpop.f32.mrf.mxu1 }
0x1a81   : > { %v13149_v4 = vpop.f32.mrf.mxu1 }
0x1a83   : > { %v13151_v50 = vpop.f32.mrf.mxu1 }
0x1a85   : > { %v13153_v18 = vpop.f32.mrf.mxu1 }
0x1a87   : > { %v13155_v0 = vpop.f32.mrf.mxu1 }
0x1a89   : > { %v13157_v20 = vpop.f32.mrf.mxu1 }
0x1a8b   : > { %v13159_v11 = vpop.f32.mrf.mxu1 }
0x1a90   : > { %v13161_v56 = vpop.f32.mrf.mxu1 }
0x1a92   : > { %v13163_v55 = vpop.f32.mrf.mxu1 }
0x1a98   : > { %v13165_v21 = vpop.f32.mrf.mxu1 }
0x1a9a   : > { %v13167_v17 = vpop.f32.mrf.mxu1 }
0x1acd   : > { %v13169_v9 = vpop.f32.mrf.mxu1 }
0x1acf   : > { %v13171_v60 = vpop.f32.mrf.mxu1 }
0x1ad5   : > { %v13173_v1 = vpop.f32.mrf.mxu1 }
0x1ad7   : > { %v13175_v61 = vpop.f32.mrf.mxu1 }
0x1add   : > { %v13177_v28 = vpop.f32.mrf.mxu1 }
0x1adf   : > { %v13179_v62 = vpop.f32.mrf.mxu1 }
0x1ae5   : > { %v10200_v24 = vpop.f32.mrf.mxu1 }
0x1ae6   : > { %v6985_v25 = vsel %vm360_vm0, %v10200_v24, -inf }
0x1ae7   : > { %6986 = vmax.xlane.f32.xlu1 %v6985_v25  ;;  %v6963_v43 = vpop.f32.mrf.mxu1 }
0x1ae8   : > { %v6982_v38 = vsel %vm360_vm0, %v6963_v43, -inf }
0x1ae9   : > { %6983 = vmax.xlane.f32.xlu0 %v6982_v38  ;;  %v10203_v35 = vpop.f32.mrf.mxu1 }
0x1aea   : > { %v6991_v42 = vsel %vm360_vm0, %v10203_v35, -inf }
0x1aeb   : > { %v6973_v49 = vpop.f32.mrf.mxu1 }
0x1aec   : > { %v6988_v16 = vsel %vm360_vm0, %v6973_v49, -inf }
0x1aed   : > { %6992 = vmax.xlane.f32.xlu0 %v6991_v42 }
0x1af1   : > { %6989 = vmax.xlane.f32.xlu0 %v6988_v16 }
0x1af8   : > { %7167 = vrot.lane.b32.xlu1 %v11433_v23, %s10943_s24 }
0x1b07   : > { %7169 = vrot.lane.b32.xlu0 %v11441_v33, %s10943_s24 }
0x1b70   : > { %v6987_v26 = vpop.xlane.xlu1 %6986 }
0x1b71   : > { %v6995_v2 = vsub.f32 %v10200_v24, %v6987_v26 }
0x1b72   : > { %v6984_v22 = vpop.xlane.xlu0 %6983 }
0x1b73   : > { %v7000_v32 = vmul.f32 1.442695, %v6995_v2  ;;  %v6994_v48 = vsub.f32 %v6963_v43, %v6984_v22 }
0x1b74   : > { %v7168_v25 = vpop.permute.xlu1 %7167 }
0x1b75   : > { %10780 = vpow2.f32 %v7000_v32  ;;  %v6998_v59 = vmul.f32 1.442695, %v6994_v48 }
0x1b76   : > { %v6993_v37 = vpop.xlane.xlu0 %6992 }
0x1b77   : > { %10782 = vpow2.f32 %v6998_v59  ;;  %v6997_v19 = vsub.f32 %v10203_v35, %v6993_v37 }
0x1b79   : > { %v7004_v27 = vmul.f32 1.442695, %v6997_v19 }
0x1b7a   : > { %v6990_v45 = vpop.xlane.xlu0 %6989 }
0x1b7b   : > { %v6996_v13 = vsub.f32 %v6973_v49, %v6990_v45  ;;  %10784 = vpow2.f32 %v7004_v27 }
0x1b7d   : > { %v7002_v31 = vmul.f32 1.442695, %v6996_v13 }
0x1b7e   : > { %v7170_v7 = vpop.permute.xlu0 %7169 }
0x1b7f   : > { %10218 = vmatprep.subr.msk.mxu0 %vm896_vm1, %v7170_v7  ;;  %10786 = vpow2.f32 %v7002_v31 }
0x1b82   : > { %v10781_v63 = vpop.eup %10780 }
0x1b83   : > { %v7009_v51 = vsel %vm360_vm0, %v10781_v63, 0.0 }
0x1b84   : > { %v10783_v54 = vpop.eup %10782  ;;  %7010 = vadd.xlane.f32.xlu0 %v7009_v51 }
0x1b85   : > { %v7006_v46 = vsel %vm360_vm0, %v10783_v54, 0.0 }
0x1b86   : > { %7007 = vadd.xlane.f32.xlu1 %v7006_v46 }
0x1b88   : > { %v10785_v14 = vpop.eup %10784 }
0x1b89   : > { %v7015_v53 = vsel %vm360_vm0, %v10785_v14, 0.0 }
0x1b8c   : > { %v10787_v6 = vpop.eup %10786 }
0x1b8d   : > { %v7012_v24 = vsel %vm360_vm0, %v10787_v6, 0.0 }
0x1b97   : > { %7163 = vrot.lane.b32.xlu1 %v11452_v3, %s10943_s24 }
0x1b9a   : > { %7165 = vrot.lane.b32.xlu0 %v11458_v47, %s10943_s24 }
0x1bb9   : > { %7016 = vadd.xlane.f32.xlu0 %v7015_v53 }
0x1bbb   : > { %7013 = vadd.xlane.f32.xlu1 %v7012_v24 }
0x1bcc   : > { %7157 = vrot.lane.b32.xlu1 %v11479_v57, %s10944_s26 }
0x1bcf   : > { %7155 = vrot.lane.b32.xlu0 %v11470_v8, %s10944_s26 }
0x1bd0   : > { %7161 = vrot.lane.b32.xlu1 %v11489_v36, %s10944_s26 }
0x1bd3   : > { %7159 = vrot.lane.b32.xlu0 %v14245_v10, %s10944_s26 }
0x1c0d   : > { %v7011_v43 = vpop.xlane.xlu0 %7010 }
0x1c0e   : > { %10788 = vrcp.f32 %v7011_v43 }
0x1c0f   : > { %v7008_v38 = vpop.xlane.xlu1 %7007 }
0x1c10   : > { %10790 = vrcp.f32 %v7008_v38 }
0x1c11   : > { %v7166_v8 = vpop.permute.xlu0 %7165 }
0x1c13   : > { %v7164_v57 = vpop.permute.xlu1 %7163 }
0x1c1b   : > { %v10789_v35 = vpop.eup %10788 }
0x1c1c   : > { %v7021_v16 = vmul.f32 %v10789_v35, %v10781_v63 }
0x1c1d   : > { %v10791_v42 = vpop.eup %10790 }
0x1c1e   : > { %v7019_v49 = vmul.f32 %v10791_v42, %v10783_v54 }
0x1c20   : > { %10212 = vmatprep.mubr.msk.f32.mxu0 %vm360_vm0, %v7019_v49 }
0x1c21   : > { %10213 = vmatmul.mubr.msk.f32.vlgmr.msra.gmra.mxu0 %vm360_vm0, %v7021_v16 }
0x1c22   : > { %10219 = vmatpush3.xpose.msk.msra.mxu0 %vm896_vm1, %v7170_v7 }
0x1c23   : > { %10220 = vmatprep.subr.msk.mxu0 %vm896_vm1, %v7168_v25 }
0x1c26   : > { %10221 = vmatpush3.xpose.msk.msra.mxu0 %vm896_vm1, %v7168_v25 }
0x1c27   : > { %10222 = vmatprep.subr.msk.mxu0 %vm896_vm1, %v7166_v8 }
0x1c2a   : > { %10223 = vmatpush3.xpose.msk.msra.mxu0 %vm896_vm1, %v7166_v8 }
0x1c2b   : > { %10224 = vmatprep.subr.msk.mxu0 %vm896_vm1, %v7164_v57 }
0x1c2e   : > { %10225 = vmatpush3.xpose.msk.msra.mxu0 %vm896_vm1, %v7164_v57 }
0x1c42   : > { %v7017_v36 = vpop.xlane.xlu0 %7016 }
0x1c43   : > { %10792 = vrcp.f32 %v7017_v36 }
0x1c44   : > { %v7014_v10 = vpop.xlane.xlu1 %7013 }
0x1c45   : > { %10794 = vrcp.f32 %v7014_v10 }
0x1c46   : > { %v7156_v32 = vpop.permute.xlu0 %7155 }
0x1c48   : > { %v7158_v59 = vpop.permute.xlu1 %7157 }
0x1c4a   : > { %v7160_v37 = vpop.permute.xlu0 %7159 }
0x1c4c   : > { %v7162_v45 = vpop.permute.xlu1 %7161 }
0x1c50   : > { %v10793_v26 = vpop.eup %10792 }
0x1c51   : > { %v7025_v48 = vmul.f32 %v10793_v26, %v10785_v14 }
0x1c52   : > { %v10795_v2 = vpop.eup %10794 }
0x1c53   : > { %v7023_v22 = vmul.f32 %v10795_v2, %v10787_v6 }
0x1c55   : > { %10215 = vmatprep.mubr.msk.f32.mxu0 %vm360_vm0, %v7023_v22 }
0x1c56   : > { %10216 = vmatmul.mubr.msk.f32.gmra.mxu0 %vm360_vm0, %v7025_v48 }
0x1c57   : > { %10226 = vmatprep.mubr.msk.f32.mxu0 %vm896_vm1, %v7156_v32 }
0x1c5a   : > { %10227 = vmatmul.mubr.msk.f32.vlgmr.msra.gmra.mxu0 %vm896_vm1, %v7158_v59 }
0x1c5b   : > { %10229 = vmatprep.mubr.msk.f32.mxu0 %vm896_vm1, %v7160_v37  ;;  %v14330_v37 = vld [vmem:[#allocation23_spill] sm:$0xff] }
0x1c5e   : > { %10230 = vmatmul.mubr.msk.f32.gmra.mxu0 %vm896_vm1, %v7162_v45  ;;  %v14331_v45 = vld [vmem:[#allocation25_spill] sm:$0xff] }
0x1ce1   : > { %v13221_v7 = vpop.f32.mrf.mxu0 }
0x1ce3   : > { %v13223_v63 = vpop.f32.mrf.mxu0 }
0x1d16   : > { %v13225_v51 = vpop.f32.mrf.mxu0 }
0x1d18   : > { %v13227_v54 = vpop.f32.mrf.mxu0 }
0x1d1a   : > { %v10228_v46 = vpop.f32.mrf.mxu0 }
0x1d1b   : > { %v7275_v19 = vsel %vm360_vm0, %v10228_v46, -inf }
0x1d1c   : > { %7276 = vmax.xlane.f32.xlu1 %v7275_v19  ;;  %v7253_v13 = vpop.f32.mrf.mxu0 }
0x1d1d   : > { %v7272_v27 = vsel %vm360_vm0, %v7253_v13, -inf }
0x1d1e   : > { %7273 = vmax.xlane.f32.xlu0 %v7272_v27  ;;  %v10231_v31 = vpop.f32.mrf.mxu0  ;;  %v14336_v27 = vld [vmem:[#allocation21_spill] sm:$0xff] }
0x1d1f   : > { %v7281_v53 = vsel %vm360_vm0, %v10231_v31, -inf }
0x1d20   : > { %v7263_v14 = vpop.f32.mrf.mxu0 }
0x1d21   : > { %v7278_v6 = vsel %vm360_vm0, %v7263_v14, -inf }
0x1d22   : > { %7279 = vmax.xlane.f32.xlu0 %v7278_v6  ;;  %v14339_v6 = vld [vmem:[#allocation26_spill] sm:$0xff] }
0x1d26   : > { %7282 = vmax.xlane.f32.xlu0 %v7281_v53  ;;  %v14340_v53 = vld [vmem:[#allocation28_spill] sm:$0xff] }
0x1d2d   : > { %7322 = vrot.lane.b32.xlu1 %v11441_v33, %s10945_s27 }
0x1d31   : > { %7318 = vrot.lane.b32.xlu1 %v11458_v47, %s10945_s27 }
0x1d35   : > { %7316 = vrot.lane.b32.xlu1 %v11452_v3, %s10945_s27 }
0x1d3c   : > { %7320 = vrot.lane.b32.xlu0 %v11433_v23, %s10945_s27 }
0x1da5   : > { %v7277_v24 = vpop.xlane.xlu1 %7276 }
0x1da6   : > { %v7285_v25 = vsub.f32 %v10228_v46, %v7277_v24  ;;  %v14341_v24 = vld [vmem:[#allocation30_spill] sm:$0xff] }
0x1da7   : > { %v7274_v43 = vpop.xlane.xlu0 %7273 }
0x1da8   : > { %v7290_v38 = vmul.f32 1.442695, %v7285_v25  ;;  %v7284_v35 = vsub.f32 %v7253_v13, %v7274_v43  ;;  %v14333_v13 = vld [vmem:[#allocation29_spill] sm:$0xff]  ;;  %v14342_v25 = vld [vmem:[#allocation32_spill] sm:$0xff] }
0x1da9   : > { %v7323_v42 = vpop.permute.xlu1 %7322 }
0x1daa   : > { %10796 = vpow2.f32 %v7290_v38  ;;  %v7288_v49 = vmul.f32 1.442695, %v7284_v35  ;;  %10232 = vmatprep.subr.mxu1 %v7323_v42 }
0x1dab   : > { %10233 = vmatpush3.msra.mxu1 %v7323_v42  ;;  %v7280_v33 = vpop.xlane.xlu0 %7279 }
0x1dac   : > { %10798 = vpow2.f32 %v7288_v49  ;;  %v7286_v48 = vsub.f32 %v7263_v14, %v7280_v33  ;;  %v14338_v14 = vld [vmem:[#allocation24_spill] sm:$0xff] }
0x1dad   : > { %v7319_v8 = vpop.permute.xlu1 %7318 }
0x1dae   : > { %v7292_v59 = vmul.f32 1.442695, %v7286_v48 }
0x1daf   : > { %v7283_v16 = vpop.xlane.xlu0 %7282 }
0x1db0   : > { %v7287_v47 = vsub.f32 %v10231_v31, %v7283_v16  ;;  %v14337_v31 = vld [vmem:[#allocation22_spill] sm:$0xff] }
0x1db1   : > { %v7317_v36 = vpop.permute.xlu1 %7316 }
0x1db2   : > { %v7294_v57 = vmul.f32 1.442695, %v7287_v47 }
0x1db3   : > { %v7321_v3 = vpop.permute.xlu0 %7320 }
0x1db4   : > { %10800 = vpow2.f32 %v7294_v57  ;;  %10234 = vmatprep.subr.mxu1 %v7321_v3 }
0x1db5   : > { %10235 = vmatpush3.msra.mxu1 %v7321_v3  ;;  %10802 = vpow2.f32 %v7292_v59 }
0x1db6   : > { %10236 = vmatprep.subr.mxu1 %v7319_v8 }
0x1db7   : > { %v10797_v23 = vpop.eup %10796  ;;  %10237 = vmatpush3.msra.mxu1 %v7319_v8 }
0x1db8   : > { %10238 = vmatprep.subr.mxu1 %v7317_v36  ;;  %v7299_v10 = vsel %vm360_vm0, %v10797_v23, 0.0 }
0x1db9   : > { %v10799_v26 = vpop.eup %10798  ;;  %7300 = vadd.xlane.f32.xlu0 %v7299_v10  ;;  %10239 = vmatpush3.msra.mxu1 %v7317_v36 }
0x1dba   : > { %v7296_v2 = vsel %vm360_vm0, %v10799_v26, 0.0 }
0x1dbb   : > { %7297 = vadd.xlane.f32.xlu1 %v7296_v2 }
0x1dc1   : > { %v10801_v22 = vpop.eup %10800 }
0x1dc2   : > { %v7305_v32 = vsel %vm360_vm0, %v10801_v22, 0.0  ;;  %v10803_v46 = vpop.eup %10802 }
0x1dc3   : > { %7306 = vadd.xlane.f32.xlu0 %v7305_v32  ;;  %v7302_v19 = vsel %vm360_vm0, %v10803_v46, 0.0 }
0x1dcc   : > { %7445 = vrot.lane.b32.xlu1 %v11581_v39, %s10944_s26  ;;  %v14332_v39 = vld [vmem:[#allocation27_spill] sm:$0xff] }
0x1dd9   : > { %7477 = vrot.lane.b32.xlu0 %v11366_v5, %s10944_s26 }
0x1ddd   : > { %7447 = vrot.lane.b32.xlu0 %v11590_v12, %s10944_s26  ;;  %v14334_v12 = vld [vmem:[#allocation31_spill] sm:$0xff] }
0x1de1   : > { %7451 = vrot.lane.b32.xlu0 %v11601_v58, %s10944_s26  ;;  %v14335_v58 = vld [vmem:[#allocation33_spill] sm:$0xff] }
0x1de5   : > { %7455 = vrot.lane.b32.xlu0 %v14330_v37, %s10944_s26 }
0x1de9   : > { %7459 = vrot.lane.b32.xlu0 %v14331_v45, %s10944_s26 }
0x1ded   : > { %7463 = vrot.lane.b32.xlu0 %v14332_v39, %s10944_s26 }
0x1df0   : > { %7303 = vadd.xlane.f32.xlu1 %v7302_v19 }
0x1df1   : > { %7467 = vrot.lane.b32.xlu0 %v14333_v13, %s10944_s26 }
0x1df5   : > { %7471 = vrot.lane.b32.xlu0 %v14334_v12, %s10944_s26 }
0x1df9   : > { %7475 = vrot.lane.b32.xlu0 %v14335_v58, %s10944_s26 }
0x1e01   : > { %7449 = vrot.lane.b32.xlu1 %v14336_v27, %s10944_s26 }
0x1e05   : > { %7453 = vrot.lane.b32.xlu1 %v14337_v31, %s10944_s26 }
0x1e09   : > { %7457 = vrot.lane.b32.xlu1 %v14338_v14, %s10944_s26 }
0x1e0d   : > { %7461 = vrot.lane.b32.xlu1 %v14339_v6, %s10944_s26 }
0x1e11   : > { %7465 = vrot.lane.b32.xlu1 %v14340_v53, %s10944_s26 }
0x1e15   : > { %7469 = vrot.lane.b32.xlu1 %v14341_v24, %s10944_s26 }
0x1e19   : > { %7473 = vrot.lane.b32.xlu1 %v14342_v25, %s10944_s26 }
0x1e42   : > { %v7301_v43 = vpop.xlane.xlu0 %7300 }
0x1e43   : > { %10804 = vrcp.f32 %v7301_v43 }
0x1e44   : > { %v7298_v38 = vpop.xlane.xlu1 %7297 }
0x1e45   : > { %10806 = vrcp.f32 %v7298_v38 }
0x1e48   : > { %v7446_v8 = vpop.permute.xlu1 %7445 }
0x1e4c   : > { %v7307_v35 = vpop.xlane.xlu0 %7306 }
0x1e4d   : > { %10808 = vrcp.f32 %v7307_v35 }
0x1e50   : > { %v7478_v42 = vpop.permute.xlu0 %7477  ;;  %v10805_v49 = vpop.eup %10804 }
0x1e51   : > { %10246 = vmatprep.subr.msk.mxu1 %vm896_vm1, %v7478_v42  ;;  %v7311_v47 = vmul.f32 %v10805_v49, %v10797_v23 }
0x1e52   : > { %v10807_v33 = vpop.eup %10806 }
0x1e53   : > { %v7309_v16 = vmul.f32 %v10807_v33, %v10799_v26 }
0x1e54   : > { %v7448_v3 = vpop.permute.xlu0 %7447 }
0x1e55   : > { %10240 = vmatprep.mubr.msk.f32.mxu1 %vm360_vm0, %v7309_v16 }
0x1e56   : > { %10241 = vmatmul.mubr.msk.f32.vlgmr.msra.gmra.mxu1 %vm360_vm0, %v7311_v47 }
0x1e57   : > { %10247 = vmatpush3.xpose.msk.msra.mxu1 %vm896_vm1, %v7478_v42 }
0x1e58   : > { %v7452_v2 = vpop.permute.xlu0 %7451 }
0x1e5a   : > { %v10809_v10 = vpop.eup %10808 }
0x1e5b   : > { %v7315_v37 = vmul.f32 %v10809_v10, %v10801_v22 }
0x1e5c   : > { %v7456_v23 = vpop.permute.xlu0 %7455 }
0x1e60   : > { %v7460_v45 = vpop.permute.xlu0 %7459 }
0x1e64   : > { %v7464_v22 = vpop.permute.xlu0 %7463 }
0x1e68   : > { %v7468_v19 = vpop.permute.xlu0 %7467 }
0x1e6c   : > { %v7472_v12 = vpop.permute.xlu0 %7471 }
0x1e70   : > { %v7476_v27 = vpop.permute.xlu0 %7475 }
0x1e79   : > { %v7304_v57 = vpop.xlane.xlu1 %7303 }
0x1e7a   : > { %10810 = vrcp.f32 %v7304_v57 }
0x1e7d   : > { %v7450_v36 = vpop.permute.xlu1 %7449 }
0x1e81   : > { %v7454_v59 = vpop.permute.xlu1 %7453 }
0x1e85   : > { %v7458_v26 = vpop.permute.xlu1 %7457 }
0x1e87   : > { %v10811_v32 = vpop.eup %10810 }
0x1e88   : > { %v7313_v48 = vmul.f32 %v10811_v32, %v10803_v46 }
0x1e89   : > { %v7462_v46 = vpop.permute.xlu1 %7461 }
0x1e8a   : > { %10243 = vmatprep.mubr.msk.f32.mxu1 %vm360_vm0, %v7313_v48 }
0x1e8b   : > { %10244 = vmatmul.mubr.msk.f32.gmra.mxu1 %vm360_vm0, %v7315_v37 }
0x1e8c   : > { %10248 = vmatprep.mubr.msk.f32.mxu1 %vm896_vm1, %v7446_v8 }
0x1e8d   : > { %v7466_v39 = vpop.permute.xlu1 %7465 }
0x1e8f   : > { %10249 = vmatmul.mubr.msk.f32.vlgmr.msra.gmra.mxu1 %vm896_vm1, %v7448_v3 }
0x1e90   : > { %10251 = vmatprep.mubr.msk.f32.mxu1 %vm896_vm1, %v7450_v36 }
0x1e91   : > { %v7470_v13 = vpop.permute.xlu1 %7469 }
0x1e93   : > { %10252 = vmatmul.mubr.msk.f32.gmra.mxu1 %vm896_vm1, %v7452_v2 }
0x1e94   : > { %10254 = vmatprep.mubr.msk.f32.mxu1 %vm896_vm1, %v7454_v59 }
0x1e95   : > { %v7474_v58 = vpop.permute.xlu1 %7473 }
0x1e97   : > { %10255 = vmatmul.mubr.msk.f32.gmra.mxu1 %vm896_vm1, %v7456_v23 }
0x1e98   : > { %10257 = vmatprep.mubr.msk.f32.mxu1 %vm896_vm1, %v7458_v26 }
0x1e9b   : > { %10258 = vmatmul.mubr.msk.f32.gmra.mxu1 %vm896_vm1, %v7460_v45 }
0x1e9c   : > { %10260 = vmatprep.mubr.msk.f32.mxu1 %vm896_vm1, %v7462_v46 }
0x1e9f   : > { %10261 = vmatmul.mubr.msk.f32.gmra.mxu1 %vm896_vm1, %v7464_v22 }
0x1ea0   : > { %10263 = vmatprep.mubr.msk.f32.mxu1 %vm896_vm1, %v7466_v39 }
0x1ea3   : > { %10264 = vmatmul.mubr.msk.f32.gmra.mxu1 %vm896_vm1, %v7468_v19 }
0x1ea4   : > { %10266 = vmatprep.mubr.msk.f32.mxu1 %vm896_vm1, %v7470_v13 }
0x1ea7   : > { %10267 = vmatmul.mubr.msk.f32.gmra.mxu1 %vm896_vm1, %v7472_v12 }
0x1ea8   : > { %10269 = vmatprep.mubr.msk.f32.mxu1 %vm896_vm1, %v7474_v58 }
0x1eab   : > { %10270 = vmatmul.mubr.msk.f32.gmra.mxu1 %vm896_vm1, %v7476_v27 }
0x1f16   : > { %v13301_v31 = vpop.f32.mrf.mxu1 }
0x1f18   : > { %v13303_v14 = vpop.f32.mrf.mxu1 }
0x1f4b   : > { %v13305_v6 = vpop.f32.mrf.mxu1 }
0x1f4c   : > { %14343 = vst [vmem:[#allocation17_spill] sm:$0xff] %v13305_v6 }
0x1f4d   : > { %v13307_v53 = vpop.f32.mrf.mxu1 }
0x1f4e   : > { %14344 = vst [vmem:[#allocation13_spill] sm:$0xff] %v13307_v53 }
0x1f4f   : > { %v10250_v24 = vpop.f32.mrf.mxu1 }
0x1f50   : > { %v7661_v25 = vsel %vm896_vm1, %v10250_v24, -inf }
0x1f51   : > { %7662 = vmax.xlane.f32.xlu0 %v7661_v25  ;;  %v7579_v43 = vpop.f32.mrf.mxu1 }
0x1f52   : > { %v7658_v38 = vsel %vm896_vm1, %v7579_v43, -inf }
0x1f53   : > { %7659 = vmax.xlane.f32.xlu1 %v7658_v38  ;;  %v10253_v35 = vpop.f32.mrf.mxu1 }
0x1f54   : > { %v7667_v49 = vsel %vm896_vm1, %v10253_v35, -inf }
0x1f55   : > { %v7589_v42 = vpop.f32.mrf.mxu1 }
0x1f56   : > { %v7664_v33 = vsel %vm896_vm1, %v7589_v42, -inf }
0x1f57   : > { %7668 = vmax.xlane.f32.xlu1 %v7667_v49  ;;  %7665 = vmax.xlane.f32.xlu0 %v7664_v33  ;;  %v10256_v16 = vpop.f32.mrf.mxu1 }
0x1f58   : > { %v7673_v8 = vsel %vm896_vm1, %v10256_v16, -inf }
0x1f59   : > { %v7599_v47 = vpop.f32.mrf.mxu1 }
0x1f5a   : > { %v7670_v57 = vsel %vm896_vm1, %v7599_v47, -inf }
0x1f5b   : > { %7674 = vmax.xlane.f32.xlu1 %v7673_v8  ;;  %7671 = vmax.xlane.f32.xlu0 %v7670_v57  ;;  %v10259_v3 = vpop.f32.mrf.mxu1 }
0x1f5c   : > { %v7679_v10 = vsel %vm896_vm1, %v10259_v3, -inf }
0x1f5d   : > { %v7609_v36 = vpop.f32.mrf.mxu1 }
0x1f5e   : > { %v7676_v2 = vsel %vm896_vm1, %v7609_v36, -inf }
0x1f5f   : > { %7680 = vmax.xlane.f32.xlu1 %v7679_v10  ;;  %7677 = vmax.xlane.f32.xlu0 %v7676_v2  ;;  %v13317_v32 = vpop.f32.mrf.mxu1 }
0x1f60   : > { %v7685_v59 = vsel %vm896_vm1, %v13317_v32, -inf }
0x1f61   : > { %v13319_v48 = vpop.f32.mrf.mxu1 }
0x1f62   : > { %v7682_v37 = vsel %vm896_vm1, %v13319_v48, -inf }
0x1f63   : > { %7686 = vmax.xlane.f32.xlu1 %v7685_v59  ;;  %7683 = vmax.xlane.f32.xlu0 %v7682_v37  ;;  %v13325_v23 = vpop.f32.mrf.mxu1 }
0x1f64   : > { %v7691_v45 = vsel %vm896_vm1, %v13325_v23, -inf }
0x1f65   : > { %v13327_v26 = vpop.f32.mrf.mxu1 }
0x1f66   : > { %v7688_v46 = vsel %vm896_vm1, %v13327_v26, -inf }
0x1f67   : > { %7692 = vmax.xlane.f32.xlu1 %v7691_v45  ;;  %7689 = vmax.xlane.f32.xlu0 %v7688_v46  ;;  %v13333_v22 = vpop.f32.mrf.mxu1 }
0x1f68   : > { %v7697_v19 = vsel %vm896_vm1, %v13333_v22, -inf }
0x1f69   : > { %v13335_v39 = vpop.f32.mrf.mxu1 }
0x1f6a   : > { %v7694_v13 = vsel %vm896_vm1, %v13335_v39, -inf }
0x1f6b   : > { %7698 = vmax.xlane.f32.xlu1 %v7697_v19  ;;  %7695 = vmax.xlane.f32.xlu0 %v7694_v13  ;;  %v13341_v12 = vpop.f32.mrf.mxu1 }
0x1f6c   : > { %v7703_v27 = vsel %vm896_vm1, %v13341_v12, -inf }
0x1f6d   : > { %v13343_v58 = vpop.f32.mrf.mxu1 }
0x1f6e   : > { %v7700_v25 = vsel %vm896_vm1, %v13343_v58, -inf }
0x1f6f   : > { %7704 = vmax.xlane.f32.xlu1 %v7703_v27  ;;  %7701 = vmax.xlane.f32.xlu0 %v7700_v25 }
0x1fda   : > { %v7663_v38 = vpop.xlane.xlu0 %7662 }
0x1fdb   : > { %v7707_v49 = vsub.f32 %v10250_v24, %v7663_v38 }
0x1fdc   : > { %v7660_v33 = vpop.xlane.xlu1 %7659 }
0x1fdd   : > { %v7724_v8 = vmul.f32 1.442695, %v7707_v49  ;;  %v7706_v57 = vsub.f32 %v7579_v43, %v7660_v33 }
0x1fdf   : > { %10812 = vpow2.f32 %v7724_v8  ;;  %v7722_v10 = vmul.f32 1.442695, %v7706_v57 }
0x1fe0   : > { %v7669_v2 = vpop.xlane.xlu1 %7668  ;;  %v7666_v59 = vpop.xlane.xlu0 %7665 }
0x1fe1   : > { %10814 = vpow2.f32 %v7722_v10  ;;  %v7709_v37 = vsub.f32 %v10253_v35, %v7669_v2  ;;  %v7708_v45 = vsub.f32 %v7589_v42, %v7666_v59 }
0x1fe3   : > { %v7728_v46 = vmul.f32 1.442695, %v7709_v37  ;;  %v7726_v19 = vmul.f32 1.442695, %v7708_v45 }
0x1fe4   : > { %v7675_v13 = vpop.xlane.xlu1 %7674  ;;  %v7672_v6 = vpop.xlane.xlu0 %7671 }
0x1fe5   : > { %10816 = vpow2.f32 %v7728_v46  ;;  %v7711_v53 = vsub.f32 %v10256_v16, %v7675_v13  ;;  %v7710_v27 = vsub.f32 %v7599_v47, %v7672_v6 }
0x1fe6   : > { %10818 = vpow2.f32 %v7726_v19 }
0x1fe7   : > { %v7732_v25 = vmul.f32 1.442695, %v7711_v53  ;;  %v7730_v24 = vmul.f32 1.442695, %v7710_v27 }
0x1fe8   : > { %v7681_v38 = vpop.xlane.xlu1 %7680  ;;  %v7678_v49 = vpop.xlane.xlu0 %7677 }
0x1fe9   : > { %10820 = vpow2.f32 %v7732_v25  ;;  %v7713_v43 = vsub.f32 %v10259_v3, %v7681_v38  ;;  %v7712_v33 = vsub.f32 %v7609_v36, %v7678_v49 }
0x1fea   : > { %10822 = vpow2.f32 %v7730_v24 }
0x1feb   : > { %v7736_v8 = vmul.f32 1.442695, %v7713_v43  ;;  %v7734_v57 = vmul.f32 1.442695, %v7712_v33 }
0x1fec   : > { %v13349_v35 = vpop.eup %10812  ;;  %v7687_v42 = vpop.xlane.xlu1 %7686 }
0x1fed   : > { %v7684_v10 = vpop.xlane.xlu0 %7683  ;;  %10824 = vpow2.f32 %v7736_v8  ;;  %v7715_v2 = vsub.f32 %v13317_v32, %v7687_v42  ;;  %v7757_v53 = vsel %vm896_vm1, %v13349_v35, 0.0 }
0x1fee   : > { %v7714_v6 = vsub.f32 %v13319_v48, %v7684_v10  ;;  %v13355_v16 = vpop.eup %10814  ;;  %10826 = vpow2.f32 %v7734_v57  ;;  %7758 = vadd.xlane.f32.xlu1 %v7757_v53 }
0x1fef   : > { %v7740_v47 = vmul.f32 1.442695, %v7715_v2  ;;  %v7754_v36 = vsel %vm896_vm1, %v13355_v16, 0.0 }
0x1ff0   : > { %v7738_v3 = vmul.f32 1.442695, %v7714_v6  ;;  %v7693_v59 = vpop.xlane.xlu1 %7692  ;;  %7755 = vadd.xlane.f32.xlu0 %v7754_v36 }
0x1ff1   : > { %v7690_v37 = vpop.xlane.xlu0 %7689  ;;  %10828 = vpow2.f32 %v7740_v47  ;;  %v7717_v32 = vsub.f32 %v13325_v23, %v7693_v59 }
0x1ff2   : > { %v7716_v48 = vsub.f32 %v13327_v26, %v7690_v37  ;;  %v13361_v45 = vpop.eup %10816  ;;  %10830 = vpow2.f32 %v7738_v3 }
0x1ff3   : > { %v13363_v46 = vpop.eup %10818  ;;  %v7744_v19 = vmul.f32 1.442695, %v7717_v32  ;;  %v7763_v27 = vsel %vm896_vm1, %v13361_v45, 0.0 }
0x1ff4   : > { %v7742_v13 = vmul.f32 1.442695, %v7716_v48  ;;  %v7699_v25 = vpop.xlane.xlu1 %7698  ;;  %7764 = vadd.xlane.f32.xlu1 %v7763_v27  ;;  %v7760_v24 = vsel %vm896_vm1, %v13363_v46, 0.0 }
0x1ff5   : > { %v7696_v38 = vpop.xlane.xlu0 %7695  ;;  %10832 = vpow2.f32 %v7744_v19  ;;  %v7719_v23 = vsub.f32 %v13333_v22, %v7699_v25  ;;  %7761 = vadd.xlane.f32.xlu0 %v7760_v24 }
0x1ff6   : > { %v7718_v26 = vsub.f32 %v13335_v39, %v7696_v38  ;;  %v13371_v49 = vpop.eup %10820  ;;  %10834 = vpow2.f32 %v7742_v13 }
0x1ff7   : > { %v13373_v43 = vpop.eup %10822  ;;  %v7748_v33 = vmul.f32 1.442695, %v7719_v23  ;;  %v7769_v57 = vsel %vm896_vm1, %v13371_v49, 0.0 }
0x1ff8   : > { %v7746_v8 = vmul.f32 1.442695, %v7718_v26  ;;  %v7705_v42 = vpop.xlane.xlu1 %7704  ;;  %7770 = vadd.xlane.f32.xlu1 %v7769_v57  ;;  %v7766_v10 = vsel %vm896_vm1, %v13373_v43, 0.0 }
0x1ff9   : > { %v7702_v2 = vpop.xlane.xlu0 %7701  ;;  %10836 = vpow2.f32 %v7748_v33  ;;  %v7721_v22 = vsub.f32 %v13341_v12, %v7705_v42  ;;  %7767 = vadd.xlane.f32.xlu0 %v7766_v10  ;;  %v14345_v42 = vld [vmem:[#allocation34_spill] sm:$0xff]  ;;  %v14346_v10 = vld [vmem:[#allocation19_spill] sm:$0xff] }
0x1ffa   : > { %v7720_v39 = vsub.f32 %v13343_v58, %v7702_v2  ;;  %v13381_v6 = vpop.eup %10824  ;;  %10838 = vpow2.f32 %v7746_v8  ;;  %v14347_v2 = vld [vmem:[#allocation49_spill] sm:$0xff] }
0x1ffb   : > { %v13383_v53 = vpop.eup %10826  ;;  %v7775_v3 = vsel %vm896_vm1, %v13381_v6, 0.0  ;;  %v7752_v36 = vmul.f32 1.442695, %v7721_v22  ;;  %v14348_v22 = vld [vmem:[#allocation50_spill] sm:$0xff] }
0x1ffc   : > { %v7750_v47 = vmul.f32 1.442695, %v7720_v39  ;;  %7776 = vadd.xlane.f32.xlu1 %v7775_v3  ;;  %v7772_v59 = vsel %vm896_vm1, %v13383_v53, 0.0  ;;  %v14349_v39 = vld [vmem:[#allocation5_spill] sm:$0xff] }
0x1ffd   : > { %7773 = vadd.xlane.f32.xlu0 %v7772_v59  ;;  %v14352_v3 = vld [vmem:[#allocation73_spill] sm:$0xff]  ;;  %v14354_v59 = vld [vmem:[#allocation52_spill] sm:$0xff] }
0x1ffe   : > { %v13389_v37 = vpop.eup %10828  ;;  %10840 = vpow2.f32 %v7750_v47  ;;  %v14350_v47 = vld [vmem:[#allocation8_spill] sm:$0xff] }
0x1fff   : > { %v13391_v12 = vpop.eup %10830  ;;  %v7781_v58 = vsel %vm896_vm1, %v13389_v37, 0.0  ;;  %10842 = vpow2.f32 %v7752_v36  ;;  %v14353_v36 = vld [vmem:[#allocation72_spill] sm:$0xff] }
0x2000   : > { %7782 = vadd.xlane.f32.xlu1 %v7781_v58  ;;  %v7778_v32 = vsel %vm896_vm1, %v13391_v12, 0.0  ;;  %v14355_v58 = vld [vmem:[#allocation35_spill] sm:$0xff] }
0x2001   : > { %7779 = vadd.xlane.f32.xlu0 %v7778_v32  ;;  %v14356_v32 = vld [vmem:[#allocation3_spill] sm:$0xff] }
0x2002   : > { %v13397_v48 = vpop.eup %10832 }
0x2003   : > { %v13399_v19 = vpop.eup %10834  ;;  %v7787_v13 = vsel %vm896_vm1, %v13397_v48, 0.0 }
0x2004   : > { %7788 = vadd.xlane.f32.xlu1 %v7787_v13  ;;  %v7784_v27 = vsel %vm896_vm1, %v13399_v19, 0.0  ;;  %v14358_v13 = vld [vmem:[#allocation75_spill] sm:$0xff] }
0x2005   : > { %7785 = vadd.xlane.f32.xlu0 %v7784_v27  ;;  %v14359_v27 = vld [vmem:[#allocation38_spill] sm:$0xff] }
0x2006   : > { %v13405_v25 = vpop.eup %10836 }
0x2007   : > { %v13407_v24 = vpop.eup %10838  ;;  %v7793_v38 = vsel %vm896_vm1, %v13405_v25, 0.0 }
0x2008   : > { %7794 = vadd.xlane.f32.xlu1 %v7793_v38  ;;  %v7790_v23 = vsel %vm896_vm1, %v13407_v24, 0.0  ;;  %v14362_v38 = vld [vmem:[#allocation54_spill] sm:$0xff] }
0x2009   : > { %7791 = vadd.xlane.f32.xlu0 %v7790_v23  ;;  %v14363_v23 = vld [vmem:[#allocation37_spill] sm:$0xff] }
0x200b   : > { %v13413_v26 = vpop.eup %10840 }
0x200c   : > { %v7796_v33 = vsel %vm896_vm1, %v13413_v26, 0.0  ;;  %v13417_v8 = vpop.eup %10842 }
0x200d   : > { %7797 = vadd.xlane.f32.xlu1 %v7796_v33  ;;  %v7799_v57 = vsel %vm896_vm1, %v13417_v8, 0.0  ;;  %v14366_v33 = vld [vmem:[#allocation77_spill] sm:$0xff] }
0x2011   : > { %7800 = vadd.xlane.f32.xlu1 %v7799_v57  ;;  %v14367_v57 = vld [vmem:[#allocation40_spill] sm:$0xff] }
0x201f   : > { %7834 = vrot.lane.b32.xlu0 %v11366_v5, %s10943_s24  ;;  %v14351_v5 = vld [vmem:[#allocation36_spill] sm:$0xff] }
0x2022   : > { %2565 = vrot.lane.b32.xlu1 %v14345_v42, %s10946_s29  ;;  %v14370_v42 = vld [vmem:[#allocation56_spill] sm:$0xff] }
0x2023   : > { %2567 = vrot.lane.b32.xlu0 %v14346_v10, %s10946_s29  ;;  %v14371_v10 = vld [vmem:[#allocation39_spill] sm:$0xff] }
0x2026   : > { %2906 = vrot.lane.b32.xlu1 %v14347_v2, %s10947_s11  ;;  %v14374_v2 = vld [vmem:[#allocation79_spill] sm:$0xff] }
0x2027   : > { %2904 = vrot.lane.b32.xlu0 %v14348_v22, %s10947_s11  ;;  %v14375_v22 = vld [vmem:[#allocation42_spill] sm:$0xff] }
0x202a   : > { %4394 = vrot.lane.b32.xlu1 %v14349_v39, %s10945_s27 }
0x202b   : > { %4392 = vrot.lane.b32.xlu0 %v14350_v47, %s10945_s27  ;;  %v14377_v47 = vld [vmem:[#allocation78_spill] sm:$0xff] }
0x202e   : > { %2569 = vrot.lane.b32.xlu1 %v14351_v5, %s10946_s29 }
0x202f   : > { %4731 = vrot.lane.b32.xlu0 %v14352_v3, %s10948_s12  ;;  %v14378_v3 = vld [vmem:[#allocation57_spill] sm:$0xff] }
0x2032   : > { %6219 = vrot.lane.b32.xlu1 %v13135_v29, %s10942_s23  ;;  %v14357_v29 = vld [vmem:[#allocation51_spill] sm:$0xff] }
0x2033   : > { %4733 = vrot.lane.b32.xlu0 %v14353_v36, %s10948_s12  ;;  %v14379_v36 = vld [vmem:[#allocation41_spill] sm:$0xff] }
0x2036   : > { %2908 = vrot.lane.b32.xlu1 %v14354_v59, %s10947_s11 }
0x2037   : > { %2571 = vrot.lane.b32.xlu0 %v14355_v58, %s10946_s29 }
0x203a   : > { %6558 = vrot.lane.b32.xlu1 %v13167_v17, %s10949_s13  ;;  %v14360_v17 = vld [vmem:[#allocation7_spill] sm:$0xff] }
0x203b   : > { %6221 = vrot.lane.b32.xlu0 %v13133_v15, %s10942_s23  ;;  %v14361_v15 = vld [vmem:[#allocation74_spill] sm:$0xff] }
0x203e   : > { %4396 = vrot.lane.b32.xlu1 %v14356_v32, %s10945_s27  ;;  %v14380_v32 = vld [vmem:[#allocation65_spill] sm:$0xff] }
0x203f   : > { %2910 = vrot.lane.b32.xlu0 %v14357_v29, %s10947_s11 }
0x2042   : > { %4735 = vrot.lane.b32.xlu1 %v14358_v13, %s10948_s12 }
0x2043   : > { %6560 = vrot.lane.b32.xlu0 %v13165_v21, %s10949_s13  ;;  %v14364_v21 = vld [vmem:[#allocation4_spill] sm:$0xff] }
0x2046   : > { %2573 = vrot.lane.b32.xlu1 %v14359_v27, %s10946_s29  ;;  %v14381_v27 = vld [vmem:[#allocation20_spill] sm:$0xff] }
0x2047   : > { %4398 = vrot.lane.b32.xlu0 %v14360_v17, %s10945_s27 }
0x204a   : > { %6223 = vrot.lane.b32.xlu1 %v13139_v44, %s10942_s23  ;;  %v14365_v44 = vld [vmem:[#allocation53_spill] sm:$0xff] }
0x204b   : > { %4737 = vrot.lane.b32.xlu0 %v14361_v15, %s10948_s12 }
0x204e   : > { %3195 = vrot.lane.b32.xlu1 %v14362_v38, %s10947_s11 }
0x204f   : > { %2575 = vrot.lane.b32.xlu0 %v14363_v23, %s10946_s29  ;;  %v14383_v23 = vld [vmem:[#allocation44_spill] sm:$0xff] }
0x2052   : > { %6562 = vrot.lane.b32.xlu1 %v13171_v60, %s10949_s13  ;;  %v14368_v60 = vld [vmem:[#allocation10_spill] sm:$0xff] }
0x2053   : > { %6225 = vrot.lane.b32.xlu0 %v13137_v30, %s10942_s23  ;;  %v14369_v30 = vld [vmem:[#allocation76_spill] sm:$0xff] }
0x2056   : > { %4400 = vrot.lane.b32.xlu1 %v14364_v21, %s10945_s27 }
0x2057   : > { %3197 = vrot.lane.b32.xlu0 %v14365_v44, %s10947_s11 }
0x205a   : > { %5022 = vrot.lane.b32.xlu1 %v14366_v33, %s10948_s12 }
0x205b   : > { %6564 = vrot.lane.b32.xlu0 %v13169_v9, %s10949_s13  ;;  %v14372_v9 = vld [vmem:[#allocation11_spill] sm:$0xff] }
0x205e   : > { %2577 = vrot.lane.b32.xlu1 %v14367_v57, %s10946_s29  ;;  %v14385_v57 = vld [vmem:[#allocation80_spill] sm:$0xff] }
0x205f   : > { %4402 = vrot.lane.b32.xlu0 %v14368_v60, %s10945_s27 }
0x2062   : > { %6227 = vrot.lane.b32.xlu1 %v13143_v40, %s10942_s23  ;;  %v14373_v40 = vld [vmem:[#allocation55_spill] sm:$0xff] }
0x2063   : > { %5024 = vrot.lane.b32.xlu0 %v14369_v30, %s10948_s12  ;;  %v14386_v30 = vld [vmem:[#allocation59_spill] sm:$0xff] }
0x2066   : > { %3199 = vrot.lane.b32.xlu1 %v14370_v42, %s10947_s11 }
0x2067   : > { %2579 = vrot.lane.b32.xlu0 %v14371_v10, %s10946_s29 }
0x206a   : > { %6849 = vrot.lane.b32.xlu1 %v13175_v61, %s10949_s13  ;;  %v14376_v61 = vld [vmem:[#allocation9_spill] sm:$0xff] }
0x206b   : > { %6229 = vrot.lane.b32.xlu0 %v13141_v52, %s10942_s23 }
0x206e   : > { %4404 = vrot.lane.b32.xlu1 %v14372_v9, %s10945_s27 }
0x206f   : > { %3201 = vrot.lane.b32.xlu0 %v14373_v40, %s10947_s11  ;;  %v14387_v40 = vld [vmem:[#allocation43_spill] sm:$0xff] }
0x2072   : > { %5026 = vrot.lane.b32.xlu1 %v14374_v2, %s10948_s12 }
0x2073   : > { %6851 = vrot.lane.b32.xlu0 %v13173_v1, %s10949_s13 }
0x2076   : > { %2581 = vrot.lane.b32.xlu1 %v14375_v22, %s10946_s29 }
0x2077   : > { %4406 = vrot.lane.b32.xlu0 %v14376_v61, %s10945_s27  ;;  %v7759_v39 = vpop.xlane.xlu1 %7758 }
0x2079   : > { %v7756_v52 = vpop.xlane.xlu0 %7755 }
0x207a   : > { %6231 = vrot.lane.b32.xlu1 %v13147_v41, %s10942_s23  ;;  %10844 = vrcp.f32 %v7756_v52 }
0x207b   : > { %5028 = vrot.lane.b32.xlu0 %v14377_v47, %s10948_s12  ;;  %10846 = vrcp.f32 %v7759_v39 }
0x207d   : > { %v7765_v5 = vpop.xlane.xlu1 %7764 }
0x207e   : > { %3485 = vrot.lane.b32.xlu1 %v14378_v3, %s10947_s11  ;;  %v7762_v1 = vpop.xlane.xlu0 %7761 }
0x207f   : > { %2583 = vrot.lane.b32.xlu0 %v14379_v36, %s10946_s29  ;;  %10848 = vrcp.f32 %v7762_v1 }
0x2080   : > { %10850 = vrcp.f32 %v7765_v5 }
0x2081   : > { %v7771_v59 = vpop.xlane.xlu1 %7770 }
0x2082   : > { %6853 = vrot.lane.b32.xlu1 %v13179_v62, %s10949_s13  ;;  %v7768_v58 = vpop.xlane.xlu0 %7767  ;;  %v14382_v62 = vld [vmem:[#allocation81_spill] sm:$0xff] }
0x2083   : > { %6233 = vrot.lane.b32.xlu0 %v13145_v34, %s10942_s23  ;;  %10852 = vrcp.f32 %v7768_v58 }
0x2084   : > { %10854 = vrcp.f32 %v7771_v59  ;;  %v14390_v59 = vld [vmem:[#allocation83_spill] sm:$0xff] }
0x2085   : > { %v7777_v41 = vpop.xlane.xlu1 %7776 }
0x2086   : > { %4408 = vrot.lane.b32.xlu1 %v14380_v32, %s10945_s27  ;;  %v7774_v29 = vpop.xlane.xlu0 %7773 }
0x2087   : > { %v10845_v13 = vpop.eup %10844  ;;  %3487 = vrot.lane.b32.xlu0 %v14381_v27, %s10947_s11  ;;  %10856 = vrcp.f32 %v7774_v29 }
0x2088   : > { %v7803_v17 = vmul.f32 %v10845_v13, %v13355_v16  ;;  %v14384_v16 = vld [vmem:[#allocation64_spill] sm:$0xff]  ;;  %10858 = vrcp.f32 %v7777_v41  ;;  %v14391_v13 = vld [vmem:[#allocation46_spill] sm:$0xff] }
0x2089   : > { %v7783_v15 = vpop.xlane.xlu1 %7782 }
0x208a   : > { %5312 = vrot.lane.b32.xlu1 %v14382_v62, %s10948_s12  ;;  %v7780_v38 = vpop.xlane.xlu0 %7779  ;;  %10274 = vmatprep.mubr.msk.f32.mxu0 %vm896_vm1, %v7803_v17 }
0x208b   : > { %6855 = vrot.lane.b32.xlu0 %v13177_v28, %s10949_s13  ;;  %v10847_v28 = vpop.eup %10846  ;;  %10860 = vrcp.f32 %v7780_v38 }
0x208c   : > { %v10849_v60 = vpop.eup %10848  ;;  %v7805_v9 = vmul.f32 %v10847_v28, %v13349_v35  ;;  %10862 = vrcp.f32 %v7783_v15 }
0x208d   : > { %v7789_v34 = vpop.xlane.xlu1 %7788  ;;  %v7807_v2 = vmul.f32 %v10849_v60, %v13363_v46 }
0x208e   : > { %2585 = vrot.lane.b32.xlu1 %v14383_v23, %s10946_s29  ;;  %v7786_v21 = vpop.xlane.xlu0 %7785  ;;  %v14393_v23 = vld [vmem:[#allocation82_spill] sm:$0xff] }
0x208f   : > { %4410 = vrot.lane.b32.xlu0 %v14384_v16, %s10945_s27  ;;  %10864 = vrcp.f32 %v7786_v21 }
0x2090   : > { %10866 = vrcp.f32 %v7789_v34 }
0x2091   : > { %v7795_v44 = vpop.xlane.xlu1 %7794 }
0x2092   : > { %6235 = vrot.lane.b32.xlu1 %v13151_v50, %s10942_s23  ;;  %v7792_v33 = vpop.xlane.xlu0 %7791  ;;  %v10851_v50 = vpop.eup %10850 }
0x2093   : > { %5314 = vrot.lane.b32.xlu0 %v14385_v57, %s10948_s12  ;;  %v10853_v22 = vpop.eup %10852  ;;  %v7809_v39 = vmul.f32 %v10851_v50, %v13361_v45  ;;  %10868 = vrcp.f32 %v7792_v33 }
0x2094   : > { %v10855_v46 = vpop.eup %10854  ;;  %v7811_v52 = vmul.f32 %v10853_v22, %v13373_v43  ;;  %10870 = vrcp.f32 %v7795_v44  ;;  %v14400_v22 = vld [vmem:[#allocation68_spill] sm:$0xff] }
0x2095   : > { %v10857_v47 = vpop.eup %10856  ;;  %v7813_v45 = vmul.f32 %v10855_v46, %v13371_v49 }
0x2096   : > { %3489 = vrot.lane.b32.xlu1 %v14386_v30, %s10947_s11  ;;  %v7798_v42 = vpop.xlane.xlu1 %7797  ;;  %v7835_v10 = vpop.permute.xlu0 %7834  ;;  %v7815_v1 = vmul.f32 %v10857_v47, %v13383_v53 }
0x2097   : > { %2587 = vrot.lane.b32.xlu0 %v14387_v40, %s10946_s29  ;;  %10272 = vmatprep.subr.mxu0 %v7835_v10  ;;  %v10859_v43 = vpop.eup %10858  ;;  %10872 = vrcp.f32 %v7798_v42  ;;  %v14399_v40 = vld [vmem:[#allocation48_spill] sm:$0xff] }
0x2098   : > { %10273 = vmatpush3.msra.mxu0 %v7835_v10  ;;  %v10861_v36 = vpop.eup %10860  ;;  %v7817_v49 = vmul.f32 %v10859_v43, %v13381_v6  ;;  %v14397_v10 = vld [vmem:[#allocation60_spill] sm:$0xff] }
0x2099   : > { %10275 = vmatmul.mubr.msk.f32.vlgmr.msra.gmra.mxu0 %vm896_vm1, %v7805_v9  ;;  %v10863_v53 = vpop.eup %10862  ;;  %v7819_v32 = vmul.f32 %v10861_v36, %v13391_v12  ;;  %v14398_v9 = vld [vmem:[#allocation12_spill] sm:$0xff] }
0x209a   : > { %7139 = vrot.lane.b32.xlu1 %v13223_v63, %s10949_s13  ;;  %v7801_v61 = vpop.xlane.xlu1 %7800  ;;  %10277 = vmatprep.mubr.msk.f32.mxu0 %vm896_vm1, %v7807_v2  ;;  %v2568_v35 = vpop.permute.xlu0 %2567  ;;  %v14388_v63 = vld [vmem:[#allocation67_spill] sm:$0xff]  ;;  %v7821_v6 = vmul.f32 %v10863_v53, %v13389_v37 }
0x209b   : > { %2615 = vst.msk [vmem:[#allocation2 + $0x8] sm:$0xff] %vm2613_vm4, %v2568_v35  ;;  %6237 = vrot.lane.b32.xlu0 %v13149_v4, %s10942_s23  ;;  %v14389_v4 = vld [vmem:[#allocation58_spill] sm:$0xff]  ;;  %10874 = vrcp.f32 %v7801_v61 }
0x209c   : > { %v10865_v29 = vpop.eup %10864 }
0x209d   : > { %10278 = vmatmul.mubr.msk.f32.gmra.mxu0 %vm896_vm1, %v7809_v39  ;;  %v10867_v12 = vpop.eup %10866  ;;  %v7823_v15 = vmul.f32 %v10865_v29, %v13399_v19  ;;  %v14402_v39 = vld [vmem:[#allocation63_spill] sm:$0xff] }
0x209e   : > { %4412 = vrot.lane.b32.xlu1 %v14388_v63, %s10945_s27  ;;  %v2566_v5 = vpop.permute.xlu1 %2565  ;;  %10280 = vmatprep.mubr.msk.f32.mxu0 %vm896_vm1, %v7811_v52  ;;  %v2905_v3 = vpop.permute.xlu0 %2904  ;;  %v7825_v37 = vmul.f32 %v10867_v12, %v13397_v48  ;;  %v14395_v48 = vld [vmem:[#allocation45_spill] sm:$0xff] }
0x209f   : > { %2614 = vst.msk [vmem:[#allocation2] sm:$0xff] %vm2613_vm4, %v2566_v5  ;;  %3491 = vrot.lane.b32.xlu0 %v14389_v4, %s10947_s11  ;;  %v14404_v5 = vld [vmem:[#allocation71_spill] sm:$0xff] }
0x20a0   : > { %2917 = vst.msk [vmem:[#allocation2] sm:$0xff] %vm2916_vm5, %v2905_v3  ;;  %v10869_v62 = vpop.eup %10868 }
0x20a1   : > { %10281 = vmatmul.mubr.msk.f32.gmra.mxu0 %vm896_vm1, %v7813_v45  ;;  %v10871_v19 = vpop.eup %10870  ;;  %v7827_v21 = vmul.f32 %v10869_v62, %v13407_v24  ;;  %v14406_v45 = vld [vmem:[#allocation15_spill] sm:$0xff] }
0x20a2   : > { %5316 = vrot.lane.b32.xlu1 %v14390_v59, %s10948_s12  ;;  %v2907_v58 = vpop.permute.xlu1 %2906  ;;  %10283 = vmatprep.mubr.msk.f32.mxu0 %vm896_vm1, %v7815_v1  ;;  %v4393_v41 = vpop.permute.xlu0 %4392  ;;  %v7829_v57 = vmul.f32 %v10871_v19, %v13405_v25  ;;  %v8133_v19 = vld [vmem:[%s14117_s5 + $0x30] sm:$0xff] }
0x20a3   : > { %2918 = vst.msk [vmem:[#allocation2 + $0x8] sm:$0xff] %vm2916_vm5, %v2907_v58  ;;  %7141 = vrot.lane.b32.xlu0 %v13221_v7, %s10949_s13  ;;  %v14392_v7 = vld [vmem:[#allocation66_spill] sm:$0xff] }
0x20a4   : > { %4441 = vst.msk [vmem:[#allocation2] sm:$0xff] %vm4440_vm6, %v4393_v41  ;;  %v10873_v16 = vpop.eup %10872  ;;  %v14408_v58 = vld [vmem:[#allocation70_spill] sm:$0xff] }
0x20a5   : > { %10284 = vmatmul.mubr.msk.f32.gmra.mxu0 %vm896_vm1, %v7817_v49  ;;  %v7831_v28 = vmul.f32 %v10873_v16, %v13413_v26  ;;  %v14396_v26 = vld [vmem:[#allocation69_spill] sm:$0xff] }
0x20a6   : > { %2589 = vrot.lane.b32.xlu1 %v14391_v13, %s10946_s29  ;;  %v4395_v27 = vpop.permute.xlu1 %4394  ;;  %10286 = vmatprep.mubr.msk.f32.mxu0 %vm896_vm1, %v7819_v32  ;;  %v4732_v17 = vpop.permute.xlu0 %4731  ;;  %v14409_v32 = vld [vmem:[#allocation13_spill] sm:$0xff] }
0x20a7   : > { %4442 = vst.msk [vmem:[#allocation2 + $0x8] sm:$0xff] %vm4440_vm6, %v4395_v27  ;;  %4414 = vrot.lane.b32.xlu0 %v14392_v7, %s10945_s27 }
0x20a8   : > { %4744 = vst.msk [vmem:[#allocation2] sm:$0xff] %vm4743_vm7, %v4732_v17  ;;  %v10875_v24 = vpop.eup %10874 }
0x20a9   : > { %10287 = vmatmul.mubr.msk.f32.gmra.mxu0 %vm896_vm1, %v7821_v6  ;;  %v7833_v25 = vmul.f32 %v10875_v24, %v13417_v8 }
0x20aa   : > { %6239 = vrot.lane.b32.xlu1 %v13155_v0, %s10942_s23  ;;  %v2570_v38 = vpop.permute.xlu1 %2569  ;;  %10289 = vmatprep.mubr.msk.f32.mxu0 %vm896_vm1, %v7823_v15  ;;  %v4734_v34 = vpop.permute.xlu0 %4733  ;;  %v14394_v0 = vld [vmem:[#allocation61_spill] sm:$0xff] }
0x20ab   : > { %2616 = vst.msk [vmem:[#allocation2 + $0x10] sm:$0xff] %vm2613_vm4, %v2570_v38  ;;  %5318 = vrot.lane.b32.xlu0 %v14393_v23, %s10948_s12 }
0x20ac   : > { %4745 = vst.msk [vmem:[#allocation2 + $0x8] sm:$0xff] %vm4743_vm7, %v4734_v34 }
0x20ad   : > { %10290 = vmatmul.mubr.msk.f32.gmra.mxu0 %vm896_vm1, %v7825_v37  ;;  %v8134_v37 = vld [vmem:[%s14117_s5 + $0x38] sm:$0xff] }
0x20ae   : > { %3775 = vrot.lane.b32.xlu1 %v14394_v0, %s10947_s11  ;;  %v6220_v44 = vpop.permute.xlu1 %6219  ;;  %10292 = vmatprep.mubr.msk.f32.mxu0 %vm896_vm1, %v7827_v21  ;;  %v2572_v33 = vpop.permute.xlu0 %2571  ;;  %v8132_v0 = vld [vmem:[%s14117_s5 + $0x28] sm:$0xff] }
0x20af   : > { %6268 = vst.msk [vmem:[#allocation2] sm:$0xff] %vm6267_vm8, %v6220_v44  ;;  %2591 = vrot.lane.b32.xlu0 %v14395_v48, %s10946_s29  ;;  %10298 = vmatprep.subr.mxu1 %v8134_v37 }
0x20b0   : > { %2617 = vst.msk [vmem:[#allocation2 + $0x18] sm:$0xff] %vm2613_vm4, %v2572_v33  ;;  %10299 = vmatpush3.msra.mxu1 %v8134_v37 }
0x20b1   : > { %10293 = vmatmul.mubr.msk.f32.gmra.mxu0 %vm896_vm1, %v7829_v57  ;;  %10300 = vmatprep.subr.mxu1 %v8133_v19 }
0x20b2   : > { %7143 = vrot.lane.b32.xlu1 %v13227_v54, %s10949_s13  ;;  %v2909_v60 = vpop.permute.xlu1 %2908  ;;  %10295 = vmatprep.mubr.msk.f32.mxu0 %vm896_vm1, %v7831_v28  ;;  %v6222_v30 = vpop.permute.xlu0 %6221 }
0x20b3   : > { %2919 = vst.msk [vmem:[#allocation2 + $0x10] sm:$0xff] %vm2916_vm5, %v2909_v60  ;;  %6241 = vrot.lane.b32.xlu0 %v13153_v18, %s10942_s23  ;;  %10301 = vmatpush3.msra.mxu1 %v8133_v19 }
0x20b4   : > { %6269 = vst.msk [vmem:[#allocation2 + $0x8] sm:$0xff] %vm6267_vm8, %v6222_v30  ;;  %10302 = vmatprep.subr.mxu1 %v8132_v0 }
0x20b5   : > { %10296 = vmatmul.mubr.msk.f32.gmra.mxu0 %vm896_vm1, %v7833_v25  ;;  %10303 = vmatpush3.msra.mxu1 %v8132_v0 }
0x20b6   : > { %4416 = vrot.lane.b32.xlu1 %v14396_v26, %s10945_s27  ;;  %v6559_v54 = vpop.permute.xlu1 %6558  ;;  %v2911_v42 = vpop.permute.xlu0 %2910 }
0x20b7   : > { %6571 = vst.msk [vmem:[#allocation2] sm:$0xff] %vm6570_vm9, %v6559_v54  ;;  %3777 = vrot.lane.b32.xlu0 %v14397_v10, %s10947_s11 }
0x20b8   : > { %2920 = vst.msk [vmem:[#allocation2 + $0x18] sm:$0xff] %vm2916_vm5, %v2911_v42 }
0x20ba   : > { %5602 = vrot.lane.b32.xlu1 %v14398_v9, %s10948_s12  ;;  %v4397_v18 = vpop.permute.xlu1 %4396  ;;  %v6561_v8 = vpop.permute.xlu0 %6560 }
0x20bb   : > { %4443 = vst.msk [vmem:[#allocation2 + $0x10] sm:$0xff] %vm4440_vm6, %v4397_v18  ;;  %7145 = vrot.lane.b32.xlu0 %v13225_v51, %s10949_s13  ;;  %v14401_v51 = vld [vmem:[#allocation6_spill] sm:$0xff] }
0x20bc   : > { %6572 = vst.msk [vmem:[#allocation2 + $0x8] sm:$0xff] %vm6570_vm9, %v6561_v8 }
0x20be   : > { %2593 = vrot.lane.b32.xlu1 %v14399_v40, %s10946_s29  ;;  %v4736_v50 = vpop.permute.xlu1 %4735  ;;  %v4399_v2 = vpop.permute.xlu0 %4398 }
0x20bf   : > { %4746 = vst.msk [vmem:[#allocation2 + $0x10] sm:$0xff] %vm4743_vm7, %v4736_v50  ;;  %4418 = vrot.lane.b32.xlu0 %v14400_v22, %s10945_s27 }
0x20c0   : > { %4444 = vst.msk [vmem:[#allocation2 + $0x18] sm:$0xff] %vm4440_vm6, %v4399_v2 }
0x20c2   : > { %6243 = vrot.lane.b32.xlu1 %v13159_v11, %s10942_s23  ;;  %v2574_v61 = vpop.permute.xlu1 %2573  ;;  %v4738_v35 = vpop.permute.xlu0 %4737  ;;  %v14403_v11 = vld [vmem:[#allocation47_spill] sm:$0xff] }
0x20c3   : > { %2618 = vst.msk [vmem:[#allocation2 + $0x20] sm:$0xff] %vm2613_vm4, %v2574_v61  ;;  %5604 = vrot.lane.b32.xlu0 %v14401_v51, %s10948_s12 }
0x20c4   : > { %4747 = vst.msk [vmem:[#allocation2 + $0x18] sm:$0xff] %vm4743_vm7, %v4738_v35 }
0x20c6   : > { %3779 = vrot.lane.b32.xlu1 %v14402_v39, %s10947_s11  ;;  %v6224_v46 = vpop.permute.xlu1 %6223  ;;  %v2576_v52 = vpop.permute.xlu0 %2575 }
0x20c7   : > { %6270 = vst.msk [vmem:[#allocation2 + $0x10] sm:$0xff] %vm6267_vm8, %v6224_v46  ;;  %2595 = vrot.lane.b32.xlu0 %v14403_v11, %s10946_s29 }
0x20c8   : > { %2619 = vst.msk [vmem:[#allocation2 + $0x28] sm:$0xff] %vm2613_vm4, %v2576_v52 }
0x20ca   : > { %7429 = vrot.lane.b32.xlu1 %v13303_v14, %s10949_s13  ;;  %v3196_v47 = vpop.permute.xlu1 %3195  ;;  %v6226_v63 = vpop.permute.xlu0 %6225  ;;  %v14405_v14 = vld [vmem:[#allocation62_spill] sm:$0xff] }
0x20cb   : > { %3207 = vst.msk [vmem:[#allocation2 + $0x20] sm:$0xff] %vm2916_vm5, %v3196_v47  ;;  %6245 = vrot.lane.b32.xlu0 %v13157_v20, %s10942_s23  ;;  %v14407_v20 = vld [vmem:[#allocation14_spill] sm:$0xff] }
0x20cc   : > { %6271 = vst.msk [vmem:[#allocation2 + $0x18] sm:$0xff] %vm6267_vm8, %v6226_v63 }
0x20ce   : > { %4420 = vrot.lane.b32.xlu1 %v14404_v5, %s10945_s27  ;;  %v6563_v3 = vpop.permute.xlu1 %6562  ;;  %v3198_v4 = vpop.permute.xlu0 %3197 }
0x20cf   : > { %6573 = vst.msk [vmem:[#allocation2 + $0x10] sm:$0xff] %vm6570_vm9, %v6563_v3  ;;  %3781 = vrot.lane.b32.xlu0 %v14405_v14, %s10947_s11 }
0x20d0   : > { %3208 = vst.msk [vmem:[#allocation2 + $0x28] sm:$0xff] %vm2916_vm5, %v3198_v4 }
0x20d2   : > { %5606 = vrot.lane.b32.xlu1 %v14406_v45, %s10948_s12  ;;  %v4401_v43 = vpop.permute.xlu1 %4400  ;;  %v6565_v1 = vpop.permute.xlu0 %6564 }
0x20d3   : > { %4445 = vst.msk [vmem:[#allocation2 + $0x20] sm:$0xff] %vm4440_vm6, %v4401_v43  ;;  %7431 = vrot.lane.b32.xlu0 %v13301_v31, %s10949_s13 }
0x20d4   : > { %6574 = vst.msk [vmem:[#allocation2 + $0x18] sm:$0xff] %vm6570_vm9, %v6565_v1 }
0x20d6   : > { %5608 = vrot.lane.b32.xlu1 %v14407_v20, %s10948_s12  ;;  %v5023_v36 = vpop.permute.xlu1 %5022  ;;  %v4403_v59 = vpop.permute.xlu0 %4402 }
0x20d7   : > { %5034 = vst.msk [vmem:[#allocation2 + $0x20] sm:$0xff] %vm4743_vm7, %v5023_v36  ;;  %4422 = vrot.lane.b32.xlu0 %v14408_v58, %s10945_s27 }
0x20d8   : > { %4446 = vst.msk [vmem:[#allocation2 + $0x28] sm:$0xff] %vm4440_vm6, %v4403_v59  ;;  %v8131_v59 = vld [vmem:[%s14117_s5 + $0x20] sm:$0xff] }
0x20d9   : > { %10304 = vmatprep.subr.mxu1 %v8131_v59 }
0x20da   : > { %6249 = vrot.lane.b32.xlu1 %v13161_v56, %s10942_s23  ;;  %v2578_v41 = vpop.permute.xlu1 %2577  ;;  %v5025_v49 = vpop.permute.xlu0 %5024  ;;  %10305 = vmatpush3.msra.mxu1 %v8131_v59 }
0x20db   : > { %2620 = vst.msk [vmem:[#allocation2 + $0x30] sm:$0xff] %vm2613_vm4, %v2578_v41  ;;  %6247 = vrot.lane.b32.xlu0 %v13163_v55, %s10942_s23 }
0x20dc   : > { %5035 = vst.msk [vmem:[#allocation2 + $0x28] sm:$0xff] %vm4743_vm7, %v5025_v49  ;;  %v8130_v49 = vld [vmem:[%s14117_s5 + $0x18] sm:$0xff] }
0x20dd   : > { %10306 = vmatprep.subr.mxu1 %v8130_v49 }
0x20de   : > { %v6228_v31 = vpop.permute.xlu1 %6227  ;;  %v2580_v53 = vpop.permute.xlu0 %2579  ;;  %10307 = vmatpush3.msra.mxu1 %v8130_v49 }
0x20df   : > { %6272 = vst.msk [vmem:[#allocation2 + $0x20] sm:$0xff] %vm6267_vm8, %v6228_v31  ;;  %7433 = vrot.lane.b32.xlu0 %v14409_v32, %s10949_s13  ;;  %v8129_v31 = vld [vmem:[%s14117_s5 + $0x10] sm:$0xff] }
0x20e0   : > { %2621 = vst.msk [vmem:[#allocation2 + $0x38] sm:$0xff] %vm2613_vm4, %v2580_v53  ;;  %10308 = vmatprep.subr.mxu1 %v8129_v31 }
0x20e1   : > { %10309 = vmatpush3.msra.mxu1 %v8129_v31 }
0x20e2   : > { %v3200_v29 = vpop.permute.xlu1 %3199  ;;  %v6230_v56 = vpop.permute.xlu0 %6229 }
0x20e3   : > { %3209 = vst.msk [vmem:[#allocation2 + $0x30] sm:$0xff] %vm2916_vm5, %v3200_v29  ;;  %v8128_v29 = vld [vmem:[%s14117_s5 + $0x8] sm:$0xff] }
0x20e4   : > { %6273 = vst.msk [vmem:[#allocation2 + $0x28] sm:$0xff] %vm6267_vm8, %v6230_v56  ;;  %10310 = vmatprep.subr.mxu1 %v8128_v29  ;;  %v8127_v56 = vld [vmem:[%s14117_s5] sm:$0xff] }
0x20e5   : > { %10311 = vmatpush3.msra.mxu1 %v8128_v29 }
0x20e6   : > { %v6850_v13 = vpop.permute.xlu1 %6849  ;;  %v3202_v27 = vpop.permute.xlu0 %3201  ;;  %10312 = vmatprep.subr.mxu1 %v8127_v56 }
0x20e7   : > { %6861 = vst.msk [vmem:[#allocation2 + $0x20] sm:$0xff] %vm6570_vm9, %v6850_v13  ;;  %10313 = vmatpush3.msra.mxu1 %v8127_v56 }
0x20e8   : > { %3210 = vst.msk [vmem:[#allocation2 + $0x38] sm:$0xff] %vm2916_vm5, %v3202_v27 }
0x20ea   : > { %v4405_v55 = vpop.permute.xlu1 %4404  ;;  %v6852_v17 = vpop.permute.xlu0 %6851 }
0x20eb   : > { %4447 = vst.msk [vmem:[#allocation2 + $0x30] sm:$0xff] %vm4440_vm6, %v4405_v55 }
0x20ec   : > { %6862 = vst.msk [vmem:[#allocation2 + $0x28] sm:$0xff] %vm6570_vm9, %v6852_v17 }
0x20ee   : > { %v5027_v7 = vpop.permute.xlu1 %5026  ;;  %v4407_v6 = vpop.permute.xlu0 %4406 }
0x20ef   : > { %5036 = vst.msk [vmem:[#allocation2 + $0x30] sm:$0xff] %vm4743_vm7, %v5027_v7 }
0x20f0   : > { %4448 = vst.msk [vmem:[#allocation2 + $0x38] sm:$0xff] %vm4440_vm6, %v4407_v6 }
0x20f2   : > { %v2582_v12 = vpop.permute.xlu1 %2581  ;;  %v5029_v15 = vpop.permute.xlu0 %5028 }
0x20f3   : > { %2622 = vst.msk [vmem:[#allocation2 + $0x40] sm:$0xff] %vm2613_vm4, %v2582_v12 }
0x20f4   : > { %5037 = vst.msk [vmem:[#allocation2 + $0x38] sm:$0xff] %vm4743_vm7, %v5029_v15 }
0x20f6   : > { %v6232_v62 = vpop.permute.xlu1 %6231  ;;  %v2584_v38 = vpop.permute.xlu0 %2583 }
0x20f7   : > { %6274 = vst.msk [vmem:[#allocation2 + $0x30] sm:$0xff] %vm6267_vm8, %v6232_v62 }
0x20f8   : > { %2623 = vst.msk [vmem:[#allocation2 + $0x48] sm:$0xff] %vm2613_vm4, %v2584_v38 }
0x20fa   : > { %v3486_v34 = vpop.permute.xlu1 %3485  ;;  %v6234_v23 = vpop.permute.xlu0 %6233 }
0x20fb   : > { %3497 = vst.msk [vmem:[#allocation2 + $0x40] sm:$0xff] %vm2916_vm5, %v3486_v34 }
0x20fc   : > { %6275 = vst.msk [vmem:[#allocation2 + $0x38] sm:$0xff] %vm6267_vm8, %v6234_v23 }
0x20fe   : > { %v6854_v21 = vpop.permute.xlu1 %6853  ;;  %v3488_v16 = vpop.permute.xlu0 %3487 }
0x20ff   : > { %6863 = vst.msk [vmem:[#allocation2 + $0x30] sm:$0xff] %vm6570_vm9, %v6854_v21 }
0x2100   : > { %3498 = vst.msk [vmem:[#allocation2 + $0x48] sm:$0xff] %vm2916_vm5, %v3488_v16 }
0x2102   : > { %v4409_v44 = vpop.permute.xlu1 %4408  ;;  %v6856_v33 = vpop.permute.xlu0 %6855 }
0x2103   : > { %4449 = vst.msk [vmem:[#allocation2 + $0x40] sm:$0xff] %vm4440_vm6, %v4409_v44 }
0x2104   : > { %6864 = vst.msk [vmem:[#allocation2 + $0x38] sm:$0xff] %vm6570_vm9, %v6856_v33  ;;  %v14410_v33 = vld [vmem:[#allocation17_spill] sm:$0xff] }
0x2106   : > { %v5313_v48 = vpop.permute.xlu1 %5312  ;;  %v4411_v57 = vpop.permute.xlu0 %4410 }
0x2107   : > { %5324 = vst.msk [vmem:[#allocation2 + $0x40] sm:$0xff] %vm4743_vm7, %v5313_v48 }
0x2108   : > { %4450 = vst.msk [vmem:[#allocation2 + $0x48] sm:$0xff] %vm4440_vm6, %v4411_v57 }
0x210a   : > { %v2586_v24 = vpop.permute.xlu1 %2585  ;;  %v5315_v28 = vpop.permute.xlu0 %5314 }
0x210b   : > { %2624 = vst.msk [vmem:[#allocation2 + $0x50] sm:$0xff] %vm2613_vm4, %v2586_v24 }
0x210c   : > { %5325 = vst.msk [vmem:[#allocation2 + $0x48] sm:$0xff] %vm4743_vm7, %v5315_v28 }
0x210e   : > { %v6236_v60 = vpop.permute.xlu1 %6235  ;;  %v2588_v30 = vpop.permute.xlu0 %2587 }
0x210f   : > { %6276 = vst.msk [vmem:[#allocation2 + $0x40] sm:$0xff] %vm6267_vm8, %v6236_v60 }
0x2110   : > { %2625 = vst.msk [vmem:[#allocation2 + $0x58] sm:$0xff] %vm2613_vm4, %v2588_v30 }
0x2112   : > { %v3490_v25 = vpop.permute.xlu1 %3489  ;;  %v6238_v26 = vpop.permute.xlu0 %6237 }
0x2113   : > { %3499 = vst.msk [vmem:[#allocation2 + $0x50] sm:$0xff] %vm2916_vm5, %v3490_v25 }
0x2114   : > { %6277 = vst.msk [vmem:[#allocation2 + $0x48] sm:$0xff] %vm6267_vm8, %v6238_v26 }
0x2116   : > { %v7140_v54 = vpop.permute.xlu1 %7139  ;;  %v3492_v42 = vpop.permute.xlu0 %3491 }
0x2117   : > { %7151 = vst.msk [vmem:[#allocation2 + $0x40] sm:$0xff] %vm6570_vm9, %v7140_v54 }
0x2118   : > { %3500 = vst.msk [vmem:[#allocation2 + $0x58] sm:$0xff] %vm2916_vm5, %v3492_v42 }
0x211a   : > { %v4413_v10 = vpop.permute.xlu1 %4412  ;;  %v7142_v9 = vpop.permute.xlu0 %7141 }
0x211b   : > { %4451 = vst.msk [vmem:[#allocation2 + $0x50] sm:$0xff] %vm4440_vm6, %v4413_v10 }
0x211c   : > { %7152 = vst.msk [vmem:[#allocation2 + $0x48] sm:$0xff] %vm6570_vm9, %v7142_v9 }
0x211e   : > { %v5317_v18 = vpop.permute.xlu1 %5316  ;;  %v4415_v8 = vpop.permute.xlu0 %4414 }
0x211f   : > { %5326 = vst.msk [vmem:[#allocation2 + $0x50] sm:$0xff] %vm4743_vm7, %v5317_v18 }
0x2120   : > { %4452 = vst.msk [vmem:[#allocation2 + $0x58] sm:$0xff] %vm4440_vm6, %v4415_v8 }
0x2122   : > { %v2590_v40 = vpop.permute.xlu1 %2589  ;;  %v5319_v50 = vpop.permute.xlu0 %5318 }
0x2123   : > { %2626 = vst.msk [vmem:[#allocation2 + $0x60] sm:$0xff] %vm2613_vm4, %v2590_v40 }
0x2124   : > { %5327 = vst.msk [vmem:[#allocation2 + $0x58] sm:$0xff] %vm4743_vm7, %v5319_v50 }
0x2126   : > { %v6240_v2 = vpop.permute.xlu1 %6239  ;;  %v2592_v22 = vpop.permute.xlu0 %2591 }
0x2127   : > { %6278 = vst.msk [vmem:[#allocation2 + $0x50] sm:$0xff] %vm6267_vm8, %v6240_v2 }
0x2128   : > { %2627 = vst.msk [vmem:[#allocation2 + $0x68] sm:$0xff] %vm2613_vm4, %v2592_v22 }
0x212a   : > { %v3776_v61 = vpop.permute.xlu1 %3775  ;;  %v6242_v35 = vpop.permute.xlu0 %6241 }
0x212b   : > { %3787 = vst.msk [vmem:[#allocation2 + $0x60] sm:$0xff] %vm2916_vm5, %v3776_v61 }
0x212c   : > { %6279 = vst.msk [vmem:[#allocation2 + $0x58] sm:$0xff] %vm6267_vm8, %v6242_v35 }
0x212e   : > { %v7144_v51 = vpop.permute.xlu1 %7143  ;;  %v3778_v39 = vpop.permute.xlu0 %3777 }
0x212f   : > { %7153 = vst.msk [vmem:[#allocation2 + $0x50] sm:$0xff] %vm6570_vm9, %v7144_v51 }
0x2130   : > { %3788 = vst.msk [vmem:[#allocation2 + $0x68] sm:$0xff] %vm2916_vm5, %v3778_v39 }
0x2132   : > { %v4417_v46 = vpop.permute.xlu1 %4416  ;;  %v7146_v52 = vpop.permute.xlu0 %7145 }
0x2133   : > { %4453 = vst.msk [vmem:[#allocation2 + $0x60] sm:$0xff] %vm4440_vm6, %v4417_v46 }
0x2134   : > { %7154 = vst.msk [vmem:[#allocation2 + $0x58] sm:$0xff] %vm6570_vm9, %v7146_v52 }
0x2136   : > { %v5603_v11 = vpop.permute.xlu1 %5602  ;;  %v4419_v47 = vpop.permute.xlu0 %4418 }
0x2137   : > { %5614 = vst.msk [vmem:[#allocation2 + $0x60] sm:$0xff] %vm4743_vm7, %v5603_v11 }
0x2138   : > { %4454 = vst.msk [vmem:[#allocation2 + $0x68] sm:$0xff] %vm4440_vm6, %v4419_v47 }
0x213a   : > { %v2594_v63 = vpop.permute.xlu1 %2593  ;;  %v5605_v5 = vpop.permute.xlu0 %5604 }
0x213b   : > { %2628 = vst.msk [vmem:[#allocation2 + $0x70] sm:$0xff] %vm2613_vm4, %v2594_v63 }
0x213c   : > { %5615 = vst.msk [vmem:[#allocation2 + $0x68] sm:$0xff] %vm4743_vm7, %v5605_v5 }
0x213e   : > { %v6244_v3 = vpop.permute.xlu1 %6243  ;;  %v2596_v4 = vpop.permute.xlu0 %2595 }
0x213f   : > { %6280 = vst.msk [vmem:[#allocation2 + $0x60] sm:$0xff] %vm6267_vm8, %v6244_v3 }
0x2140   : > { %2629 = vst.msk [vmem:[#allocation2 + $0x78] sm:$0xff] %vm2613_vm4, %v2596_v4 }
0x2142   : > { %v3780_v14 = vpop.permute.xlu1 %3779  ;;  %v6246_v45 = vpop.permute.xlu0 %6245 }
0x2143   : > { %3789 = vst.msk [vmem:[#allocation2 + $0x70] sm:$0xff] %vm2916_vm5, %v3780_v14 }
0x2144   : > { %6281 = vst.msk [vmem:[#allocation2 + $0x68] sm:$0xff] %vm6267_vm8, %v6246_v45 }
0x2146   : > { %v7430_v43 = vpop.permute.xlu1 %7429  ;;  %v3782_v1 = vpop.permute.xlu0 %3781 }
0x2147   : > { %7441 = vst.msk [vmem:[#allocation2 + $0x60] sm:$0xff] %vm6570_vm9, %v7430_v43 }
0x2148   : > { %3790 = vst.msk [vmem:[#allocation2 + $0x78] sm:$0xff] %vm2916_vm5, %v3782_v1  ;;  %v13818_v1 = vld [vmem:[%s14118_s6] ss:$0 sm:$0xff] }
0x214a   : > { %v4421_v20 = vpop.permute.xlu1 %4420  ;;  %v7432_v36 = vpop.permute.xlu0 %7431 }
0x214b   : > { %4455 = vst.msk [vmem:[#allocation2 + $0x70] sm:$0xff] %vm4440_vm6, %v4421_v20 }
0x214c   : > { %7442 = vst.msk [vmem:[#allocation2 + $0x68] sm:$0xff] %vm6570_vm9, %v7432_v36 }
0x214e   : > { %v5607_v58 = vpop.permute.xlu1 %5606  ;;  %v4423_v41 = vpop.permute.xlu0 %4422 }
0x214f   : > { %5616 = vst.msk [vmem:[#allocation2 + $0x70] sm:$0xff] %vm4743_vm7, %v5607_v58  ;;  %v10908_v58 = vld [vmem:[%s11037_s28 + $0x8] sm:$0xff] }
0x2150   : > { %4456 = vst.msk [vmem:[#allocation2 + $0x78] sm:$0xff] %vm4440_vm6, %v4423_v41 }
0x2152   : > { %v5609_v53 = vpop.permute.xlu1 %5608  ;;  %v6248_v32 = vpop.permute.xlu0 %6247 }
0x2153   : > { %5617 = vst.msk [vmem:[#allocation2 + $0x78] sm:$0xff] %vm4743_vm7, %v5609_v53  ;;  %v10909_v53 = vld [vmem:[%s11037_s28] sm:$0xff] }
0x2154   : > { %6282 = vst.msk [vmem:[#allocation2 + $0x70] sm:$0xff] %vm6267_vm8, %v6248_v32 }
0x2156   : > { %v6250_v13 = vpop.permute.xlu1 %6249  ;;  %v7434_v27 = vpop.permute.xlu0 %7433 }
0x2157   : > { %6283 = vst.msk [vmem:[#allocation2 + $0x78] sm:$0xff] %vm6267_vm8, %v6250_v13 }
0x2158   : > { %7443 = vst.msk [vmem:[#allocation2 + $0x70] sm:$0xff] %vm6570_vm9, %v7434_v27  ;;  %v10910_v27 = vld [vmem:[%s11037_s28 + $0x18] sm:$0xff] }
0x2159   : > { %v10276_v55 = vpop.f32.mrf.mxu0 }
0x215a   : > { %8048 = vrot.lane.b32.xlu0 %v10276_v55, %s10939_s20 }
0x215b   : > { %v7951_v17 = vpop.f32.mrf.mxu0 }
0x215c   : > { %8046 = vrot.lane.b32.xlu1 %v7951_v17, %s10939_s20 }
0x215d   : > { %v10279_v7 = vpop.f32.mrf.mxu0 }
0x215e   : > { %8052 = vrot.lane.b32.xlu0 %v10279_v7, %s10939_s20 }
0x215f   : > { %v7961_v6 = vpop.f32.mrf.mxu0 }
0x2160   : > { %8050 = vrot.lane.b32.xlu1 %v7961_v6, %s10939_s20 }
0x2161   : > { %v10282_v12 = vpop.f32.mrf.mxu0 }
0x2162   : > { %8056 = vrot.lane.b32.xlu0 %v10282_v12, %s10939_s20 }
0x2163   : > { %v7971_v15 = vpop.f32.mrf.mxu0 }
0x2164   : > { %8054 = vrot.lane.b32.xlu1 %v7971_v15, %s10939_s20 }
0x2165   : > { %v10285_v62 = vpop.f32.mrf.mxu0 }
0x2166   : > { %8060 = vrot.lane.b32.xlu0 %v10285_v62, %s10939_s20  ;;  %v10911_v62 = vld [vmem:[%s11037_s28 + $0x10] sm:$0xff] }
0x2167   : > { %v7981_v38 = vpop.f32.mrf.mxu0 }
0x2168   : > { %8058 = vrot.lane.b32.xlu1 %v7981_v38, %s10939_s20 }
0x2169   : > { %v10288_v34 = vpop.f32.mrf.mxu0 }
0x216a   : > { %8064 = vrot.lane.b32.xlu0 %v10288_v34, %s10939_s20 }
0x216b   : > { %v7991_v23 = vpop.f32.mrf.mxu0 }
0x216c   : > { %8062 = vrot.lane.b32.xlu1 %v7991_v23, %s10939_s20 }
0x216d   : > { %v10291_v37 = vpop.f32.mrf.mxu0 }
0x216e   : > { %8068 = vrot.lane.b32.xlu0 %v10291_v37, %s10939_s20 }
0x216f   : > { %v8001_v19 = vpop.f32.mrf.mxu0 }
0x2170   : > { %8066 = vrot.lane.b32.xlu1 %v8001_v19, %s10939_s20  ;;  %v10912_v19 = vld [vmem:[%s11037_s28 + $0x20] sm:$0xff] }
0x2171   : > { %v10294_v21 = vpop.f32.mrf.mxu0 }
0x2172   : > { %8072 = vrot.lane.b32.xlu0 %v10294_v21, %s10939_s20 }
0x2173   : > { %v8011_v16 = vpop.f32.mrf.mxu0 }
0x2174   : > { %8070 = vrot.lane.b32.xlu1 %v8011_v16, %s10939_s20  ;;  %v10913_v16 = vld [vmem:[%s11037_s28 + $0x28] sm:$0xff] }
0x2175   : > { %v10297_v0 = vpop.f32.mrf.mxu0 }
0x2177   : > { %v8021_v44 = vpop.f32.mrf.mxu0 }
0x2178   : > { %7435 = vrot.lane.b32.xlu1 %v14410_v33, %s10949_s13  ;;  %8074 = vrot.lane.b32.xlu0 %v8021_v44, %s10939_s20 }
0x217c   : > { %8076 = vrot.lane.b32.xlu1 %v10297_v0, %s10939_s20 }
0x21cc   : > { %v8049_v48 = vpop.permute.xlu0 %8048 }
0x21cd   : > { %8096 = vst.msk [vmem:[#allocation2 + $0x8] sm:$0xff] %vm8094_vm10, %v8049_v48 }
0x21ce   : > { %v8047_v57 = vpop.permute.xlu1 %8046 }
0x21cf   : > { %8095 = vst.msk [vmem:[#allocation2] sm:$0xff] %vm8094_vm10, %v8047_v57 }
0x21d0   : > { %v8053_v24 = vpop.permute.xlu0 %8052 }
0x21d1   : > { %8098 = vst.msk [vmem:[#allocation2 + $0x18] sm:$0xff] %vm8094_vm10, %v8053_v24 }
0x21d2   : > { %v8051_v28 = vpop.permute.xlu1 %8050 }
0x21d3   : > { %8097 = vst.msk [vmem:[#allocation2 + $0x10] sm:$0xff] %vm8094_vm10, %v8051_v28 }
0x21d4   : > { %v8057_v60 = vpop.permute.xlu0 %8056  ;;  %v8112_v26 = vld [vmem:[#allocation2 + $0x8] sm:$0xff] }
0x21d5   : > { %8100 = vst.msk [vmem:[#allocation2 + $0x28] sm:$0xff] %vm8094_vm10, %v8057_v60  ;;  %v10914_v60 = vld [vmem:[%s11037_s28 + $0x30] sm:$0xff] }
0x21d6   : > { %v8055_v30 = vpop.permute.xlu1 %8054  ;;  %v8111_v25 = vld [vmem:[#allocation2] sm:$0xff] }
0x21d7   : > { %8099 = vst.msk [vmem:[#allocation2 + $0x20] sm:$0xff] %vm8094_vm10, %v8055_v30  ;;  %10314 = vmatprep.mubr.msk.f32.mxu1 %vm8142_vm11, %v8111_v25 }
0x21d8   : > { %10315 = vmatmul.mubr.msk.f32.vlgmr.msra.gmra.mxu1 %vm8142_vm11, %v8112_v26  ;;  %v8061_v54 = vpop.permute.xlu0 %8060  ;;  %v8114_v9 = vld [vmem:[#allocation2 + $0x18] sm:$0xff] }
0x21d9   : > { %8102 = vst.msk [vmem:[#allocation2 + $0x38] sm:$0xff] %vm8094_vm10, %v8061_v54  ;;  %v10915_v54 = vld [vmem:[%s11037_s28 + $0x38] sm:$0xff] }
0x21da   : > { %v8059_v42 = vpop.permute.xlu1 %8058  ;;  %v8113_v10 = vld [vmem:[#allocation2 + $0x10] sm:$0xff] }
0x21db   : > { %8101 = vst.msk [vmem:[#allocation2 + $0x30] sm:$0xff] %vm8094_vm10, %v8059_v42  ;;  %10317 = vmatprep.mubr.msk.f32.mxu1 %vm8142_vm11, %v8113_v10 }
0x21dc   : > { %10318 = vmatmul.mubr.msk.f32.gmra.mxu1 %vm8142_vm11, %v8114_v9  ;;  %v8065_v18 = vpop.permute.xlu0 %8064  ;;  %v8116_v50 = vld [vmem:[#allocation2 + $0x28] sm:$0xff] }
0x21dd   : > { %8104 = vst.msk [vmem:[#allocation2 + $0x48] sm:$0xff] %vm8094_vm10, %v8065_v18 }
0x21de   : > { %v8063_v8 = vpop.permute.xlu1 %8062  ;;  %v8115_v40 = vld [vmem:[#allocation2 + $0x20] sm:$0xff] }
0x21df   : > { %8103 = vst.msk [vmem:[#allocation2 + $0x40] sm:$0xff] %vm8094_vm10, %v8063_v8  ;;  %10320 = vmatprep.mubr.msk.f32.mxu1 %vm8142_vm11, %v8115_v40  ;;  %v10916_v40 = vld [vmem:[%s11037_s28 + $0x40] sm:$0xff] }
0x21e0   : > { %10321 = vmatmul.mubr.msk.f32.gmra.mxu1 %vm8142_vm11, %v8116_v50  ;;  %v8069_v2 = vpop.permute.xlu0 %8068  ;;  %v8118_v35 = vld [vmem:[#allocation2 + $0x38] sm:$0xff] }
0x21e1   : > { %8106 = vst.msk [vmem:[#allocation2 + $0x58] sm:$0xff] %vm8094_vm10, %v8069_v2  ;;  %v10917_v2 = vld [vmem:[%s11037_s28 + $0x48] sm:$0xff] }
0x21e2   : > { %v8067_v22 = vpop.permute.xlu1 %8066  ;;  %v8117_v61 = vld [vmem:[#allocation2 + $0x30] sm:$0xff] }
0x21e3   : > { %8105 = vst.msk [vmem:[#allocation2 + $0x50] sm:$0xff] %vm8094_vm10, %v8067_v22  ;;  %10323 = vmatprep.mubr.msk.f32.mxu1 %vm8142_vm11, %v8117_v61 }
0x21e4   : > { %10324 = vmatmul.mubr.msk.f32.gmra.mxu1 %vm8142_vm11, %v8118_v35  ;;  %v8073_v51 = vpop.permute.xlu0 %8072  ;;  %v8120_v52 = vld [vmem:[#allocation2 + $0x48] sm:$0xff] }
0x21e5   : > { %8108 = vst.msk [vmem:[#allocation2 + $0x68] sm:$0xff] %vm8094_vm10, %v8073_v51 }
0x21e6   : > { %v8071_v39 = vpop.permute.xlu1 %8070  ;;  %v8119_v46 = vld [vmem:[#allocation2 + $0x40] sm:$0xff] }
0x21e7   : > { %8107 = vst.msk [vmem:[#allocation2 + $0x60] sm:$0xff] %vm8094_vm10, %v8071_v39  ;;  %10326 = vmatprep.mubr.msk.f32.mxu1 %vm8142_vm11, %v8119_v46 }
0x21e8   : > { %10327 = vmatmul.mubr.msk.f32.gmra.mxu1 %vm8142_vm11, %v8120_v52  ;;  %v8122_v5 = vld [vmem:[#allocation2 + $0x58] sm:$0xff] }
0x21ea   : > { %v7436_v11 = vpop.permute.xlu1 %7435  ;;  %v8075_v47 = vpop.permute.xlu0 %8074  ;;  %v8121_v63 = vld [vmem:[#allocation2 + $0x50] sm:$0xff] }
0x21eb   : > { %7444 = vst.msk [vmem:[#allocation2 + $0x78] sm:$0xff] %vm6570_vm9, %v7436_v11  ;;  %10329 = vmatprep.mubr.msk.f32.mxu1 %vm8142_vm11, %v8121_v63  ;;  %v10918_v11 = vld [vmem:[%s11037_s28 + $0x50] sm:$0xff] }
0x21ec   : > { %8109 = vst.msk [vmem:[#allocation2 + $0x70] sm:$0xff] %vm8094_vm10, %v8075_v47  ;;  %10330 = vmatmul.mubr.msk.f32.gmra.mxu1 %vm8142_vm11, %v8122_v5  ;;  %v8124_v14 = vld [vmem:[#allocation2 + $0x68] sm:$0xff] }
0x21ee   : > { %v8077_v3 = vpop.permute.xlu1 %8076  ;;  %v8123_v4 = vld [vmem:[#allocation2 + $0x60] sm:$0xff] }
0x21ef   : > { %8110 = vst.msk [vmem:[#allocation2 + $0x78] sm:$0xff] %vm8094_vm10, %v8077_v3  ;;  %10332 = vmatprep.mubr.msk.f32.mxu1 %vm8142_vm11, %v8123_v4  ;;  %v10919_v3 = vld [vmem:[%s11037_s28 + $0x58] sm:$0xff] }
0x21f0   : > { %10333 = vmatmul.mubr.msk.f32.gmra.mxu1 %vm8142_vm11, %v8124_v14 }
0x21f3   : > { %v8125_v45 = vld [vmem:[#allocation2 + $0x70] sm:$0xff] }
0x21f4   : > { %10335 = vmatprep.mubr.msk.f32.mxu1 %vm8142_vm11, %v8125_v45 }
0x21f6   : > { %v8126_v43 = vld [vmem:[#allocation2 + $0x78] sm:$0xff] }
0x21f7   : > { %10336 = vmatmul.mubr.msk.f32.gmra.mxu1 %vm8142_vm11, %v8126_v43 }
0x2298   : > { %v10316_v20 = vpop.f32.mrf.mxu1 }
0x2299   : > { %v8263_v36 = vadd.f32 %v10316_v20, %v13818_v1  ;;  %v10920_v20 = vld [vmem:[%s11037_s28 + $0x60] sm:$0xff] }
0x229a   : > { %v8257_v59 = vpop.f32.mrf.mxu1 }
0x229b   : > { %v13822_v41 = vadd.f32 %v10908_v58, %v8263_v36  ;;  %v8258_v49 = vadd.f32 %v13818_v1, %v8257_v59  ;;  %v10921_v59 = vld [vmem:[%s11037_s28 + $0x68] sm:$0xff] }
0x229c   : > { %v10319_v31 = vpop.f32.mrf.mxu1 }
0x229d   : > { %v13826_v32 = vadd.f32 %v10909_v53, %v8258_v49  ;;  %v8273_v29 = vadd.f32 %v10319_v31, %v13818_v1  ;;  %v8355_v56 = vsel %vm360_vm0, %v13822_v41, 0.0 }
0x229e   : > { %8356 = vadd.xlane.f32.xlu1 %v8355_v56  ;;  %v8267_v13 = vpop.f32.mrf.mxu1 }
0x229f   : > { %v13832_v55 = vadd.f32 %v10910_v27, %v8273_v29  ;;  %v8268_v17 = vadd.f32 %v13818_v1, %v8267_v13  ;;  %v8352_v7 = vsel %vm360_vm0, %v13826_v32, 0.0  ;;  %v10922_v27 = vld [vmem:[%s11037_s28 + $0x78] sm:$0xff] }
0x22a0   : > { %8353 = vadd.xlane.f32.xlu0 %v8352_v7  ;;  %v10322_v6 = vpop.f32.mrf.mxu1 }
0x22a1   : > { %v8283_v12 = vadd.f32 %v10322_v6, %v13818_v1  ;;  %v13839_v38 = vadd.f32 %v10911_v62, %v8268_v17  ;;  %v8361_v23 = vsel %vm360_vm0, %v13832_v55, 0.0  ;;  %v10923_v6 = vld [vmem:[%s11037_s28 + $0x70] sm:$0xff] }
0x22a2   : > { %v8277_v15 = vpop.f32.mrf.mxu1 }
0x22a3   : > { %v8278_v34 = vadd.f32 %v13818_v1, %v8277_v15  ;;  %v13848_v0 = vadd.f32 %v10913_v16, %v8283_v12  ;;  %v8358_v57 = vsel %vm360_vm0, %v13839_v38, 0.0 }
0x22a4   : > { %8362 = vadd.xlane.f32.xlu0 %v8361_v23  ;;  %v10325_v37 = vpop.f32.mrf.mxu1 }
0x22a5   : > { %v13845_v21 = vadd.f32 %v10912_v19, %v8278_v34  ;;  %v8293_v33 = vadd.f32 %v10325_v37, %v13818_v1  ;;  %v8367_v9 = vsel %vm360_vm0, %v13848_v0, 0.0 }
0x22a6   : > { %v8287_v44 = vpop.f32.mrf.mxu1 }
0x22a7   : > { %v8288_v48 = vadd.f32 %v13818_v1, %v8287_v44  ;;  %v8364_v24 = vsel %vm360_vm0, %v13845_v21, 0.0  ;;  %v13861_v42 = vadd.f32 %v10915_v54, %v8293_v33 }
0x22a8   : > { %8359 = vadd.xlane.f32.xlu0 %v8358_v57  ;;  %8365 = vadd.xlane.f32.xlu1 %v8364_v24  ;;  %v10328_v28 = vpop.f32.mrf.mxu1 }
0x22a9   : > { %v13857_v30 = vadd.f32 %v10914_v60, %v8288_v48  ;;  %v8303_v25 = vadd.f32 %v10328_v28, %v13818_v1  ;;  %v8373_v39 = vsel %vm360_vm0, %v13861_v42, 0.0 }
0x22aa   : > { %v8297_v26 = vpop.f32.mrf.mxu1 }
0x22ab   : > { %v8298_v10 = vadd.f32 %v13818_v1, %v8297_v26  ;;  %v8370_v18 = vsel %vm360_vm0, %v13857_v30, 0.0  ;;  %v13872_v22 = vadd.f32 %v10917_v2, %v8303_v25 }
0x22ac   : > { %8368 = vadd.xlane.f32.xlu0 %v8367_v9  ;;  %8371 = vadd.xlane.f32.xlu1 %v8370_v18  ;;  %v10331_v8 = vpop.f32.mrf.mxu1 }
0x22ad   : > { %v13869_v50 = vadd.f32 %v10916_v40, %v8298_v10  ;;  %v8313_v35 = vadd.f32 %v10331_v8, %v13818_v1  ;;  %v8379_v5 = vsel %vm360_vm0, %v13872_v22, 0.0 }
0x22ae   : > { %v8307_v61 = vpop.f32.mrf.mxu1 }
0x22af   : > { %v8308_v51 = vadd.f32 %v13818_v1, %v8307_v61  ;;  %v8376_v46 = vsel %vm360_vm0, %v13869_v50, 0.0  ;;  %v13886_v4 = vadd.f32 %v10919_v3, %v8313_v35 }
0x22b0   : > { %8374 = vadd.xlane.f32.xlu0 %v8373_v39  ;;  %8377 = vadd.xlane.f32.xlu1 %v8376_v46  ;;  %v10334_v52 = vpop.f32.mrf.mxu1 }
0x22b1   : > { %v13881_v47 = vadd.f32 %v10918_v11, %v8308_v51  ;;  %v8323_v14 = vadd.f32 %v10334_v52, %v13818_v1  ;;  %v8385_v31 = vsel %vm360_vm0, %v13886_v4, 0.0 }
0x22b2   : > { %v8317_v63 = vpop.f32.mrf.mxu1 }
0x22b3   : > { %v8318_v45 = vadd.f32 %v13818_v1, %v8317_v63  ;;  %v8382_v43 = vsel %vm360_vm0, %v13881_v47, 0.0  ;;  %v13896_v58 = vadd.f32 %v10921_v59, %v8323_v14 }
0x22b4   : > { %8380 = vadd.xlane.f32.xlu0 %v8379_v5  ;;  %8383 = vadd.xlane.f32.xlu1 %v8382_v43 }
0x22b5   : > { %v13893_v36 = vadd.f32 %v10920_v20, %v8318_v45  ;;  %v8391_v7 = vsel %vm360_vm0, %v13896_v58, 0.0 }
0x22b7   : > { %v10337_v49 = vpop.f32.mrf.mxu1  ;;  %v8388_v53 = vsel %vm360_vm0, %v13893_v36, 0.0 }
0x22b8   : > { %v8333_v29 = vadd.f32 %v10337_v49, %v13818_v1  ;;  %8386 = vadd.xlane.f32.xlu0 %v8385_v31  ;;  %8389 = vadd.xlane.f32.xlu1 %v8388_v53 }
0x22b9   : > { %v8327_v56 = vpop.f32.mrf.mxu1 }
0x22ba   : > { %v8328_v13 = vadd.f32 %v13818_v1, %v8327_v56  ;;  %v13905_v17 = vadd.f32 %v10922_v27, %v8333_v29 }
0x22bc   : > { %v13910_v12 = vadd.f32 %v10923_v6, %v8328_v13  ;;  %8392 = vadd.xlane.f32.xlu0 %v8391_v7  ;;  %v8397_v62 = vsel %vm360_vm0, %v13905_v17, 0.0 }
0x22be   : > { %v8394_v15 = vsel %vm360_vm0, %v13910_v12, 0.0 }
0x22bf   : > { %8395 = vadd.xlane.f32.xlu1 %v8394_v15 }
0x22c0   : > { %8398 = vadd.xlane.f32.xlu0 %v8397_v62 }
0x2327   : > { %v8357_v34 = vpop.xlane.xlu1 %8356 }
0x2328   : > { %v8402_v1 = vmul.f32 0.03125, %v8357_v34 }
0x2329   : > { %v8354_v23 = vpop.xlane.xlu0 %8353 }
0x232a   : > { %v13917_v37 = vsub.f32 %v13822_v41, %v8402_v1  ;;  %v8401_v19 = vmul.f32 0.03125, %v8354_v23 }
0x232c   : > { %v13920_v16 = vsub.f32 %v13826_v32, %v8401_v19  ;;  %v8434_v44 = vmul.f32 %v13917_v37, %v13917_v37 }
0x232d   : > { %v8363_v33 = vpop.xlane.xlu0 %8362 }
0x232e   : > { %v8404_v48 = vmul.f32 0.03125, %v8363_v33  ;;  %v8452_v57 = vsel %vm360_vm0, %v8434_v44, 0.0  ;;  %v8433_v24 = vmul.f32 %v13920_v16, %v13920_v16 }
0x232f   : > { %8453 = vadd.xlane.f32.xlu0 %v8452_v57 }
0x2330   : > { %v13928_v28 = vsub.f32 %v13832_v55, %v8404_v48  ;;  %v8449_v41 = vsel %vm360_vm0, %v8433_v24, 0.0 }
0x2331   : > { %v8366_v60 = vpop.xlane.xlu1 %8365  ;;  %8450 = vadd.xlane.f32.xlu1 %v8449_v41  ;;  %v8360_v32 = vpop.xlane.xlu0 %8359 }
0x2332   : > { %v8405_v25 = vmul.f32 0.03125, %v8366_v60  ;;  %v8403_v26 = vmul.f32 0.03125, %v8360_v32  ;;  %v8436_v54 = vmul.f32 %v13928_v28, %v13928_v28 }
0x2334   : > { %v13934_v10 = vsub.f32 %v13845_v21, %v8405_v25  ;;  %v13937_v9 = vsub.f32 %v13839_v38, %v8403_v26  ;;  %v8458_v18 = vsel %vm360_vm0, %v8436_v54, 0.0 }
0x2335   : > { %v8372_v55 = vpop.xlane.xlu1 %8371  ;;  %8459 = vadd.xlane.f32.xlu0 %v8458_v18  ;;  %v8369_v8 = vpop.xlane.xlu0 %8368 }
0x2336   : > { %v8407_v40 = vmul.f32 0.03125, %v8372_v55  ;;  %v8406_v2 = vmul.f32 0.03125, %v8369_v8  ;;  %v8435_v61 = vmul.f32 %v13937_v9, %v13937_v9  ;;  %v8437_v35 = vmul.f32 %v13934_v10, %v13934_v10 }
0x2338   : > { %v13945_v51 = vsub.f32 %v13857_v30, %v8407_v40  ;;  %v13948_v21 = vsub.f32 %v13848_v0, %v8406_v2  ;;  %v8455_v38 = vsel %vm360_vm0, %v8435_v61, 0.0  ;;  %v8461_v5 = vsel %vm360_vm0, %v8437_v35, 0.0 }
0x2339   : > { %v8378_v39 = vpop.xlane.xlu1 %8377  ;;  %8456 = vadd.xlane.f32.xlu1 %v8455_v38  ;;  %v8375_v46 = vpop.xlane.xlu0 %8374 }
0x233a   : > { %v8409_v52 = vmul.f32 0.03125, %v8378_v39  ;;  %v8408_v11 = vmul.f32 0.03125, %v8375_v46  ;;  %v8438_v63 = vmul.f32 %v13948_v21, %v13948_v21  ;;  %v8439_v14 = vmul.f32 %v13945_v51, %v13945_v51 }
0x233c   : > { %v13955_v3 = vsub.f32 %v13869_v50, %v8409_v52  ;;  %v13958_v30 = vsub.f32 %v13861_v42, %v8408_v11  ;;  %v8464_v0 = vsel %vm360_vm0, %v8438_v63, 0.0  ;;  %v8467_v53 = vsel %vm360_vm0, %v8439_v14, 0.0 }
0x233d   : > { %v8384_v45 = vpop.xlane.xlu1 %8383  ;;  %8462 = vadd.xlane.f32.xlu1 %v8461_v5  ;;  %8465 = vadd.xlane.f32.xlu0 %v8464_v0  ;;  %v8381_v43 = vpop.xlane.xlu0 %8380 }
0x233e   : > { %v8411_v20 = vmul.f32 0.03125, %v8384_v45  ;;  %v8410_v59 = vmul.f32 0.03125, %v8381_v43  ;;  %v8440_v49 = vmul.f32 %v13958_v30, %v13958_v30  ;;  %v8441_v50 = vmul.f32 %v13955_v3, %v13955_v3 }
0x2340   : > { %v13968_v42 = vsub.f32 %v13881_v47, %v8411_v20  ;;  %v13971_v31 = vsub.f32 %v13872_v22, %v8410_v59  ;;  %v8470_v29 = vsel %vm360_vm0, %v8440_v49, 0.0  ;;  %v8473_v15 = vsel %vm360_vm0, %v8441_v50, 0.0  ;;  %v14015_v49 = vld [vmem:[%s14119_s7] ss:$0 sm:$0xff] }
0x2341   : > { %v8390_v56 = vpop.xlane.xlu1 %8389  ;;  %8468 = vadd.xlane.f32.xlu1 %v8467_v53  ;;  %8471 = vadd.xlane.f32.xlu0 %v8470_v29  ;;  %v8387_v13 = vpop.xlane.xlu0 %8386 }
0x2342   : > { %v8413_v27 = vmul.f32 0.03125, %v8390_v56  ;;  %v8412_v7 = vmul.f32 0.03125, %v8387_v13  ;;  %v8442_v6 = vmul.f32 %v13971_v31, %v13971_v31  ;;  %v8443_v34 = vmul.f32 %v13968_v42, %v13968_v42 }
0x2344   : > { %v13979_v47 = vsub.f32 %v13893_v36, %v8413_v27  ;;  %v13982_v22 = vsub.f32 %v13886_v4, %v8412_v7  ;;  %v8476_v62 = vsel %vm360_vm0, %v8442_v6, 0.0  ;;  %v8479_v33 = vsel %vm360_vm0, %v8443_v34, 0.0  ;;  %v14021_v7 = vld [vmem:[%s14120_s8] ss:$0 sm:$0xff] }
0x2345   : > { %8474 = vadd.xlane.f32.xlu1 %v8473_v15  ;;  %8477 = vadd.xlane.f32.xlu0 %v8476_v62  ;;  %v8393_v1 = vpop.xlane.xlu0 %8392 }
0x2346   : > { %v8414_v23 = vmul.f32 0.03125, %v8393_v1  ;;  %v8444_v19 = vmul.f32 %v13982_v22, %v13982_v22  ;;  %v8445_v48 = vmul.f32 %v13979_v47, %v13979_v47 }
0x2348   : > { %v13990_v44 = vsub.f32 %v13896_v58, %v8414_v23  ;;  %v8396_v36 = vpop.xlane.xlu1 %8395  ;;  %v8482_v4 = vsel %vm360_vm0, %v8444_v19, 0.0  ;;  %v8485_v25 = vsel %vm360_vm0, %v8445_v48, 0.0 }
0x2349   : > { %v8415_v57 = vmul.f32 0.03125, %v8396_v36  ;;  %8480 = vadd.xlane.f32.xlu1 %v8479_v33  ;;  %8483 = vadd.xlane.f32.xlu0 %v8482_v4  ;;  %v8399_v24 = vpop.xlane.xlu0 %8398 }
0x234a   : > { %v8416_v41 = vmul.f32 0.03125, %v8399_v24  ;;  %v8446_v60 = vmul.f32 %v13990_v44, %v13990_v44 }
0x234b   : > { %v13999_v32 = vsub.f32 %v13910_v12, %v8415_v57 }
0x234c   : > { %v14002_v58 = vsub.f32 %v13905_v17, %v8416_v41  ;;  %v8488_v26 = vsel %vm360_vm0, %v8446_v60, 0.0 }
0x234d   : > { %8486 = vadd.xlane.f32.xlu1 %v8485_v25  ;;  %8489 = vadd.xlane.f32.xlu0 %v8488_v26  ;;  %v8447_v54 = vmul.f32 %v13999_v32, %v13999_v32 }
0x234e   : > { %v8448_v18 = vmul.f32 %v14002_v58, %v14002_v58 }
0x234f   : > { %v8491_v55 = vsel %vm360_vm0, %v8447_v54, 0.0 }
0x2350   : > { %v8494_v12 = vsel %vm360_vm0, %v8448_v18, 0.0 }
0x2351   : > { %8492 = vadd.xlane.f32.xlu1 %v8491_v55  ;;  %8495 = vadd.xlane.f32.xlu0 %v8494_v12 }
0x23b8   : > { %v8454_v17 = vpop.xlane.xlu0 %8453 }
0x23b9   : > { %v8498_v8 = vmul.f32 0.03125, %v8454_v17 }
0x23ba   : > { %v8451_v40 = vpop.xlane.xlu1 %8450 }
0x23bb   : > { %v8514_v2 = vadd.f32 1e-05, %v8498_v8  ;;  %v8497_v61 = vmul.f32 0.03125, %v8451_v40 }
0x23bd   : > { %10876 = vrsqrt.f32 %v8514_v2  ;;  %v8513_v35 = vadd.f32 1e-05, %v8497_v61 }
0x23be   : > { %v8460_v38 = vpop.xlane.xlu0 %8459 }
0x23bf   : > { %10878 = vrsqrt.f32 %v8513_v35  ;;  %v8500_v39 = vmul.f32 0.03125, %v8460_v38 }
0x23c1   : > { %v8516_v46 = vadd.f32 1e-05, %v8500_v39 }
0x23c2   : > { %v8457_v52 = vpop.xlane.xlu1 %8456 }
0x23c3   : > { %10880 = vrsqrt.f32 %v8516_v46  ;;  %v8499_v11 = vmul.f32 0.03125, %v8457_v52 }
0x23c5   : > { %v8515_v63 = vadd.f32 1e-05, %v8499_v11 }
0x23c6   : > { %v8463_v5 = vpop.xlane.xlu1 %8462  ;;  %v8466_v0 = vpop.xlane.xlu0 %8465 }
0x23c7   : > { %10882 = vrsqrt.f32 %v8515_v63  ;;  %v8501_v14 = vmul.f32 0.03125, %v8463_v5  ;;  %v8502_v45 = vmul.f32 0.03125, %v8466_v0 }
0x23c9   : > { %v8517_v43 = vadd.f32 1e-05, %v8501_v14  ;;  %v8518_v20 = vadd.f32 1e-05, %v8502_v45 }
0x23ca   : > { %v10877_v59 = vpop.eup %10876  ;;  %v8469_v50 = vpop.xlane.xlu1 %8468 }
0x23cb   : > { %v8472_v53 = vpop.xlane.xlu0 %8471  ;;  %v8546_v29 = vmul.f32 %v10877_v59, %v13917_v37  ;;  %10884 = vrsqrt.f32 %v8517_v43  ;;  %v8503_v56 = vmul.f32 0.03125, %v8469_v50 }
0x23cc   : > { %v8504_v13 = vmul.f32 0.03125, %v8472_v53  ;;  %v10879_v27 = vpop.eup %10878  ;;  %10886 = vrsqrt.f32 %v8518_v20 }
0x23cd   : > { %v8569_v6 = vmul.f32 %v14015_v49, %v8546_v29  ;;  %v8545_v15 = vmul.f32 %v10879_v27, %v13920_v16  ;;  %v8519_v62 = vadd.f32 1e-05, %v8503_v56 }
0x23ce   : > { %v8520_v34 = vadd.f32 1e-05, %v8504_v13  ;;  %v8475_v37 = vpop.xlane.xlu1 %8474 }
0x23cf   : > { %v8478_v1 = vpop.xlane.xlu0 %8477  ;;  %v8592_v23 = vadd.f32 %v14021_v7, %v8569_v6  ;;  %v8568_v19 = vmul.f32 %v14015_v49, %v8545_v15  ;;  %10888 = vrsqrt.f32 %v8519_v62  ;;  %v8505_v36 = vmul.f32 0.03125, %v8475_v37 }
0x23d0   : > { %v10881_v33 = vpop.eup %10880  ;;  %10890 = vrsqrt.f32 %v8520_v34  ;;  %v8506_v16 = vmul.f32 0.03125, %v8478_v1 }
0x23d1   : > { %8608 = vst.msk [vmem:[%s14030_s21 + $0x8] sm:$0xff] %vm360_vm0, %v8592_v23  ;;  %v8591_v4 = vadd.f32 %v14021_v7, %v8568_v19  ;;  %v8548_v48 = vmul.f32 %v10881_v33, %v13928_v28  ;;  %v8521_v57 = vadd.f32 1e-05, %v8505_v36 }
0x23d2   : > { %v8522_v24 = vadd.f32 1e-05, %v8506_v16  ;;  %v8481_v41 = vpop.xlane.xlu1 %8480 }
0x23d3   : > { %v8484_v60 = vpop.xlane.xlu0 %8483  ;;  %8607 = vst.msk [vmem:[%s14030_s21] sm:$0xff] %vm360_vm0, %v8591_v4  ;;  %v8571_v25 = vmul.f32 %v14015_v49, %v8548_v48  ;;  %10892 = vrsqrt.f32 %v8521_v57  ;;  %v8507_v26 = vmul.f32 0.03125, %v8481_v41 }
0x23d4   : > { %v8508_v54 = vmul.f32 0.03125, %v8484_v60  ;;  %v10883_v18 = vpop.eup %10882  ;;  %10894 = vrsqrt.f32 %v8522_v24 }
0x23d5   : > { %v8594_v55 = vadd.f32 %v14021_v7, %v8571_v25  ;;  %v8547_v12 = vmul.f32 %v10883_v18, %v13937_v9  ;;  %v8523_v17 = vadd.f32 1e-05, %v8507_v26 }
0x23d6   : > { %v8524_v28 = vadd.f32 1e-05, %v8508_v54  ;;  %v8487_v8 = vpop.xlane.xlu1 %8486 }
0x23d7   : > { %v8490_v40 = vpop.xlane.xlu0 %8489  ;;  %8610 = vst.msk [vmem:[%s14030_s21 + $0x18] sm:$0xff] %vm360_vm0, %v8594_v55  ;;  %v8570_v2 = vmul.f32 %v14015_v49, %v8547_v12  ;;  %10896 = vrsqrt.f32 %v8523_v17  ;;  %v8509_v61 = vmul.f32 0.03125, %v8487_v8 }
0x23d8   : > { %v8510_v35 = vmul.f32 0.03125, %v8490_v40  ;;  %v10885_v38 = vpop.eup %10884  ;;  %10898 = vrsqrt.f32 %v8524_v28 }
0x23d9   : > { %v10887_v39 = vpop.eup %10886  ;;  %v8593_v46 = vadd.f32 %v14021_v7, %v8570_v2  ;;  %v8549_v52 = vmul.f32 %v10885_v38, %v13934_v10  ;;  %v8525_v9 = vadd.f32 1e-05, %v8509_v61 }
0x23da   : > { %v8526_v11 = vadd.f32 1e-05, %v8510_v35  ;;  %v8550_v63 = vmul.f32 %v10887_v39, %v13948_v21  ;;  %v8493_v5 = vpop.xlane.xlu1 %8492 }
0x23db   : > { %v8496_v0 = vpop.xlane.xlu0 %8495  ;;  %8609 = vst.msk [vmem:[%s14030_s21 + $0x10] sm:$0xff] %vm360_vm0, %v8593_v46  ;;  %v8572_v14 = vmul.f32 %v14015_v49, %v8549_v52  ;;  %10900 = vrsqrt.f32 %v8525_v9  ;;  %v8511_v45 = vmul.f32 0.03125, %v8493_v5 }
0x23dc   : > { %v8512_v43 = vmul.f32 0.03125, %v8496_v0  ;;  %v10889_v20 = vpop.eup %10888  ;;  %v8573_v59 = vmul.f32 %v14015_v49, %v8550_v63  ;;  %10902 = vrsqrt.f32 %v8526_v11 }
0x23dd   : > { %v10891_v10 = vpop.eup %10890  ;;  %v8595_v50 = vadd.f32 %v14021_v7, %v8572_v14  ;;  %v8551_v21 = vmul.f32 %v10889_v20, %v13945_v51  ;;  %v8527_v53 = vadd.f32 1e-05, %v8511_v45 }
0x23de   : > { %v8528_v29 = vadd.f32 1e-05, %v8512_v43  ;;  %v8596_v56 = vadd.f32 %v14021_v7, %v8573_v59  ;;  %v8552_v13 = vmul.f32 %v10891_v10, %v13958_v30 }
0x23df   : > { %8611 = vst.msk [vmem:[%s14030_s21 + $0x20] sm:$0xff] %vm360_vm0, %v8595_v50  ;;  %v8574_v27 = vmul.f32 %v14015_v49, %v8551_v21  ;;  %10904 = vrsqrt.f32 %v8527_v53 }
0x23e0   : > { %v10893_v6 = vpop.eup %10892  ;;  %8612 = vst.msk [vmem:[%s14030_s21 + $0x28] sm:$0xff] %vm360_vm0, %v8596_v56  ;;  %v8575_v15 = vmul.f32 %v14015_v49, %v8552_v13  ;;  %10906 = vrsqrt.f32 %v8528_v29 }
0x23e1   : > { %v10895_v51 = vpop.eup %10894  ;;  %v8597_v62 = vadd.f32 %v14021_v7, %v8574_v27  ;;  %v8553_v34 = vmul.f32 %v10893_v6, %v13955_v3 }
0x23e2   : > { %v8598_v30 = vadd.f32 %v14021_v7, %v8575_v15  ;;  %v8554_v37 = vmul.f32 %v10895_v51, %v13971_v31 }
0x23e3   : > { %8613 = vst.msk [vmem:[%s14030_s21 + $0x30] sm:$0xff] %vm360_vm0, %v8597_v62  ;;  %v8576_v1 = vmul.f32 %v14015_v49, %v8553_v34 }
0x23e4   : > { %v10897_v23 = vpop.eup %10896  ;;  %8614 = vst.msk [vmem:[%s14030_s21 + $0x38] sm:$0xff] %vm360_vm0, %v8598_v30  ;;  %v8577_v19 = vmul.f32 %v14015_v49, %v8554_v37 }
0x23e5   : > { %v10899_v36 = vpop.eup %10898  ;;  %v8599_v33 = vadd.f32 %v14021_v7, %v8576_v1  ;;  %v8555_v3 = vmul.f32 %v10897_v23, %v13968_v42 }
0x23e6   : > { %v8600_v16 = vadd.f32 %v14021_v7, %v8577_v19  ;;  %v8556_v31 = vmul.f32 %v10899_v36, %v13982_v22 }
0x23e7   : > { %8615 = vst.msk [vmem:[%s14030_s21 + $0x40] sm:$0xff] %vm360_vm0, %v8599_v33  ;;  %v8578_v4 = vmul.f32 %v14015_v49, %v8555_v3 }
0x23e8   : > { %v10901_v48 = vpop.eup %10900  ;;  %8616 = vst.msk [vmem:[%s14030_s21 + $0x48] sm:$0xff] %vm360_vm0, %v8600_v16  ;;  %v8579_v57 = vmul.f32 %v14015_v49, %v8556_v31 }
0x23e9   : > { %v10903_v24 = vpop.eup %10902  ;;  %v8601_v41 = vadd.f32 %v14021_v7, %v8578_v4  ;;  %v8557_v42 = vmul.f32 %v10901_v48, %v13979_v47 }
0x23ea   : > { %v8602_v60 = vadd.f32 %v14021_v7, %v8579_v57  ;;  %v8558_v22 = vmul.f32 %v10903_v24, %v13990_v44 }
0x23eb   : > { %8617 = vst.msk [vmem:[%s14030_s21 + $0x50] sm:$0xff] %vm360_vm0, %v8601_v41  ;;  %v8580_v25 = vmul.f32 %v14015_v49, %v8557_v42 }
0x23ec   : > { %v10905_v26 = vpop.eup %10904  ;;  %8618 = vst.msk [vmem:[%s14030_s21 + $0x58] sm:$0xff] %vm360_vm0, %v8602_v60  ;;  %v8581_v54 = vmul.f32 %v14015_v49, %v8558_v22 }
0x23ed   : > { %v10907_v18 = vpop.eup %10906  ;;  %v8603_v55 = vadd.f32 %v14021_v7, %v8580_v25  ;;  %v8559_v47 = vmul.f32 %v10905_v26, %v13999_v32 }
0x23ee   : > { %v8604_v12 = vadd.f32 %v14021_v7, %v8581_v54  ;;  %v8560_v44 = vmul.f32 %v10907_v18, %v14002_v58 }
0x23ef   : > { %8619 = vst.msk [vmem:[%s14030_s21 + $0x60] sm:$0xff] %vm360_vm0, %v8603_v55  ;;  %v8582_v17 = vmul.f32 %v14015_v49, %v8559_v47 }
0x23f0   : > { %8620 = vst.msk [vmem:[%s14030_s21 + $0x68] sm:$0xff] %vm360_vm0, %v8604_v12  ;;  %v8583_v28 = vmul.f32 %v14015_v49, %v8560_v44 }
0x23f1   : > { %v8605_v8 = vadd.f32 %v14021_v7, %v8582_v17 }
0x23f2   : > { %v8606_v40 = vadd.f32 %v14021_v7, %v8583_v28 }
0x23f3   : > { %8621 = vst.msk [vmem:[%s14030_s21 + $0x70] sm:$0xff] %vm360_vm0, %v8605_v8 }
0x23f4   : > { %8622 = vst.msk [vmem:[%s14030_s21 + $0x78] sm:$0xff] %vm360_vm0, %v8606_v40 }
0x23f5 PF: > { %s19_s30 = sadd.s32 1, %s10930_s30  }
0x23f6   : > { %p16_p4 = scmp.ge.s32.totalorder %s19_s30, 4  }
0x23f8   :  { %18 = sbr.rel (!%p16_p4) target bundleno = 1 (0x1), region = 86 }

</bundles_post_ra>
